<compile_context>
chip_gen: v7x
topology: tpu7x:2x2x1
jax: 0.10.0
libtpu: 0.0.40
codegen_flags: <defaults>
</compile_context>

<pallas_src>
import math
import functools

import jax
import jax.numpy as jnp
from jax.experimental import pallas as pl
from jax.experimental.pallas import tpu as pltpu

VMEM = pltpu.MemorySpace.VMEM
_LN_EPS = 1e-5          # nn.LayerNorm default
_NEG = -1e9             # additive mask value


# ------------------------------ fused kernel -------------------------------

def _fused_forward_kernel(*refs, treedef, n_params, nhead):
    """Entire encoder-decoder-critic forward in one Mosaic kernel.

    refs layout:
      [param leaf Refs ...] +
      [src2d, tgt2d, pe_src, pe_tgt, tgt_mask(T,T),
       bsrc_col, bsrc_row, btgt_col, btgt_row, ttgt_col] +
      [out_ref]

    Token tensors are 2-D slabs (L*N, E) with row = l*N + n.  Per-batch
    attention separation is rebuilt in-kernel from O(L*N) id vectors (broadcast
    compares), and the (T, T) causal tgt mask is expanded gather-free with a
    tiny selection matmul -- no quadratic mask inputs, no 3-D reshapes, no
    transposes.
    """
    # Lazy weights: leaves stay as Refs; each is loaded with [...] at use site.
    p = jax.tree_util.tree_unflatten(treedef, list(refs[:n_params]))
    (src_ref, tgt_ref, pe_src_ref, pe_tgt_ref, tgt_mask_ref,
     bsrc_col_ref, bsrc_row_ref, btgt_col_ref, btgt_row_ref,
     ttgt_col_ref) = refs[n_params:-1]
    out_ref = refs[-1]

    MS, E = src_ref.shape                    # S*N, d_model
    MT = tgt_ref.shape[0]                    # T*N
    T = tgt_mask_ref.shape[0]
    D = E // nhead

    zero = jnp.float32(0.0)
    neg = jnp.float32(_NEG)

    # ------------------ additive masks rebuilt in-kernel -------------------
    def block_mask(q_ids, k_ids):            # (Mq,1) vs (1,Mk) -> (Mq, Mk)
        return jnp.where(q_ids == k_ids, zero, neg)

    bsrc_row = bsrc_row_ref[...]
    btgt_col = btgt_col_ref[...]
    enc_mask = block_mask(bsrc_col_ref[...], bsrc_row)           # (MS, MS)
    cross_mask = block_mask(btgt_col, bsrc_row)                  # (MT, MS)
    # Expand (T, T) tgt_mask -> (MT, MT) without gathers/reshapes:
    #   sel[i, t] = 1.0 iff token-id(row i) == t ;  big = sel @ tgt @ sel^T
    sel = (ttgt_col_ref[...] ==
           jax.lax.broadcasted_iota(jnp.int32, (MT, T), 1)).astype(jnp.float32)
    tm = jnp.dot(sel, tgt_mask_ref[...], preferred_element_type=jnp.float32)
    tgt_big = jax.lax.dot_general(tm, sel, (((1,), (1,)), ((), ())),
                                  preferred_element_type=jnp.float32)
    dec_self_mask = block_mask(btgt_col, btgt_row_ref[...]) + tgt_big

    # ----------------------------- building blocks -------------------------
    def layer_norm(y, g_ref, b_ref):
        mu = jnp.mean(y, axis=-1, keepdims=True)
        yc = y - mu
        var = jnp.mean(yc * yc, axis=-1, keepdims=True)
        return yc * jax.lax.rsqrt(var + _LN_EPS) * g_ref[...] + b_ref[...]

    def mha(q_in, kv_in, ap, mask, is_self):
        # 1/sqrt(D) is pre-folded into w_in[:, :E] / b_in[:, :E] in the wrapper.
        if is_self:
            # Fused QKV projection: one wide (E, 3E) matmul.
            qkv = jnp.dot(q_in, ap["w_in"][...],
                          preferred_element_type=jnp.float32) + ap["b_in"][...]
            q, k, v = qkv[:, :E], qkv[:, E:2 * E], qkv[:, 2 * E:]
        else:
            w_in = ap["w_in"][...]
            b_in = ap["b_in"][...]
            q = jnp.dot(q_in, w_in[:, :E],
                        preferred_element_type=jnp.float32) + b_in[:, :E]
            kv = jnp.dot(kv_in, w_in[:, E:],
                         preferred_element_type=jnp.float32) + b_in[:, E:]
            k, v = kv[:, :E], kv[:, E:]

        wo = ap["wo"][...]                       # (E, E); row-sliced per head
        out = None
        for h in range(nhead):                   # small static unroll
            sl = slice(h * D, (h + 1) * D)
            s = jax.lax.dot_general(q[:, sl], k[:, sl], (((1,), (1,)), ((), ())),
                                    preferred_element_type=jnp.float32) + mask
            s = s - jnp.max(s, axis=-1, keepdims=True)   # keep: safe for trained weights
            e = jnp.exp(s)
            prob = e * pl.reciprocal(jnp.sum(e, axis=-1, keepdims=True),
                                     approx=True)        # EUP, not VPU divide
            head = jnp.dot(prob, v[:, sl], preferred_element_type=jnp.float32)
            # concat-free output projection: accumulate head @ wo_rows
            part = jnp.dot(head, wo[sl, :], preferred_element_type=jnp.float32)
            out = part if out is None else out + part
        return out + ap["bo"][...]

    def ffn(x, lp):
        h = jnp.dot(x, lp["w1"][...],
                    preferred_element_type=jnp.float32) + lp["b1"][...]
        h = jnp.maximum(h, 0.0)
        return jnp.dot(h, lp["w2"][...],
                       preferred_element_type=jnp.float32) + lp["b2"][...]

    # ------------------------------- encoder -------------------------------
    x = src_ref[...] + pe_src_ref[...]                 # PE add fused in-kernel
    for lp in p["enc_layers"]:
        x = layer_norm(x + mha(x, x, lp["self_attn"], enc_mask, True),
                       lp["ln1_g"], lp["ln1_b"])
        x = layer_norm(x + ffn(x, lp), lp["ln2_g"], lp["ln2_b"])
    memory = layer_norm(x, p["enc_norm_g"], p["enc_norm_b"])

    # ------------------------------- decoder -------------------------------
    y = tgt_ref[...] + pe_tgt_ref[...]
    for lp in p["dec_layers"]:
        y = layer_norm(y + mha(y, y, lp["self_attn"], dec_self_mask, True),
                       lp["ln1_g"], lp["ln1_b"])
        y = layer_norm(y + mha(y, memory, lp["cross_attn"], cross_mask, False),
                       lp["ln2_g"], lp["ln2_b"])
        y = layer_norm(y + ffn(y, lp), lp["ln3_g"], lp["ln3_b"])
    out = layer_norm(y, p["dec_norm_g"], p["dec_norm_b"])

    # --------------- summed critic heads (sum folded in wrapper) -----------
    crit = jnp.dot(out, p["critic_w"][...],
                   preferred_element_type=jnp.float32) + p["critic_b"][...]
    out_ref[...] = crit.astype(out_ref.dtype)


# -------------------------------- wrapper -----------------------------------

def forward(params, src, tgt, tgt_mask, *, nhead):
    """src: (S, N, E), tgt: (T, N, E), tgt_mask: (T, T) additive -> (T, N)."""
    S, N, E = src.shape
    T = tgt.shape[0]
    D = E // nhead
    scale = 1.0 / math.sqrt(D)

    # Cheap host/XLA-side input prep (a few tiny O(L*N) ops per call).
    pe = params["pe"]                                        # (max_len, 1, E)
    pe_src = jnp.broadcast_to(pe[:S], (S, N, E)).reshape(S * N, E)
    pe_tgt = jnp.broadcast_to(pe[:T], (T, N, E)).reshape(T * N, E)
    src2d = src.reshape(S * N, E)                            # row = l*N + n
    tgt2d = tgt.reshape(T * N, E)

    # O(L*N) id vectors instead of O((L*N)^2) additive masks.
    bsrc = jnp.arange(S * N, dtype=jnp.int32) % N            # batch id per src row
    btgt = jnp.arange(T * N, dtype=jnp.int32) % N            # batch id per tgt row
    ttgt = jnp.arange(T * N, dtype=jnp.int32) // N           # token id per tgt row
    bsrc_col, bsrc_row = bsrc[:, None], bsrc[None, :]
    btgt_col, btgt_row = btgt[:, None], btgt[None, :]
    ttgt_col = ttgt[:, None]

    # Fold 1/sqrt(head_dim) into the q projection (weights + bias).
    def fold_attn(ap):
        return {**ap,
                "w_in": ap["w_in"].at[:, :E].multiply(scale),
                "b_in": ap["b_in"].at[:, :E].multiply(scale)}

    def fold_layer(lp):
        lp = dict(lp)
        lp["self_attn"] = fold_attn(lp["self_attn"])
        if "cross_attn" in lp:
            lp["cross_attn"] = fold_attn(lp["cross_attn"])
        return lp

    kparams = {
        "enc_layers": [fold_layer(l) for l in params["enc_layers"]],
        "dec_layers": [fold_layer(l) for l in params["dec_layers"]],
        "enc_norm_g": params["enc_norm_g"], "enc_norm_b": params["enc_norm_b"],
        "dec_norm_g": params["dec_norm_g"], "dec_norm_b": params["dec_norm_b"],
        # critic sum folded: sum_c (out @ w_c + b_c) == out @ sum_c(w_c) + sum_c(b_c)
        "critic_w": jnp.sum(params["critic_w"], axis=1, keepdims=True),   # (E, 1)
        "critic_b": params["critic_b"].sum().reshape(1, 1),               # (1, 1)
    }
    leaves, treedef = jax.tree_util.tree_flatten(kparams)
    n_params = len(leaves)

    kernel = functools.partial(_fused_forward_kernel, treedef=treedef,
                               n_params=n_params, nhead=nhead)
    data = (src2d, tgt2d, pe_src, pe_tgt, tgt_mask.astype(jnp.float32),
            bsrc_col, bsrc_row, btgt_col, btgt_row, ttgt_col)

    # TODO(synk): at realistic sizes, (a) add a leading grid axis over batch N
    # with dimension_semantics=("parallel",) to use both v7x TensorCores and
    # drop the batch-block masks, (b) cast matmul operands to bf16 on v6e/v7x,
    # and (c) re-budget VMEM against v7x's 64 MiB (set vmem_limit_bytes) /
    # switch to (tm, tn, tk) blocking; at this toy size everything fits with
    # huge margin and one program minimizes per-step overhead.
    out2d = pl.pallas_call(
        kernel,
        out_shape=jax.ShapeDtypeStruct((T * N, 1), jnp.float32),
        in_specs=[pl.BlockSpec(memory_space=VMEM)] * (n_params + len(data)),
        out_specs=pl.BlockSpec(memory_space=VMEM),
    )(*leaves, *data)
    return out2d.reshape(T, N)   # == sum_c critic_c(output).squeeze(-1)


# ----------------------------- parameter init -------------------------------

def _make_pe(max_len, d_model):
    position = jnp.arange(max_len, dtype=jnp.float32)[:, None]
    div_term = jnp.exp(jnp.arange(0, d_model, 2, dtype=jnp.float32)
                       * (-math.log(10000.0) / d_model))
    pe = jnp.zeros((max_len, d_model), dtype=jnp.float32)
    pe = pe.at[:, 0::2].set(jnp.sin(position * div_term))
    pe = pe.at[:, 1::2].set(jnp.cos(position * div_term))
    return pe[:, None, :]                           # (max_len, 1, d_model)


def _attn_params(key, E):
    k1, k2 = jax.random.split(key)
    return {"w_in": jax.random.normal(k1, (E, 3 * E), jnp.float32) * 0.05,
            "b_in": jnp.zeros((1, 3 * E), jnp.float32),
            "wo": jax.random.normal(k2, (E, E), jnp.float32) * 0.05,
            "bo": jnp.zeros((1, E), jnp.float32)}


def _enc_layer_params(key, E, dff):
    ks = jax.random.split(key, 3)
    return {"self_attn": _attn_params(ks[0], E),
            "w1": jax.random.normal(ks[1], (E, dff), jnp.float32) * 0.05,
            "b1": jnp.zeros((1, dff), jnp.float32),
            "w2": jax.random.normal(ks[2], (dff, E), jnp.float32) * 0.05,
            "b2": jnp.zeros((1, E), jnp.float32),
            "ln1_g": jnp.ones((1, E), jnp.float32), "ln1_b": jnp.zeros((1, E), jnp.float32),
            "ln2_g": jnp.ones((1, E), jnp.float32), "ln2_b": jnp.zeros((1, E), jnp.float32)}


def _dec_layer_params(key, E, dff):
    ks = jax.random.split(key, 2)
    p = _enc_layer_params(ks[0], E, dff)
    p["cross_attn"] = _attn_params(ks[1], E)
    p["ln3_g"] = jnp.ones((1, E), jnp.float32)
    p["ln3_b"] = jnp.zeros((1, E), jnp.float32)
    return p


def init_params(key, *, d_model, nhead, num_encoder_layers, num_decoder_layers,
                dim_feedforward, num_critics, max_len=64):
    ks = jax.random.split(key, num_encoder_layers + num_decoder_layers + 1)
    enc = [_enc_layer_params(ks[i], d_model, dim_feedforward)
           for i in range(num_encoder_layers)]
    dec = [_dec_layer_params(ks[num_encoder_layers + i], d_model, dim_feedforward)
           for i in range(num_decoder_layers)]
    # init_weights(): critic weight ~ U(-0.1, 0.1), bias = 0
    critic_w = jax.random.uniform(ks[-1], (d_model, num_critics), jnp.float32,
                                  minval=-0.1, maxval=0.1)
    critic_b = jnp.zeros((1, num_critics), jnp.float32)
    return {"pe": _make_pe(max_len, d_model),
            "enc_layers": enc, "dec_layers": dec,
            "enc_norm_g": jnp.ones((1, d_model), jnp.float32),
            "enc_norm_b": jnp.zeros((1, d_model), jnp.float32),
            "dec_norm_g": jnp.ones((1, d_model), jnp.float32),
            "dec_norm_b": jnp.zeros((1, d_model), jnp.float32),
            "critic_w": critic_w, "critic_b": critic_b}


# ---------------------------------- main -------------------------------------

if __name__ == "__main__":
    # small configuration consistent with the module (scaled-down d_model / layers)
    d_model = 32
    nhead = 4
    num_encoder_layers = 2
    num_decoder_layers = 2
    dim_feedforward = 64
    num_critics = 4
    S, T, N = 8, 8, 2            # src len, tgt len, batch

    root = jax.random.PRNGKey(0)
    kp, ksrc, ktgt = jax.random.split(root, 3)
    params = init_params(kp, d_model=d_model, nhead=nhead,
                         num_encoder_layers=num_encoder_layers,
                         num_decoder_layers=num_decoder_layers,
                         dim_feedforward=dim_feedforward,
                         num_critics=num_critics)

    src = jax.random.normal(ksrc, (S, N, d_model), jnp.float32)
    tgt = jax.random.normal(ktgt, (T, N, d_model), jnp.float32)
    # causal additive float mask (generate_square_subsequent_mask semantics)
    row = jnp.arange(T)[:, None]
    col = jnp.arange(T)[None, :]
    tgt_mask = jnp.where(col > row, _NEG, 0.0).astype(jnp.float32)

    # TODO(synk): dropout inside PositionalEncoding / encoder / decoder layers is
    # train-time only; this implements eval-mode (dropout = identity).
    fwd = jax.jit(functools.partial(forward, nhead=nhead))
    out = jax.block_until_ready(fwd(params, src, tgt, tgt_mask))
    assert out.shape == (T, N), out.shape
    print("KERNEL_OK")
</pallas_src>

<mosaic_0001>
module attributes {stable_mosaic.version = 11 : i64} {
  func.func @_fused_forward_kernel(%arg0: memref<1x1xf32, #tpu.memory_space<vmem>>, %arg1: memref<32x1xf32, #tpu.memory_space<vmem>>, %arg2: memref<1x64xf32, #tpu.memory_space<vmem>>, %arg3: memref<1x32xf32, #tpu.memory_space<vmem>>, %arg4: memref<1x96xf32, #tpu.memory_space<vmem>>, %arg5: memref<1x32xf32, #tpu.memory_space<vmem>>, %arg6: memref<32x96xf32, #tpu.memory_space<vmem>>, %arg7: memref<32x32xf32, #tpu.memory_space<vmem>>, %arg8: memref<1x32xf32, #tpu.memory_space<vmem>>, %arg9: memref<1x32xf32, #tpu.memory_space<vmem>>, %arg10: memref<1x32xf32, #tpu.memory_space<vmem>>, %arg11: memref<1x32xf32, #tpu.memory_space<vmem>>, %arg12: memref<1x32xf32, #tpu.memory_space<vmem>>, %arg13: memref<1x32xf32, #tpu.memory_space<vmem>>, %arg14: memref<1x96xf32, #tpu.memory_space<vmem>>, %arg15: memref<1x32xf32, #tpu.memory_space<vmem>>, %arg16: memref<32x96xf32, #tpu.memory_space<vmem>>, %arg17: memref<32x32xf32, #tpu.memory_space<vmem>>, %arg18: memref<32x64xf32, #tpu.memory_space<vmem>>, %arg19: memref<64x32xf32, #tpu.memory_space<vmem>>, %arg20: memref<1x64xf32, #tpu.memory_space<vmem>>, %arg21: memref<1x32xf32, #tpu.memory_space<vmem>>, %arg22: memref<1x96xf32, #tpu.memory_space<vmem>>, %arg23: memref<1x32xf32, #tpu.memory_space<vmem>>, %arg24: memref<32x96xf32, #tpu.memory_space<vmem>>, %arg25: memref<32x32xf32, #tpu.memory_space<vmem>>, %arg26: memref<1x32xf32, #tpu.memory_space<vmem>>, %arg27: memref<1x32xf32, #tpu.memory_space<vmem>>, %arg28: memref<1x32xf32, #tpu.memory_space<vmem>>, %arg29: memref<1x32xf32, #tpu.memory_space<vmem>>, %arg30: memref<1x32xf32, #tpu.memory_space<vmem>>, %arg31: memref<1x32xf32, #tpu.memory_space<vmem>>, %arg32: memref<1x96xf32, #tpu.memory_space<vmem>>, %arg33: memref<1x32xf32, #tpu.memory_space<vmem>>, %arg34: memref<32x96xf32, #tpu.memory_space<vmem>>, %arg35: memref<32x32xf32, #tpu.memory_space<vmem>>, %arg36: memref<32x64xf32, #tpu.memory_space<vmem>>, %arg37: memref<64x32xf32, #tpu.memory_space<vmem>>, %arg38: memref<1x32xf32, #tpu.memory_space<vmem>>, %arg39: memref<1x32xf32, #tpu.memory_space<vmem>>, %arg40: memref<1x64xf32, #tpu.memory_space<vmem>>, %arg41: memref<1x32xf32, #tpu.memory_space<vmem>>, %arg42: memref<1x32xf32, #tpu.memory_space<vmem>>, %arg43: memref<1x32xf32, #tpu.memory_space<vmem>>, %arg44: memref<1x32xf32, #tpu.memory_space<vmem>>, %arg45: memref<1x32xf32, #tpu.memory_space<vmem>>, %arg46: memref<1x96xf32, #tpu.memory_space<vmem>>, %arg47: memref<1x32xf32, #tpu.memory_space<vmem>>, %arg48: memref<32x96xf32, #tpu.memory_space<vmem>>, %arg49: memref<32x32xf32, #tpu.memory_space<vmem>>, %arg50: memref<32x64xf32, #tpu.memory_space<vmem>>, %arg51: memref<64x32xf32, #tpu.memory_space<vmem>>, %arg52: memref<1x64xf32, #tpu.memory_space<vmem>>, %arg53: memref<1x32xf32, #tpu.memory_space<vmem>>, %arg54: memref<1x32xf32, #tpu.memory_space<vmem>>, %arg55: memref<1x32xf32, #tpu.memory_space<vmem>>, %arg56: memref<1x32xf32, #tpu.memory_space<vmem>>, %arg57: memref<1x32xf32, #tpu.memory_space<vmem>>, %arg58: memref<1x96xf32, #tpu.memory_space<vmem>>, %arg59: memref<1x32xf32, #tpu.memory_space<vmem>>, %arg60: memref<32x96xf32, #tpu.memory_space<vmem>>, %arg61: memref<32x32xf32, #tpu.memory_space<vmem>>, %arg62: memref<32x64xf32, #tpu.memory_space<vmem>>, %arg63: memref<64x32xf32, #tpu.memory_space<vmem>>, %arg64: memref<1x32xf32, #tpu.memory_space<vmem>>, %arg65: memref<1x32xf32, #tpu.memory_space<vmem>>, %arg66: memref<16x32xf32, #tpu.memory_space<vmem>>, %arg67: memref<16x32xf32, #tpu.memory_space<vmem>>, %arg68: memref<16x32xf32, #tpu.memory_space<vmem>>, %arg69: memref<16x32xf32, #tpu.memory_space<vmem>>, %arg70: memref<8x8xf32, #tpu.memory_space<vmem>>, %arg71: memref<16x1xi32, #tpu.memory_space<vmem>>, %arg72: memref<1x16xi32, #tpu.memory_space<vmem>>, %arg73: memref<16x1xi32, #tpu.memory_space<vmem>>, %arg74: memref<1x16xi32, #tpu.memory_space<vmem>>, %arg75: memref<16x1xi32, #tpu.memory_space<vmem>>, %arg76: memref<16x1xf32, #tpu.memory_space<vmem>>) attributes {dimension_semantics = [], scalar_prefetch = 0 : i64, scratch_operands = 0 : i64, tpu.core_type = #tpu.core_type<tc>} {
    %c0 = arith.constant 0 : index
    %c0_0 = arith.constant 0 : index
    %0 = vector.load %arg72[%c0, %c0_0] : memref<1x16xi32, #tpu.memory_space<vmem>>, vector<1x16xi32>
    %c0_1 = arith.constant 0 : index
    %c0_2 = arith.constant 0 : index
    %1 = vector.load %arg73[%c0_1, %c0_2] : memref<16x1xi32, #tpu.memory_space<vmem>>, vector<16x1xi32>
    %c0_3 = arith.constant 0 : index
    %c0_4 = arith.constant 0 : index
    %2 = vector.load %arg71[%c0_3, %c0_4] : memref<16x1xi32, #tpu.memory_space<vmem>>, vector<16x1xi32>
    %3 = vector.broadcast %2 : vector<16x1xi32> to vector<16x16xi32>
    %4 = vector.broadcast %0 : vector<1x16xi32> to vector<16x16xi32>
    %5 = arith.cmpi eq, %3, %4 : vector<16x16xi32>
    %cst = arith.constant 0.000000e+00 : f32
    %cst_5 = arith.constant -1.000000e+09 : f32
    %6 = vector.broadcast %cst : f32 to vector<16x16xf32>
    %7 = vector.broadcast %cst_5 : f32 to vector<16x16xf32>
    %8 = arith.select %5, %6, %7 : vector<16x16xi1>, vector<16x16xf32>
    %9 = vector.broadcast %1 : vector<16x1xi32> to vector<16x16xi32>
    %10 = vector.broadcast %0 : vector<1x16xi32> to vector<16x16xi32>
    %11 = arith.cmpi eq, %9, %10 : vector<16x16xi32>
    %cst_6 = arith.constant 0.000000e+00 : f32
    %cst_7 = arith.constant -1.000000e+09 : f32
    %12 = vector.broadcast %cst_6 : f32 to vector<16x16xf32>
    %13 = vector.broadcast %cst_7 : f32 to vector<16x16xf32>
    %14 = arith.select %11, %12, %13 : vector<16x16xi1>, vector<16x16xf32>
    %c0_8 = arith.constant 0 : index
    %c0_9 = arith.constant 0 : index
    %15 = vector.load %arg75[%c0_8, %c0_9] : memref<16x1xi32, #tpu.memory_space<vmem>>, vector<16x1xi32>
    %16 = tpu.iota {dimensions = array<i32: 1>} : vector<16x8xi32>
    %17 = vector.broadcast %15 : vector<16x1xi32> to vector<16x8xi32>
    %18 = arith.cmpi eq, %17, %16 : vector<16x8xi32>
    %19 = arith.extui %18 : vector<16x8xi1> to vector<16x8xi32>
    %20 = arith.sitofp %19 : vector<16x8xi32> to vector<16x8xf32>
    %c0_10 = arith.constant 0 : index
    %c0_11 = arith.constant 0 : index
    %21 = vector.load %arg70[%c0_10, %c0_11] : memref<8x8xf32, #tpu.memory_space<vmem>>, vector<8x8xf32>
    %cst_12 = arith.constant dense<0.000000e+00> : vector<16x8xf32>
    %22 = tpu.matmul %20, %21, %cst_12 {dimension_numbers = #tpu.dot_dimension_numbers<[1], [0], [0], [1], [0, 0, 1, 1], [], []>} : vector<16x8xf32>, vector<8x8xf32>, vector<16x8xf32> -> vector<16x8xf32>
    %cst_13 = arith.constant dense<0.000000e+00> : vector<16x16xf32>
    %23 = tpu.matmul %22, %20, %cst_13 {dimension_numbers = #tpu.dot_dimension_numbers<[1], [1], [0], [0], [0, 0, 1, 0], [], []>} : vector<16x8xf32>, vector<16x8xf32>, vector<16x16xf32> -> vector<16x16xf32>
    %c0_14 = arith.constant 0 : index
    %c0_15 = arith.constant 0 : index
    %24 = vector.load %arg74[%c0_14, %c0_15] : memref<1x16xi32, #tpu.memory_space<vmem>>, vector<1x16xi32>
    %25 = vector.broadcast %1 : vector<16x1xi32> to vector<16x16xi32>
    %26 = vector.broadcast %24 : vector<1x16xi32> to vector<16x16xi32>
    %27 = arith.cmpi eq, %25, %26 : vector<16x16xi32>
    %cst_16 = arith.constant 0.000000e+00 : f32
    %cst_17 = arith.constant -1.000000e+09 : f32
    %28 = vector.broadcast %cst_16 : f32 to vector<16x16xf32>
    %29 = vector.broadcast %cst_17 : f32 to vector<16x16xf32>
    %30 = arith.select %27, %28, %29 : vector<16x16xi1>, vector<16x16xf32>
    %31 = arith.addf %30, %23 : vector<16x16xf32>
    %c0_18 = arith.constant 0 : index
    %c0_19 = arith.constant 0 : index
    %32 = vector.load %arg66[%c0_18, %c0_19] : memref<16x32xf32, #tpu.memory_space<vmem>>, vector<16x32xf32>
    %c0_20 = arith.constant 0 : index
    %c0_21 = arith.constant 0 : index
    %33 = vector.load %arg68[%c0_20, %c0_21] : memref<16x32xf32, #tpu.memory_space<vmem>>, vector<16x32xf32>
    %34 = arith.addf %32, %33 : vector<16x32xf32>
    %c0_22 = arith.constant 0 : index
    %c0_23 = arith.constant 0 : index
    %35 = vector.load %arg48[%c0_22, %c0_23] : memref<32x96xf32, #tpu.memory_space<vmem>>, vector<32x96xf32>
    %cst_24 = arith.constant dense<0.000000e+00> : vector<16x96xf32>
    %36 = tpu.matmul %34, %35, %cst_24 {dimension_numbers = #tpu.dot_dimension_numbers<[1], [0], [0], [1], [0, 0, 1, 1], [], []>} : vector<16x32xf32>, vector<32x96xf32>, vector<16x96xf32> -> vector<16x96xf32>
    %c0_25 = arith.constant 0 : index
    %c0_26 = arith.constant 0 : index
    %37 = vector.load %arg46[%c0_25, %c0_26] : memref<1x96xf32, #tpu.memory_space<vmem>>, vector<1x96xf32>
    %38 = vector.broadcast %37 : vector<1x96xf32> to vector<16x96xf32>
    %39 = arith.addf %36, %38 : vector<16x96xf32>
    %40 = vector.extract_strided_slice %39 {offsets = [0, 0], sizes = [16, 32], strides = [1, 1]} : vector<16x96xf32> to vector<16x32xf32>
    %41 = vector.extract_strided_slice %39 {offsets = [0, 32], sizes = [16, 32], strides = [1, 1]} : vector<16x96xf32> to vector<16x32xf32>
    %42 = vector.extract_strided_slice %39 {offsets = [0, 64], sizes = [16, 32], strides = [1, 1]} : vector<16x96xf32> to vector<16x32xf32>
    %c0_27 = arith.constant 0 : index
    %c0_28 = arith.constant 0 : index
    %43 = vector.load %arg49[%c0_27, %c0_28] : memref<32x32xf32, #tpu.memory_space<vmem>>, vector<32x32xf32>
    %44 = vector.extract_strided_slice %40 {offsets = [0, 0], sizes = [16, 8], strides = [1, 1]} : vector<16x32xf32> to vector<16x8xf32>
    %45 = vector.extract_strided_slice %41 {offsets = [0, 0], sizes = [16, 8], strides = [1, 1]} : vector<16x32xf32> to vector<16x8xf32>
    %cst_29 = arith.constant dense<0.000000e+00> : vector<16x16xf32>
    %46 = tpu.matmul %44, %45, %cst_29 {dimension_numbers = #tpu.dot_dimension_numbers<[1], [1], [0], [0], [0, 0, 1, 0], [], []>} : vector<16x8xf32>, vector<16x8xf32>, vector<16x16xf32> -> vector<16x16xf32>
    %47 = arith.addf %46, %8 : vector<16x16xf32>
    %cst_30 = arith.constant dense<0xFF800000> : vector<16xf32>
    %48 = vector.multi_reduction <maximumf>, %47, %cst_30 [1] : vector<16x16xf32> to vector<16xf32>
    %49 = vector.shape_cast %48 : vector<16xf32> to vector<16x1xf32>
    %50 = vector.broadcast %49 : vector<16x1xf32> to vector<16x16xf32>
    %51 = arith.subf %47, %50 : vector<16x16xf32>
    %52 = math.exp %51 : vector<16x16xf32>
    %cst_31 = arith.constant dense<0.000000e+00> : vector<16xf32>
    %53 = vector.multi_reduction <add>, %52, %cst_31 [1] : vector<16x16xf32> to vector<16xf32>
    %54 = vector.shape_cast %53 : vector<16xf32> to vector<16x1xf32>
    %55 = tpu.reciprocal %54 {approx = true} : vector<16x1xf32> -> vector<16x1xf32>
    %56 = vector.broadcast %55 : vector<16x1xf32> to vector<16x16xf32>
    %57 = arith.mulf %52, %56 : vector<16x16xf32>
    %58 = vector.extract_strided_slice %42 {offsets = [0, 0], sizes = [16, 8], strides = [1, 1]} : vector<16x32xf32> to vector<16x8xf32>
    %cst_32 = arith.constant dense<0.000000e+00> : vector<16x8xf32>
    %59 = tpu.matmul %57, %58, %cst_32 {dimension_numbers = #tpu.dot_dimension_numbers<[1], [0], [0], [1], [0, 0, 1, 1], [], []>} : vector<16x16xf32>, vector<16x8xf32>, vector<16x8xf32> -> vector<16x8xf32>
    %60 = vector.extract_strided_slice %43 {offsets = [0, 0], sizes = [8, 32], strides = [1, 1]} : vector<32x32xf32> to vector<8x32xf32>
    %cst_33 = arith.constant dense<0.000000e+00> : vector<16x32xf32>
    %61 = tpu.matmul %59, %60, %cst_33 {dimension_numbers = #tpu.dot_dimension_numbers<[1], [0], [0], [1], [0, 0, 1, 1], [], []>} : vector<16x8xf32>, vector<8x32xf32>, vector<16x32xf32> -> vector<16x32xf32>
    %62 = vector.extract_strided_slice %40 {offsets = [0, 8], sizes = [16, 8], strides = [1, 1]} : vector<16x32xf32> to vector<16x8xf32>
    %63 = vector.extract_strided_slice %41 {offsets = [0, 8], sizes = [16, 8], strides = [1, 1]} : vector<16x32xf32> to vector<16x8xf32>
    %cst_34 = arith.constant dense<0.000000e+00> : vector<16x16xf32>
    %64 = tpu.matmul %62, %63, %cst_34 {dimension_numbers = #tpu.dot_dimension_numbers<[1], [1], [0], [0], [0, 0, 1, 0], [], []>} : vector<16x8xf32>, vector<16x8xf32>, vector<16x16xf32> -> vector<16x16xf32>
    %65 = arith.addf %64, %8 : vector<16x16xf32>
    %cst_35 = arith.constant dense<0xFF800000> : vector<16xf32>
    %66 = vector.multi_reduction <maximumf>, %65, %cst_35 [1] : vector<16x16xf32> to vector<16xf32>
    %67 = vector.shape_cast %66 : vector<16xf32> to vector<16x1xf32>
    %68 = vector.broadcast %67 : vector<16x1xf32> to vector<16x16xf32>
    %69 = arith.subf %65, %68 : vector<16x16xf32>
    %70 = math.exp %69 : vector<16x16xf32>
    %cst_36 = arith.constant dense<0.000000e+00> : vector<16xf32>
    %71 = vector.multi_reduction <add>, %70, %cst_36 [1] : vector<16x16xf32> to vector<16xf32>
    %72 = vector.shape_cast %71 : vector<16xf32> to vector<16x1xf32>
    %73 = tpu.reciprocal %72 {approx = true} : vector<16x1xf32> -> vector<16x1xf32>
    %74 = vector.broadcast %73 : vector<16x1xf32> to vector<16x16xf32>
    %75 = arith.mulf %70, %74 : vector<16x16xf32>
    %76 = vector.extract_strided_slice %42 {offsets = [0, 8], sizes = [16, 8], strides = [1, 1]} : vector<16x32xf32> to vector<16x8xf32>
    %cst_37 = arith.constant dense<0.000000e+00> : vector<16x8xf32>
    %77 = tpu.matmul %75, %76, %cst_37 {dimension_numbers = #tpu.dot_dimension_numbers<[1], [0], [0], [1], [0, 0, 1, 1], [], []>} : vector<16x16xf32>, vector<16x8xf32>, vector<16x8xf32> -> vector<16x8xf32>
    %78 = vector.extract_strided_slice %43 {offsets = [8, 0], sizes = [8, 32], strides = [1, 1]} : vector<32x32xf32> to vector<8x32xf32>
    %cst_38 = arith.constant dense<0.000000e+00> : vector<16x32xf32>
    %79 = tpu.matmul %77, %78, %cst_38 {dimension_numbers = #tpu.dot_dimension_numbers<[1], [0], [0], [1], [0, 0, 1, 1], [], []>} : vector<16x8xf32>, vector<8x32xf32>, vector<16x32xf32> -> vector<16x32xf32>
    %80 = arith.addf %61, %79 : vector<16x32xf32>
    %81 = vector.extract_strided_slice %40 {offsets = [0, 16], sizes = [16, 8], strides = [1, 1]} : vector<16x32xf32> to vector<16x8xf32>
    %82 = vector.extract_strided_slice %41 {offsets = [0, 16], sizes = [16, 8], strides = [1, 1]} : vector<16x32xf32> to vector<16x8xf32>
    %cst_39 = arith.constant dense<0.000000e+00> : vector<16x16xf32>
    %83 = tpu.matmul %81, %82, %cst_39 {dimension_numbers = #tpu.dot_dimension_numbers<[1], [1], [0], [0], [0, 0, 1, 0], [], []>} : vector<16x8xf32>, vector<16x8xf32>, vector<16x16xf32> -> vector<16x16xf32>
    %84 = arith.addf %83, %8 : vector<16x16xf32>
    %cst_40 = arith.constant dense<0xFF800000> : vector<16xf32>
    %85 = vector.multi_reduction <maximumf>, %84, %cst_40 [1] : vector<16x16xf32> to vector<16xf32>
    %86 = vector.shape_cast %85 : vector<16xf32> to vector<16x1xf32>
    %87 = vector.broadcast %86 : vector<16x1xf32> to vector<16x16xf32>
    %88 = arith.subf %84, %87 : vector<16x16xf32>
    %89 = math.exp %88 : vector<16x16xf32>
    %cst_41 = arith.constant dense<0.000000e+00> : vector<16xf32>
    %90 = vector.multi_reduction <add>, %89, %cst_41 [1] : vector<16x16xf32> to vector<16xf32>
    %91 = vector.shape_cast %90 : vector<16xf32> to vector<16x1xf32>
    %92 = tpu.reciprocal %91 {approx = true} : vector<16x1xf32> -> vector<16x1xf32>
    %93 = vector.broadcast %92 : vector<16x1xf32> to vector<16x16xf32>
    %94 = arith.mulf %89, %93 : vector<16x16xf32>
    %95 = vector.extract_strided_slice %42 {offsets = [0, 16], sizes = [16, 8], strides = [1, 1]} : vector<16x32xf32> to vector<16x8xf32>
    %cst_42 = arith.constant dense<0.000000e+00> : vector<16x8xf32>
    %96 = tpu.matmul %94, %95, %cst_42 {dimension_numbers = #tpu.dot_dimension_numbers<[1], [0], [0], [1], [0, 0, 1, 1], [], []>} : vector<16x16xf32>, vector<16x8xf32>, vector<16x8xf32> -> vector<16x8xf32>
    %97 = vector.extract_strided_slice %43 {offsets = [16, 0], sizes = [8, 32], strides = [1, 1]} : vector<32x32xf32> to vector<8x32xf32>
    %cst_43 = arith.constant dense<0.000000e+00> : vector<16x32xf32>
    %98 = tpu.matmul %96, %97, %cst_43 {dimension_numbers = #tpu.dot_dimension_numbers<[1], [0], [0], [1], [0, 0, 1, 1], [], []>} : vector<16x8xf32>, vector<8x32xf32>, vector<16x32xf32> -> vector<16x32xf32>
    %99 = arith.addf %80, %98 : vector<16x32xf32>
    %100 = vector.extract_strided_slice %40 {offsets = [0, 24], sizes = [16, 8], strides = [1, 1]} : vector<16x32xf32> to vector<16x8xf32>
    %101 = vector.extract_strided_slice %41 {offsets = [0, 24], sizes = [16, 8], strides = [1, 1]} : vector<16x32xf32> to vector<16x8xf32>
    %cst_44 = arith.constant dense<0.000000e+00> : vector<16x16xf32>
    %102 = tpu.matmul %100, %101, %cst_44 {dimension_numbers = #tpu.dot_dimension_numbers<[1], [1], [0], [0], [0, 0, 1, 0], [], []>} : vector<16x8xf32>, vector<16x8xf32>, vector<16x16xf32> -> vector<16x16xf32>
    %103 = arith.addf %102, %8 : vector<16x16xf32>
    %cst_45 = arith.constant dense<0xFF800000> : vector<16xf32>
    %104 = vector.multi_reduction <maximumf>, %103, %cst_45 [1] : vector<16x16xf32> to vector<16xf32>
    %105 = vector.shape_cast %104 : vector<16xf32> to vector<16x1xf32>
    %106 = vector.broadcast %105 : vector<16x1xf32> to vector<16x16xf32>
    %107 = arith.subf %103, %106 : vector<16x16xf32>
    %108 = math.exp %107 : vector<16x16xf32>
    %cst_46 = arith.constant dense<0.000000e+00> : vector<16xf32>
    %109 = vector.multi_reduction <add>, %108, %cst_46 [1] : vector<16x16xf32> to vector<16xf32>
    %110 = vector.shape_cast %109 : vector<16xf32> to vector<16x1xf32>
    %111 = tpu.reciprocal %110 {approx = true} : vector<16x1xf32> -> vector<16x1xf32>
    %112 = vector.broadcast %111 : vector<16x1xf32> to vector<16x16xf32>
    %113 = arith.mulf %108, %112 : vector<16x16xf32>
    %114 = vector.extract_strided_slice %42 {offsets = [0, 24], sizes = [16, 8], strides = [1, 1]} : vector<16x32xf32> to vector<16x8xf32>
    %cst_47 = arith.constant dense<0.000000e+00> : vector<16x8xf32>
    %115 = tpu.matmul %113, %114, %cst_47 {dimension_numbers = #tpu.dot_dimension_numbers<[1], [0], [0], [1], [0, 0, 1, 1], [], []>} : vector<16x16xf32>, vector<16x8xf32>, vector<16x8xf32> -> vector<16x8xf32>
    %116 = vector.extract_strided_slice %43 {offsets = [24, 0], sizes = [8, 32], strides = [1, 1]} : vector<32x32xf32> to vector<8x32xf32>
    %cst_48 = arith.constant dense<0.000000e+00> : vector<16x32xf32>
    %117 = tpu.matmul %115, %116, %cst_48 {dimension_numbers = #tpu.dot_dimension_numbers<[1], [0], [0], [1], [0, 0, 1, 1], [], []>} : vector<16x8xf32>, vector<8x32xf32>, vector<16x32xf32> -> vector<16x32xf32>
    %118 = arith.addf %99, %117 : vector<16x32xf32>
    %c0_49 = arith.constant 0 : index
    %c0_50 = arith.constant 0 : index
    %119 = vector.load %arg47[%c0_49, %c0_50] : memref<1x32xf32, #tpu.memory_space<vmem>>, vector<1x32xf32>
    %120 = vector.broadcast %119 : vector<1x32xf32> to vector<16x32xf32>
    %121 = arith.addf %118, %120 : vector<16x32xf32>
    %122 = arith.addf %34, %121 : vector<16x32xf32>
    %cst_51 = arith.constant dense<0.000000e+00> : vector<16xf32>
    %123 = vector.multi_reduction <add>, %122, %cst_51 [1] : vector<16x32xf32> to vector<16xf32>
    %124 = vector.shape_cast %123 : vector<16xf32> to vector<16x1xf32>
    %cst_52 = arith.constant 3.200000e+01 : f32
    %125 = vector.broadcast %cst_52 : f32 to vector<16x1xf32>
    %126 = arith.divf %124, %125 : vector<16x1xf32>
    %127 = vector.broadcast %126 : vector<16x1xf32> to vector<16x32xf32>
    %128 = arith.subf %122, %127 : vector<16x32xf32>
    %129 = arith.mulf %128, %128 : vector<16x32xf32>
    %cst_53 = arith.constant dense<0.000000e+00> : vector<16xf32>
    %130 = vector.multi_reduction <add>, %129, %cst_53 [1] : vector<16x32xf32> to vector<16xf32>
    %131 = vector.shape_cast %130 : vector<16xf32> to vector<16x1xf32>
    %cst_54 = arith.constant 3.200000e+01 : f32
    %132 = vector.broadcast %cst_54 : f32 to vector<16x1xf32>
    %133 = arith.divf %131, %132 : vector<16x1xf32>
    %cst_55 = arith.constant 9.99999974E-6 : f32
    %134 = vector.broadcast %cst_55 : f32 to vector<16x1xf32>
    %135 = arith.addf %133, %134 : vector<16x1xf32>
    %136 = math.rsqrt %135 : vector<16x1xf32>
    %137 = vector.broadcast %136 : vector<16x1xf32> to vector<16x32xf32>
    %138 = arith.mulf %128, %137 : vector<16x32xf32>
    %c0_56 = arith.constant 0 : index
    %c0_57 = arith.constant 0 : index
    %139 = vector.load %arg43[%c0_56, %c0_57] : memref<1x32xf32, #tpu.memory_space<vmem>>, vector<1x32xf32>
    %140 = vector.broadcast %139 : vector<1x32xf32> to vector<16x32xf32>
    %141 = arith.mulf %138, %140 : vector<16x32xf32>
    %c0_58 = arith.constant 0 : index
    %c0_59 = arith.constant 0 : index
    %142 = vector.load %arg42[%c0_58, %c0_59] : memref<1x32xf32, #tpu.memory_space<vmem>>, vector<1x32xf32>
    %143 = vector.broadcast %142 : vector<1x32xf32> to vector<16x32xf32>
    %144 = arith.addf %141, %143 : vector<16x32xf32>
    %c0_60 = arith.constant 0 : index
    %c0_61 = arith.constant 0 : index
    %145 = vector.load %arg50[%c0_60, %c0_61] : memref<32x64xf32, #tpu.memory_space<vmem>>, vector<32x64xf32>
    %cst_62 = arith.constant dense<0.000000e+00> : vector<16x64xf32>
    %146 = tpu.matmul %144, %145, %cst_62 {dimension_numbers = #tpu.dot_dimension_numbers<[1], [0], [0], [1], [0, 0, 1, 1], [], []>} : vector<16x32xf32>, vector<32x64xf32>, vector<16x64xf32> -> vector<16x64xf32>
    %c0_63 = arith.constant 0 : index
    %c0_64 = arith.constant 0 : index
    %147 = vector.load %arg40[%c0_63, %c0_64] : memref<1x64xf32, #tpu.memory_space<vmem>>, vector<1x64xf32>
    %148 = vector.broadcast %147 : vector<1x64xf32> to vector<16x64xf32>
    %149 = arith.addf %146, %148 : vector<16x64xf32>
    %cst_65 = arith.constant 0.000000e+00 : f32
    %150 = vector.broadcast %cst_65 : f32 to vector<16x64xf32>
    %151 = arith.maximumf %149, %150 : vector<16x64xf32>
    %c0_66 = arith.constant 0 : index
    %c0_67 = arith.constant 0 : index
    %152 = vector.load %arg51[%c0_66, %c0_67] : memref<64x32xf32, #tpu.memory_space<vmem>>, vector<64x32xf32>
    %cst_68 = arith.constant dense<0.000000e+00> : vector<16x32xf32>
    %153 = tpu.matmul %151, %152, %cst_68 {dimension_numbers = #tpu.dot_dimension_numbers<[1], [0], [0], [1], [0, 0, 1, 1], [], []>} : vector<16x64xf32>, vector<64x32xf32>, vector<16x32xf32> -> vector<16x32xf32>
    %c0_69 = arith.constant 0 : index
    %c0_70 = arith.constant 0 : index
    %154 = vector.load %arg41[%c0_69, %c0_70] : memref<1x32xf32, #tpu.memory_space<vmem>>, vector<1x32xf32>
    %155 = vector.broadcast %154 : vector<1x32xf32> to vector<16x32xf32>
    %156 = arith.addf %153, %155 : vector<16x32xf32>
    %157 = arith.addf %144, %156 : vector<16x32xf32>
    %cst_71 = arith.constant dense<0.000000e+00> : vector<16xf32>
    %158 = vector.multi_reduction <add>, %157, %cst_71 [1] : vector<16x32xf32> to vector<16xf32>
    %159 = vector.shape_cast %158 : vector<16xf32> to vector<16x1xf32>
    %cst_72 = arith.constant 3.200000e+01 : f32
    %160 = vector.broadcast %cst_72 : f32 to vector<16x1xf32>
    %161 = arith.divf %159, %160 : vector<16x1xf32>
    %162 = vector.broadcast %161 : vector<16x1xf32> to vector<16x32xf32>
    %163 = arith.subf %157, %162 : vector<16x32xf32>
    %164 = arith.mulf %163, %163 : vector<16x32xf32>
    %cst_73 = arith.constant dense<0.000000e+00> : vector<16xf32>
    %165 = vector.multi_reduction <add>, %164, %cst_73 [1] : vector<16x32xf32> to vector<16xf32>
    %166 = vector.shape_cast %165 : vector<16xf32> to vector<16x1xf32>
    %cst_74 = arith.constant 3.200000e+01 : f32
    %167 = vector.broadcast %cst_74 : f32 to vector<16x1xf32>
    %168 = arith.divf %166, %167 : vector<16x1xf32>
    %cst_75 = arith.constant 9.99999974E-6 : f32
    %169 = vector.broadcast %cst_75 : f32 to vector<16x1xf32>
    %170 = arith.addf %168, %169 : vector<16x1xf32>
    %171 = math.rsqrt %170 : vector<16x1xf32>
    %172 = vector.broadcast %171 : vector<16x1xf32> to vector<16x32xf32>
    %173 = arith.mulf %163, %172 : vector<16x32xf32>
    %c0_76 = arith.constant 0 : index
    %c0_77 = arith.constant 0 : index
    %174 = vector.load %arg45[%c0_76, %c0_77] : memref<1x32xf32, #tpu.memory_space<vmem>>, vector<1x32xf32>
    %175 = vector.broadcast %174 : vector<1x32xf32> to vector<16x32xf32>
    %176 = arith.mulf %173, %175 : vector<16x32xf32>
    %c0_78 = arith.constant 0 : index
    %c0_79 = arith.constant 0 : index
    %177 = vector.load %arg44[%c0_78, %c0_79] : memref<1x32xf32, #tpu.memory_space<vmem>>, vector<1x32xf32>
    %178 = vector.broadcast %177 : vector<1x32xf32> to vector<16x32xf32>
    %179 = arith.addf %176, %178 : vector<16x32xf32>
    %c0_80 = arith.constant 0 : index
    %c0_81 = arith.constant 0 : index
    %180 = vector.load %arg60[%c0_80, %c0_81] : memref<32x96xf32, #tpu.memory_space<vmem>>, vector<32x96xf32>
    %cst_82 = arith.constant dense<0.000000e+00> : vector<16x96xf32>
    %181 = tpu.matmul %179, %180, %cst_82 {dimension_numbers = #tpu.dot_dimension_numbers<[1], [0], [0], [1], [0, 0, 1, 1], [], []>} : vector<16x32xf32>, vector<32x96xf32>, vector<16x96xf32> -> vector<16x96xf32>
    %c0_83 = arith.constant 0 : index
    %c0_84 = arith.constant 0 : index
    %182 = vector.load %arg58[%c0_83, %c0_84] : memref<1x96xf32, #tpu.memory_space<vmem>>, vector<1x96xf32>
    %183 = vector.broadcast %182 : vector<1x96xf32> to vector<16x96xf32>
    %184 = arith.addf %181, %183 : vector<16x96xf32>
    %185 = vector.extract_strided_slice %184 {offsets = [0, 0], sizes = [16, 32], strides = [1, 1]} : vector<16x96xf32> to vector<16x32xf32>
    %186 = vector.extract_strided_slice %184 {offsets = [0, 32], sizes = [16, 32], strides = [1, 1]} : vector<16x96xf32> to vector<16x32xf32>
    %187 = vector.extract_strided_slice %184 {offsets = [0, 64], sizes = [16, 32], strides = [1, 1]} : vector<16x96xf32> to vector<16x32xf32>
    %c0_85 = arith.constant 0 : index
    %c0_86 = arith.constant 0 : index
    %188 = vector.load %arg61[%c0_85, %c0_86] : memref<32x32xf32, #tpu.memory_space<vmem>>, vector<32x32xf32>
    %189 = vector.extract_strided_slice %185 {offsets = [0, 0], sizes = [16, 8], strides = [1, 1]} : vector<16x32xf32> to vector<16x8xf32>
    %190 = vector.extract_strided_slice %186 {offsets = [0, 0], sizes = [16, 8], strides = [1, 1]} : vector<16x32xf32> to vector<16x8xf32>
    %cst_87 = arith.constant dense<0.000000e+00> : vector<16x16xf32>
    %191 = tpu.matmul %189, %190, %cst_87 {dimension_numbers = #tpu.dot_dimension_numbers<[1], [1], [0], [0], [0, 0, 1, 0], [], []>} : vector<16x8xf32>, vector<16x8xf32>, vector<16x16xf32> -> vector<16x16xf32>
    %192 = arith.addf %191, %8 : vector<16x16xf32>
    %cst_88 = arith.constant dense<0xFF800000> : vector<16xf32>
    %193 = vector.multi_reduction <maximumf>, %192, %cst_88 [1] : vector<16x16xf32> to vector<16xf32>
    %194 = vector.shape_cast %193 : vector<16xf32> to vector<16x1xf32>
    %195 = vector.broadcast %194 : vector<16x1xf32> to vector<16x16xf32>
    %196 = arith.subf %192, %195 : vector<16x16xf32>
    %197 = math.exp %196 : vector<16x16xf32>
    %cst_89 = arith.constant dense<0.000000e+00> : vector<16xf32>
    %198 = vector.multi_reduction <add>, %197, %cst_89 [1] : vector<16x16xf32> to vector<16xf32>
    %199 = vector.shape_cast %198 : vector<16xf32> to vector<16x1xf32>
    %200 = tpu.reciprocal %199 {approx = true} : vector<16x1xf32> -> vector<16x1xf32>
    %201 = vector.broadcast %200 : vector<16x1xf32> to vector<16x16xf32>
    %202 = arith.mulf %197, %201 : vector<16x16xf32>
    %203 = vector.extract_strided_slice %187 {offsets = [0, 0], sizes = [16, 8], strides = [1, 1]} : vector<16x32xf32> to vector<16x8xf32>
    %cst_90 = arith.constant dense<0.000000e+00> : vector<16x8xf32>
    %204 = tpu.matmul %202, %203, %cst_90 {dimension_numbers = #tpu.dot_dimension_numbers<[1], [0], [0], [1], [0, 0, 1, 1], [], []>} : vector<16x16xf32>, vector<16x8xf32>, vector<16x8xf32> -> vector<16x8xf32>
    %205 = vector.extract_strided_slice %188 {offsets = [0, 0], sizes = [8, 32], strides = [1, 1]} : vector<32x32xf32> to vector<8x32xf32>
    %cst_91 = arith.constant dense<0.000000e+00> : vector<16x32xf32>
    %206 = tpu.matmul %204, %205, %cst_91 {dimension_numbers = #tpu.dot_dimension_numbers<[1], [0], [0], [1], [0, 0, 1, 1], [], []>} : vector<16x8xf32>, vector<8x32xf32>, vector<16x32xf32> -> vector<16x32xf32>
    %207 = vector.extract_strided_slice %185 {offsets = [0, 8], sizes = [16, 8], strides = [1, 1]} : vector<16x32xf32> to vector<16x8xf32>
    %208 = vector.extract_strided_slice %186 {offsets = [0, 8], sizes = [16, 8], strides = [1, 1]} : vector<16x32xf32> to vector<16x8xf32>
    %cst_92 = arith.constant dense<0.000000e+00> : vector<16x16xf32>
    %209 = tpu.matmul %207, %208, %cst_92 {dimension_numbers = #tpu.dot_dimension_numbers<[1], [1], [0], [0], [0, 0, 1, 0], [], []>} : vector<16x8xf32>, vector<16x8xf32>, vector<16x16xf32> -> vector<16x16xf32>
    %210 = arith.addf %209, %8 : vector<16x16xf32>
    %cst_93 = arith.constant dense<0xFF800000> : vector<16xf32>
    %211 = vector.multi_reduction <maximumf>, %210, %cst_93 [1] : vector<16x16xf32> to vector<16xf32>
    %212 = vector.shape_cast %211 : vector<16xf32> to vector<16x1xf32>
    %213 = vector.broadcast %212 : vector<16x1xf32> to vector<16x16xf32>
    %214 = arith.subf %210, %213 : vector<16x16xf32>
    %215 = math.exp %214 : vector<16x16xf32>
    %cst_94 = arith.constant dense<0.000000e+00> : vector<16xf32>
    %216 = vector.multi_reduction <add>, %215, %cst_94 [1] : vector<16x16xf32> to vector<16xf32>
    %217 = vector.shape_cast %216 : vector<16xf32> to vector<16x1xf32>
    %218 = tpu.reciprocal %217 {approx = true} : vector<16x1xf32> -> vector<16x1xf32>
    %219 = vector.broadcast %218 : vector<16x1xf32> to vector<16x16xf32>
    %220 = arith.mulf %215, %219 : vector<16x16xf32>
    %221 = vector.extract_strided_slice %187 {offsets = [0, 8], sizes = [16, 8], strides = [1, 1]} : vector<16x32xf32> to vector<16x8xf32>
    %cst_95 = arith.constant dense<0.000000e+00> : vector<16x8xf32>
    %222 = tpu.matmul %220, %221, %cst_95 {dimension_numbers = #tpu.dot_dimension_numbers<[1], [0], [0], [1], [0, 0, 1, 1], [], []>} : vector<16x16xf32>, vector<16x8xf32>, vector<16x8xf32> -> vector<16x8xf32>
    %223 = vector.extract_strided_slice %188 {offsets = [8, 0], sizes = [8, 32], strides = [1, 1]} : vector<32x32xf32> to vector<8x32xf32>
    %cst_96 = arith.constant dense<0.000000e+00> : vector<16x32xf32>
    %224 = tpu.matmul %222, %223, %cst_96 {dimension_numbers = #tpu.dot_dimension_numbers<[1], [0], [0], [1], [0, 0, 1, 1], [], []>} : vector<16x8xf32>, vector<8x32xf32>, vector<16x32xf32> -> vector<16x32xf32>
    %225 = arith.addf %206, %224 : vector<16x32xf32>
    %226 = vector.extract_strided_slice %185 {offsets = [0, 16], sizes = [16, 8], strides = [1, 1]} : vector<16x32xf32> to vector<16x8xf32>
    %227 = vector.extract_strided_slice %186 {offsets = [0, 16], sizes = [16, 8], strides = [1, 1]} : vector<16x32xf32> to vector<16x8xf32>
    %cst_97 = arith.constant dense<0.000000e+00> : vector<16x16xf32>
    %228 = tpu.matmul %226, %227, %cst_97 {dimension_numbers = #tpu.dot_dimension_numbers<[1], [1], [0], [0], [0, 0, 1, 0], [], []>} : vector<16x8xf32>, vector<16x8xf32>, vector<16x16xf32> -> vector<16x16xf32>
    %229 = arith.addf %228, %8 : vector<16x16xf32>
    %cst_98 = arith.constant dense<0xFF800000> : vector<16xf32>
    %230 = vector.multi_reduction <maximumf>, %229, %cst_98 [1] : vector<16x16xf32> to vector<16xf32>
    %231 = vector.shape_cast %230 : vector<16xf32> to vector<16x1xf32>
    %232 = vector.broadcast %231 : vector<16x1xf32> to vector<16x16xf32>
    %233 = arith.subf %229, %232 : vector<16x16xf32>
    %234 = math.exp %233 : vector<16x16xf32>
    %cst_99 = arith.constant dense<0.000000e+00> : vector<16xf32>
    %235 = vector.multi_reduction <add>, %234, %cst_99 [1] : vector<16x16xf32> to vector<16xf32>
    %236 = vector.shape_cast %235 : vector<16xf32> to vector<16x1xf32>
    %237 = tpu.reciprocal %236 {approx = true} : vector<16x1xf32> -> vector<16x1xf32>
    %238 = vector.broadcast %237 : vector<16x1xf32> to vector<16x16xf32>
    %239 = arith.mulf %234, %238 : vector<16x16xf32>
    %240 = vector.extract_strided_slice %187 {offsets = [0, 16], sizes = [16, 8], strides = [1, 1]} : vector<16x32xf32> to vector<16x8xf32>
    %cst_100 = arith.constant dense<0.000000e+00> : vector<16x8xf32>
    %241 = tpu.matmul %239, %240, %cst_100 {dimension_numbers = #tpu.dot_dimension_numbers<[1], [0], [0], [1], [0, 0, 1, 1], [], []>} : vector<16x16xf32>, vector<16x8xf32>, vector<16x8xf32> -> vector<16x8xf32>
    %242 = vector.extract_strided_slice %188 {offsets = [16, 0], sizes = [8, 32], strides = [1, 1]} : vector<32x32xf32> to vector<8x32xf32>
    %cst_101 = arith.constant dense<0.000000e+00> : vector<16x32xf32>
    %243 = tpu.matmul %241, %242, %cst_101 {dimension_numbers = #tpu.dot_dimension_numbers<[1], [0], [0], [1], [0, 0, 1, 1], [], []>} : vector<16x8xf32>, vector<8x32xf32>, vector<16x32xf32> -> vector<16x32xf32>
    %244 = arith.addf %225, %243 : vector<16x32xf32>
    %245 = vector.extract_strided_slice %185 {offsets = [0, 24], sizes = [16, 8], strides = [1, 1]} : vector<16x32xf32> to vector<16x8xf32>
    %246 = vector.extract_strided_slice %186 {offsets = [0, 24], sizes = [16, 8], strides = [1, 1]} : vector<16x32xf32> to vector<16x8xf32>
    %cst_102 = arith.constant dense<0.000000e+00> : vector<16x16xf32>
    %247 = tpu.matmul %245, %246, %cst_102 {dimension_numbers = #tpu.dot_dimension_numbers<[1], [1], [0], [0], [0, 0, 1, 0], [], []>} : vector<16x8xf32>, vector<16x8xf32>, vector<16x16xf32> -> vector<16x16xf32>
    %248 = arith.addf %247, %8 : vector<16x16xf32>
    %cst_103 = arith.constant dense<0xFF800000> : vector<16xf32>
    %249 = vector.multi_reduction <maximumf>, %248, %cst_103 [1] : vector<16x16xf32> to vector<16xf32>
    %250 = vector.shape_cast %249 : vector<16xf32> to vector<16x1xf32>
    %251 = vector.broadcast %250 : vector<16x1xf32> to vector<16x16xf32>
    %252 = arith.subf %248, %251 : vector<16x16xf32>
    %253 = math.exp %252 : vector<16x16xf32>
    %cst_104 = arith.constant dense<0.000000e+00> : vector<16xf32>
    %254 = vector.multi_reduction <add>, %253, %cst_104 [1] : vector<16x16xf32> to vector<16xf32>
    %255 = vector.shape_cast %254 : vector<16xf32> to vector<16x1xf32>
    %256 = tpu.reciprocal %255 {approx = true} : vector<16x1xf32> -> vector<16x1xf32>
    %257 = vector.broadcast %256 : vector<16x1xf32> to vector<16x16xf32>
    %258 = arith.mulf %253, %257 : vector<16x16xf32>
    %259 = vector.extract_strided_slice %187 {offsets = [0, 24], sizes = [16, 8], strides = [1, 1]} : vector<16x32xf32> to vector<16x8xf32>
    %cst_105 = arith.constant dense<0.000000e+00> : vector<16x8xf32>
    %260 = tpu.matmul %258, %259, %cst_105 {dimension_numbers = #tpu.dot_dimension_numbers<[1], [0], [0], [1], [0, 0, 1, 1], [], []>} : vector<16x16xf32>, vector<16x8xf32>, vector<16x8xf32> -> vector<16x8xf32>
    %261 = vector.extract_strided_slice %188 {offsets = [24, 0], sizes = [8, 32], strides = [1, 1]} : vector<32x32xf32> to vector<8x32xf32>
    %cst_106 = arith.constant dense<0.000000e+00> : vector<16x32xf32>
    %262 = tpu.matmul %260, %261, %cst_106 {dimension_numbers = #tpu.dot_dimension_numbers<[1], [0], [0], [1], [0, 0, 1, 1], [], []>} : vector<16x8xf32>, vector<8x32xf32>, vector<16x32xf32> -> vector<16x32xf32>
    %263 = arith.addf %244, %262 : vector<16x32xf32>
    %c0_107 = arith.constant 0 : index
    %c0_108 = arith.constant 0 : index
    %264 = vector.load %arg59[%c0_107, %c0_108] : memref<1x32xf32, #tpu.memory_space<vmem>>, vector<1x32xf32>
    %265 = vector.broadcast %264 : vector<1x32xf32> to vector<16x32xf32>
    %266 = arith.addf %263, %265 : vector<16x32xf32>
    %267 = arith.addf %179, %266 : vector<16x32xf32>
    %cst_109 = arith.constant dense<0.000000e+00> : vector<16xf32>
    %268 = vector.multi_reduction <add>, %267, %cst_109 [1] : vector<16x32xf32> to vector<16xf32>
    %269 = vector.shape_cast %268 : vector<16xf32> to vector<16x1xf32>
    %cst_110 = arith.constant 3.200000e+01 : f32
    %270 = vector.broadcast %cst_110 : f32 to vector<16x1xf32>
    %271 = arith.divf %269, %270 : vector<16x1xf32>
    %272 = vector.broadcast %271 : vector<16x1xf32> to vector<16x32xf32>
    %273 = arith.subf %267, %272 : vector<16x32xf32>
    %274 = arith.mulf %273, %273 : vector<16x32xf32>
    %cst_111 = arith.constant dense<0.000000e+00> : vector<16xf32>
    %275 = vector.multi_reduction <add>, %274, %cst_111 [1] : vector<16x32xf32> to vector<16xf32>
    %276 = vector.shape_cast %275 : vector<16xf32> to vector<16x1xf32>
    %cst_112 = arith.constant 3.200000e+01 : f32
    %277 = vector.broadcast %cst_112 : f32 to vector<16x1xf32>
    %278 = arith.divf %276, %277 : vector<16x1xf32>
    %cst_113 = arith.constant 9.99999974E-6 : f32
    %279 = vector.broadcast %cst_113 : f32 to vector<16x1xf32>
    %280 = arith.addf %278, %279 : vector<16x1xf32>
    %281 = math.rsqrt %280 : vector<16x1xf32>
    %282 = vector.broadcast %281 : vector<16x1xf32> to vector<16x32xf32>
    %283 = arith.mulf %273, %282 : vector<16x32xf32>
    %c0_114 = arith.constant 0 : index
    %c0_115 = arith.constant 0 : index
    %284 = vector.load %arg55[%c0_114, %c0_115] : memref<1x32xf32, #tpu.memory_space<vmem>>, vector<1x32xf32>
    %285 = vector.broadcast %284 : vector<1x32xf32> to vector<16x32xf32>
    %286 = arith.mulf %283, %285 : vector<16x32xf32>
    %c0_116 = arith.constant 0 : index
    %c0_117 = arith.constant 0 : index
    %287 = vector.load %arg54[%c0_116, %c0_117] : memref<1x32xf32, #tpu.memory_space<vmem>>, vector<1x32xf32>
    %288 = vector.broadcast %287 : vector<1x32xf32> to vector<16x32xf32>
    %289 = arith.addf %286, %288 : vector<16x32xf32>
    %c0_118 = arith.constant 0 : index
    %c0_119 = arith.constant 0 : index
    %290 = vector.load %arg62[%c0_118, %c0_119] : memref<32x64xf32, #tpu.memory_space<vmem>>, vector<32x64xf32>
    %cst_120 = arith.constant dense<0.000000e+00> : vector<16x64xf32>
    %291 = tpu.matmul %289, %290, %cst_120 {dimension_numbers = #tpu.dot_dimension_numbers<[1], [0], [0], [1], [0, 0, 1, 1], [], []>} : vector<16x32xf32>, vector<32x64xf32>, vector<16x64xf32> -> vector<16x64xf32>
    %c0_121 = arith.constant 0 : index
    %c0_122 = arith.constant 0 : index
    %292 = vector.load %arg52[%c0_121, %c0_122] : memref<1x64xf32, #tpu.memory_space<vmem>>, vector<1x64xf32>
    %293 = vector.broadcast %292 : vector<1x64xf32> to vector<16x64xf32>
    %294 = arith.addf %291, %293 : vector<16x64xf32>
    %cst_123 = arith.constant 0.000000e+00 : f32
    %295 = vector.broadcast %cst_123 : f32 to vector<16x64xf32>
    %296 = arith.maximumf %294, %295 : vector<16x64xf32>
    %c0_124 = arith.constant 0 : index
    %c0_125 = arith.constant 0 : index
    %297 = vector.load %arg63[%c0_124, %c0_125] : memref<64x32xf32, #tpu.memory_space<vmem>>, vector<64x32xf32>
    %cst_126 = arith.constant dense<0.000000e+00> : vector<16x32xf32>
    %298 = tpu.matmul %296, %297, %cst_126 {dimension_numbers = #tpu.dot_dimension_numbers<[1], [0], [0], [1], [0, 0, 1, 1], [], []>} : vector<16x64xf32>, vector<64x32xf32>, vector<16x32xf32> -> vector<16x32xf32>
    %c0_127 = arith.constant 0 : index
    %c0_128 = arith.constant 0 : index
    %299 = vector.load %arg53[%c0_127, %c0_128] : memref<1x32xf32, #tpu.memory_space<vmem>>, vector<1x32xf32>
    %300 = vector.broadcast %299 : vector<1x32xf32> to vector<16x32xf32>
    %301 = arith.addf %298, %300 : vector<16x32xf32>
    %302 = arith.addf %289, %301 : vector<16x32xf32>
    %cst_129 = arith.constant dense<0.000000e+00> : vector<16xf32>
    %303 = vector.multi_reduction <add>, %302, %cst_129 [1] : vector<16x32xf32> to vector<16xf32>
    %304 = vector.shape_cast %303 : vector<16xf32> to vector<16x1xf32>
    %cst_130 = arith.constant 3.200000e+01 : f32
    %305 = vector.broadcast %cst_130 : f32 to vector<16x1xf32>
    %306 = arith.divf %304, %305 : vector<16x1xf32>
    %307 = vector.broadcast %306 : vector<16x1xf32> to vector<16x32xf32>
    %308 = arith.subf %302, %307 : vector<16x32xf32>
    %309 = arith.mulf %308, %308 : vector<16x32xf32>
    %cst_131 = arith.constant dense<0.000000e+00> : vector<16xf32>
    %310 = vector.multi_reduction <add>, %309, %cst_131 [1] : vector<16x32xf32> to vector<16xf32>
    %311 = vector.shape_cast %310 : vector<16xf32> to vector<16x1xf32>
    %cst_132 = arith.constant 3.200000e+01 : f32
    %312 = vector.broadcast %cst_132 : f32 to vector<16x1xf32>
    %313 = arith.divf %311, %312 : vector<16x1xf32>
    %cst_133 = arith.constant 9.99999974E-6 : f32
    %314 = vector.broadcast %cst_133 : f32 to vector<16x1xf32>
    %315 = arith.addf %313, %314 : vector<16x1xf32>
    %316 = math.rsqrt %315 : vector<16x1xf32>
    %317 = vector.broadcast %316 : vector<16x1xf32> to vector<16x32xf32>
    %318 = arith.mulf %308, %317 : vector<16x32xf32>
    %c0_134 = arith.constant 0 : index
    %c0_135 = arith.constant 0 : index
    %319 = vector.load %arg57[%c0_134, %c0_135] : memref<1x32xf32, #tpu.memory_space<vmem>>, vector<1x32xf32>
    %320 = vector.broadcast %319 : vector<1x32xf32> to vector<16x32xf32>
    %321 = arith.mulf %318, %320 : vector<16x32xf32>
    %c0_136 = arith.constant 0 : index
    %c0_137 = arith.constant 0 : index
    %322 = vector.load %arg56[%c0_136, %c0_137] : memref<1x32xf32, #tpu.memory_space<vmem>>, vector<1x32xf32>
    %323 = vector.broadcast %322 : vector<1x32xf32> to vector<16x32xf32>
    %324 = arith.addf %321, %323 : vector<16x32xf32>
    %cst_138 = arith.constant dense<0.000000e+00> : vector<16xf32>
    %325 = vector.multi_reduction <add>, %324, %cst_138 [1] : vector<16x32xf32> to vector<16xf32>
    %326 = vector.shape_cast %325 : vector<16xf32> to vector<16x1xf32>
    %cst_139 = arith.constant 3.200000e+01 : f32
    %327 = vector.broadcast %cst_139 : f32 to vector<16x1xf32>
    %328 = arith.divf %326, %327 : vector<16x1xf32>
    %329 = vector.broadcast %328 : vector<16x1xf32> to vector<16x32xf32>
    %330 = arith.subf %324, %329 : vector<16x32xf32>
    %331 = arith.mulf %330, %330 : vector<16x32xf32>
    %cst_140 = arith.constant dense<0.000000e+00> : vector<16xf32>
    %332 = vector.multi_reduction <add>, %331, %cst_140 [1] : vector<16x32xf32> to vector<16xf32>
    %333 = vector.shape_cast %332 : vector<16xf32> to vector<16x1xf32>
    %cst_141 = arith.constant 3.200000e+01 : f32
    %334 = vector.broadcast %cst_141 : f32 to vector<16x1xf32>
    %335 = arith.divf %333, %334 : vector<16x1xf32>
    %cst_142 = arith.constant 9.99999974E-6 : f32
    %336 = vector.broadcast %cst_142 : f32 to vector<16x1xf32>
    %337 = arith.addf %335, %336 : vector<16x1xf32>
    %338 = math.rsqrt %337 : vector<16x1xf32>
    %339 = vector.broadcast %338 : vector<16x1xf32> to vector<16x32xf32>
    %340 = arith.mulf %330, %339 : vector<16x32xf32>
    %c0_143 = arith.constant 0 : index
    %c0_144 = arith.constant 0 : index
    %341 = vector.load %arg65[%c0_143, %c0_144] : memref<1x32xf32, #tpu.memory_space<vmem>>, vector<1x32xf32>
    %342 = vector.broadcast %341 : vector<1x32xf32> to vector<16x32xf32>
    %343 = arith.mulf %340, %342 : vector<16x32xf32>
    %c0_145 = arith.constant 0 : index
    %c0_146 = arith.constant 0 : index
    %344 = vector.load %arg64[%c0_145, %c0_146] : memref<1x32xf32, #tpu.memory_space<vmem>>, vector<1x32xf32>
    %345 = vector.broadcast %344 : vector<1x32xf32> to vector<16x32xf32>
    %346 = arith.addf %343, %345 : vector<16x32xf32>
    %c0_147 = arith.constant 0 : index
    %c0_148 = arith.constant 0 : index
    %347 = vector.load %arg67[%c0_147, %c0_148] : memref<16x32xf32, #tpu.memory_space<vmem>>, vector<16x32xf32>
    %c0_149 = arith.constant 0 : index
    %c0_150 = arith.constant 0 : index
    %348 = vector.load %arg69[%c0_149, %c0_150] : memref<16x32xf32, #tpu.memory_space<vmem>>, vector<16x32xf32>
    %349 = arith.addf %347, %348 : vector<16x32xf32>
    %c0_151 = arith.constant 0 : index
    %c0_152 = arith.constant 0 : index
    %350 = vector.load %arg16[%c0_151, %c0_152] : memref<32x96xf32, #tpu.memory_space<vmem>>, vector<32x96xf32>
    %cst_153 = arith.constant dense<0.000000e+00> : vector<16x96xf32>
    %351 = tpu.matmul %349, %350, %cst_153 {dimension_numbers = #tpu.dot_dimension_numbers<[1], [0], [0], [1], [0, 0, 1, 1], [], []>} : vector<16x32xf32>, vector<32x96xf32>, vector<16x96xf32> -> vector<16x96xf32>
    %c0_154 = arith.constant 0 : index
    %c0_155 = arith.constant 0 : index
    %352 = vector.load %arg14[%c0_154, %c0_155] : memref<1x96xf32, #tpu.memory_space<vmem>>, vector<1x96xf32>
    %353 = vector.broadcast %352 : vector<1x96xf32> to vector<16x96xf32>
    %354 = arith.addf %351, %353 : vector<16x96xf32>
    %355 = vector.extract_strided_slice %354 {offsets = [0, 0], sizes = [16, 32], strides = [1, 1]} : vector<16x96xf32> to vector<16x32xf32>
    %356 = vector.extract_strided_slice %354 {offsets = [0, 32], sizes = [16, 32], strides = [1, 1]} : vector<16x96xf32> to vector<16x32xf32>
    %357 = vector.extract_strided_slice %354 {offsets = [0, 64], sizes = [16, 32], strides = [1, 1]} : vector<16x96xf32> to vector<16x32xf32>
    %c0_156 = arith.constant 0 : index
    %c0_157 = arith.constant 0 : index
    %358 = vector.load %arg17[%c0_156, %c0_157] : memref<32x32xf32, #tpu.memory_space<vmem>>, vector<32x32xf32>
    %359 = vector.extract_strided_slice %355 {offsets = [0, 0], sizes = [16, 8], strides = [1, 1]} : vector<16x32xf32> to vector<16x8xf32>
    %360 = vector.extract_strided_slice %356 {offsets = [0, 0], sizes = [16, 8], strides = [1, 1]} : vector<16x32xf32> to vector<16x8xf32>
    %cst_158 = arith.constant dense<0.000000e+00> : vector<16x16xf32>
    %361 = tpu.matmul %359, %360, %cst_158 {dimension_numbers = #tpu.dot_dimension_numbers<[1], [1], [0], [0], [0, 0, 1, 0], [], []>} : vector<16x8xf32>, vector<16x8xf32>, vector<16x16xf32> -> vector<16x16xf32>
    %362 = arith.addf %361, %31 : vector<16x16xf32>
    %cst_159 = arith.constant dense<0xFF800000> : vector<16xf32>
    %363 = vector.multi_reduction <maximumf>, %362, %cst_159 [1] : vector<16x16xf32> to vector<16xf32>
    %364 = vector.shape_cast %363 : vector<16xf32> to vector<16x1xf32>
    %365 = vector.broadcast %364 : vector<16x1xf32> to vector<16x16xf32>
    %366 = arith.subf %362, %365 : vector<16x16xf32>
    %367 = math.exp %366 : vector<16x16xf32>
    %cst_160 = arith.constant dense<0.000000e+00> : vector<16xf32>
    %368 = vector.multi_reduction <add>, %367, %cst_160 [1] : vector<16x16xf32> to vector<16xf32>
    %369 = vector.shape_cast %368 : vector<16xf32> to vector<16x1xf32>
    %370 = tpu.reciprocal %369 {approx = true} : vector<16x1xf32> -> vector<16x1xf32>
    %371 = vector.broadcast %370 : vector<16x1xf32> to vector<16x16xf32>
    %372 = arith.mulf %367, %371 : vector<16x16xf32>
    %373 = vector.extract_strided_slice %357 {offsets = [0, 0], sizes = [16, 8], strides = [1, 1]} : vector<16x32xf32> to vector<16x8xf32>
    %cst_161 = arith.constant dense<0.000000e+00> : vector<16x8xf32>
    %374 = tpu.matmul %372, %373, %cst_161 {dimension_numbers = #tpu.dot_dimension_numbers<[1], [0], [0], [1], [0, 0, 1, 1], [], []>} : vector<16x16xf32>, vector<16x8xf32>, vector<16x8xf32> -> vector<16x8xf32>
    %375 = vector.extract_strided_slice %358 {offsets = [0, 0], sizes = [8, 32], strides = [1, 1]} : vector<32x32xf32> to vector<8x32xf32>
    %cst_162 = arith.constant dense<0.000000e+00> : vector<16x32xf32>
    %376 = tpu.matmul %374, %375, %cst_162 {dimension_numbers = #tpu.dot_dimension_numbers<[1], [0], [0], [1], [0, 0, 1, 1], [], []>} : vector<16x8xf32>, vector<8x32xf32>, vector<16x32xf32> -> vector<16x32xf32>
    %377 = vector.extract_strided_slice %355 {offsets = [0, 8], sizes = [16, 8], strides = [1, 1]} : vector<16x32xf32> to vector<16x8xf32>
    %378 = vector.extract_strided_slice %356 {offsets = [0, 8], sizes = [16, 8], strides = [1, 1]} : vector<16x32xf32> to vector<16x8xf32>
    %cst_163 = arith.constant dense<0.000000e+00> : vector<16x16xf32>
    %379 = tpu.matmul %377, %378, %cst_163 {dimension_numbers = #tpu.dot_dimension_numbers<[1], [1], [0], [0], [0, 0, 1, 0], [], []>} : vector<16x8xf32>, vector<16x8xf32>, vector<16x16xf32> -> vector<16x16xf32>
    %380 = arith.addf %379, %31 : vector<16x16xf32>
    %cst_164 = arith.constant dense<0xFF800000> : vector<16xf32>
    %381 = vector.multi_reduction <maximumf>, %380, %cst_164 [1] : vector<16x16xf32> to vector<16xf32>
    %382 = vector.shape_cast %381 : vector<16xf32> to vector<16x1xf32>
    %383 = vector.broadcast %382 : vector<16x1xf32> to vector<16x16xf32>
    %384 = arith.subf %380, %383 : vector<16x16xf32>
    %385 = math.exp %384 : vector<16x16xf32>
    %cst_165 = arith.constant dense<0.000000e+00> : vector<16xf32>
    %386 = vector.multi_reduction <add>, %385, %cst_165 [1] : vector<16x16xf32> to vector<16xf32>
    %387 = vector.shape_cast %386 : vector<16xf32> to vector<16x1xf32>
    %388 = tpu.reciprocal %387 {approx = true} : vector<16x1xf32> -> vector<16x1xf32>
    %389 = vector.broadcast %388 : vector<16x1xf32> to vector<16x16xf32>
    %390 = arith.mulf %385, %389 : vector<16x16xf32>
    %391 = vector.extract_strided_slice %357 {offsets = [0, 8], sizes = [16, 8], strides = [1, 1]} : vector<16x32xf32> to vector<16x8xf32>
    %cst_166 = arith.constant dense<0.000000e+00> : vector<16x8xf32>
    %392 = tpu.matmul %390, %391, %cst_166 {dimension_numbers = #tpu.dot_dimension_numbers<[1], [0], [0], [1], [0, 0, 1, 1], [], []>} : vector<16x16xf32>, vector<16x8xf32>, vector<16x8xf32> -> vector<16x8xf32>
    %393 = vector.extract_strided_slice %358 {offsets = [8, 0], sizes = [8, 32], strides = [1, 1]} : vector<32x32xf32> to vector<8x32xf32>
    %cst_167 = arith.constant dense<0.000000e+00> : vector<16x32xf32>
    %394 = tpu.matmul %392, %393, %cst_167 {dimension_numbers = #tpu.dot_dimension_numbers<[1], [0], [0], [1], [0, 0, 1, 1], [], []>} : vector<16x8xf32>, vector<8x32xf32>, vector<16x32xf32> -> vector<16x32xf32>
    %395 = arith.addf %376, %394 : vector<16x32xf32>
    %396 = vector.extract_strided_slice %355 {offsets = [0, 16], sizes = [16, 8], strides = [1, 1]} : vector<16x32xf32> to vector<16x8xf32>
    %397 = vector.extract_strided_slice %356 {offsets = [0, 16], sizes = [16, 8], strides = [1, 1]} : vector<16x32xf32> to vector<16x8xf32>
    %cst_168 = arith.constant dense<0.000000e+00> : vector<16x16xf32>
    %398 = tpu.matmul %396, %397, %cst_168 {dimension_numbers = #tpu.dot_dimension_numbers<[1], [1], [0], [0], [0, 0, 1, 0], [], []>} : vector<16x8xf32>, vector<16x8xf32>, vector<16x16xf32> -> vector<16x16xf32>
    %399 = arith.addf %398, %31 : vector<16x16xf32>
    %cst_169 = arith.constant dense<0xFF800000> : vector<16xf32>
    %400 = vector.multi_reduction <maximumf>, %399, %cst_169 [1] : vector<16x16xf32> to vector<16xf32>
    %401 = vector.shape_cast %400 : vector<16xf32> to vector<16x1xf32>
    %402 = vector.broadcast %401 : vector<16x1xf32> to vector<16x16xf32>
    %403 = arith.subf %399, %402 : vector<16x16xf32>
    %404 = math.exp %403 : vector<16x16xf32>
    %cst_170 = arith.constant dense<0.000000e+00> : vector<16xf32>
    %405 = vector.multi_reduction <add>, %404, %cst_170 [1] : vector<16x16xf32> to vector<16xf32>
    %406 = vector.shape_cast %405 : vector<16xf32> to vector<16x1xf32>
    %407 = tpu.reciprocal %406 {approx = true} : vector<16x1xf32> -> vector<16x1xf32>
    %408 = vector.broadcast %407 : vector<16x1xf32> to vector<16x16xf32>
    %409 = arith.mulf %404, %408 : vector<16x16xf32>
    %410 = vector.extract_strided_slice %357 {offsets = [0, 16], sizes = [16, 8], strides = [1, 1]} : vector<16x32xf32> to vector<16x8xf32>
    %cst_171 = arith.constant dense<0.000000e+00> : vector<16x8xf32>
    %411 = tpu.matmul %409, %410, %cst_171 {dimension_numbers = #tpu.dot_dimension_numbers<[1], [0], [0], [1], [0, 0, 1, 1], [], []>} : vector<16x16xf32>, vector<16x8xf32>, vector<16x8xf32> -> vector<16x8xf32>
    %412 = vector.extract_strided_slice %358 {offsets = [16, 0], sizes = [8, 32], strides = [1, 1]} : vector<32x32xf32> to vector<8x32xf32>
    %cst_172 = arith.constant dense<0.000000e+00> : vector<16x32xf32>
    %413 = tpu.matmul %411, %412, %cst_172 {dimension_numbers = #tpu.dot_dimension_numbers<[1], [0], [0], [1], [0, 0, 1, 1], [], []>} : vector<16x8xf32>, vector<8x32xf32>, vector<16x32xf32> -> vector<16x32xf32>
    %414 = arith.addf %395, %413 : vector<16x32xf32>
    %415 = vector.extract_strided_slice %355 {offsets = [0, 24], sizes = [16, 8], strides = [1, 1]} : vector<16x32xf32> to vector<16x8xf32>
    %416 = vector.extract_strided_slice %356 {offsets = [0, 24], sizes = [16, 8], strides = [1, 1]} : vector<16x32xf32> to vector<16x8xf32>
    %cst_173 = arith.constant dense<0.000000e+00> : vector<16x16xf32>
    %417 = tpu.matmul %415, %416, %cst_173 {dimension_numbers = #tpu.dot_dimension_numbers<[1], [1], [0], [0], [0, 0, 1, 0], [], []>} : vector<16x8xf32>, vector<16x8xf32>, vector<16x16xf32> -> vector<16x16xf32>
    %418 = arith.addf %417, %31 : vector<16x16xf32>
    %cst_174 = arith.constant dense<0xFF800000> : vector<16xf32>
    %419 = vector.multi_reduction <maximumf>, %418, %cst_174 [1] : vector<16x16xf32> to vector<16xf32>
    %420 = vector.shape_cast %419 : vector<16xf32> to vector<16x1xf32>
    %421 = vector.broadcast %420 : vector<16x1xf32> to vector<16x16xf32>
    %422 = arith.subf %418, %421 : vector<16x16xf32>
    %423 = math.exp %422 : vector<16x16xf32>
    %cst_175 = arith.constant dense<0.000000e+00> : vector<16xf32>
    %424 = vector.multi_reduction <add>, %423, %cst_175 [1] : vector<16x16xf32> to vector<16xf32>
    %425 = vector.shape_cast %424 : vector<16xf32> to vector<16x1xf32>
    %426 = tpu.reciprocal %425 {approx = true} : vector<16x1xf32> -> vector<16x1xf32>
    %427 = vector.broadcast %426 : vector<16x1xf32> to vector<16x16xf32>
    %428 = arith.mulf %423, %427 : vector<16x16xf32>
    %429 = vector.extract_strided_slice %357 {offsets = [0, 24], sizes = [16, 8], strides = [1, 1]} : vector<16x32xf32> to vector<16x8xf32>
    %cst_176 = arith.constant dense<0.000000e+00> : vector<16x8xf32>
    %430 = tpu.matmul %428, %429, %cst_176 {dimension_numbers = #tpu.dot_dimension_numbers<[1], [0], [0], [1], [0, 0, 1, 1], [], []>} : vector<16x16xf32>, vector<16x8xf32>, vector<16x8xf32> -> vector<16x8xf32>
    %431 = vector.extract_strided_slice %358 {offsets = [24, 0], sizes = [8, 32], strides = [1, 1]} : vector<32x32xf32> to vector<8x32xf32>
    %cst_177 = arith.constant dense<0.000000e+00> : vector<16x32xf32>
    %432 = tpu.matmul %430, %431, %cst_177 {dimension_numbers = #tpu.dot_dimension_numbers<[1], [0], [0], [1], [0, 0, 1, 1], [], []>} : vector<16x8xf32>, vector<8x32xf32>, vector<16x32xf32> -> vector<16x32xf32>
    %433 = arith.addf %414, %432 : vector<16x32xf32>
    %c0_178 = arith.constant 0 : index
    %c0_179 = arith.constant 0 : index
    %434 = vector.load %arg15[%c0_178, %c0_179] : memref<1x32xf32, #tpu.memory_space<vmem>>, vector<1x32xf32>
    %435 = vector.broadcast %434 : vector<1x32xf32> to vector<16x32xf32>
    %436 = arith.addf %433, %435 : vector<16x32xf32>
    %437 = arith.addf %349, %436 : vector<16x32xf32>
    %cst_180 = arith.constant dense<0.000000e+00> : vector<16xf32>
    %438 = vector.multi_reduction <add>, %437, %cst_180 [1] : vector<16x32xf32> to vector<16xf32>
    %439 = vector.shape_cast %438 : vector<16xf32> to vector<16x1xf32>
    %cst_181 = arith.constant 3.200000e+01 : f32
    %440 = vector.broadcast %cst_181 : f32 to vector<16x1xf32>
    %441 = arith.divf %439, %440 : vector<16x1xf32>
    %442 = vector.broadcast %441 : vector<16x1xf32> to vector<16x32xf32>
    %443 = arith.subf %437, %442 : vector<16x32xf32>
    %444 = arith.mulf %443, %443 : vector<16x32xf32>
    %cst_182 = arith.constant dense<0.000000e+00> : vector<16xf32>
    %445 = vector.multi_reduction <add>, %444, %cst_182 [1] : vector<16x32xf32> to vector<16xf32>
    %446 = vector.shape_cast %445 : vector<16xf32> to vector<16x1xf32>
    %cst_183 = arith.constant 3.200000e+01 : f32
    %447 = vector.broadcast %cst_183 : f32 to vector<16x1xf32>
    %448 = arith.divf %446, %447 : vector<16x1xf32>
    %cst_184 = arith.constant 9.99999974E-6 : f32
    %449 = vector.broadcast %cst_184 : f32 to vector<16x1xf32>
    %450 = arith.addf %448, %449 : vector<16x1xf32>
    %451 = math.rsqrt %450 : vector<16x1xf32>
    %452 = vector.broadcast %451 : vector<16x1xf32> to vector<16x32xf32>
    %453 = arith.mulf %443, %452 : vector<16x32xf32>
    %c0_185 = arith.constant 0 : index
    %c0_186 = arith.constant 0 : index
    %454 = vector.load %arg9[%c0_185, %c0_186] : memref<1x32xf32, #tpu.memory_space<vmem>>, vector<1x32xf32>
    %455 = vector.broadcast %454 : vector<1x32xf32> to vector<16x32xf32>
    %456 = arith.mulf %453, %455 : vector<16x32xf32>
    %c0_187 = arith.constant 0 : index
    %c0_188 = arith.constant 0 : index
    %457 = vector.load %arg8[%c0_187, %c0_188] : memref<1x32xf32, #tpu.memory_space<vmem>>, vector<1x32xf32>
    %458 = vector.broadcast %457 : vector<1x32xf32> to vector<16x32xf32>
    %459 = arith.addf %456, %458 : vector<16x32xf32>
    %c0_189 = arith.constant 0 : index
    %c0_190 = arith.constant 0 : index
    %460 = vector.load %arg6[%c0_189, %c0_190] : memref<32x96xf32, #tpu.memory_space<vmem>>, vector<32x96xf32>
    %c0_191 = arith.constant 0 : index
    %c0_192 = arith.constant 0 : index
    %461 = vector.load %arg4[%c0_191, %c0_192] : memref<1x96xf32, #tpu.memory_space<vmem>>, vector<1x96xf32>
    %462 = vector.extract_strided_slice %460 {offsets = [0, 0], sizes = [32, 32], strides = [1, 1]} : vector<32x96xf32> to vector<32x32xf32>
    %cst_193 = arith.constant dense<0.000000e+00> : vector<16x32xf32>
    %463 = tpu.matmul %459, %462, %cst_193 {dimension_numbers = #tpu.dot_dimension_numbers<[1], [0], [0], [1], [0, 0, 1, 1], [], []>} : vector<16x32xf32>, vector<32x32xf32>, vector<16x32xf32> -> vector<16x32xf32>
    %464 = vector.extract_strided_slice %461 {offsets = [0, 0], sizes = [1, 32], strides = [1, 1]} : vector<1x96xf32> to vector<1x32xf32>
    %465 = vector.broadcast %464 : vector<1x32xf32> to vector<16x32xf32>
    %466 = arith.addf %463, %465 : vector<16x32xf32>
    %467 = vector.extract_strided_slice %460 {offsets = [0, 32], sizes = [32, 64], strides = [1, 1]} : vector<32x96xf32> to vector<32x64xf32>
    %cst_194 = arith.constant dense<0.000000e+00> : vector<16x64xf32>
    %468 = tpu.matmul %346, %467, %cst_194 {dimension_numbers = #tpu.dot_dimension_numbers<[1], [0], [0], [1], [0, 0, 1, 1], [], []>} : vector<16x32xf32>, vector<32x64xf32>, vector<16x64xf32> -> vector<16x64xf32>
    %469 = vector.extract_strided_slice %461 {offsets = [0, 32], sizes = [1, 64], strides = [1, 1]} : vector<1x96xf32> to vector<1x64xf32>
    %470 = vector.broadcast %469 : vector<1x64xf32> to vector<16x64xf32>
    %471 = arith.addf %468, %470 : vector<16x64xf32>
    %472 = vector.extract_strided_slice %471 {offsets = [0, 0], sizes = [16, 32], strides = [1, 1]} : vector<16x64xf32> to vector<16x32xf32>
    %473 = vector.extract_strided_slice %471 {offsets = [0, 32], sizes = [16, 32], strides = [1, 1]} : vector<16x64xf32> to vector<16x32xf32>
    %c0_195 = arith.constant 0 : index
    %c0_196 = arith.constant 0 : index
    %474 = vector.load %arg7[%c0_195, %c0_196] : memref<32x32xf32, #tpu.memory_space<vmem>>, vector<32x32xf32>
    %475 = vector.extract_strided_slice %466 {offsets = [0, 0], sizes = [16, 8], strides = [1, 1]} : vector<16x32xf32> to vector<16x8xf32>
    %476 = vector.extract_strided_slice %472 {offsets = [0, 0], sizes = [16, 8], strides = [1, 1]} : vector<16x32xf32> to vector<16x8xf32>
    %cst_197 = arith.constant dense<0.000000e+00> : vector<16x16xf32>
    %477 = tpu.matmul %475, %476, %cst_197 {dimension_numbers = #tpu.dot_dimension_numbers<[1], [1], [0], [0], [0, 0, 1, 0], [], []>} : vector<16x8xf32>, vector<16x8xf32>, vector<16x16xf32> -> vector<16x16xf32>
    %478 = arith.addf %477, %14 : vector<16x16xf32>
    %cst_198 = arith.constant dense<0xFF800000> : vector<16xf32>
    %479 = vector.multi_reduction <maximumf>, %478, %cst_198 [1] : vector<16x16xf32> to vector<16xf32>
    %480 = vector.shape_cast %479 : vector<16xf32> to vector<16x1xf32>
    %481 = vector.broadcast %480 : vector<16x1xf32> to vector<16x16xf32>
    %482 = arith.subf %478, %481 : vector<16x16xf32>
    %483 = math.exp %482 : vector<16x16xf32>
    %cst_199 = arith.constant dense<0.000000e+00> : vector<16xf32>
    %484 = vector.multi_reduction <add>, %483, %cst_199 [1] : vector<16x16xf32> to vector<16xf32>
    %485 = vector.shape_cast %484 : vector<16xf32> to vector<16x1xf32>
    %486 = tpu.reciprocal %485 {approx = true} : vector<16x1xf32> -> vector<16x1xf32>
    %487 = vector.broadcast %486 : vector<16x1xf32> to vector<16x16xf32>
    %488 = arith.mulf %483, %487 : vector<16x16xf32>
    %489 = vector.extract_strided_slice %473 {offsets = [0, 0], sizes = [16, 8], strides = [1, 1]} : vector<16x32xf32> to vector<16x8xf32>
    %cst_200 = arith.constant dense<0.000000e+00> : vector<16x8xf32>
    %490 = tpu.matmul %488, %489, %cst_200 {dimension_numbers = #tpu.dot_dimension_numbers<[1], [0], [0], [1], [0, 0, 1, 1], [], []>} : vector<16x16xf32>, vector<16x8xf32>, vector<16x8xf32> -> vector<16x8xf32>
    %491 = vector.extract_strided_slice %474 {offsets = [0, 0], sizes = [8, 32], strides = [1, 1]} : vector<32x32xf32> to vector<8x32xf32>
    %cst_201 = arith.constant dense<0.000000e+00> : vector<16x32xf32>
    %492 = tpu.matmul %490, %491, %cst_201 {dimension_numbers = #tpu.dot_dimension_numbers<[1], [0], [0], [1], [0, 0, 1, 1], [], []>} : vector<16x8xf32>, vector<8x32xf32>, vector<16x32xf32> -> vector<16x32xf32>
    %493 = vector.extract_strided_slice %466 {offsets = [0, 8], sizes = [16, 8], strides = [1, 1]} : vector<16x32xf32> to vector<16x8xf32>
    %494 = vector.extract_strided_slice %472 {offsets = [0, 8], sizes = [16, 8], strides = [1, 1]} : vector<16x32xf32> to vector<16x8xf32>
    %cst_202 = arith.constant dense<0.000000e+00> : vector<16x16xf32>
    %495 = tpu.matmul %493, %494, %cst_202 {dimension_numbers = #tpu.dot_dimension_numbers<[1], [1], [0], [0], [0, 0, 1, 0], [], []>} : vector<16x8xf32>, vector<16x8xf32>, vector<16x16xf32> -> vector<16x16xf32>
    %496 = arith.addf %495, %14 : vector<16x16xf32>
    %cst_203 = arith.constant dense<0xFF800000> : vector<16xf32>
    %497 = vector.multi_reduction <maximumf>, %496, %cst_203 [1] : vector<16x16xf32> to vector<16xf32>
    %498 = vector.shape_cast %497 : vector<16xf32> to vector<16x1xf32>
    %499 = vector.broadcast %498 : vector<16x1xf32> to vector<16x16xf32>
    %500 = arith.subf %496, %499 : vector<16x16xf32>
    %501 = math.exp %500 : vector<16x16xf32>
    %cst_204 = arith.constant dense<0.000000e+00> : vector<16xf32>
    %502 = vector.multi_reduction <add>, %501, %cst_204 [1] : vector<16x16xf32> to vector<16xf32>
    %503 = vector.shape_cast %502 : vector<16xf32> to vector<16x1xf32>
    %504 = tpu.reciprocal %503 {approx = true} : vector<16x1xf32> -> vector<16x1xf32>
    %505 = vector.broadcast %504 : vector<16x1xf32> to vector<16x16xf32>
    %506 = arith.mulf %501, %505 : vector<16x16xf32>
    %507 = vector.extract_strided_slice %473 {offsets = [0, 8], sizes = [16, 8], strides = [1, 1]} : vector<16x32xf32> to vector<16x8xf32>
    %cst_205 = arith.constant dense<0.000000e+00> : vector<16x8xf32>
    %508 = tpu.matmul %506, %507, %cst_205 {dimension_numbers = #tpu.dot_dimension_numbers<[1], [0], [0], [1], [0, 0, 1, 1], [], []>} : vector<16x16xf32>, vector<16x8xf32>, vector<16x8xf32> -> vector<16x8xf32>
    %509 = vector.extract_strided_slice %474 {offsets = [8, 0], sizes = [8, 32], strides = [1, 1]} : vector<32x32xf32> to vector<8x32xf32>
    %cst_206 = arith.constant dense<0.000000e+00> : vector<16x32xf32>
    %510 = tpu.matmul %508, %509, %cst_206 {dimension_numbers = #tpu.dot_dimension_numbers<[1], [0], [0], [1], [0, 0, 1, 1], [], []>} : vector<16x8xf32>, vector<8x32xf32>, vector<16x32xf32> -> vector<16x32xf32>
    %511 = arith.addf %492, %510 : vector<16x32xf32>
    %512 = vector.extract_strided_slice %466 {offsets = [0, 16], sizes = [16, 8], strides = [1, 1]} : vector<16x32xf32> to vector<16x8xf32>
    %513 = vector.extract_strided_slice %472 {offsets = [0, 16], sizes = [16, 8], strides = [1, 1]} : vector<16x32xf32> to vector<16x8xf32>
    %cst_207 = arith.constant dense<0.000000e+00> : vector<16x16xf32>
    %514 = tpu.matmul %512, %513, %cst_207 {dimension_numbers = #tpu.dot_dimension_numbers<[1], [1], [0], [0], [0, 0, 1, 0], [], []>} : vector<16x8xf32>, vector<16x8xf32>, vector<16x16xf32> -> vector<16x16xf32>
    %515 = arith.addf %514, %14 : vector<16x16xf32>
    %cst_208 = arith.constant dense<0xFF800000> : vector<16xf32>
    %516 = vector.multi_reduction <maximumf>, %515, %cst_208 [1] : vector<16x16xf32> to vector<16xf32>
    %517 = vector.shape_cast %516 : vector<16xf32> to vector<16x1xf32>
    %518 = vector.broadcast %517 : vector<16x1xf32> to vector<16x16xf32>
    %519 = arith.subf %515, %518 : vector<16x16xf32>
    %520 = math.exp %519 : vector<16x16xf32>
    %cst_209 = arith.constant dense<0.000000e+00> : vector<16xf32>
    %521 = vector.multi_reduction <add>, %520, %cst_209 [1] : vector<16x16xf32> to vector<16xf32>
    %522 = vector.shape_cast %521 : vector<16xf32> to vector<16x1xf32>
    %523 = tpu.reciprocal %522 {approx = true} : vector<16x1xf32> -> vector<16x1xf32>
    %524 = vector.broadcast %523 : vector<16x1xf32> to vector<16x16xf32>
    %525 = arith.mulf %520, %524 : vector<16x16xf32>
    %526 = vector.extract_strided_slice %473 {offsets = [0, 16], sizes = [16, 8], strides = [1, 1]} : vector<16x32xf32> to vector<16x8xf32>
    %cst_210 = arith.constant dense<0.000000e+00> : vector<16x8xf32>
    %527 = tpu.matmul %525, %526, %cst_210 {dimension_numbers = #tpu.dot_dimension_numbers<[1], [0], [0], [1], [0, 0, 1, 1], [], []>} : vector<16x16xf32>, vector<16x8xf32>, vector<16x8xf32> -> vector<16x8xf32>
    %528 = vector.extract_strided_slice %474 {offsets = [16, 0], sizes = [8, 32], strides = [1, 1]} : vector<32x32xf32> to vector<8x32xf32>
    %cst_211 = arith.constant dense<0.000000e+00> : vector<16x32xf32>
    %529 = tpu.matmul %527, %528, %cst_211 {dimension_numbers = #tpu.dot_dimension_numbers<[1], [0], [0], [1], [0, 0, 1, 1], [], []>} : vector<16x8xf32>, vector<8x32xf32>, vector<16x32xf32> -> vector<16x32xf32>
    %530 = arith.addf %511, %529 : vector<16x32xf32>
    %531 = vector.extract_strided_slice %466 {offsets = [0, 24], sizes = [16, 8], strides = [1, 1]} : vector<16x32xf32> to vector<16x8xf32>
    %532 = vector.extract_strided_slice %472 {offsets = [0, 24], sizes = [16, 8], strides = [1, 1]} : vector<16x32xf32> to vector<16x8xf32>
    %cst_212 = arith.constant dense<0.000000e+00> : vector<16x16xf32>
    %533 = tpu.matmul %531, %532, %cst_212 {dimension_numbers = #tpu.dot_dimension_numbers<[1], [1], [0], [0], [0, 0, 1, 0], [], []>} : vector<16x8xf32>, vector<16x8xf32>, vector<16x16xf32> -> vector<16x16xf32>
    %534 = arith.addf %533, %14 : vector<16x16xf32>
    %cst_213 = arith.constant dense<0xFF800000> : vector<16xf32>
    %535 = vector.multi_reduction <maximumf>, %534, %cst_213 [1] : vector<16x16xf32> to vector<16xf32>
    %536 = vector.shape_cast %535 : vector<16xf32> to vector<16x1xf32>
    %537 = vector.broadcast %536 : vector<16x1xf32> to vector<16x16xf32>
    %538 = arith.subf %534, %537 : vector<16x16xf32>
    %539 = math.exp %538 : vector<16x16xf32>
    %cst_214 = arith.constant dense<0.000000e+00> : vector<16xf32>
    %540 = vector.multi_reduction <add>, %539, %cst_214 [1] : vector<16x16xf32> to vector<16xf32>
    %541 = vector.shape_cast %540 : vector<16xf32> to vector<16x1xf32>
    %542 = tpu.reciprocal %541 {approx = true} : vector<16x1xf32> -> vector<16x1xf32>
    %543 = vector.broadcast %542 : vector<16x1xf32> to vector<16x16xf32>
    %544 = arith.mulf %539, %543 : vector<16x16xf32>
    %545 = vector.extract_strided_slice %473 {offsets = [0, 24], sizes = [16, 8], strides = [1, 1]} : vector<16x32xf32> to vector<16x8xf32>
    %cst_215 = arith.constant dense<0.000000e+00> : vector<16x8xf32>
    %546 = tpu.matmul %544, %545, %cst_215 {dimension_numbers = #tpu.dot_dimension_numbers<[1], [0], [0], [1], [0, 0, 1, 1], [], []>} : vector<16x16xf32>, vector<16x8xf32>, vector<16x8xf32> -> vector<16x8xf32>
    %547 = vector.extract_strided_slice %474 {offsets = [24, 0], sizes = [8, 32], strides = [1, 1]} : vector<32x32xf32> to vector<8x32xf32>
    %cst_216 = arith.constant dense<0.000000e+00> : vector<16x32xf32>
    %548 = tpu.matmul %546, %547, %cst_216 {dimension_numbers = #tpu.dot_dimension_numbers<[1], [0], [0], [1], [0, 0, 1, 1], [], []>} : vector<16x8xf32>, vector<8x32xf32>, vector<16x32xf32> -> vector<16x32xf32>
    %549 = arith.addf %530, %548 : vector<16x32xf32>
    %c0_217 = arith.constant 0 : index
    %c0_218 = arith.constant 0 : index
    %550 = vector.load %arg5[%c0_217, %c0_218] : memref<1x32xf32, #tpu.memory_space<vmem>>, vector<1x32xf32>
    %551 = vector.broadcast %550 : vector<1x32xf32> to vector<16x32xf32>
    %552 = arith.addf %549, %551 : vector<16x32xf32>
    %553 = arith.addf %459, %552 : vector<16x32xf32>
    %cst_219 = arith.constant dense<0.000000e+00> : vector<16xf32>
    %554 = vector.multi_reduction <add>, %553, %cst_219 [1] : vector<16x32xf32> to vector<16xf32>
    %555 = vector.shape_cast %554 : vector<16xf32> to vector<16x1xf32>
    %cst_220 = arith.constant 3.200000e+01 : f32
    %556 = vector.broadcast %cst_220 : f32 to vector<16x1xf32>
    %557 = arith.divf %555, %556 : vector<16x1xf32>
    %558 = vector.broadcast %557 : vector<16x1xf32> to vector<16x32xf32>
    %559 = arith.subf %553, %558 : vector<16x32xf32>
    %560 = arith.mulf %559, %559 : vector<16x32xf32>
    %cst_221 = arith.constant dense<0.000000e+00> : vector<16xf32>
    %561 = vector.multi_reduction <add>, %560, %cst_221 [1] : vector<16x32xf32> to vector<16xf32>
    %562 = vector.shape_cast %561 : vector<16xf32> to vector<16x1xf32>
    %cst_222 = arith.constant 3.200000e+01 : f32
    %563 = vector.broadcast %cst_222 : f32 to vector<16x1xf32>
    %564 = arith.divf %562, %563 : vector<16x1xf32>
    %cst_223 = arith.constant 9.99999974E-6 : f32
    %565 = vector.broadcast %cst_223 : f32 to vector<16x1xf32>
    %566 = arith.addf %564, %565 : vector<16x1xf32>
    %567 = math.rsqrt %566 : vector<16x1xf32>
    %568 = vector.broadcast %567 : vector<16x1xf32> to vector<16x32xf32>
    %569 = arith.mulf %559, %568 : vector<16x32xf32>
    %c0_224 = arith.constant 0 : index
    %c0_225 = arith.constant 0 : index
    %570 = vector.load %arg11[%c0_224, %c0_225] : memref<1x32xf32, #tpu.memory_space<vmem>>, vector<1x32xf32>
    %571 = vector.broadcast %570 : vector<1x32xf32> to vector<16x32xf32>
    %572 = arith.mulf %569, %571 : vector<16x32xf32>
    %c0_226 = arith.constant 0 : index
    %c0_227 = arith.constant 0 : index
    %573 = vector.load %arg10[%c0_226, %c0_227] : memref<1x32xf32, #tpu.memory_space<vmem>>, vector<1x32xf32>
    %574 = vector.broadcast %573 : vector<1x32xf32> to vector<16x32xf32>
    %575 = arith.addf %572, %574 : vector<16x32xf32>
    %c0_228 = arith.constant 0 : index
    %c0_229 = arith.constant 0 : index
    %576 = vector.load %arg18[%c0_228, %c0_229] : memref<32x64xf32, #tpu.memory_space<vmem>>, vector<32x64xf32>
    %cst_230 = arith.constant dense<0.000000e+00> : vector<16x64xf32>
    %577 = tpu.matmul %575, %576, %cst_230 {dimension_numbers = #tpu.dot_dimension_numbers<[1], [0], [0], [1], [0, 0, 1, 1], [], []>} : vector<16x32xf32>, vector<32x64xf32>, vector<16x64xf32> -> vector<16x64xf32>
    %c0_231 = arith.constant 0 : index
    %c0_232 = arith.constant 0 : index
    %578 = vector.load %arg2[%c0_231, %c0_232] : memref<1x64xf32, #tpu.memory_space<vmem>>, vector<1x64xf32>
    %579 = vector.broadcast %578 : vector<1x64xf32> to vector<16x64xf32>
    %580 = arith.addf %577, %579 : vector<16x64xf32>
    %cst_233 = arith.constant 0.000000e+00 : f32
    %581 = vector.broadcast %cst_233 : f32 to vector<16x64xf32>
    %582 = arith.maximumf %580, %581 : vector<16x64xf32>
    %c0_234 = arith.constant 0 : index
    %c0_235 = arith.constant 0 : index
    %583 = vector.load %arg19[%c0_234, %c0_235] : memref<64x32xf32, #tpu.memory_space<vmem>>, vector<64x32xf32>
    %cst_236 = arith.constant dense<0.000000e+00> : vector<16x32xf32>
    %584 = tpu.matmul %582, %583, %cst_236 {dimension_numbers = #tpu.dot_dimension_numbers<[1], [0], [0], [1], [0, 0, 1, 1], [], []>} : vector<16x64xf32>, vector<64x32xf32>, vector<16x32xf32> -> vector<16x32xf32>
    %c0_237 = arith.constant 0 : index
    %c0_238 = arith.constant 0 : index
    %585 = vector.load %arg3[%c0_237, %c0_238] : memref<1x32xf32, #tpu.memory_space<vmem>>, vector<1x32xf32>
    %586 = vector.broadcast %585 : vector<1x32xf32> to vector<16x32xf32>
    %587 = arith.addf %584, %586 : vector<16x32xf32>
    %588 = arith.addf %575, %587 : vector<16x32xf32>
    %cst_239 = arith.constant dense<0.000000e+00> : vector<16xf32>
    %589 = vector.multi_reduction <add>, %588, %cst_239 [1] : vector<16x32xf32> to vector<16xf32>
    %590 = vector.shape_cast %589 : vector<16xf32> to vector<16x1xf32>
    %cst_240 = arith.constant 3.200000e+01 : f32
    %591 = vector.broadcast %cst_240 : f32 to vector<16x1xf32>
    %592 = arith.divf %590, %591 : vector<16x1xf32>
    %593 = vector.broadcast %592 : vector<16x1xf32> to vector<16x32xf32>
    %594 = arith.subf %588, %593 : vector<16x32xf32>
    %595 = arith.mulf %594, %594 : vector<16x32xf32>
    %cst_241 = arith.constant dense<0.000000e+00> : vector<16xf32>
    %596 = vector.multi_reduction <add>, %595, %cst_241 [1] : vector<16x32xf32> to vector<16xf32>
    %597 = vector.shape_cast %596 : vector<16xf32> to vector<16x1xf32>
    %cst_242 = arith.constant 3.200000e+01 : f32
    %598 = vector.broadcast %cst_242 : f32 to vector<16x1xf32>
    %599 = arith.divf %597, %598 : vector<16x1xf32>
    %cst_243 = arith.constant 9.99999974E-6 : f32
    %600 = vector.broadcast %cst_243 : f32 to vector<16x1xf32>
    %601 = arith.addf %599, %600 : vector<16x1xf32>
    %602 = math.rsqrt %601 : vector<16x1xf32>
    %603 = vector.broadcast %602 : vector<16x1xf32> to vector<16x32xf32>
    %604 = arith.mulf %594, %603 : vector<16x32xf32>
    %c0_244 = arith.constant 0 : index
    %c0_245 = arith.constant 0 : index
    %605 = vector.load %arg13[%c0_244, %c0_245] : memref<1x32xf32, #tpu.memory_space<vmem>>, vector<1x32xf32>
    %606 = vector.broadcast %605 : vector<1x32xf32> to vector<16x32xf32>
    %607 = arith.mulf %604, %606 : vector<16x32xf32>
    %c0_246 = arith.constant 0 : index
    %c0_247 = arith.constant 0 : index
    %608 = vector.load %arg12[%c0_246, %c0_247] : memref<1x32xf32, #tpu.memory_space<vmem>>, vector<1x32xf32>
    %609 = vector.broadcast %608 : vector<1x32xf32> to vector<16x32xf32>
    %610 = arith.addf %607, %609 : vector<16x32xf32>
    %c0_248 = arith.constant 0 : index
    %c0_249 = arith.constant 0 : index
    %611 = vector.load %arg34[%c0_248, %c0_249] : memref<32x96xf32, #tpu.memory_space<vmem>>, vector<32x96xf32>
    %cst_250 = arith.constant dense<0.000000e+00> : vector<16x96xf32>
    %612 = tpu.matmul %610, %611, %cst_250 {dimension_numbers = #tpu.dot_dimension_numbers<[1], [0], [0], [1], [0, 0, 1, 1], [], []>} : vector<16x32xf32>, vector<32x96xf32>, vector<16x96xf32> -> vector<16x96xf32>
    %c0_251 = arith.constant 0 : index
    %c0_252 = arith.constant 0 : index
    %613 = vector.load %arg32[%c0_251, %c0_252] : memref<1x96xf32, #tpu.memory_space<vmem>>, vector<1x96xf32>
    %614 = vector.broadcast %613 : vector<1x96xf32> to vector<16x96xf32>
    %615 = arith.addf %612, %614 : vector<16x96xf32>
    %616 = vector.extract_strided_slice %615 {offsets = [0, 0], sizes = [16, 32], strides = [1, 1]} : vector<16x96xf32> to vector<16x32xf32>
    %617 = vector.extract_strided_slice %615 {offsets = [0, 32], sizes = [16, 32], strides = [1, 1]} : vector<16x96xf32> to vector<16x32xf32>
    %618 = vector.extract_strided_slice %615 {offsets = [0, 64], sizes = [16, 32], strides = [1, 1]} : vector<16x96xf32> to vector<16x32xf32>
    %c0_253 = arith.constant 0 : index
    %c0_254 = arith.constant 0 : index
    %619 = vector.load %arg35[%c0_253, %c0_254] : memref<32x32xf32, #tpu.memory_space<vmem>>, vector<32x32xf32>
    %620 = vector.extract_strided_slice %616 {offsets = [0, 0], sizes = [16, 8], strides = [1, 1]} : vector<16x32xf32> to vector<16x8xf32>
    %621 = vector.extract_strided_slice %617 {offsets = [0, 0], sizes = [16, 8], strides = [1, 1]} : vector<16x32xf32> to vector<16x8xf32>
    %cst_255 = arith.constant dense<0.000000e+00> : vector<16x16xf32>
    %622 = tpu.matmul %620, %621, %cst_255 {dimension_numbers = #tpu.dot_dimension_numbers<[1], [1], [0], [0], [0, 0, 1, 0], [], []>} : vector<16x8xf32>, vector<16x8xf32>, vector<16x16xf32> -> vector<16x16xf32>
    %623 = arith.addf %622, %31 : vector<16x16xf32>
    %cst_256 = arith.constant dense<0xFF800000> : vector<16xf32>
    %624 = vector.multi_reduction <maximumf>, %623, %cst_256 [1] : vector<16x16xf32> to vector<16xf32>
    %625 = vector.shape_cast %624 : vector<16xf32> to vector<16x1xf32>
    %626 = vector.broadcast %625 : vector<16x1xf32> to vector<16x16xf32>
    %627 = arith.subf %623, %626 : vector<16x16xf32>
    %628 = math.exp %627 : vector<16x16xf32>
    %cst_257 = arith.constant dense<0.000000e+00> : vector<16xf32>
    %629 = vector.multi_reduction <add>, %628, %cst_257 [1] : vector<16x16xf32> to vector<16xf32>
    %630 = vector.shape_cast %629 : vector<16xf32> to vector<16x1xf32>
    %631 = tpu.reciprocal %630 {approx = true} : vector<16x1xf32> -> vector<16x1xf32>
    %632 = vector.broadcast %631 : vector<16x1xf32> to vector<16x16xf32>
    %633 = arith.mulf %628, %632 : vector<16x16xf32>
    %634 = vector.extract_strided_slice %618 {offsets = [0, 0], sizes = [16, 8], strides = [1, 1]} : vector<16x32xf32> to vector<16x8xf32>
    %cst_258 = arith.constant dense<0.000000e+00> : vector<16x8xf32>
    %635 = tpu.matmul %633, %634, %cst_258 {dimension_numbers = #tpu.dot_dimension_numbers<[1], [0], [0], [1], [0, 0, 1, 1], [], []>} : vector<16x16xf32>, vector<16x8xf32>, vector<16x8xf32> -> vector<16x8xf32>
    %636 = vector.extract_strided_slice %619 {offsets = [0, 0], sizes = [8, 32], strides = [1, 1]} : vector<32x32xf32> to vector<8x32xf32>
    %cst_259 = arith.constant dense<0.000000e+00> : vector<16x32xf32>
    %637 = tpu.matmul %635, %636, %cst_259 {dimension_numbers = #tpu.dot_dimension_numbers<[1], [0], [0], [1], [0, 0, 1, 1], [], []>} : vector<16x8xf32>, vector<8x32xf32>, vector<16x32xf32> -> vector<16x32xf32>
    %638 = vector.extract_strided_slice %616 {offsets = [0, 8], sizes = [16, 8], strides = [1, 1]} : vector<16x32xf32> to vector<16x8xf32>
    %639 = vector.extract_strided_slice %617 {offsets = [0, 8], sizes = [16, 8], strides = [1, 1]} : vector<16x32xf32> to vector<16x8xf32>
    %cst_260 = arith.constant dense<0.000000e+00> : vector<16x16xf32>
    %640 = tpu.matmul %638, %639, %cst_260 {dimension_numbers = #tpu.dot_dimension_numbers<[1], [1], [0], [0], [0, 0, 1, 0], [], []>} : vector<16x8xf32>, vector<16x8xf32>, vector<16x16xf32> -> vector<16x16xf32>
    %641 = arith.addf %640, %31 : vector<16x16xf32>
    %cst_261 = arith.constant dense<0xFF800000> : vector<16xf32>
    %642 = vector.multi_reduction <maximumf>, %641, %cst_261 [1] : vector<16x16xf32> to vector<16xf32>
    %643 = vector.shape_cast %642 : vector<16xf32> to vector<16x1xf32>
    %644 = vector.broadcast %643 : vector<16x1xf32> to vector<16x16xf32>
    %645 = arith.subf %641, %644 : vector<16x16xf32>
    %646 = math.exp %645 : vector<16x16xf32>
    %cst_262 = arith.constant dense<0.000000e+00> : vector<16xf32>
    %647 = vector.multi_reduction <add>, %646, %cst_262 [1] : vector<16x16xf32> to vector<16xf32>
    %648 = vector.shape_cast %647 : vector<16xf32> to vector<16x1xf32>
    %649 = tpu.reciprocal %648 {approx = true} : vector<16x1xf32> -> vector<16x1xf32>
    %650 = vector.broadcast %649 : vector<16x1xf32> to vector<16x16xf32>
    %651 = arith.mulf %646, %650 : vector<16x16xf32>
    %652 = vector.extract_strided_slice %618 {offsets = [0, 8], sizes = [16, 8], strides = [1, 1]} : vector<16x32xf32> to vector<16x8xf32>
    %cst_263 = arith.constant dense<0.000000e+00> : vector<16x8xf32>
    %653 = tpu.matmul %651, %652, %cst_263 {dimension_numbers = #tpu.dot_dimension_numbers<[1], [0], [0], [1], [0, 0, 1, 1], [], []>} : vector<16x16xf32>, vector<16x8xf32>, vector<16x8xf32> -> vector<16x8xf32>
    %654 = vector.extract_strided_slice %619 {offsets = [8, 0], sizes = [8, 32], strides = [1, 1]} : vector<32x32xf32> to vector<8x32xf32>
    %cst_264 = arith.constant dense<0.000000e+00> : vector<16x32xf32>
    %655 = tpu.matmul %653, %654, %cst_264 {dimension_numbers = #tpu.dot_dimension_numbers<[1], [0], [0], [1], [0, 0, 1, 1], [], []>} : vector<16x8xf32>, vector<8x32xf32>, vector<16x32xf32> -> vector<16x32xf32>
    %656 = arith.addf %637, %655 : vector<16x32xf32>
    %657 = vector.extract_strided_slice %616 {offsets = [0, 16], sizes = [16, 8], strides = [1, 1]} : vector<16x32xf32> to vector<16x8xf32>
    %658 = vector.extract_strided_slice %617 {offsets = [0, 16], sizes = [16, 8], strides = [1, 1]} : vector<16x32xf32> to vector<16x8xf32>
    %cst_265 = arith.constant dense<0.000000e+00> : vector<16x16xf32>
    %659 = tpu.matmul %657, %658, %cst_265 {dimension_numbers = #tpu.dot_dimension_numbers<[1], [1], [0], [0], [0, 0, 1, 0], [], []>} : vector<16x8xf32>, vector<16x8xf32>, vector<16x16xf32> -> vector<16x16xf32>
    %660 = arith.addf %659, %31 : vector<16x16xf32>
    %cst_266 = arith.constant dense<0xFF800000> : vector<16xf32>
    %661 = vector.multi_reduction <maximumf>, %660, %cst_266 [1] : vector<16x16xf32> to vector<16xf32>
    %662 = vector.shape_cast %661 : vector<16xf32> to vector<16x1xf32>
    %663 = vector.broadcast %662 : vector<16x1xf32> to vector<16x16xf32>
    %664 = arith.subf %660, %663 : vector<16x16xf32>
    %665 = math.exp %664 : vector<16x16xf32>
    %cst_267 = arith.constant dense<0.000000e+00> : vector<16xf32>
    %666 = vector.multi_reduction <add>, %665, %cst_267 [1] : vector<16x16xf32> to vector<16xf32>
    %667 = vector.shape_cast %666 : vector<16xf32> to vector<16x1xf32>
    %668 = tpu.reciprocal %667 {approx = true} : vector<16x1xf32> -> vector<16x1xf32>
    %669 = vector.broadcast %668 : vector<16x1xf32> to vector<16x16xf32>
    %670 = arith.mulf %665, %669 : vector<16x16xf32>
    %671 = vector.extract_strided_slice %618 {offsets = [0, 16], sizes = [16, 8], strides = [1, 1]} : vector<16x32xf32> to vector<16x8xf32>
    %cst_268 = arith.constant dense<0.000000e+00> : vector<16x8xf32>
    %672 = tpu.matmul %670, %671, %cst_268 {dimension_numbers = #tpu.dot_dimension_numbers<[1], [0], [0], [1], [0, 0, 1, 1], [], []>} : vector<16x16xf32>, vector<16x8xf32>, vector<16x8xf32> -> vector<16x8xf32>
    %673 = vector.extract_strided_slice %619 {offsets = [16, 0], sizes = [8, 32], strides = [1, 1]} : vector<32x32xf32> to vector<8x32xf32>
    %cst_269 = arith.constant dense<0.000000e+00> : vector<16x32xf32>
    %674 = tpu.matmul %672, %673, %cst_269 {dimension_numbers = #tpu.dot_dimension_numbers<[1], [0], [0], [1], [0, 0, 1, 1], [], []>} : vector<16x8xf32>, vector<8x32xf32>, vector<16x32xf32> -> vector<16x32xf32>
    %675 = arith.addf %656, %674 : vector<16x32xf32>
    %676 = vector.extract_strided_slice %616 {offsets = [0, 24], sizes = [16, 8], strides = [1, 1]} : vector<16x32xf32> to vector<16x8xf32>
    %677 = vector.extract_strided_slice %617 {offsets = [0, 24], sizes = [16, 8], strides = [1, 1]} : vector<16x32xf32> to vector<16x8xf32>
    %cst_270 = arith.constant dense<0.000000e+00> : vector<16x16xf32>
    %678 = tpu.matmul %676, %677, %cst_270 {dimension_numbers = #tpu.dot_dimension_numbers<[1], [1], [0], [0], [0, 0, 1, 0], [], []>} : vector<16x8xf32>, vector<16x8xf32>, vector<16x16xf32> -> vector<16x16xf32>
    %679 = arith.addf %678, %31 : vector<16x16xf32>
    %cst_271 = arith.constant dense<0xFF800000> : vector<16xf32>
    %680 = vector.multi_reduction <maximumf>, %679, %cst_271 [1] : vector<16x16xf32> to vector<16xf32>
    %681 = vector.shape_cast %680 : vector<16xf32> to vector<16x1xf32>
    %682 = vector.broadcast %681 : vector<16x1xf32> to vector<16x16xf32>
    %683 = arith.subf %679, %682 : vector<16x16xf32>
    %684 = math.exp %683 : vector<16x16xf32>
    %cst_272 = arith.constant dense<0.000000e+00> : vector<16xf32>
    %685 = vector.multi_reduction <add>, %684, %cst_272 [1] : vector<16x16xf32> to vector<16xf32>
    %686 = vector.shape_cast %685 : vector<16xf32> to vector<16x1xf32>
    %687 = tpu.reciprocal %686 {approx = true} : vector<16x1xf32> -> vector<16x1xf32>
    %688 = vector.broadcast %687 : vector<16x1xf32> to vector<16x16xf32>
    %689 = arith.mulf %684, %688 : vector<16x16xf32>
    %690 = vector.extract_strided_slice %618 {offsets = [0, 24], sizes = [16, 8], strides = [1, 1]} : vector<16x32xf32> to vector<16x8xf32>
    %cst_273 = arith.constant dense<0.000000e+00> : vector<16x8xf32>
    %691 = tpu.matmul %689, %690, %cst_273 {dimension_numbers = #tpu.dot_dimension_numbers<[1], [0], [0], [1], [0, 0, 1, 1], [], []>} : vector<16x16xf32>, vector<16x8xf32>, vector<16x8xf32> -> vector<16x8xf32>
    %692 = vector.extract_strided_slice %619 {offsets = [24, 0], sizes = [8, 32], strides = [1, 1]} : vector<32x32xf32> to vector<8x32xf32>
    %cst_274 = arith.constant dense<0.000000e+00> : vector<16x32xf32>
    %693 = tpu.matmul %691, %692, %cst_274 {dimension_numbers = #tpu.dot_dimension_numbers<[1], [0], [0], [1], [0, 0, 1, 1], [], []>} : vector<16x8xf32>, vector<8x32xf32>, vector<16x32xf32> -> vector<16x32xf32>
    %694 = arith.addf %675, %693 : vector<16x32xf32>
    %c0_275 = arith.constant 0 : index
    %c0_276 = arith.constant 0 : index
    %695 = vector.load %arg33[%c0_275, %c0_276] : memref<1x32xf32, #tpu.memory_space<vmem>>, vector<1x32xf32>
    %696 = vector.broadcast %695 : vector<1x32xf32> to vector<16x32xf32>
    %697 = arith.addf %694, %696 : vector<16x32xf32>
    %698 = arith.addf %610, %697 : vector<16x32xf32>
    %cst_277 = arith.constant dense<0.000000e+00> : vector<16xf32>
    %699 = vector.multi_reduction <add>, %698, %cst_277 [1] : vector<16x32xf32> to vector<16xf32>
    %700 = vector.shape_cast %699 : vector<16xf32> to vector<16x1xf32>
    %cst_278 = arith.constant 3.200000e+01 : f32
    %701 = vector.broadcast %cst_278 : f32 to vector<16x1xf32>
    %702 = arith.divf %700, %701 : vector<16x1xf32>
    %703 = vector.broadcast %702 : vector<16x1xf32> to vector<16x32xf32>
    %704 = arith.subf %698, %703 : vector<16x32xf32>
    %705 = arith.mulf %704, %704 : vector<16x32xf32>
    %cst_279 = arith.constant dense<0.000000e+00> : vector<16xf32>
    %706 = vector.multi_reduction <add>, %705, %cst_279 [1] : vector<16x32xf32> to vector<16xf32>
    %707 = vector.shape_cast %706 : vector<16xf32> to vector<16x1xf32>
    %cst_280 = arith.constant 3.200000e+01 : f32
    %708 = vector.broadcast %cst_280 : f32 to vector<16x1xf32>
    %709 = arith.divf %707, %708 : vector<16x1xf32>
    %cst_281 = arith.constant 9.99999974E-6 : f32
    %710 = vector.broadcast %cst_281 : f32 to vector<16x1xf32>
    %711 = arith.addf %709, %710 : vector<16x1xf32>
    %712 = math.rsqrt %711 : vector<16x1xf32>
    %713 = vector.broadcast %712 : vector<16x1xf32> to vector<16x32xf32>
    %714 = arith.mulf %704, %713 : vector<16x32xf32>
    %c0_282 = arith.constant 0 : index
    %c0_283 = arith.constant 0 : index
    %715 = vector.load %arg27[%c0_282, %c0_283] : memref<1x32xf32, #tpu.memory_space<vmem>>, vector<1x32xf32>
    %716 = vector.broadcast %715 : vector<1x32xf32> to vector<16x32xf32>
    %717 = arith.mulf %714, %716 : vector<16x32xf32>
    %c0_284 = arith.constant 0 : index
    %c0_285 = arith.constant 0 : index
    %718 = vector.load %arg26[%c0_284, %c0_285] : memref<1x32xf32, #tpu.memory_space<vmem>>, vector<1x32xf32>
    %719 = vector.broadcast %718 : vector<1x32xf32> to vector<16x32xf32>
    %720 = arith.addf %717, %719 : vector<16x32xf32>
    %c0_286 = arith.constant 0 : index
    %c0_287 = arith.constant 0 : index
    %721 = vector.load %arg24[%c0_286, %c0_287] : memref<32x96xf32, #tpu.memory_space<vmem>>, vector<32x96xf32>
    %c0_288 = arith.constant 0 : index
    %c0_289 = arith.constant 0 : index
    %722 = vector.load %arg22[%c0_288, %c0_289] : memref<1x96xf32, #tpu.memory_space<vmem>>, vector<1x96xf32>
    %723 = vector.extract_strided_slice %721 {offsets = [0, 0], sizes = [32, 32], strides = [1, 1]} : vector<32x96xf32> to vector<32x32xf32>
    %cst_290 = arith.constant dense<0.000000e+00> : vector<16x32xf32>
    %724 = tpu.matmul %720, %723, %cst_290 {dimension_numbers = #tpu.dot_dimension_numbers<[1], [0], [0], [1], [0, 0, 1, 1], [], []>} : vector<16x32xf32>, vector<32x32xf32>, vector<16x32xf32> -> vector<16x32xf32>
    %725 = vector.extract_strided_slice %722 {offsets = [0, 0], sizes = [1, 32], strides = [1, 1]} : vector<1x96xf32> to vector<1x32xf32>
    %726 = vector.broadcast %725 : vector<1x32xf32> to vector<16x32xf32>
    %727 = arith.addf %724, %726 : vector<16x32xf32>
    %728 = vector.extract_strided_slice %721 {offsets = [0, 32], sizes = [32, 64], strides = [1, 1]} : vector<32x96xf32> to vector<32x64xf32>
    %cst_291 = arith.constant dense<0.000000e+00> : vector<16x64xf32>
    %729 = tpu.matmul %346, %728, %cst_291 {dimension_numbers = #tpu.dot_dimension_numbers<[1], [0], [0], [1], [0, 0, 1, 1], [], []>} : vector<16x32xf32>, vector<32x64xf32>, vector<16x64xf32> -> vector<16x64xf32>
    %730 = vector.extract_strided_slice %722 {offsets = [0, 32], sizes = [1, 64], strides = [1, 1]} : vector<1x96xf32> to vector<1x64xf32>
    %731 = vector.broadcast %730 : vector<1x64xf32> to vector<16x64xf32>
    %732 = arith.addf %729, %731 : vector<16x64xf32>
    %733 = vector.extract_strided_slice %732 {offsets = [0, 0], sizes = [16, 32], strides = [1, 1]} : vector<16x64xf32> to vector<16x32xf32>
    %734 = vector.extract_strided_slice %732 {offsets = [0, 32], sizes = [16, 32], strides = [1, 1]} : vector<16x64xf32> to vector<16x32xf32>
    %c0_292 = arith.constant 0 : index
    %c0_293 = arith.constant 0 : index
    %735 = vector.load %arg25[%c0_292, %c0_293] : memref<32x32xf32, #tpu.memory_space<vmem>>, vector<32x32xf32>
    %736 = vector.extract_strided_slice %727 {offsets = [0, 0], sizes = [16, 8], strides = [1, 1]} : vector<16x32xf32> to vector<16x8xf32>
    %737 = vector.extract_strided_slice %733 {offsets = [0, 0], sizes = [16, 8], strides = [1, 1]} : vector<16x32xf32> to vector<16x8xf32>
    %cst_294 = arith.constant dense<0.000000e+00> : vector<16x16xf32>
    %738 = tpu.matmul %736, %737, %cst_294 {dimension_numbers = #tpu.dot_dimension_numbers<[1], [1], [0], [0], [0, 0, 1, 0], [], []>} : vector<16x8xf32>, vector<16x8xf32>, vector<16x16xf32> -> vector<16x16xf32>
    %739 = arith.addf %738, %14 : vector<16x16xf32>
    %cst_295 = arith.constant dense<0xFF800000> : vector<16xf32>
    %740 = vector.multi_reduction <maximumf>, %739, %cst_295 [1] : vector<16x16xf32> to vector<16xf32>
    %741 = vector.shape_cast %740 : vector<16xf32> to vector<16x1xf32>
    %742 = vector.broadcast %741 : vector<16x1xf32> to vector<16x16xf32>
    %743 = arith.subf %739, %742 : vector<16x16xf32>
    %744 = math.exp %743 : vector<16x16xf32>
    %cst_296 = arith.constant dense<0.000000e+00> : vector<16xf32>
    %745 = vector.multi_reduction <add>, %744, %cst_296 [1] : vector<16x16xf32> to vector<16xf32>
    %746 = vector.shape_cast %745 : vector<16xf32> to vector<16x1xf32>
    %747 = tpu.reciprocal %746 {approx = true} : vector<16x1xf32> -> vector<16x1xf32>
    %748 = vector.broadcast %747 : vector<16x1xf32> to vector<16x16xf32>
    %749 = arith.mulf %744, %748 : vector<16x16xf32>
    %750 = vector.extract_strided_slice %734 {offsets = [0, 0], sizes = [16, 8], strides = [1, 1]} : vector<16x32xf32> to vector<16x8xf32>
    %cst_297 = arith.constant dense<0.000000e+00> : vector<16x8xf32>
    %751 = tpu.matmul %749, %750, %cst_297 {dimension_numbers = #tpu.dot_dimension_numbers<[1], [0], [0], [1], [0, 0, 1, 1], [], []>} : vector<16x16xf32>, vector<16x8xf32>, vector<16x8xf32> -> vector<16x8xf32>
    %752 = vector.extract_strided_slice %735 {offsets = [0, 0], sizes = [8, 32], strides = [1, 1]} : vector<32x32xf32> to vector<8x32xf32>
    %cst_298 = arith.constant dense<0.000000e+00> : vector<16x32xf32>
    %753 = tpu.matmul %751, %752, %cst_298 {dimension_numbers = #tpu.dot_dimension_numbers<[1], [0], [0], [1], [0, 0, 1, 1], [], []>} : vector<16x8xf32>, vector<8x32xf32>, vector<16x32xf32> -> vector<16x32xf32>
    %754 = vector.extract_strided_slice %727 {offsets = [0, 8], sizes = [16, 8], strides = [1, 1]} : vector<16x32xf32> to vector<16x8xf32>
    %755 = vector.extract_strided_slice %733 {offsets = [0, 8], sizes = [16, 8], strides = [1, 1]} : vector<16x32xf32> to vector<16x8xf32>
    %cst_299 = arith.constant dense<0.000000e+00> : vector<16x16xf32>
    %756 = tpu.matmul %754, %755, %cst_299 {dimension_numbers = #tpu.dot_dimension_numbers<[1], [1], [0], [0], [0, 0, 1, 0], [], []>} : vector<16x8xf32>, vector<16x8xf32>, vector<16x16xf32> -> vector<16x16xf32>
    %757 = arith.addf %756, %14 : vector<16x16xf32>
    %cst_300 = arith.constant dense<0xFF800000> : vector<16xf32>
    %758 = vector.multi_reduction <maximumf>, %757, %cst_300 [1] : vector<16x16xf32> to vector<16xf32>
    %759 = vector.shape_cast %758 : vector<16xf32> to vector<16x1xf32>
    %760 = vector.broadcast %759 : vector<16x1xf32> to vector<16x16xf32>
    %761 = arith.subf %757, %760 : vector<16x16xf32>
    %762 = math.exp %761 : vector<16x16xf32>
    %cst_301 = arith.constant dense<0.000000e+00> : vector<16xf32>
    %763 = vector.multi_reduction <add>, %762, %cst_301 [1] : vector<16x16xf32> to vector<16xf32>
    %764 = vector.shape_cast %763 : vector<16xf32> to vector<16x1xf32>
    %765 = tpu.reciprocal %764 {approx = true} : vector<16x1xf32> -> vector<16x1xf32>
    %766 = vector.broadcast %765 : vector<16x1xf32> to vector<16x16xf32>
    %767 = arith.mulf %762, %766 : vector<16x16xf32>
    %768 = vector.extract_strided_slice %734 {offsets = [0, 8], sizes = [16, 8], strides = [1, 1]} : vector<16x32xf32> to vector<16x8xf32>
    %cst_302 = arith.constant dense<0.000000e+00> : vector<16x8xf32>
    %769 = tpu.matmul %767, %768, %cst_302 {dimension_numbers = #tpu.dot_dimension_numbers<[1], [0], [0], [1], [0, 0, 1, 1], [], []>} : vector<16x16xf32>, vector<16x8xf32>, vector<16x8xf32> -> vector<16x8xf32>
    %770 = vector.extract_strided_slice %735 {offsets = [8, 0], sizes = [8, 32], strides = [1, 1]} : vector<32x32xf32> to vector<8x32xf32>
    %cst_303 = arith.constant dense<0.000000e+00> : vector<16x32xf32>
    %771 = tpu.matmul %769, %770, %cst_303 {dimension_numbers = #tpu.dot_dimension_numbers<[1], [0], [0], [1], [0, 0, 1, 1], [], []>} : vector<16x8xf32>, vector<8x32xf32>, vector<16x32xf32> -> vector<16x32xf32>
    %772 = arith.addf %753, %771 : vector<16x32xf32>
    %773 = vector.extract_strided_slice %727 {offsets = [0, 16], sizes = [16, 8], strides = [1, 1]} : vector<16x32xf32> to vector<16x8xf32>
    %774 = vector.extract_strided_slice %733 {offsets = [0, 16], sizes = [16, 8], strides = [1, 1]} : vector<16x32xf32> to vector<16x8xf32>
    %cst_304 = arith.constant dense<0.000000e+00> : vector<16x16xf32>
    %775 = tpu.matmul %773, %774, %cst_304 {dimension_numbers = #tpu.dot_dimension_numbers<[1], [1], [0], [0], [0, 0, 1, 0], [], []>} : vector<16x8xf32>, vector<16x8xf32>, vector<16x16xf32> -> vector<16x16xf32>
    %776 = arith.addf %775, %14 : vector<16x16xf32>
    %cst_305 = arith.constant dense<0xFF800000> : vector<16xf32>
    %777 = vector.multi_reduction <maximumf>, %776, %cst_305 [1] : vector<16x16xf32> to vector<16xf32>
    %778 = vector.shape_cast %777 : vector<16xf32> to vector<16x1xf32>
    %779 = vector.broadcast %778 : vector<16x1xf32> to vector<16x16xf32>
    %780 = arith.subf %776, %779 : vector<16x16xf32>
    %781 = math.exp %780 : vector<16x16xf32>
    %cst_306 = arith.constant dense<0.000000e+00> : vector<16xf32>
    %782 = vector.multi_reduction <add>, %781, %cst_306 [1] : vector<16x16xf32> to vector<16xf32>
    %783 = vector.shape_cast %782 : vector<16xf32> to vector<16x1xf32>
    %784 = tpu.reciprocal %783 {approx = true} : vector<16x1xf32> -> vector<16x1xf32>
    %785 = vector.broadcast %784 : vector<16x1xf32> to vector<16x16xf32>
    %786 = arith.mulf %781, %785 : vector<16x16xf32>
    %787 = vector.extract_strided_slice %734 {offsets = [0, 16], sizes = [16, 8], strides = [1, 1]} : vector<16x32xf32> to vector<16x8xf32>
    %cst_307 = arith.constant dense<0.000000e+00> : vector<16x8xf32>
    %788 = tpu.matmul %786, %787, %cst_307 {dimension_numbers = #tpu.dot_dimension_numbers<[1], [0], [0], [1], [0, 0, 1, 1], [], []>} : vector<16x16xf32>, vector<16x8xf32>, vector<16x8xf32> -> vector<16x8xf32>
    %789 = vector.extract_strided_slice %735 {offsets = [16, 0], sizes = [8, 32], strides = [1, 1]} : vector<32x32xf32> to vector<8x32xf32>
    %cst_308 = arith.constant dense<0.000000e+00> : vector<16x32xf32>
    %790 = tpu.matmul %788, %789, %cst_308 {dimension_numbers = #tpu.dot_dimension_numbers<[1], [0], [0], [1], [0, 0, 1, 1], [], []>} : vector<16x8xf32>, vector<8x32xf32>, vector<16x32xf32> -> vector<16x32xf32>
    %791 = arith.addf %772, %790 : vector<16x32xf32>
    %792 = vector.extract_strided_slice %727 {offsets = [0, 24], sizes = [16, 8], strides = [1, 1]} : vector<16x32xf32> to vector<16x8xf32>
    %793 = vector.extract_strided_slice %733 {offsets = [0, 24], sizes = [16, 8], strides = [1, 1]} : vector<16x32xf32> to vector<16x8xf32>
    %cst_309 = arith.constant dense<0.000000e+00> : vector<16x16xf32>
    %794 = tpu.matmul %792, %793, %cst_309 {dimension_numbers = #tpu.dot_dimension_numbers<[1], [1], [0], [0], [0, 0, 1, 0], [], []>} : vector<16x8xf32>, vector<16x8xf32>, vector<16x16xf32> -> vector<16x16xf32>
    %795 = arith.addf %794, %14 : vector<16x16xf32>
    %cst_310 = arith.constant dense<0xFF800000> : vector<16xf32>
    %796 = vector.multi_reduction <maximumf>, %795, %cst_310 [1] : vector<16x16xf32> to vector<16xf32>
    %797 = vector.shape_cast %796 : vector<16xf32> to vector<16x1xf32>
    %798 = vector.broadcast %797 : vector<16x1xf32> to vector<16x16xf32>
    %799 = arith.subf %795, %798 : vector<16x16xf32>
    %800 = math.exp %799 : vector<16x16xf32>
    %cst_311 = arith.constant dense<0.000000e+00> : vector<16xf32>
    %801 = vector.multi_reduction <add>, %800, %cst_311 [1] : vector<16x16xf32> to vector<16xf32>
    %802 = vector.shape_cast %801 : vector<16xf32> to vector<16x1xf32>
    %803 = tpu.reciprocal %802 {approx = true} : vector<16x1xf32> -> vector<16x1xf32>
    %804 = vector.broadcast %803 : vector<16x1xf32> to vector<16x16xf32>
    %805 = arith.mulf %800, %804 : vector<16x16xf32>
    %806 = vector.extract_strided_slice %734 {offsets = [0, 24], sizes = [16, 8], strides = [1, 1]} : vector<16x32xf32> to vector<16x8xf32>
    %cst_312 = arith.constant dense<0.000000e+00> : vector<16x8xf32>
    %807 = tpu.matmul %805, %806, %cst_312 {dimension_numbers = #tpu.dot_dimension_numbers<[1], [0], [0], [1], [0, 0, 1, 1], [], []>} : vector<16x16xf32>, vector<16x8xf32>, vector<16x8xf32> -> vector<16x8xf32>
    %808 = vector.extract_strided_slice %735 {offsets = [24, 0], sizes = [8, 32], strides = [1, 1]} : vector<32x32xf32> to vector<8x32xf32>
    %cst_313 = arith.constant dense<0.000000e+00> : vector<16x32xf32>
    %809 = tpu.matmul %807, %808, %cst_313 {dimension_numbers = #tpu.dot_dimension_numbers<[1], [0], [0], [1], [0, 0, 1, 1], [], []>} : vector<16x8xf32>, vector<8x32xf32>, vector<16x32xf32> -> vector<16x32xf32>
    %810 = arith.addf %791, %809 : vector<16x32xf32>
    %c0_314 = arith.constant 0 : index
    %c0_315 = arith.constant 0 : index
    %811 = vector.load %arg23[%c0_314, %c0_315] : memref<1x32xf32, #tpu.memory_space<vmem>>, vector<1x32xf32>
    %812 = vector.broadcast %811 : vector<1x32xf32> to vector<16x32xf32>
    %813 = arith.addf %810, %812 : vector<16x32xf32>
    %814 = arith.addf %720, %813 : vector<16x32xf32>
    %cst_316 = arith.constant dense<0.000000e+00> : vector<16xf32>
    %815 = vector.multi_reduction <add>, %814, %cst_316 [1] : vector<16x32xf32> to vector<16xf32>
    %816 = vector.shape_cast %815 : vector<16xf32> to vector<16x1xf32>
    %cst_317 = arith.constant 3.200000e+01 : f32
    %817 = vector.broadcast %cst_317 : f32 to vector<16x1xf32>
    %818 = arith.divf %816, %817 : vector<16x1xf32>
    %819 = vector.broadcast %818 : vector<16x1xf32> to vector<16x32xf32>
    %820 = arith.subf %814, %819 : vector<16x32xf32>
    %821 = arith.mulf %820, %820 : vector<16x32xf32>
    %cst_318 = arith.constant dense<0.000000e+00> : vector<16xf32>
    %822 = vector.multi_reduction <add>, %821, %cst_318 [1] : vector<16x32xf32> to vector<16xf32>
    %823 = vector.shape_cast %822 : vector<16xf32> to vector<16x1xf32>
    %cst_319 = arith.constant 3.200000e+01 : f32
    %824 = vector.broadcast %cst_319 : f32 to vector<16x1xf32>
    %825 = arith.divf %823, %824 : vector<16x1xf32>
    %cst_320 = arith.constant 9.99999974E-6 : f32
    %826 = vector.broadcast %cst_320 : f32 to vector<16x1xf32>
    %827 = arith.addf %825, %826 : vector<16x1xf32>
    %828 = math.rsqrt %827 : vector<16x1xf32>
    %829 = vector.broadcast %828 : vector<16x1xf32> to vector<16x32xf32>
    %830 = arith.mulf %820, %829 : vector<16x32xf32>
    %c0_321 = arith.constant 0 : index
    %c0_322 = arith.constant 0 : index
    %831 = vector.load %arg29[%c0_321, %c0_322] : memref<1x32xf32, #tpu.memory_space<vmem>>, vector<1x32xf32>
    %832 = vector.broadcast %831 : vector<1x32xf32> to vector<16x32xf32>
    %833 = arith.mulf %830, %832 : vector<16x32xf32>
    %c0_323 = arith.constant 0 : index
    %c0_324 = arith.constant 0 : index
    %834 = vector.load %arg28[%c0_323, %c0_324] : memref<1x32xf32, #tpu.memory_space<vmem>>, vector<1x32xf32>
    %835 = vector.broadcast %834 : vector<1x32xf32> to vector<16x32xf32>
    %836 = arith.addf %833, %835 : vector<16x32xf32>
    %c0_325 = arith.constant 0 : index
    %c0_326 = arith.constant 0 : index
    %837 = vector.load %arg36[%c0_325, %c0_326] : memref<32x64xf32, #tpu.memory_space<vmem>>, vector<32x64xf32>
    %cst_327 = arith.constant dense<0.000000e+00> : vector<16x64xf32>
    %838 = tpu.matmul %836, %837, %cst_327 {dimension_numbers = #tpu.dot_dimension_numbers<[1], [0], [0], [1], [0, 0, 1, 1], [], []>} : vector<16x32xf32>, vector<32x64xf32>, vector<16x64xf32> -> vector<16x64xf32>
    %c0_328 = arith.constant 0 : index
    %c0_329 = arith.constant 0 : index
    %839 = vector.load %arg20[%c0_328, %c0_329] : memref<1x64xf32, #tpu.memory_space<vmem>>, vector<1x64xf32>
    %840 = vector.broadcast %839 : vector<1x64xf32> to vector<16x64xf32>
    %841 = arith.addf %838, %840 : vector<16x64xf32>
    %cst_330 = arith.constant 0.000000e+00 : f32
    %842 = vector.broadcast %cst_330 : f32 to vector<16x64xf32>
    %843 = arith.maximumf %841, %842 : vector<16x64xf32>
    %c0_331 = arith.constant 0 : index
    %c0_332 = arith.constant 0 : index
    %844 = vector.load %arg37[%c0_331, %c0_332] : memref<64x32xf32, #tpu.memory_space<vmem>>, vector<64x32xf32>
    %cst_333 = arith.constant dense<0.000000e+00> : vector<16x32xf32>
    %845 = tpu.matmul %843, %844, %cst_333 {dimension_numbers = #tpu.dot_dimension_numbers<[1], [0], [0], [1], [0, 0, 1, 1], [], []>} : vector<16x64xf32>, vector<64x32xf32>, vector<16x32xf32> -> vector<16x32xf32>
    %c0_334 = arith.constant 0 : index
    %c0_335 = arith.constant 0 : index
    %846 = vector.load %arg21[%c0_334, %c0_335] : memref<1x32xf32, #tpu.memory_space<vmem>>, vector<1x32xf32>
    %847 = vector.broadcast %846 : vector<1x32xf32> to vector<16x32xf32>
    %848 = arith.addf %845, %847 : vector<16x32xf32>
    %849 = arith.addf %836, %848 : vector<16x32xf32>
    %cst_336 = arith.constant dense<0.000000e+00> : vector<16xf32>
    %850 = vector.multi_reduction <add>, %849, %cst_336 [1] : vector<16x32xf32> to vector<16xf32>
    %851 = vector.shape_cast %850 : vector<16xf32> to vector<16x1xf32>
    %cst_337 = arith.constant 3.200000e+01 : f32
    %852 = vector.broadcast %cst_337 : f32 to vector<16x1xf32>
    %853 = arith.divf %851, %852 : vector<16x1xf32>
    %854 = vector.broadcast %853 : vector<16x1xf32> to vector<16x32xf32>
    %855 = arith.subf %849, %854 : vector<16x32xf32>
    %856 = arith.mulf %855, %855 : vector<16x32xf32>
    %cst_338 = arith.constant dense<0.000000e+00> : vector<16xf32>
    %857 = vector.multi_reduction <add>, %856, %cst_338 [1] : vector<16x32xf32> to vector<16xf32>
    %858 = vector.shape_cast %857 : vector<16xf32> to vector<16x1xf32>
    %cst_339 = arith.constant 3.200000e+01 : f32
    %859 = vector.broadcast %cst_339 : f32 to vector<16x1xf32>
    %860 = arith.divf %858, %859 : vector<16x1xf32>
    %cst_340 = arith.constant 9.99999974E-6 : f32
    %861 = vector.broadcast %cst_340 : f32 to vector<16x1xf32>
    %862 = arith.addf %860, %861 : vector<16x1xf32>
    %863 = math.rsqrt %862 : vector<16x1xf32>
    %864 = vector.broadcast %863 : vector<16x1xf32> to vector<16x32xf32>
    %865 = arith.mulf %855, %864 : vector<16x32xf32>
    %c0_341 = arith.constant 0 : index
    %c0_342 = arith.constant 0 : index
    %866 = vector.load %arg31[%c0_341, %c0_342] : memref<1x32xf32, #tpu.memory_space<vmem>>, vector<1x32xf32>
    %867 = vector.broadcast %866 : vector<1x32xf32> to vector<16x32xf32>
    %868 = arith.mulf %865, %867 : vector<16x32xf32>
    %c0_343 = arith.constant 0 : index
    %c0_344 = arith.constant 0 : index
    %869 = vector.load %arg30[%c0_343, %c0_344] : memref<1x32xf32, #tpu.memory_space<vmem>>, vector<1x32xf32>
    %870 = vector.broadcast %869 : vector<1x32xf32> to vector<16x32xf32>
    %871 = arith.addf %868, %870 : vector<16x32xf32>
    %cst_345 = arith.constant dense<0.000000e+00> : vector<16xf32>
    %872 = vector.multi_reduction <add>, %871, %cst_345 [1] : vector<16x32xf32> to vector<16xf32>
    %873 = vector.shape_cast %872 : vector<16xf32> to vector<16x1xf32>
    %cst_346 = arith.constant 3.200000e+01 : f32
    %874 = vector.broadcast %cst_346 : f32 to vector<16x1xf32>
    %875 = arith.divf %873, %874 : vector<16x1xf32>
    %876 = vector.broadcast %875 : vector<16x1xf32> to vector<16x32xf32>
    %877 = arith.subf %871, %876 : vector<16x32xf32>
    %878 = arith.mulf %877, %877 : vector<16x32xf32>
    %cst_347 = arith.constant dense<0.000000e+00> : vector<16xf32>
    %879 = vector.multi_reduction <add>, %878, %cst_347 [1] : vector<16x32xf32> to vector<16xf32>
    %880 = vector.shape_cast %879 : vector<16xf32> to vector<16x1xf32>
    %cst_348 = arith.constant 3.200000e+01 : f32
    %881 = vector.broadcast %cst_348 : f32 to vector<16x1xf32>
    %882 = arith.divf %880, %881 : vector<16x1xf32>
    %cst_349 = arith.constant 9.99999974E-6 : f32
    %883 = vector.broadcast %cst_349 : f32 to vector<16x1xf32>
    %884 = arith.addf %882, %883 : vector<16x1xf32>
    %885 = math.rsqrt %884 : vector<16x1xf32>
    %886 = vector.broadcast %885 : vector<16x1xf32> to vector<16x32xf32>
    %887 = arith.mulf %877, %886 : vector<16x32xf32>
    %c0_350 = arith.constant 0 : index
    %c0_351 = arith.constant 0 : index
    %888 = vector.load %arg39[%c0_350, %c0_351] : memref<1x32xf32, #tpu.memory_space<vmem>>, vector<1x32xf32>
    %889 = vector.broadcast %888 : vector<1x32xf32> to vector<16x32xf32>
    %890 = arith.mulf %887, %889 : vector<16x32xf32>
    %c0_352 = arith.constant 0 : index
    %c0_353 = arith.constant 0 : index
    %891 = vector.load %arg38[%c0_352, %c0_353] : memref<1x32xf32, #tpu.memory_space<vmem>>, vector<1x32xf32>
    %892 = vector.broadcast %891 : vector<1x32xf32> to vector<16x32xf32>
    %893 = arith.addf %890, %892 : vector<16x32xf32>
    %c0_354 = arith.constant 0 : index
    %c0_355 = arith.constant 0 : index
    %894 = vector.load %arg1[%c0_354, %c0_355] : memref<32x1xf32, #tpu.memory_space<vmem>>, vector<32x1xf32>
    %cst_356 = arith.constant dense<0.000000e+00> : vector<16x1xf32>
    %895 = tpu.matmul %893, %894, %cst_356 {dimension_numbers = #tpu.dot_dimension_numbers<[1], [0], [0], [1], [0, 0, 1, 1], [], []>} : vector<16x32xf32>, vector<32x1xf32>, vector<16x1xf32> -> vector<16x1xf32>
    %c0_357 = arith.constant 0 : index
    %c0_358 = arith.constant 0 : index
    %896 = vector.load %arg0[%c0_357, %c0_358] : memref<1x1xf32, #tpu.memory_space<vmem>>, vector<1x1xf32>
    %897 = vector.broadcast %896 : vector<1x1xf32> to vector<16x1xf32>
    %898 = arith.addf %895, %897 : vector<16x1xf32>
    %c0_359 = arith.constant 0 : index
    %c0_360 = arith.constant 0 : index
    %899 = vector.load %arg76[%c0_359, %c0_360] : memref<16x1xf32, #tpu.memory_space<vmem>>, vector<16x1xf32>
    tpu.vector_store %arg76[%c0_359, %c0_360], %898 {strides = array<i32>} : memref<16x1xf32, #tpu.memory_space<vmem>>, vector<16x1xf32>,
    return
  }
}

</mosaic_0001>

<bundles_post_ra>
// kernel: forward.1
= control target key start
LH: loop header
LB: loop body
LE: loop exit
PB: predicated region body
PF: predicated region fallthrough
CT: control target
= control target key end

     0   :  { %s12611_s6 = smov 1   ;;  %s12612_s10 = smov 2   ;;  %s14149_s0 = inlined_call_operand.smem [shape: u32[77], index: -1, kind: input, shape index: {}] }
   0x1   :  { %s1_s5 = sld [smem:[%s14149_s0]]   ;;  %s12613_s14 = smov 3  }
   0x2   :  { %s12729_s9 = sld [smem:[%s14149_s0 + %s12611_s6]]   ;;  %s12614_s18 = smov 4  }
   0x3   :  { %s12734_s13 = sld [smem:[%s14149_s0 + %s12612_s10]]   ;;  %s12615_s22 = smov 5  }
   0x4   :  { %s12739_s17 = sld [smem:[%s14149_s0 + %s12613_s14]]   ;;  %s12616_s26 = smov 6  }
   0x5   :  { %s12744_s21 = sld [smem:[%s14149_s0 + %s12614_s18]]   ;;  %s12617_s30 = smov 7  }
   0x6   :  { %s12749_s25 = sld [smem:[%s14149_s0 + %s12615_s22]]   ;;  %s12618_s4 = smov 8  }
   0x7   :  { %s12754_s29 = sld [smem:[%s14149_s0 + %s12616_s26]]   ;;  %v158_v0 = vstv %s1_s5  ;;  %s12619_s10 = smov 9  }
   0x8   :  { %14180 = sst [smem:[#allocation38_spill]] %s12729_s9  ;;  %159 = vst [vmem:[#allocation2] sm:$0x1] %v158_v0  ;;  %s12620_s15 = smov 10  }
   0x9   :  { %14181 = sst [smem:[#allocation39_spill]] %s12734_s13  ;;  %s12621_s5 = smov 11  }
   0xa   :  { %14182 = sst [smem:[#allocation40_spill]] %s12739_s17  ;;  %s12622_s24 = smov 12  }
   0xb   :  { %14183 = sst [smem:[#allocation41_spill]] %s12744_s21  ;;  %s12624_s6 = smov 14  }
   0xc   :  { %14184 = sst [smem:[#allocation42_spill]] %s12749_s25  ;;  %s12625_s12 = smov 15  }
   0xd   :  { %14185 = sst [smem:[#allocation43_spill]] %s12754_s29  ;;  %s12627_s26 = smov 17  }
   0xe   :  { %s12759_s3 = sld [smem:[%s14149_s0 + %s12617_s30]]   ;;  %s12623_s30 = smov 13  }
   0xf   :  { %s12764_s8 = sld [smem:[%s14149_s0 + %s12618_s4]]   ;;  %s12628_s2 = smov 18  }
  0x10   :  { %s12769_s14 = sld [smem:[%s14149_s0 + %s12619_s10]]  }
  0x11   :  { %s12774_s19 = sld [smem:[%s14149_s0 + %s12620_s15]]  }
  0x12   :  { %s12779_s23 = sld [smem:[%s14149_s0 + %s12621_s5]]   ;;  %s12626_s5 = smov 16  }
  0x13   :  { %s12784_s28 = sld [smem:[%s14149_s0 + %s12622_s24]]  }
  0x14   :  { %14186 = sst [smem:[#allocation44_spill]] %s12759_s3 }
  0x15   :  { %14187 = sst [smem:[#allocation45_spill]] %s12764_s8 }
  0x16   :  { %14188 = sst [smem:[#allocation46_spill]] %s12769_s14 }
  0x17   :  { %14189 = sst [smem:[#allocation47_spill]] %s12774_s19 }
  0x18   :  { %14190 = sst [smem:[#allocation48_spill]] %s12779_s23 }
  0x19   :  { %14191 = sst [smem:[#allocation49_spill]] %s12784_s28 }
  0x1a   :  { %s12789_s4 = sld [smem:[%s14149_s0 + %s12623_s30]]  }
  0x1b   :  { %s12794_s11 = sld [smem:[%s14149_s0 + %s12624_s6]]  }
  0x1c   :  { %s12799_s18 = sld [smem:[%s14149_s0 + %s12625_s12]]   ;;  %s12629_s12 = smov 19  }
  0x1d   :  { %s12804_s24 = sld [smem:[%s14149_s0 + %s12626_s5]]   ;;  %s12630_s5 = smov 20  }
  0x1e   :  { %s12809_s1 = sld [smem:[%s14149_s0 + %s12627_s26]]   ;;  %s12631_s26 = smov 21  }
  0x1f   :  { %s12814_s10 = sld [smem:[%s14149_s0 + %s12628_s2]]   ;;  %s12632_s2 = smov 22  }
  0x20   :  { %14192 = sst [smem:[#allocation50_spill]] %s12789_s4 }
  0x21   :  { %14193 = sst [smem:[#allocation51_spill]] %s12794_s11 }
  0x22   :  { %14194 = sst [smem:[#allocation52_spill]] %s12799_s18 }
  0x23   :  { %14195 = sst [smem:[#allocation53_spill]] %s12804_s24 }
  0x24   :  { %14196 = sst [smem:[#allocation54_spill]] %s12809_s1 }
  0x25   :  { %14197 = sst [smem:[#allocation55_spill]] %s12814_s10 }
  0x26   :  { %s12819_s9 = sld [smem:[%s14149_s0 + %s12629_s12]]   ;;  %s12633_s12 = smov 23  }
  0x27   :  { %s12824_s28 = sld [smem:[%s14149_s0 + %s12630_s5]]   ;;  %s12634_s5 = smov 24  }
  0x28   :  { %s12829_s4 = sld [smem:[%s14149_s0 + %s12631_s26]]   ;;  %s12635_s26 = smov 25  }
  0x29   :  { %s12834_s17 = sld [smem:[%s14149_s0 + %s12632_s2]]   ;;  %s12636_s2 = smov 26  }
  0x2a   :  { %s12839_s13 = sld [smem:[%s14149_s0 + %s12633_s12]]   ;;  %s12637_s12 = smov 27  }
  0x2c   :  { %14198 = sst [smem:[#allocation56_spill]] %s12819_s9 }
  0x2d   :  { %14199 = sst [smem:[#allocation57_spill]] %s12824_s28 }
  0x2e   :  { %14200 = sst [smem:[#allocation58_spill]] %s12829_s4 }
  0x2f   :  { %14201 = sst [smem:[#allocation59_spill]] %s12834_s17 }
  0x30   :  { %14202 = sst [smem:[#allocation60_spill]] %s12839_s13 }
  0x31   :  { %s12844_s28 = sld [smem:[%s14149_s0 + %s12634_s5]]   ;;  %s12638_s5 = smov 28  }
  0x32   :  { %s12849_s4 = sld [smem:[%s14149_s0 + %s12635_s26]]   ;;  %s12639_s26 = smov 29  }
  0x33   :  { %s12854_s17 = sld [smem:[%s14149_s0 + %s12636_s2]]   ;;  %s12640_s2 = smov 30  }
  0x34   :  { %s12859_s13 = sld [smem:[%s14149_s0 + %s12637_s12]]   ;;  %s12641_s12 = smov 31  }
  0x37   :  { %14203 = sst [smem:[#allocation61_spill]] %s12844_s28 }
  0x38   :  { %14204 = sst [smem:[#allocation62_spill]] %s12849_s4 }
  0x39   :  { %14205 = sst [smem:[#allocation63_spill]] %s12854_s17 }
  0x3a   :  { %14206 = sst [smem:[#allocation64_spill]] %s12859_s13 }
  0x3b   :  { %s12864_s28 = sld [smem:[%s14149_s0 + %s12638_s5]]   ;;  %s12642_s5 = smov 32  }
  0x3c   :  { %s12869_s4 = sld [smem:[%s14149_s0 + %s12639_s26]]   ;;  %s12643_s26 = smov 33  }
  0x3d   :  { %s12874_s17 = sld [smem:[%s14149_s0 + %s12640_s2]]   ;;  %s12644_s2 = smov 34  }
  0x3e   :  { %s12879_s13 = sld [smem:[%s14149_s0 + %s12641_s12]]   ;;  %s12645_s12 = smov 35  }
  0x41   :  { %14207 = sst [smem:[#allocation65_spill]] %s12864_s28 }
  0x42   :  { %14208 = sst [smem:[#allocation66_spill]] %s12869_s4 }
  0x43   :  { %14209 = sst [smem:[#allocation67_spill]] %s12874_s17 }
  0x44   :  { %14210 = sst [smem:[#allocation68_spill]] %s12879_s13 }
  0x45   :  { %s12884_s28 = sld [smem:[%s14149_s0 + %s12642_s5]]   ;;  %s12646_s5 = smov 36  }
  0x46   :  { %s12889_s4 = sld [smem:[%s14149_s0 + %s12643_s26]]   ;;  %s12647_s26 = smov 37  }
  0x47   :  { %s12894_s17 = sld [smem:[%s14149_s0 + %s12644_s2]]   ;;  %s12648_s2 = smov 38  }
  0x48   :  { %s12899_s13 = sld [smem:[%s14149_s0 + %s12645_s12]]   ;;  %s12649_s12 = smov 39  }
  0x4b   :  { %14211 = sst [smem:[#allocation69_spill]] %s12884_s28 }
  0x4c   :  { %14212 = sst [smem:[#allocation70_spill]] %s12889_s4 }
  0x4d   :  { %14213 = sst [smem:[#allocation71_spill]] %s12894_s17 }
  0x4e   :  { %14214 = sst [smem:[#allocation72_spill]] %s12899_s13 }
  0x4f   :  { %s12904_s28 = sld [smem:[%s14149_s0 + %s12646_s5]]   ;;  %s12650_s5 = smov 40  }
  0x50   :  { %s12909_s4 = sld [smem:[%s14149_s0 + %s12647_s26]]   ;;  %s12651_s26 = smov 41  }
  0x51   :  { %s12914_s17 = sld [smem:[%s14149_s0 + %s12648_s2]]   ;;  %s12652_s2 = smov 42  }
  0x52   :  { %s12919_s13 = sld [smem:[%s14149_s0 + %s12649_s12]]   ;;  %s12653_s12 = smov 43  }
  0x53   :  { %s12939_s19 = sld [smem:[%s14149_s0 + %s12653_s12]]   ;;  %s12657_s12 = smov 47  }
  0x54   :  { %s12959_s25 = sld [smem:[%s14149_s0 + %s12657_s12]]   ;;  %s12661_s12 = smov 51  }
  0x55   :  { %14215 = sst [smem:[#allocation73_spill]] %s12904_s28 }
  0x56   :  { %14216 = sst [smem:[#allocation74_spill]] %s12909_s4 }
  0x57   :  { %14217 = sst [smem:[#allocation75_spill]] %s12914_s17 }
  0x58   :  { %s12924_s28 = sld [smem:[%s14149_s0 + %s12650_s5]]   ;;  %s12654_s5 = smov 44  }
  0x59   :  { %s12929_s4 = sld [smem:[%s14149_s0 + %s12651_s26]]   ;;  %s12655_s26 = smov 45  }
  0x5a   :  { %s12934_s17 = sld [smem:[%s14149_s0 + %s12652_s2]]   ;;  %s12656_s2 = smov 46  }
  0x5b   :  { %s12944_s23 = sld [smem:[%s14149_s0 + %s12654_s5]]   ;;  %s12658_s5 = smov 48  }
  0x5c   :  { %s12949_s9 = sld [smem:[%s14149_s0 + %s12655_s26]]   ;;  %s12659_s26 = smov 49  }
  0x5d   :  { %s12954_s10 = sld [smem:[%s14149_s0 + %s12656_s2]]   ;;  %s12660_s2 = smov 50  }
  0x5e   :  { %s12964_s3 = sld [smem:[%s14149_s0 + %s12658_s5]]   ;;  %s12662_s5 = smov 52  }
  0x5f   :  { %s12969_s8 = sld [smem:[%s14149_s0 + %s12659_s26]]   ;;  %s12663_s26 = smov 53  }
  0x60   :  { %s12974_s14 = sld [smem:[%s14149_s0 + %s12660_s2]]   ;;  %s12664_s2 = smov 54  }
  0x61   :  { %s12979_s21 = sld [smem:[%s14149_s0 + %s12661_s12]]   ;;  %s12665_s12 = smov 55  }
  0x62   :  { %s12984_s29 = sld [smem:[%s14149_s0 + %s12662_s5]]   ;;  %s12666_s5 = smov 56  }
  0x63   :  { %14218 = sst [smem:[#allocation76_spill]] %s12954_s10 }
  0x64   :  { %14219 = sst [smem:[#allocation77_spill]] %s12964_s3 }
  0x65   :  { %14220 = sst [smem:[#allocation78_spill]] %s12969_s8 }
  0x66   :  { %14221 = sst [smem:[#allocation79_spill]] %s12974_s14 }
  0x67   :  { %14222 = sst [smem:[#allocation80_spill]] %s12979_s21 }
  0x68   :  { %s12989_s18 = sld [smem:[%s14149_s0 + %s12663_s26]]   ;;  %s12667_s26 = smov 57  }
  0x69   :  { %s12994_s1 = sld [smem:[%s14149_s0 + %s12664_s2]]   ;;  %s12668_s2 = smov 58  }
  0x6a   :  { %s12999_s11 = sld [smem:[%s14149_s0 + %s12665_s12]]   ;;  %s12669_s12 = smov 59  }
  0x6b   :  { %s13004_s24 = sld [smem:[%s14149_s0 + %s12666_s5]]   ;;  %s12670_s5 = smov 60  }
  0x6c   :  { %s13009_s21 = sld [smem:[%s14149_s0 + %s12667_s26]]   ;;  %s12671_s26 = smov 61  }
  0x6d   :  { %s13014_s14 = sld [smem:[%s14149_s0 + %s12668_s2]]   ;;  %s12672_s2 = smov 62  }
  0x6e   :  { %s13019_s8 = sld [smem:[%s14149_s0 + %s12669_s12]]   ;;  %s12673_s12 = smov 63  }
  0x6f   :  { %s13024_s10 = sld [smem:[%s14149_s0 + %s12670_s5]]   ;;  %s12674_s5 = smov 64  }
  0x70   :  { %s13029_s3 = sld [smem:[%s14149_s0 + %s12671_s26]]   ;;  %s12675_s26 = smov 65  }
  0x71   :  { %14223 = sst [smem:[#allocation81_spill]] %s13004_s24 }
  0x73   :  { %14224 = sst [smem:[#allocation82_spill]] %s13014_s14 }
  0x74   :  { %14225 = sst [smem:[#allocation83_spill]] %s13019_s8 }
  0x75   :  { %14226 = sst [smem:[#allocation84_spill]] %s13024_s10 }
  0x76   :  { %14227 = sst [smem:[#allocation85_spill]] %s13029_s3 }
  0x77   :  { %s13034_s14 = sld [smem:[%s14149_s0 + %s12672_s2]]   ;;  %s12676_s2 = smov 66  }
  0x78   :  { %s13039_s8 = sld [smem:[%s14149_s0 + %s12673_s12]]   ;;  %s12677_s12 = smov 67  }
  0x79   :  { %s13044_s10 = sld [smem:[%s14149_s0 + %s12674_s5]]   ;;  %s12678_s5 = smov 68  }
  0x7a   :  { %s13049_s3 = sld [smem:[%s14149_s0 + %s12675_s26]]   ;;  %s12679_s26 = smov 69  }
  0x7b   :  { %s13064_s24 = sld [smem:[%s14149_s0 + %s12678_s5]]   ;;  %s12682_s5 = smov 72  }
  0x7d   :  { %14228 = sst [smem:[#allocation86_spill]] %s13034_s14 }
  0x7e   :  { %14229 = sst [smem:[#allocation87_spill]] %s13039_s8 }
  0x7f   :  { %s13054_s14 = sld [smem:[%s14149_s0 + %s12676_s2]]   ;;  %s12680_s2 = smov 70  }
  0x80   :  { %14230 = sst [smem:[#allocation88_spill]] %s13049_s3 }
  0x81   :  { %s13059_s8 = sld [smem:[%s14149_s0 + %s12677_s12]]   ;;  %s12681_s12 = smov 71  }
  0x82   :  { %14233 = sst [smem:[#allocation91_spill]] %s13064_s24 }
  0x83   :  { %s13069_s3 = sld [smem:[%s14149_s0 + %s12679_s26]]   ;;  %s12683_s26 = smov 73  }
  0x84   :  { %s13084_s24 = sld [smem:[%s14149_s0 + %s12682_s5]]   ;;  %s12686_s5 = smov 76  }
  0x85   :  { %14231 = sst [smem:[#allocation89_spill]] %s13054_s14 }
  0x86   :  { %s13074_s14 = sld [smem:[%s14149_s0 + %s12680_s2]]   ;;  %s12684_s2 = smov 74  }
  0x87   :  { %14232 = sst [smem:[#allocation90_spill]] %s13059_s8 }
  0x88   :  { %s13079_s8 = sld [smem:[%s14149_s0 + %s12681_s12]]   ;;  %s12685_s12 = smov 75  }
  0x89   :  { %14234 = sst [smem:[#allocation92_spill]] %s13069_s3 }
  0x8a   :  { %14237 = sst [smem:[#allocation95_spill]] %s13084_s24 }
  0x8b   :  { %s13089_s3 = sld [smem:[%s14149_s0 + %s12683_s26]]  }
  0x8c   :  { %14235 = sst [smem:[#allocation93_spill]] %s13074_s14 }
  0x8d   :  { %s13094_s14 = sld [smem:[%s14149_s0 + %s12684_s2]]  }
  0x8e   :  { %14236 = sst [smem:[#allocation94_spill]] %s13079_s8 }
  0x8f   :  { %s13099_s8 = sld [smem:[%s14149_s0 + %s12685_s12]]  }
  0x90   :  { %s13104_s24 = sld [smem:[%s14149_s0 + %s12686_s5]]  }
  0x91   :  { %160 = vsyncpa [#allocation4], 0 }
  0x92   :  { %161 = vsyncpa [#allocation6], 0 }
  0x93   :  { %162 = vsyncpa [#allocation9], 0 }
  0x94   :  { %163 = vsyncpa [#allocation12], 0 }
  0x95   :  { %164 = vsyncpa [#allocation15], 0 }
  0x96   :  { %165 = vsyncpa [#allocation18], 0 }
  0x97   :  { %166 = vsyncpa [#allocation21], 0 }
  0x98   :  { %167 = vsyncpa [#allocation24], 0 }
  0x99   :  { %168 = vsyncpa [#allocation27], 0  ;;  %s12687_s26 = smov [#allocation5]   ;;  %s12688_s30 = smov [#allocation8]  }
  0x9a   :  { %s263_s27 = sshll.u32 %s12687_s26, 4  ;;  %s283_s2 = sshll.u32 %s12688_s30, 4  ;;  %s264_s27 = int_to_ptr.vmem [resolvable:$true] %s263_s27  ;;  %s284_s2 = int_to_ptr.vmem [resolvable:$true] %s283_s2 }
  0x9b   :  { %s12219_s0 = scalar_lea.hbm %s12924_s28, 16 }
  0x9c   :  { %p12220_p0 = scmp.ne.s32.totalorder %s12924_s28, %s12219_s0  ;;  %p12223_p1 = scmp.lt.u32.totalorder %s12219_s0, %s12924_s28 }
  0x9e   :  { %p12225_p2 = pnand %p12223_p1, %p12220_p0 }
  0xa0   :  { %12228 = shalt.err (!%p12225_p2)
}
  0xa1   :  { %s12229_s6 = scalar_lea.vmem %s264_s27, 16  ;;  %s12233_s7 = scalar_lea.vmem %s264_s27, 32 }
  0xa2   :  { %p12230_p3 = scmp.ne.s32.totalorder %s264_s27, %s12229_s6  ;;  %p12234_p4 = scmp.lt.s32.totalorder %s264_s27, %s264_s27 }
  0xa3   :  { %p12235_p5 = scmp.lt.s32.totalorder %s12233_s7, %s12229_s6 }
  0xa5   :  { %p12236_p6 = por %p12235_p5, %p12234_p4 }
  0xa7   :  { %p12237_p7 = pnand %p12236_p6, %p12230_p3 }
  0xa9   :  { %12240 = shalt.err (!%p12237_p7)
}
  0xaa   :  { %266 = dma.hbm_to_vmem [thread:$0]  %s12924_s28, 16, %s264_s27, [#allocation6]  }
  0xab   :  { %s12241_s12 = scalar_lea.hbm %s12934_s17, 16 }
  0xac   :  { %p12242_p8 = scmp.ne.s32.totalorder %s12934_s17, %s12241_s12  ;;  %p12245_p9 = scmp.lt.u32.totalorder %s12241_s12, %s12934_s17 }
  0xae   :  { %p12247_p10 = pnand %p12245_p9, %p12242_p8 }
  0xb0   :  { %12250 = shalt.err (!%p12247_p10)
}
  0xb1   :  { %s12251_s15 = scalar_lea.vmem %s284_s2, 16  ;;  %s12255_s16 = scalar_lea.vmem %s284_s2, 32 }
  0xb2   :  { %p12252_p11 = scmp.ne.s32.totalorder %s284_s2, %s12251_s15  ;;  %p12256_p12 = scmp.lt.s32.totalorder %s284_s2, %s284_s2 }
  0xb3   :  { %p12257_p13 = scmp.lt.s32.totalorder %s12255_s16, %s12251_s15 }
  0xb5   :  { %p12258_p0 = por %p12257_p13, %p12256_p12 }
  0xb7   :  { %p12259_p1 = pnand %p12258_p0, %p12252_p11 }
  0xb9   :  { %12262 = shalt.err (!%p12259_p1)
}
  0xba   :  { %286 = dma.hbm_to_vmem [thread:$0]  %s12934_s17, 16, %s284_s2, [#allocation9]  }
  0xbb   :  { %s12689_s5 = smov [#allocation11]   ;;  %s12690_s20 = smov [#allocation14]  }
  0xbc   :  { %s303_s28 = sshll.u32 %s12689_s5, 4  ;;  %s325_s22 = sshll.u32 %s12690_s20, 4  ;;  %s304_s28 = int_to_ptr.vmem [resolvable:$true] %s303_s28  ;;  %s326_s22 = int_to_ptr.vmem [resolvable:$true] %s325_s22 }
  0xbd   :  { %s12263_s26 = scalar_lea.hbm %s12944_s23, 16 }
  0xbe   :  { %p12264_p2 = scmp.ne.s32.totalorder %s12944_s23, %s12263_s26  ;;  %p12267_p3 = scmp.lt.u32.totalorder %s12263_s26, %s12944_s23 }
  0xc0   :  { %p12269_p4 = pnand %p12267_p3, %p12264_p2 }
  0xc2   :  { %12272 = shalt.err (!%p12269_p4)
}
  0xc3   :  { %s12273_s27 = scalar_lea.vmem %s304_s28, 16  ;;  %s12277_s30 = scalar_lea.vmem %s304_s28, 32 }
  0xc4   :  { %p12274_p5 = scmp.ne.s32.totalorder %s304_s28, %s12273_s27  ;;  %p12278_p6 = scmp.lt.s32.totalorder %s304_s28, %s304_s28 }
  0xc5   :  { %p12279_p7 = scmp.lt.s32.totalorder %s12277_s30, %s12273_s27 }
  0xc7   :  { %p12280_p8 = por %p12279_p7, %p12278_p6 }
  0xc9   :  { %p12281_p9 = pnand %p12280_p8, %p12274_p5 }
  0xcb   :  { %12284 = shalt.err (!%p12281_p9)
}
  0xcc   :  { %306 = dma.hbm_to_vmem [thread:$0]  %s12944_s23, 16, %s304_s28, [#allocation12]  }
  0xcd   :  { %s12285_s17 = scalar_lea.hbm %s12959_s25, 16 }
  0xce   :  { %p12286_p10 = scmp.ne.s32.totalorder %s12959_s25, %s12285_s17  ;;  %p12289_p11 = scmp.lt.u32.totalorder %s12285_s17, %s12959_s25 }
  0xd0   :  { %p12291_p12 = pnand %p12289_p11, %p12286_p10 }
  0xd2   :  { %12294 = shalt.err (!%p12291_p12)
}
  0xd3   :  { %s12295_s2 = scalar_lea.vmem %s326_s22, 16  ;;  %s12299_s0 = scalar_lea.vmem %s326_s22, 32 }
  0xd4   :  { %p12296_p13 = scmp.ne.s32.totalorder %s326_s22, %s12295_s2  ;;  %p12300_p0 = scmp.lt.s32.totalorder %s326_s22, %s326_s22 }
  0xd5   :  { %p12301_p1 = scmp.lt.s32.totalorder %s12299_s0, %s12295_s2 }
  0xd7   :  { %p12302_p2 = por %p12301_p1, %p12300_p0 }
  0xd9   :  { %p12303_p3 = pnand %p12302_p2, %p12296_p13 }
  0xdb   :  { %12306 = shalt.err (!%p12303_p3)
}
  0xdc   :  { %328 = dma.hbm_to_vmem [thread:$0]  %s12959_s25, 16, %s326_s22, [#allocation15]  }
  0xdd   :  { %s12691_s6 = smov [#allocation17]   ;;  %s12692_s7 = smov [#allocation20]  }
  0xde   :  { %s353_s23 = sshll.u32 %s12691_s6, 4  ;;  %s373_s12 = sshll.u32 %s12692_s7, 4  ;;  %s354_s23 = int_to_ptr.vmem [resolvable:$true] %s353_s23  ;;  %s374_s12 = int_to_ptr.vmem [resolvable:$true] %s373_s12 }
  0xdf   :  { %s12307_s15 = scalar_lea.hbm %s12989_s18, 16 }
  0xe0   :  { %p12308_p4 = scmp.ne.s32.totalorder %s12989_s18, %s12307_s15  ;;  %p12311_p5 = scmp.lt.u32.totalorder %s12307_s15, %s12989_s18 }
  0xe2   :  { %p12313_p6 = pnand %p12311_p5, %p12308_p4 }
  0xe4   :  { %12316 = shalt.err (!%p12313_p6)
}
  0xe5   :  { %s12317_s16 = scalar_lea.vmem %s354_s23, 16  ;;  %s12321_s5 = scalar_lea.vmem %s354_s23, 32 }
  0xe6   :  { %p12318_p7 = scmp.ne.s32.totalorder %s354_s23, %s12317_s16  ;;  %p12322_p8 = scmp.lt.s32.totalorder %s354_s23, %s354_s23 }
  0xe7   :  { %p12323_p9 = scmp.lt.s32.totalorder %s12321_s5, %s12317_s16 }
  0xe9   :  { %p12324_p10 = por %p12323_p9, %p12322_p8 }
  0xeb   :  { %p12325_p11 = pnand %p12324_p10, %p12318_p7 }
  0xed   :  { %12328 = shalt.err (!%p12325_p11)
}
  0xee   :  { %356 = dma.hbm_to_vmem [thread:$0]  %s12989_s18, 16, %s354_s23, [#allocation18]  }
  0xef   :  { %s12329_s25 = scalar_lea.hbm %s12999_s11, 16 }
  0xf0   :  { %p12330_p12 = scmp.ne.s32.totalorder %s12999_s11, %s12329_s25  ;;  %p12333_p13 = scmp.lt.u32.totalorder %s12329_s25, %s12999_s11 }
  0xf2   :  { %p12335_p0 = pnand %p12333_p13, %p12330_p12 }
  0xf4   :  { %12338 = shalt.err (!%p12335_p0)
}
  0xf5   :  { %s12339_s28 = scalar_lea.vmem %s374_s12, 16  ;;  %s12343_s20 = scalar_lea.vmem %s374_s12, 32 }
  0xf6   :  { %p12340_p1 = scmp.ne.s32.totalorder %s374_s12, %s12339_s28  ;;  %p12344_p2 = scmp.lt.s32.totalorder %s374_s12, %s374_s12 }
  0xf7   :  { %p12345_p3 = scmp.lt.s32.totalorder %s12343_s20, %s12339_s28 }
  0xf9   :  { %p12346_p4 = por %p12345_p3, %p12344_p2 }
  0xfb   :  { %p12347_p5 = pnand %p12346_p4, %p12340_p1 }
  0xfd   :  { %12350 = shalt.err (!%p12347_p5)
}
  0xfe   :  { %376 = dma.hbm_to_vmem [thread:$0]  %s12999_s11, 16, %s374_s12, [#allocation21]  }
  0xff   :  { %s12693_s22 = smov [#allocation23]   ;;  %s12694_s26 = smov [#allocation26]  }
 0x100   :  { %s393_s18 = sshll.u32 %s12693_s22, 4  ;;  %s423_s27 = sshll.u32 %s12694_s26, 4  ;;  %s394_s18 = int_to_ptr.vmem [resolvable:$true] %s393_s18  ;;  %s424_s27 = int_to_ptr.vmem [resolvable:$true] %s423_s27 }
 0x101   :  { %s12351_s30 = scalar_lea.hbm %s13009_s21, 16 }
 0x102   :  { %p12352_p6 = scmp.ne.s32.totalorder %s13009_s21, %s12351_s30  ;;  %p12355_p7 = scmp.lt.u32.totalorder %s12351_s30, %s13009_s21 }
 0x104   :  { %p12357_p8 = pnand %p12355_p7, %p12352_p6 }
 0x106   :  { %12360 = shalt.err (!%p12357_p8)
}
 0x107   :  { %s12361_s17 = scalar_lea.vmem %s394_s18, 16  ;;  %s12365_s2 = scalar_lea.vmem %s394_s18, 32 }
 0x108   :  { %p12362_p9 = scmp.ne.s32.totalorder %s394_s18, %s12361_s17  ;;  %p12366_p10 = scmp.lt.s32.totalorder %s394_s18, %s394_s18 }
 0x109   :  { %p12367_p11 = scmp.lt.s32.totalorder %s12365_s2, %s12361_s17 }
 0x10b   :  { %p12368_p12 = por %p12367_p11, %p12366_p10 }
 0x10d   :  { %p12369_p13 = pnand %p12368_p12, %p12362_p9 }
 0x10f   :  { %12372 = shalt.err (!%p12369_p13)
}
 0x110   :  { %396 = dma.hbm_to_vmem [thread:$0]  %s13009_s21, 16, %s394_s18, [#allocation24]  }
 0x111   :  { %s12373_s11 = scalar_lea.hbm %s13044_s10, 16 }
 0x112   :  { %p12374_p0 = scmp.ne.s32.totalorder %s13044_s10, %s12373_s11  ;;  %p12377_p1 = scmp.lt.u32.totalorder %s12373_s11, %s13044_s10 }
 0x114   :  { %p12379_p2 = pnand %p12377_p1, %p12374_p0 }
 0x116   :  { %12382 = shalt.err (!%p12379_p2)
}
 0x117   :  { %s12383_s0 = scalar_lea.vmem %s424_s27, 16  ;;  %s12387_s6 = scalar_lea.vmem %s424_s27, 32 }
 0x118   :  { %p12384_p3 = scmp.ne.s32.totalorder %s424_s27, %s12383_s0  ;;  %p12388_p4 = scmp.lt.s32.totalorder %s424_s27, %s424_s27 }
 0x119   :  { %p12389_p5 = scmp.lt.s32.totalorder %s12387_s6, %s12383_s0 }
 0x11b   :  { %p12390_p6 = por %p12389_p5, %p12388_p4 }
 0x11d   :  { %p12391_p7 = pnand %p12390_p6, %p12384_p3 }
 0x11f   :  { %12394 = shalt.err (!%p12391_p7)
}
 0x120   :  { %426 = dma.hbm_to_vmem [thread:$0]  %s13044_s10, 16, %s424_s27, [#allocation27]  }
 0x121   :  { %s12695_s23 = smov [#allocation3]   ;;  %s12696_s7 = smov [#allocation7]  }
 0x122   :  { %s253_s21 = sshll.u32 %s12695_s23, 4  ;;  %s273_s12 = sshll.u32 %s12696_s7, 4  ;;  %s254_s21 = int_to_ptr.vmem [resolvable:$true] %s253_s21  ;;  %s274_s12 = int_to_ptr.vmem [resolvable:$true] %s273_s12 }
 0x123   :  { %s12395_s15 = scalar_lea.hbm %s12919_s13, 16 }
 0x124   :  { %p12396_p8 = scmp.ne.s32.totalorder %s12919_s13, %s12395_s15  ;;  %p12399_p9 = scmp.lt.u32.totalorder %s12395_s15, %s12919_s13 }
 0x126   :  { %p12401_p10 = pnand %p12399_p9, %p12396_p8 }
 0x128   :  { %12404 = shalt.err (!%p12401_p10)
}
 0x129   :  { %s12405_s16 = scalar_lea.vmem %s254_s21, 16  ;;  %s12409_s5 = scalar_lea.vmem %s254_s21, 32 }
 0x12a   :  { %p12406_p11 = scmp.ne.s32.totalorder %s254_s21, %s12405_s16  ;;  %p12410_p12 = scmp.lt.s32.totalorder %s254_s21, %s254_s21 }
 0x12b   :  { %p12411_p13 = scmp.lt.s32.totalorder %s12409_s5, %s12405_s16 }
 0x12d   :  { %p12412_p0 = por %p12411_p13, %p12410_p12 }
 0x12f   :  { %p12413_p1 = pnand %p12412_p0, %p12406_p11 }
 0x131   :  { %12416 = shalt.err (!%p12413_p1)
}
 0x132   :  { %256 = dma.hbm_to_vmem [thread:$0]  %s12919_s13, 16, %s254_s21, [#allocation4]  }
 0x133   :  { %s12417_s10 = scalar_lea.hbm %s12929_s4, 16 }
 0x134   :  { %p12418_p2 = scmp.ne.s32.totalorder %s12929_s4, %s12417_s10  ;;  %p12421_p3 = scmp.lt.u32.totalorder %s12417_s10, %s12929_s4 }
 0x136   :  { %p12423_p4 = pnand %p12421_p3, %p12418_p2 }
 0x138   :  { %12426 = shalt.err (!%p12423_p4)
}
 0x139   :  { %s12427_s25 = scalar_lea.vmem %s274_s12, 16  ;;  %s12431_s28 = scalar_lea.vmem %s274_s12, 32 }
 0x13a   :  { %p12428_p5 = scmp.ne.s32.totalorder %s274_s12, %s12427_s25  ;;  %p12432_p6 = scmp.lt.s32.totalorder %s274_s12, %s274_s12 }
 0x13b   :  { %p12433_p7 = scmp.lt.s32.totalorder %s12431_s28, %s12427_s25 }
 0x13d   :  { %p12434_p8 = por %p12433_p7, %p12432_p6 }
 0x13f   :  { %p12435_p9 = pnand %p12434_p8, %p12428_p5 }
 0x141   :  { %12438 = shalt.err (!%p12435_p9)
}
 0x142   :  { %276 = dma.hbm_to_vmem [thread:$0]  %s12929_s4, 16, %s274_s12, [#allocation6]  }
 0x143   :  { %s12697_s20 = smov [#allocation10]   ;;  %s12698_s22 = smov [#allocation13]  }
 0x144   :  { %s293_s13 = sshll.u32 %s12697_s20, 4  ;;  %s313_s18 = sshll.u32 %s12698_s22, 4  ;;  %s294_s13 = int_to_ptr.vmem [resolvable:$true] %s293_s13  ;;  %s314_s18 = int_to_ptr.vmem [resolvable:$true] %s313_s18 }
 0x145   :  { %s12439_s26 = scalar_lea.hbm %s12939_s19, 16 }
 0x146   :  { %p12440_p10 = scmp.ne.s32.totalorder %s12939_s19, %s12439_s26  ;;  %p12443_p11 = scmp.lt.u32.totalorder %s12439_s26, %s12939_s19 }
 0x148   :  { %p12445_p12 = pnand %p12443_p11, %p12440_p10 }
 0x14a   :  { %12448 = shalt.err (!%p12445_p12)
}
 0x14b   :  { %s12449_s27 = scalar_lea.vmem %s294_s13, 16  ;;  %s12453_s30 = scalar_lea.vmem %s294_s13, 32 }
 0x14c   :  { %p12450_p13 = scmp.ne.s32.totalorder %s294_s13, %s12449_s27  ;;  %p12454_p0 = scmp.lt.s32.totalorder %s294_s13, %s294_s13 }
 0x14d   :  { %p12455_p1 = scmp.lt.s32.totalorder %s12453_s30, %s12449_s27 }
 0x14f   :  { %p12456_p2 = por %p12455_p1, %p12454_p0 }
 0x151   :  { %p12457_p3 = pnand %p12456_p2, %p12450_p13 }
 0x153   :  { %12460 = shalt.err (!%p12457_p3)
}
 0x154   :  { %296 = dma.hbm_to_vmem [thread:$0]  %s12939_s19, 16, %s294_s13, [#allocation9]  }
 0x155   :  { %s12461_s4 = scalar_lea.hbm %s12949_s9, 16 }
 0x156   :  { %p12462_p4 = scmp.ne.s32.totalorder %s12949_s9, %s12461_s4  ;;  %p12465_p5 = scmp.lt.u32.totalorder %s12461_s4, %s12949_s9 }
 0x158   :  { %p12467_p6 = pnand %p12465_p5, %p12462_p4 }
 0x15a   :  { %12470 = shalt.err (!%p12467_p6)
}
 0x15b   :  { %s12471_s17 = scalar_lea.vmem %s314_s18, 16  ;;  %s12475_s2 = scalar_lea.vmem %s314_s18, 32 }
 0x15c   :  { %p12472_p7 = scmp.ne.s32.totalorder %s314_s18, %s12471_s17  ;;  %p12476_p8 = scmp.lt.s32.totalorder %s314_s18, %s314_s18 }
 0x15d   :  { %p12477_p9 = scmp.lt.s32.totalorder %s12475_s2, %s12471_s17 }
 0x15f   :  { %p12478_p10 = por %p12477_p9, %p12476_p8 }
 0x161   :  { %p12479_p11 = pnand %p12478_p10, %p12472_p7 }
 0x163   :  { %12482 = shalt.err (!%p12479_p11)
}
 0x164   :  { %316 = dma.hbm_to_vmem [thread:$0]  %s12949_s9, 16, %s314_s18, [#allocation12]  }
 0x165   :  { %s12699_s11 = smov [#allocation16]   ;;  %s12700_s0 = smov [#allocation19]  }
 0x166   :  { %s343_s19 = sshll.u32 %s12699_s11, 4  ;;  %s363_s6 = sshll.u32 %s12700_s0, 4  ;;  %s344_s19 = int_to_ptr.vmem [resolvable:$true] %s343_s19  ;;  %s364_s6 = int_to_ptr.vmem [resolvable:$true] %s363_s6 }
 0x167   :  { %s12483_s23 = scalar_lea.hbm %s12984_s29, 16 }
 0x168   :  { %p12484_p12 = scmp.ne.s32.totalorder %s12984_s29, %s12483_s23  ;;  %p12487_p13 = scmp.lt.u32.totalorder %s12483_s23, %s12984_s29 }
 0x16a   :  { %p12489_p0 = pnand %p12487_p13, %p12484_p12 }
 0x16c   :  { %12492 = shalt.err (!%p12489_p0)
}
 0x16d   :  { %s12493_s21 = scalar_lea.vmem %s344_s19, 16  ;;  %s12497_s7 = scalar_lea.vmem %s344_s19, 32 }
 0x16e   :  { %p12494_p1 = scmp.ne.s32.totalorder %s344_s19, %s12493_s21  ;;  %p12498_p2 = scmp.lt.s32.totalorder %s344_s19, %s344_s19 }
 0x16f   :  { %p12499_p3 = scmp.lt.s32.totalorder %s12497_s7, %s12493_s21 }
 0x171   :  { %p12500_p4 = por %p12499_p3, %p12498_p2 }
 0x173   :  { %p12501_p5 = pnand %p12500_p4, %p12494_p1 }
 0x175   :  { %12504 = shalt.err (!%p12501_p5)
}
 0x176   :  { %346 = dma.hbm_to_vmem [thread:$0]  %s12984_s29, 16, %s344_s19, [#allocation15]  }
 0x177   :  { %s12505_s9 = scalar_lea.hbm %s12994_s1, 16 }
 0x178   :  { %p12506_p6 = scmp.ne.s32.totalorder %s12994_s1, %s12505_s9  ;;  %p12509_p7 = scmp.lt.u32.totalorder %s12505_s9, %s12994_s1 }
 0x17a   :  { %p12511_p8 = pnand %p12509_p7, %p12506_p6 }
 0x17c   :  { %12514 = shalt.err (!%p12511_p8)
}
 0x17d   :  { %s12515_s12 = scalar_lea.vmem %s364_s6, 16  ;;  %s12519_s15 = scalar_lea.vmem %s364_s6, 32 }
 0x17e   :  { %p12516_p9 = scmp.ne.s32.totalorder %s364_s6, %s12515_s12  ;;  %p12520_p10 = scmp.lt.s32.totalorder %s364_s6, %s364_s6 }
 0x17f   :  { %p12521_p11 = scmp.lt.s32.totalorder %s12519_s15, %s12515_s12 }
 0x181   :  { %p12522_p12 = por %p12521_p11, %p12520_p10 }
 0x183   :  { %p12523_p13 = pnand %p12522_p12, %p12516_p9 }
 0x185   :  { %12526 = shalt.err (!%p12523_p13)
}
 0x186   :  { %s14238_s16 = sld [smem:[#allocation81_spill]]  ;;  %s12701_s5 = smov [#allocation22]  }
 0x187   :  { %366 = dma.hbm_to_vmem [thread:$0]  %s12994_s1, 16, %s364_s6, [#allocation18]  }
 0x188   :  { %s383_s29 = sshll.u32 %s12701_s5, 4  ;;  %s12702_s10 = smov [#allocation25]   ;;  %s384_s29 = int_to_ptr.vmem [resolvable:$true] %s383_s29 }
 0x189   :  { %s405_s25 = sshll.u32 %s12702_s10, 4  ;;  %s406_s25 = int_to_ptr.vmem [resolvable:$true] %s405_s25 }
 0x18c   :  { %s12527_s28 = scalar_lea.hbm %s14238_s16, 16 }
 0x18d   :  { %p12528_p0 = scmp.ne.s32.totalorder %s14238_s16, %s12527_s28  ;;  %p12531_p1 = scmp.lt.u32.totalorder %s12527_s28, %s14238_s16 }
 0x18f   :  { %p12533_p2 = pnand %p12531_p1, %p12528_p0 }
 0x191   :  { %12536 = shalt.err (!%p12533_p2)
}
 0x192   :  { %s12537_s20 = scalar_lea.vmem %s384_s29, 16  ;;  %s12541_s13 = scalar_lea.vmem %s384_s29, 32 }
 0x193   :  { %p12538_p3 = scmp.ne.s32.totalorder %s384_s29, %s12537_s20  ;;  %p12542_p4 = scmp.lt.s32.totalorder %s384_s29, %s384_s29 }
 0x194   :  { %p12543_p5 = scmp.lt.s32.totalorder %s12541_s13, %s12537_s20 }
 0x196   :  { %p12544_p6 = por %p12543_p5, %p12542_p4 }
 0x198   :  { %p12545_p7 = pnand %p12544_p6, %p12538_p3 }
 0x19a   :  { %12548 = shalt.err (!%p12545_p7)
}
 0x19b   :  { %s14239_s1 = sld [smem:[#allocation83_spill]] }
 0x19c   :  { %386 = dma.hbm_to_vmem [thread:$0]  %s14238_s16, 16, %s384_s29, [#allocation21]  }
 0x1a1   :  { %s12549_s22 = scalar_lea.hbm %s14239_s1, 16 }
 0x1a2   :  { %p12550_p8 = scmp.ne.s32.totalorder %s14239_s1, %s12549_s22  ;;  %p12553_p9 = scmp.lt.u32.totalorder %s12549_s22, %s14239_s1 }
 0x1a4   :  { %p12555_p10 = pnand %p12553_p9, %p12550_p8 }
 0x1a6   :  { %12558 = shalt.err (!%p12555_p10)
}
 0x1a7   :  { %s12559_s18 = scalar_lea.vmem %s406_s25, 16  ;;  %s12563_s26 = scalar_lea.vmem %s406_s25, 32 }
 0x1a8   :  { %p12560_p11 = scmp.ne.s32.totalorder %s406_s25, %s12559_s18  ;;  %p12564_p12 = scmp.lt.s32.totalorder %s406_s25, %s406_s25 }
 0x1a9   :  { %p12565_p13 = scmp.lt.s32.totalorder %s12563_s26, %s12559_s18 }
 0x1ab   :  { %p12566_p0 = por %p12565_p13, %p12564_p12 }
 0x1ad   :  { %p12567_p1 = pnand %p12566_p0, %p12560_p11 }
 0x1af   :  { %12570 = shalt.err (!%p12567_p1)
}
 0x1b0   :  { %s14240_s27 = sld [smem:[#allocation88_spill]]  ;;  %s12703_s30 = smov [#allocation28]  }
 0x1b1   :  { %408 = dma.hbm_to_vmem [thread:$0]  %s14239_s1, 16, %s406_s25, [#allocation24]  }
 0x1b2   :  { %s433_s4 = sshll.u32 %s12703_s30, 4  ;;  %s434_s4 = int_to_ptr.vmem [resolvable:$true] %s433_s4 }
 0x1b6   :  { %s12571_s17 = scalar_lea.hbm %s14240_s27, 16 }
 0x1b7   :  { %p12572_p2 = scmp.ne.s32.totalorder %s14240_s27, %s12571_s17  ;;  %p12575_p3 = scmp.lt.u32.totalorder %s12571_s17, %s14240_s27 }
 0x1b9   :  { %p12577_p4 = pnand %p12575_p3, %p12572_p2 }
 0x1bb   :  { %12580 = shalt.err (!%p12577_p4)
}
 0x1bc   :  { %s12581_s2 = scalar_lea.vmem %s434_s4, 16  ;;  %s12585_s11 = scalar_lea.vmem %s434_s4, 32 }
 0x1bd   :  { %p12582_p5 = scmp.ne.s32.totalorder %s434_s4, %s12581_s2  ;;  %p12586_p6 = scmp.lt.s32.totalorder %s434_s4, %s434_s4 }
 0x1be   :  { %p12587_p7 = scmp.lt.s32.totalorder %s12585_s11, %s12581_s2 }
 0x1c0   :  { %p12588_p8 = por %p12587_p7, %p12586_p6 }
 0x1c2   :  { %p12589_p9 = pnand %p12588_p8, %p12582_p5 }
 0x1c4   :  { %12592 = shalt.err (!%p12589_p9)
}
 0x1c5   :  { %436 = dma.hbm_to_vmem [thread:$0]  %s14240_s27, 16, %s434_s4, [#allocation27]  }
 0x1c6   :  { %12593 = dma.done.wait [#allocation4], 16  }
 0x1c7   :  { %12594 = vsyncadd [#allocation4], 4294967280 }
 0x1c8   :  { %12595 = dma.done.wait [#allocation6], 32  }
 0x1c9   :  { %12596 = vsyncadd [#allocation6], 4294967264 }
 0x1ca   :  { %12597 = dma.done.wait [#allocation9], 32  }
 0x1cb   :  { %12598 = vsyncadd [#allocation9], 4294967264 }
 0x1cc   :  { %12599 = dma.done.wait [#allocation12], 32  }
 0x1cd   :  { %12600 = vsyncadd [#allocation12], 4294967264 }
 0x1ce   :  { %12601 = dma.done.wait [#allocation15], 32  }
 0x1cf   :  { %12602 = vsyncadd [#allocation15], 4294967264 }
 0x1d0   :  { %12603 = dma.done.wait [#allocation18], 32  }
 0x1d1   :  { %12604 = vsyncadd [#allocation18], 4294967264 }
 0x1d2   :  { %12605 = dma.done.wait [#allocation21], 32  }
 0x1d3   :  { %12606 = vsyncadd [#allocation21], 4294967264 }
 0x1d4   :  { %12607 = dma.done.wait [#allocation24], 32  }
 0x1d5   :  { %12608 = vsyncadd [#allocation24], 4294967264 }
 0x1d6   :  { %12609 = dma.done.wait [#allocation27], 32  }
 0x1d7   :  { %12610 = vsyncadd [#allocation27], 4294967264  ;;  %s14241_s19 = sld [smem:[#allocation93_spill]]  ;;  %s14243_s6 = sld [smem:[#allocation94_spill]]  ;;  %v12704_v1 = vmov 0   ;;  %v537_v2 = vld [vmem:[%s13099_s8] sm:$0xff]  ;;  %v539_v9 = vlaneseq }
 0x1d8   :  { %s14242_s0 = sld [smem:[#allocation77_spill]]  ;;  %11726 = vset.pattern.permute.xlu0 %v12704_v1  ;;  %11732 = vset.pattern.permute.xlu1 %v12704_v1  ;;  %v538_v3 = vld [vmem:[%s13099_s8 + $0x8] sm:$0xff]  ;;  %s14244_s23 = sld [smem:[#allocation89_spill]]  ;;  %vm554_vm0 = vcmask 64512   ;;  %v12705_v14 = vmov 0.0   ;;  %vm745_vm3 = vcmask 261120  }
 0x1d9   :  { %542 = vperm.xlu0 %11726, %v537_v2   ;;  %s14245_s21 = sld [smem:[#allocation91_spill]]  ;;  %v540_v10 = vand.u32 127, %v539_v9  ;;  %vm13189_vm4 = vmpackc.low %vm554_vm0, %vm554_vm0  ;;  %s14248_s8 = sld [smem:[#allocation76_spill]]  ;;  %v12707_v45 = vmov -1e+09   ;;  %vm920_vm7 = vcmask 130048  }
 0x1da   :  { %s14249_s7 = sld [smem:[#allocation95_spill]]  ;;  %s12706_s9 = smov 96   ;;  %vm2123_vm8 = vcmask 523264   ;;  %vm9720_vm13 = vcmask 7168  }
 0x1db   :  { %s12708_s12 = smov 88   ;;  %s12709_s15 = smov 120  }
 0x1dc   :  { %s12710_s16 = smov 64   ;;  %s12711_s5 = smov 80  }
 0x1dd   :  { %v553_v4 = vld [vmem:[%s14241_s19] sm:$0xff]  ;;  %545 = vperm.xlu0 %11726, %v538_v3   ;;  %v512_v8 = vld [vmem:[%s14243_s6 + $0x8] sm:$0xff]  ;;  %s12712_s29 = smov 112   ;;  %s12713_s10 = smov 56  }
 0x1de   :  { %v734_v5 = vld [vmem:[%s14242_s0] sm:$0xff]  ;;  %v735_v6 = vld [vmem:[%s14242_s0 + $0x8] sm:$0xff]  ;;  %10482 = vmatprep.subr.mxu0 %v553_v4  ;;  %v736_v16 = vld [vmem:[%s14242_s0 + $0x10] sm:$0xff]  ;;  %s12714_s25 = smov 72   ;;  %s12715_s28 = smov 104  }
 0x1df   :  { %v11175_v7 = vpack.c.bf16 %v735_v6, %v734_v5  ;;  %10483 = vmatpush3.msra.mxu0 %v553_v4  ;;  %v728_v12 = vld [vmem:[%s14244_s23] sm:$0xff]  ;;  %v737_v17 = vld [vmem:[%s14242_s0 + $0x18] sm:$0xff]  ;;  %v729_v24 = vld [vmem:[%s14244_s23 + $0x8] sm:$0xff]  ;;  %s14250_s20 = sld [smem:[#allocation78_spill]]  ;;  %s12716_s13 = smov 48  }
 0x1e0   :  { %v730_v13 = vld [vmem:[%s14245_s21] sm:$0xff]  ;;  %v11179_v20 = vpack.c.bf16 %v737_v17, %v736_v16  ;;  %v731_v25 = vld [vmem:[%s14245_s21 + $0x8] sm:$0xff]  ;;  %s12717_s1 = smov 40   ;;  %s14251_s22 = sld [smem:[#allocation79_spill]] }
 0x1e1   :  { %11176 = vmatprep.subr.bf16.mxu0 %v11175_v7  ;;  %517 = vperm.xlu0 %11726, %v512_v8   ;;  %v13185_v19 = vadd.f32 %v730_v13, %v728_v12  ;;  %v13202_v26 = vadd.f32 %v731_v25, %v729_v24  ;;  %v9822_v29 = vld [vmem:[%s14248_s8] ss:$0 sm:$0xff]  ;;  %s14252_s18 = sld [smem:[#allocation80_spill]]  ;;  %s14253_s26 = sld [smem:[#allocation84_spill]] }
 0x1e2   :  { %v511_v35 = vld [vmem:[%s14243_s6] sm:$0xff]  ;;  %s14254_s27 = sld [smem:[#allocation82_spill]]  ;;  %s14255_s30 = sld [smem:[#allocation85_spill]] }
 0x1e3   :  { %v9812_v44 = vld [vmem:[%s14249_s7] ss:$0 sm:$0xff]  ;;  %s14256_s4 = sld [smem:[#allocation86_spill]]  ;;  %s14257_s17 = sld [smem:[#allocation53_spill]] }
 0x1e4   :  { %s14258_s2 = sld [smem:[#allocation87_spill]]  ;;  %s14259_s11 = sld [smem:[#allocation90_spill]] }
 0x1e5   :  { %s14260_s19 = sld [smem:[#allocation92_spill]]  ;;  %s14261_s0 = sld [smem:[#allocation51_spill]] }
 0x1e6   :  { %s14264_s6 = sld [smem:[#allocation43_spill]]  ;;  %s14265_s23 = sld [smem:[#allocation41_spill]] }
 0x1e7   :  { %s14266_s21 = sld [smem:[#allocation46_spill]]  ;;  %s14267_s8 = sld [smem:[#allocation45_spill]] }
 0x258   :  { %v543_v11 = vpop.permute.xlu0 %542 }
 0x259   :  { %vm547_vm1 = vcmp.eq.s32.totalorder %v543_v11, %v540_v10 }
 0x25a   :  { %v9813_v15 = vsel %vm547_vm1, 1.0, %v12705_v14 }
 0x25b   :  { %10484 = vmatprep.mubr.msk.f32.mxu0 %vm554_vm0, %v9813_v15 }
 0x25c   :  { %v546_v18 = vpop.permute.xlu0 %545 }
 0x25d   :  { %vm548_vm2 = vcmp.eq.s32.totalorder %v546_v18, %v540_v10 }
 0x25e   :  { %v9814_v21 = vsel %vm548_vm2, 1.0, %v12705_v14 }
 0x25f   :  { %10485 = vmatmul.mubr.msk.f32.vlgmr.msra.gmra.mrb[0].mxu0 %vm554_vm0, %v9814_v21  ;;  %v11169_v23 = vpack.c.bf16 %v9814_v21, %v9813_v15 }
 0x260   :  { %11178 = vmatpush3.bf16.msra.mxu0 %v11175_v7  ;;  %10502 = vmatprep.mubr.msk.f32.mxu0 %vm745_vm3, %v13185_v19  ;;  %v518_v43 = vpop.permute.xlu0 %517 }
 0x261   :  { %11171 = vmatprep.subr.msk.bf16.mxu1 %vm13189_vm4, %v11169_v23  ;;  %11180 = vmatprep.subr.bf16.mxu0 %v11179_v20  ;;  %vm524_vm6 = vcmp.eq.s32.totalorder %v518_v43, %v9812_v44 }
 0x262   :  { %11174 = vmatpush3.bf16.xpose.msk.msra.mxu1 %vm13189_vm4, %v11169_v23  ;;  %v13237_v47 = vsel %vm524_vm6, 0.0, %v12707_v45 }
 0x264   :  { %11182 = vmatpush3.bf16.msra.mxu0 %v11179_v20 }
 0x267   :  { %10503 = vmatmul.mubr.msk.f32.vlgmr.msra.gmra.mrb[2].mxu0 %vm745_vm3, %v13202_v26 }
 0x332   :  { %v10486_v27 = vpop.f32.mrb[0].mxu0 }
 0x333   :  { %v627_v28 = vpop.f32.mrb[1].mxu0 }
 0x334   :  { %10491 = vmatprep.mubr.msk.f32.mxu1 %vm554_vm0, %v627_v28 }
 0x335   :  { %10492 = vmatmul.mubr.msk.f32.vlgmr.msra.gmra.mrb[0].mxu1 %vm554_vm0, %v10486_v27 }
 0x33a   :  { %v10504_v30 = vpop.f32.mrb[2].mxu0 }
 0x33b   :  { %v13209_v31 = vadd.f32 %v10504_v30, %v9822_v29  ;;  %v818_v32 = vpop.f32.mrb[3].mxu0 }
 0x33c   :  { %v13211_v33 = vadd.f32 %v9822_v29, %v818_v32 }
 0x33e   :  { %10509 = vmatprep.mubr.msk.f32.mxu1 %vm554_vm0, %v13211_v33  ;;  %v13217_v34 = vpack.i.bf16 %v13209_v31, %v13211_v33 }
 0x340   :  { %11728 = vrot.lane.b32.xlu1 %v13217_v34, %s12706_s9 }
 0x344   :  { %514 = vperm.xlu1 %11732, %v511_v35  }
 0x3b2   :  { %v11729_v36 = vpop.permute.xlu1 %11728 }
 0x3b3   :  { %v11731_v37 = vunpack.i.h.bf16 %v11729_v36  ;;  %v11730_v38 = vunpack.i.l.bf16 %v11729_v36 }
 0x3b5   :  { %v11183_v39 = vpack.c.bf16 %v11731_v37, %v11730_v38 }
 0x3b7   :  { %11185 = vmatprep.subr.msk.bf16.mxu1 %vm13189_vm4, %v11183_v39 }
 0x3b8   :  { %11188 = vmatpush3.bf16.xpose.msk.msra.mxu1 %vm13189_vm4, %v11183_v39 }
 0x3bf   :  { %10510 = vmatmul.mubr.msk.f32.vlgmr.msra.gmra.mrb[2].mxu1 %vm554_vm0, %v13209_v31 }
 0x3c3   :  { %v515_v42 = vpop.permute.xlu1 %514 }
 0x3c4   :  { %vm523_vm5 = vcmp.eq.s32.totalorder %v515_v42, %v9812_v44 }
 0x3c5   :  { %v13234_v46 = vsel %vm523_vm5, 0.0, %v12707_v45 }
 0x408   :  { %v13228_v40 = vpop.f32.mrb[0].mxu1 }
 0x409   :  { %v13230_v41 = vpop.f32.mrb[1].mxu1 }
 0x492   :  { %v10511_v48 = vpop.f32.mrb[2].mxu1 }
 0x493   :  { %v917_v49 = vadd.f32 %v10511_v48, %v13237_v47  ;;  %v911_v50 = vpop.f32.mrb[3].mxu1 }
 0x494   :  { %v912_v51 = vadd.f32 %v911_v50, %v13234_v46 }
 0x495   :  { %v924_v52 = vsel %vm920_vm7, %v917_v49, -inf }
 0x496   :  { %925 = vmax.xlane.f32.xlu0 %v924_v52  ;;  %v921_v53 = vsel %vm920_vm7, %v912_v51, -inf }
 0x497   :  { %922 = vmax.xlane.f32.xlu1 %v921_v53 }
 0x523   :  { %v926_v54 = vpop.xlane.xlu0 %925 }
 0x524   :  { %v928_v55 = vsub.f32 %v917_v49, %v926_v54  ;;  %v923_v56 = vpop.xlane.xlu1 %922 }
 0x525   :  { %v927_v57 = vsub.f32 %v912_v51, %v923_v56 }
 0x526   :  { %v931_v58 = vmul.f32 1.442695, %v928_v55 }
 0x527   :  { %v929_v59 = vmul.f32 1.442695, %v927_v57 }
 0x528   :  { %11978 = vpow2.f32 %v931_v58 }
 0x529   :  { %11980 = vpow2.f32 %v929_v59 }
 0x532   :  { %v11979_v60 = vpop.eup %11978 }
 0x533   :  { %v11981_v61 = vpop.eup %11980  ;;  %v936_v62 = vsel %vm920_vm7, %v11979_v60, 0.0 }
 0x534   :  { %937 = vadd.xlane.f32.xlu1 %v936_v62  ;;  %v933_v63 = vsel %vm920_vm7, %v11981_v61, 0.0 }
 0x535   :  { %934 = vadd.xlane.f32.xlu0 %v933_v63 }
 0x545   :  { %11739 = vrot.lane.b32.xlu1 %v13217_v34, %s12708_s12 }
 0x549   :  { %1030 = vrot.lane.b32.xlu1 %v13211_v33, %s12709_s15 }
 0x54b   :  { %11734 = vrot.lane.b32.xlu0 %v13217_v34, %s12710_s16 }
 0x54f   :  { %1032 = vrot.lane.b32.xlu0 %v13209_v31, %s12709_s15 }
 0x5c1   :  { %v938_v0 = vpop.xlane.xlu1 %937 }
 0x5c2   :  { %11982 = vrcp.f32 %v938_v0  ;;  %v935_v1 = vpop.xlane.xlu0 %934 }
 0x5c3   :  { %11984 = vrcp.f32 %v935_v1  ;;  %v828_v1 = vld [vmem:[%s14250_s20 + $0x8] sm:$0xff] }
 0x5c4   :  { %10533 = vmatprep.subr.mxu1 %v828_v1 }
 0x5c5   :  { %v11740_v2 = vpop.permute.xlu1 %11739  ;;  %10534 = vmatpush3.msra.mxu1 %v828_v1 }
 0x5c6   :  { %v11735_v3 = vpop.permute.xlu0 %11734  ;;  %v11742_v4 = vunpack.i.h.bf16 %v11740_v2  ;;  %v11741_v5 = vunpack.i.l.bf16 %v11740_v2  ;;  %v827_v2 = vld [vmem:[%s14250_s20] sm:$0xff] }
 0x5c7   :  { %v11737_v6 = vunpack.i.h.bf16 %v11735_v3  ;;  %v11736_v7 = vunpack.i.l.bf16 %v11735_v3  ;;  %10538 = vmatprep.subr.mxu1 %v827_v2 }
 0x5c8   :  { %v11193_v9 = vpack.c.bf16 %v11742_v4, %v11741_v5 }
 0x5c9   :  { %v11189_v8 = vpack.c.bf16 %v11737_v6, %v11736_v7  ;;  %v1031_v14 = vpop.permute.xlu1 %1030 }
 0x5ca   :  { %v1033_v15 = vpop.permute.xlu0 %1032 }
 0x5cb   :  { %11190 = vmatprep.subr.bf16.mxu0 %v11189_v8 }
 0x5cc   :  { %v11983_v10 = vpop.eup %11982  ;;  %11192 = vmatpush3.bf16.msra.mxu0 %v11189_v8 }
 0x5cd   :  { %v11985_v11 = vpop.eup %11984  ;;  %11195 = vmatprep.subr.msk.bf16.mxu0 %vm13189_vm4, %v11193_v9  ;;  %v942_v13 = vmul.f32 %v11983_v10, %v11979_v60 }
 0x5ce   :  { %v941_v12 = vmul.f32 %v11985_v11, %v11981_v61 }
 0x5d0   :  { %10516 = vmatprep.mubr.msk.f32.mxu0 %vm920_vm7, %v941_v12 }
 0x5d1   :  { %10517 = vmatmul.mubr.msk.f32.vlgmr.msra.gmra.mrb[4].mxu0 %vm920_vm7, %v942_v13 }
 0x5d2   :  { %10523 = vmatprep.mubr.msk.f32.mxu0 %vm554_vm0, %v1031_v14 }
 0x5d5   :  { %11198 = vmatpush3.bf16.xpose.msk.msra.mxu0 %vm13189_vm4, %v11193_v9 }
 0x5dc   :  { %10524 = vmatmul.mubr.msk.f32.vlgmr.msra.gmra.mrb[6].mxu0 %vm554_vm0, %v1033_v15 }
 0x6a4   :  { %v13261_v16 = vpop.f32.mrb[4].mxu0 }
 0x6a5   :  { %v13263_v17 = vpop.f32.mrb[5].mxu0 }
 0x6af   :  { %v10525_v18 = vpop.f32.mrb[6].mxu0 }
 0x6b0   :  { %v1118_v20 = vadd.f32 %v10525_v18, %v13237_v47  ;;  %v1112_v21 = vpop.f32.mrb[7].mxu0 }
 0x6b1   :  { %v1113_v23 = vadd.f32 %v1112_v21, %v13234_v46 }
 0x6b2   :  { %v1124_v24 = vsel %vm920_vm7, %v1118_v20, -inf }
 0x6b3   :  { %1125 = vmax.xlane.f32.xlu0 %v1124_v24  ;;  %v1121_v25 = vsel %vm920_vm7, %v1113_v23, -inf }
 0x6b4   :  { %1122 = vmax.xlane.f32.xlu1 %v1121_v25 }
 0x740   :  { %v1126_v27 = vpop.xlane.xlu0 %1125 }
 0x741   :  { %v1128_v28 = vsub.f32 %v1118_v20, %v1126_v27  ;;  %v1123_v29 = vpop.xlane.xlu1 %1122 }
 0x742   :  { %v1127_v30 = vsub.f32 %v1113_v23, %v1123_v29 }
 0x743   :  { %v1131_v32 = vmul.f32 1.442695, %v1128_v28 }
 0x744   :  { %v1129_v35 = vmul.f32 1.442695, %v1127_v30 }
 0x745   :  { %11986 = vpow2.f32 %v1131_v32 }
 0x746   :  { %11988 = vpow2.f32 %v1129_v35 }
 0x74f   :  { %v11987_v36 = vpop.eup %11986 }
 0x750   :  { %v11989_v37 = vpop.eup %11988  ;;  %v1136_v38 = vsel %vm920_vm7, %v11987_v36, 0.0 }
 0x751   :  { %1137 = vadd.xlane.f32.xlu1 %v1136_v38  ;;  %v1133_v39 = vsel %vm920_vm7, %v11989_v37, 0.0 }
 0x752   :  { %1134 = vadd.xlane.f32.xlu0 %v1133_v39 }
 0x762   :  { %11749 = vrot.lane.b32.xlu1 %v13217_v34, %s12711_s5 }
 0x766   :  { %1392 = vrot.lane.b32.xlu1 %v13211_v33, %s12712_s29 }
 0x768   :  { %11744 = vrot.lane.b32.xlu0 %v13217_v34, %s12713_s10 }
 0x76a   :  { %11754 = vrot.lane.b32.xlu1 %v13217_v34, %s12714_s25 }
 0x76c   :  { %1394 = vrot.lane.b32.xlu0 %v13209_v31, %s12712_s29 }
 0x76e   :  { %1677 = vrot.lane.b32.xlu1 %v13209_v31, %s12715_s28 }
 0x770   :  { %1675 = vrot.lane.b32.xlu0 %v13211_v33, %s12715_s28 }
 0x7de   :  { %v1138_v42 = vpop.xlane.xlu1 %1137 }
 0x7df   :  { %11990 = vrcp.f32 %v1138_v42  ;;  %v1135_v43 = vpop.xlane.xlu0 %1134 }
 0x7e0   :  { %11992 = vrcp.f32 %v1135_v43 }
 0x7e2   :  { %v11750_v44 = vpop.permute.xlu1 %11749 }
 0x7e3   :  { %v11745_v48 = vpop.permute.xlu0 %11744  ;;  %v11752_v49 = vunpack.i.h.bf16 %v11750_v44  ;;  %v11751_v50 = vunpack.i.l.bf16 %v11750_v44 }
 0x7e4   :  { %v11747_v51 = vunpack.i.h.bf16 %v11745_v48  ;;  %v11746_v52 = vunpack.i.l.bf16 %v11745_v48 }
 0x7e5   :  { %v11203_v55 = vpack.c.bf16 %v11752_v49, %v11751_v50 }
 0x7e6   :  { %v1393_v53 = vpop.permute.xlu1 %1392  ;;  %v11199_v54 = vpack.c.bf16 %v11747_v51, %v11746_v52 }
 0x7e7   :  { %v1395_v62 = vpop.permute.xlu0 %1394 }
 0x7e8   :  { %11200 = vmatprep.subr.bf16.mxu0 %v11199_v54 }
 0x7e9   :  { %v11991_v56 = vpop.eup %11990  ;;  %11202 = vmatpush3.bf16.msra.mxu0 %v11199_v54 }
 0x7ea   :  { %v11993_v31 = vpop.eup %11992  ;;  %v11755_v57 = vpop.permute.xlu1 %11754  ;;  %11205 = vmatprep.subr.msk.bf16.mxu0 %vm13189_vm4, %v11203_v55  ;;  %v1142_v58 = vmul.f32 %v11991_v56, %v11987_v36  ;;  %v829_v36 = vld [vmem:[%s14250_s20 + $0x10] sm:$0xff] }
 0x7eb   :  { %v1141_v33 = vmul.f32 %v11993_v31, %v11989_v37  ;;  %v11757_v59 = vunpack.i.h.bf16 %v11755_v57  ;;  %v11756_v60 = vunpack.i.l.bf16 %v11755_v57  ;;  %v1676_v63 = vpop.permute.xlu0 %1675 }
 0x7ed   :  { %10530 = vmatprep.mubr.msk.f32.mxu0 %vm920_vm7, %v1141_v33  ;;  %v11213_v61 = vpack.c.bf16 %v11757_v59, %v11756_v60 }
 0x7ee   :  { %10531 = vmatmul.mubr.msk.f32.vlgmr.msra.gmra.mrb[8].mxu0 %vm920_vm7, %v1142_v58  ;;  %v1678_v0 = vpop.permute.xlu1 %1677 }
 0x7ef   :  { %10547 = vmatprep.mubr.msk.f32.mxu0 %vm554_vm0, %v1393_v53 }
 0x7f2   :  { %11208 = vmatpush3.bf16.xpose.msk.msra.mxu0 %vm13189_vm4, %v11203_v55 }
 0x7f3   :  { %11215 = vmatprep.subr.msk.bf16.mxu0 %vm13189_vm4, %v11213_v61 }
 0x7f9   :  { %10548 = vmatmul.mubr.msk.f32.vlgmr.msra.gmra.mrb[10].mxu0 %vm554_vm0, %v1395_v62 }
 0x7fa   :  { %11218 = vmatpush3.bf16.xpose.msk.msra.mxu0 %vm13189_vm4, %v11213_v61  ;;  %10566 = vmatprep.mubr.msk.f32.mxu0 %vm554_vm0, %v1676_v63 }
 0x801   :  { %10567 = vmatmul.mubr.msk.f32.vlgmr.msra.gmra.mrb[12].mxu0 %vm554_vm0, %v1678_v0 }
 0x8c1   :  { %v10532_v3 = vpop.f32.mrb[8].mxu0 }
 0x8c2   :  { %v1221_v4 = vpop.f32.mrb[9].mxu0 }
 0x8c3   :  { %10535 = vmatprep.mubr.msk.f32.mxu1 %vm554_vm0, %v1221_v4 }
 0x8c4   :  { %10536 = vmatmul.mubr.msk.f32.vlgmr.msra.gmra.mrb[4].mxu1 %vm554_vm0, %v10532_v3  ;;  %v830_v3 = vld [vmem:[%s14250_s20 + $0x18] sm:$0xff]  ;;  %s14269_s20 = sld [smem:[#allocation42_spill]] }
 0x8c5   :  { %10540 = vmatprep.mubr.msk.f32.mxu1 %vm554_vm0, %v13263_v17  ;;  %10539 = vmatpush3.msra.mxu1 %v827_v2 }
 0x8cc   :  { %10541 = vmatmul.mubr.msk.f32.vlgmr.msra.gmra.mrb[4].mxu1 %vm554_vm0, %v13261_v16  ;;  %v10549_v5 = vpop.f32.mrb[10].mxu0 }
 0x8cd   :  { %v1480_v6 = vadd.f32 %v10549_v5, %v13237_v47  ;;  %v1474_v7 = vpop.f32.mrb[11].mxu0 }
 0x8ce   :  { %v1475_v8 = vadd.f32 %v1474_v7, %v13234_v46  ;;  %v9857_v7 = vld [vmem:[#allocation14] ss:$0 sm:$0xff] }
 0x8cf   :  { %v1486_v9 = vsel %vm920_vm7, %v1480_v6, -inf }
 0x8d0   :  { %1487 = vmax.xlane.f32.xlu1 %v1486_v9  ;;  %v1483_v10 = vsel %vm920_vm7, %v1475_v8, -inf }
 0x8d1   :  { %1484 = vmax.xlane.f32.xlu0 %v1483_v10 }
 0x8d4   :  { %v10568_v11 = vpop.f32.mrb[12].mxu0 }
 0x8d5   :  { %v1757_v12 = vpop.f32.mrb[13].mxu0  ;;  %v1763_v30 = vadd.f32 %v10568_v11, %v13237_v47 }
 0x8d7   :  { %v1769_v35 = vsel %vm920_vm7, %v1763_v30, -inf }
 0x8e1   :  { %11759 = vrot.lane.b32.xlu1 %v13217_v34, %s12716_s13 }
 0x8e5   :  { %11764 = vrot.lane.b32.xlu1 %v13217_v34, %s12717_s1  ;;  %v1758_v34 = vadd.f32 %v1757_v12, %v13234_v46 }
 0x8e7   :  { %v1766_v32 = vsel %vm920_vm7, %v1758_v34, -inf }
 0x95d   :  { %v1488_v13 = vpop.xlane.xlu1 %1487 }
 0x95e   :  { %v1490_v14 = vsub.f32 %v1480_v6, %v1488_v13  ;;  %v1485_v15 = vpop.xlane.xlu0 %1484 }
 0x95f   :  { %v1489_v16 = vsub.f32 %v1475_v8, %v1485_v15 }
 0x960   :  { %v1493_v17 = vmul.f32 1.442695, %v1490_v14 }
 0x961   :  { %v1491_v18 = vmul.f32 1.442695, %v1489_v16  ;;  %v11760_v20 = vpop.permute.xlu1 %11759 }
 0x962   :  { %v11762_v21 = vunpack.i.h.bf16 %v11760_v20  ;;  %v11761_v23 = vunpack.i.l.bf16 %v11760_v20 }
 0x963   :  { %11994 = vpow2.f32 %v1491_v18 }
 0x964   :  { %v11209_v24 = vpack.c.bf16 %v11762_v21, %v11761_v23  ;;  %11996 = vpow2.f32 %v1493_v17 }
 0x965   :  { %v11765_v44 = vpop.permute.xlu1 %11764 }
 0x966   :  { %11210 = vmatprep.subr.bf16.mxu1 %v11209_v24  ;;  %v11767_v52 = vunpack.i.h.bf16 %v11765_v44  ;;  %v11766_v53 = vunpack.i.l.bf16 %v11765_v44  ;;  %v2113_v44 = vld [vmem:[%s14252_s18 + $0x28] sm:$0xff] }
 0x967   :  { %11212 = vmatpush3.bf16.msra.mxu1 %v11209_v24 }
 0x968   :  { %10557 = vmatprep.subr.mxu1 %v829_v36  ;;  %v11219_v31 = vpack.c.bf16 %v11767_v52, %v11766_v53 }
 0x96d   :  { %v11995_v25 = vpop.eup %11994 }
 0x96e   :  { %v1495_v27 = vsel %vm920_vm7, %v11995_v25, 0.0  ;;  %v11997_v28 = vpop.eup %11996 }
 0x96f   :  { %1496 = vadd.xlane.f32.xlu0 %v1495_v27  ;;  %v1498_v29 = vsel %vm920_vm7, %v11997_v28, 0.0  ;;  %v2014_v27 = vld [vmem:[%s14251_s22] sm:$0xff] }
 0x973   :  { %1499 = vadd.xlane.f32.xlu0 %v1498_v29 }
 0x977   :  { %1767 = vmax.xlane.f32.xlu0 %v1766_v32 }
 0x97b   :  { %1770 = vmax.xlane.f32.xlu0 %v1769_v35  ;;  %v2108_v35 = vld [vmem:[%s14252_s18] sm:$0xff] }
 0x9fc   :  { %v1497_v37 = vpop.xlane.xlu0 %1496 }
 0x9fd   :  { %11998 = vrcp.f32 %v1497_v37  ;;  %v2110_v37 = vld [vmem:[%s14252_s18 + $0x10] sm:$0xff] }
 0xa00   :  { %v1500_v38 = vpop.xlane.xlu0 %1499 }
 0xa01   :  { %12000 = vrcp.f32 %v1500_v38 }
 0xa04   :  { %v1768_v39 = vpop.xlane.xlu0 %1767 }
 0xa05   :  { %v1772_v42 = vsub.f32 %v1758_v34, %v1768_v39  ;;  %v2016_v34 = vld [vmem:[%s14251_s22 + $0x10] sm:$0xff]  ;;  %v2111_v39 = vld [vmem:[%s14252_s18 + $0x18] sm:$0xff] }
 0xa07   :  { %v11999_v43 = vpop.eup %11998  ;;  %v1774_v48 = vmul.f32 1.442695, %v1772_v42  ;;  %v11235_v42 = vpack.c.bf16 %v2111_v39, %v2110_v37 }
 0xa08   :  { %v1771_v49 = vpop.xlane.xlu0 %1770  ;;  %v1503_v50 = vmul.f32 %v11999_v43, %v11995_v25  ;;  %v2112_v43 = vld [vmem:[%s14252_s18 + $0x20] sm:$0xff] }
 0xa09   :  { %12002 = vpow2.f32 %v1774_v48  ;;  %v1773_v51 = vsub.f32 %v1763_v30, %v1771_v49  ;;  %v2017_v30 = vld [vmem:[%s14251_s22 + $0x18] sm:$0xff]  ;;  %v11239_v48 = vpack.c.bf16 %v2113_v44, %v2112_v43 }
 0xa0a   :  { %10554 = vmatprep.mubr.msk.f32.mxu1 %vm920_vm7, %v1503_v50  ;;  %v11227_v32 = vpack.c.bf16 %v2017_v30, %v2016_v34  ;;  %v2251_v34 = vld [vmem:[%s14253_s26] sm:$0xff]  ;;  %v2253_v30 = vld [vmem:[%s14253_s26 + $0x10] sm:$0xff] }
 0xa0b   :  { %v12001_v54 = vpop.eup %12000  ;;  %v1776_v55 = vmul.f32 1.442695, %v1773_v51 }
 0xa0c   :  { %v1504_v56 = vmul.f32 %v12001_v54, %v11997_v28  ;;  %v2015_v28 = vld [vmem:[%s14251_s22 + $0x8] sm:$0xff]  ;;  %s14270_s22 = sld [smem:[#allocation55_spill]] }
 0xa0d   :  { %12004 = vpow2.f32 %v1776_v55  ;;  %v11223_v29 = vpack.c.bf16 %v2015_v28, %v2014_v27 }
 0xa0e   :  { %10555 = vmatmul.mubr.msk.f32.vlgmr.msra.gmra.mrb[6].mxu1 %vm920_vm7, %v1504_v56  ;;  %v9858_v56 = vld [vmem:[#allocation10] ss:$0 sm:$0xff] }
 0xa0f   :  { %10558 = vmatpush3.msra.mxu1 %v829_v36  ;;  %11224 = vmatprep.subr.bf16.mxu0 %v11223_v29  ;;  %v2109_v36 = vld [vmem:[%s14252_s18 + $0x8] sm:$0xff] }
 0xa10   :  { %11220 = vmatprep.subr.bf16.mxu1 %v11219_v31  ;;  %11226 = vmatpush3.bf16.msra.mxu0 %v11223_v29  ;;  %v11231_v38 = vpack.c.bf16 %v2109_v36, %v2108_v35  ;;  %v2252_v29 = vld [vmem:[%s14253_s26 + $0x8] sm:$0xff]  ;;  %v2254_v35 = vld [vmem:[%s14253_s26 + $0x18] sm:$0xff]  ;;  %s14272_s26 = sld [smem:[#allocation48_spill]] }
 0xa11   :  { %11228 = vmatprep.subr.bf16.mxu0 %v11227_v32  ;;  %v11251_v36 = vpack.c.bf16 %v2254_v35, %v2253_v30 }
 0xa13   :  { %v12003_v57 = vpop.eup %12002 }
 0xa14   :  { %v1778_v33 = vsel %vm920_vm7, %v12003_v57, 0.0  ;;  %11230 = vmatpush3.bf16.msra.mxu0 %v11227_v32  ;;  %v11247_v32 = vpack.c.bf16 %v2252_v29, %v2251_v34 }
 0xa15   :  { %1779 = vadd.xlane.f32.xlu0 %v1778_v33 }
 0xa16   :  { %11248 = vmatprep.subr.bf16.mxu0 %v11247_v32 }
 0xa17   :  { %v12005_v58 = vpop.eup %12004 }
 0xa18   :  { %v1781_v59 = vsel %vm920_vm7, %v12005_v58, 0.0 }
 0xa19   :  { %1782 = vadd.xlane.f32.xlu0 %v1781_v59 }
 0xaa2   :  { %v1780_v60 = vpop.xlane.xlu0 %1779 }
 0xaa3   :  { %12006 = vrcp.f32 %v1780_v60 }
 0xaa6   :  { %v1783_v61 = vpop.xlane.xlu0 %1782 }
 0xaa7   :  { %12008 = vrcp.f32 %v1783_v61 }
 0xaad   :  { %v12007_v62 = vpop.eup %12006 }
 0xaae   :  { %v1786_v2 = vmul.f32 %v12007_v62, %v12003_v57  ;;  %v9859_v57 = vld [vmem:[#allocation8] ss:$0 sm:$0xff] }
 0xab1   :  { %v12009_v1 = vpop.eup %12008 }
 0xab2   :  { %v1787_v4 = vmul.f32 %v12009_v1, %v12005_v58 }
 0xae1   :  { %v10556_v63 = vpop.f32.mrb[6].mxu1 }
 0xae2   :  { %v1583_v0 = vpop.f32.mrb[7].mxu1 }
 0xae3   :  { %10559 = vmatprep.mubr.msk.f32.mxu1 %vm554_vm0, %v1583_v0  ;;  %v2115_v0 = vld [vmem:[%s14252_s18 + $0x38] sm:$0xff] }
 0xae4   :  { %10560 = vmatmul.mubr.msk.f32.vlgmr.msra.gmra.mrb[4].mxu1 %vm554_vm0, %v10556_v63  ;;  %v2114_v63 = vld [vmem:[%s14252_s18 + $0x30] sm:$0xff]  ;;  %s14271_s18 = sld [smem:[#allocation56_spill]] }
 0xae5   :  { %11222 = vmatpush3.bf16.msra.mxu1 %v11219_v31  ;;  %10573 = vmatprep.mubr.msk.f32.mxu1 %vm920_vm7, %v1786_v2  ;;  %v11243_v1 = vpack.c.bf16 %v2115_v0, %v2114_v63  ;;  %v9860_v2 = vld [vmem:[#allocation5] ss:$0 sm:$0xff] }
 0xae6   :  { %10576 = vmatprep.subr.mxu1 %v830_v3 }
 0xae8   :  { %10574 = vmatmul.mubr.msk.f32.vlgmr.msra.gmra.mrb[8].mxu1 %vm920_vm7, %v1787_v4 }
 0xae9   :  { %10577 = vmatpush3.msra.mxu1 %v830_v3 }
 0xaea   :  { %11232 = vmatprep.subr.bf16.mxu1 %v11231_v38 }
 0xbbb   :  { %v10575_v5 = vpop.f32.mrb[8].mxu1 }
 0xbbc   :  { %v1866_v6 = vpop.f32.mrb[9].mxu1 }
 0xbbd   :  { %10578 = vmatprep.mubr.msk.f32.mxu1 %vm554_vm0, %v1866_v6 }
 0xbbe   :  { %10579 = vmatmul.mubr.msk.f32.vlgmr.msra.gmra.mrb[4].mxu1 %vm554_vm0, %v10575_v5 }
 0xbbf   :  { %11234 = vmatpush3.bf16.msra.mxu1 %v11231_v38 }
 0xbc0   :  { %11236 = vmatprep.subr.bf16.mxu1 %v11235_v42 }
 0xbc3   :  { %11238 = vmatpush3.bf16.msra.mxu1 %v11235_v42 }
 0xbc4   :  { %11240 = vmatprep.subr.bf16.mxu1 %v11239_v48 }
 0xbc7   :  { %11242 = vmatpush3.bf16.msra.mxu1 %v11239_v48 }
 0xbc8   :  { %11244 = vmatprep.subr.bf16.mxu1 %v11243_v1 }
 0xbcb   :  { %11246 = vmatpush3.bf16.msra.mxu1 %v11243_v1 }
 0xc91   :  { %v10580_v8 = vpop.f32.mrb[4].mxu1 }
 0xc92   :  { %v1966_v9 = vadd.f32 %v10580_v8, %v9857_v7  ;;  %v1947_v10 = vpop.f32.mrb[5].mxu1 }
 0xc93   :  { %v1965_v11 = vadd.f32 %v9857_v7, %v1947_v10 }
 0xc94   :  { %v1968_v12 = vadd.f32 %v1966_v9, %v13202_v26  ;;  %v9863_v9 = vld [vmem:[#allocation7] ss:$0 sm:$0xff] }
 0xc95   :  { %v1967_v13 = vadd.f32 %v1965_v11, %v13185_v19 }
 0xc96   :  { %v1972_v14 = vsel %vm745_vm3, %v1968_v12, 0.0 }
 0xc97   :  { %1973 = vadd.xlane.f32.xlu1 %v1972_v14  ;;  %v1969_v15 = vsel %vm745_vm3, %v1967_v13, 0.0 }
 0xc98   :  { %1970 = vadd.xlane.f32.xlu0 %v1969_v15 }
 0xd24   :  { %v1974_v16 = vpop.xlane.xlu1 %1973 }
 0xd25   :  { %v1977_v17 = vmul.f32 0.03125, %v1974_v16  ;;  %v1971_v18 = vpop.xlane.xlu0 %1970 }
 0xd26   :  { %v1976_v20 = vmul.f32 0.03125, %v1971_v18 }
 0xd27   :  { %v1979_v21 = vsub.f32 %v1968_v12, %v1977_v17 }
 0xd28   :  { %v1978_v23 = vsub.f32 %v1967_v13, %v1976_v20 }
 0xd29   :  { %v1981_v26 = vmul.f32 %v1979_v21, %v1979_v21 }
 0xd2a   :  { %v1980_v24 = vmul.f32 %v1978_v23, %v1978_v23 }
 0xd2b   :  { %v1985_v25 = vsel %vm745_vm3, %v1981_v26, 0.0 }
 0xd2c   :  { %v1982_v19 = vsel %vm745_vm3, %v1980_v24, 0.0 }
 0xd2d   :  { %1983 = vadd.xlane.f32.xlu0 %v1982_v19 }
 0xd31   :  { %1986 = vadd.xlane.f32.xlu0 %v1985_v25 }
 0xdba   :  { %v1984_v49 = vpop.xlane.xlu0 %1983 }
 0xdbb   :  { %v1988_v50 = vmul.f32 0.03125, %v1984_v49  ;;  %v9866_v49 = vld [vmem:[#allocation13] ss:$0 sm:$0xff] }
 0xdbd   :  { %v1990_v51 = vadd.f32 1e-05, %v1988_v50 }
 0xdbe   :  { %v1987_v52 = vpop.xlane.xlu0 %1986 }
 0xdbf   :  { %12010 = vrsqrt.f32 %v1990_v51  ;;  %v1989_v53 = vmul.f32 0.03125, %v1987_v52  ;;  %v9867_v51 = vld [vmem:[#allocation11] ss:$0 sm:$0xff] }
 0xdc1   :  { %v1991_v54 = vadd.f32 1e-05, %v1989_v53 }
 0xdc3   :  { %12012 = vrsqrt.f32 %v1991_v54 }
 0xdc9   :  { %v12011_v55 = vpop.eup %12010 }
 0xdca   :  { %v1994_v31 = vmul.f32 %v12011_v55, %v1978_v23 }
 0xdcc   :  { %v2003_v33 = vmul.f32 %v9858_v56, %v1994_v31 }
 0xdcd   :  { %v12013_v58 = vpop.eup %12012 }
 0xdce   :  { %v1995_v59 = vmul.f32 %v12013_v58, %v1979_v21  ;;  %v2012_v60 = vadd.f32 %v9859_v57, %v2003_v33 }
 0xdd0   :  { %v2004_v61 = vmul.f32 %v9858_v56, %v1995_v59  ;;  %10589 = vmatprep.mubr.msk.f32.mxu0 %vm745_vm3, %v2012_v60 }
 0xdd2   :  { %v2013_v62 = vadd.f32 %v9859_v57, %v2004_v61  ;;  %v9868_v57 = vld [vmem:[%s14254_s27] ss:$0 sm:$0xff]  ;;  %s14273_s27 = sld [smem:[#allocation47_spill]] }
 0xdd4   :  { %10590 = vmatmul.mubr.msk.f32.vlgmr.msra.gmra.mrb[14].mxu0 %vm745_vm3, %v2013_v62 }
 0xdd5   :  { %11250 = vmatpush3.bf16.msra.mxu0 %v11247_v32 }
 0xdd6   :  { %11252 = vmatprep.subr.bf16.mxu0 %v11251_v36 }
 0xdd9   :  { %11254 = vmatpush3.bf16.msra.mxu0 %v11251_v36 }
 0xea7   :  { %v10591_v3 = vpop.f32.mrb[14].mxu0 }
 0xea8   :  { %v2103_v4 = vadd.f32 %v10591_v3, %v9860_v2  ;;  %v2097_v5 = vpop.f32.mrb[15].mxu0 }
 0xea9   :  { %v2098_v6 = vadd.f32 %v9860_v2, %v2097_v5 }
 0xeaa   :  { %v2107_v8 = vmax.f32 %v2103_v4, 0.0 }
 0xeab   :  { %v2106_v7 = vmax.f32 %v2098_v6, 0.0 }
 0xead   :  { %10608 = vmatprep.mubr.msk.f32.mxu1 %vm2123_vm8, %v2106_v7 }
 0xeae   :  { %10609 = vmatmul.mubr.msk.f32.vlgmr.msra.gmra.mrb[10].mxu1 %vm2123_vm8, %v2107_v8 }
 0xf81   :  { %v10610_v10 = vpop.f32.mrb[10].mxu1 }
 0xf82   :  { %v2196_v11 = vpop.f32.mrb[11].mxu1  ;;  %v2202_v12 = vadd.f32 %v10610_v10, %v9863_v9 }
 0xf83   :  { %v2197_v13 = vadd.f32 %v9863_v9, %v2196_v11 }
 0xf84   :  { %v2206_v16 = vadd.f32 %v2202_v12, %v2013_v62 }
 0xf85   :  { %v2205_v14 = vadd.f32 %v2197_v13, %v2012_v60 }
 0xf86   :  { %v2210_v17 = vsel %vm745_vm3, %v2206_v16, 0.0 }
 0xf87   :  { %v2207_v15 = vsel %vm745_vm3, %v2205_v14, 0.0 }
 0xf88   :  { %2208 = vadd.xlane.f32.xlu0 %v2207_v15 }
 0xf8c   :  { %2211 = vadd.xlane.f32.xlu0 %v2210_v17 }
0x1015   :  { %v2209_v18 = vpop.xlane.xlu0 %2208 }
0x1016   :  { %v2213_v20 = vmul.f32 0.03125, %v2209_v18 }
0x1018   :  { %v2215_v21 = vsub.f32 %v2205_v14, %v2213_v20 }
0x1019   :  { %v2212_v23 = vpop.xlane.xlu0 %2211 }
0x101a   :  { %v2214_v24 = vmul.f32 0.03125, %v2212_v23  ;;  %v2217_v19 = vmul.f32 %v2215_v21, %v2215_v21 }
0x101c   :  { %v2216_v26 = vsub.f32 %v2206_v16, %v2214_v24  ;;  %v2219_v25 = vsel %vm745_vm3, %v2217_v19, 0.0 }
0x101d   :  { %2220 = vadd.xlane.f32.xlu0 %v2219_v25 }
0x101e   :  { %v2218_v27 = vmul.f32 %v2216_v26, %v2216_v26 }
0x1020   :  { %v2222_v28 = vsel %vm745_vm3, %v2218_v27, 0.0 }
0x1021   :  { %2223 = vadd.xlane.f32.xlu0 %v2222_v28 }
0x10aa   :  { %v2221_v37 = vpop.xlane.xlu0 %2220 }
0x10ab   :  { %v2225_v38 = vmul.f32 0.03125, %v2221_v37 }
0x10ad   :  { %v2227_v39 = vadd.f32 1e-05, %v2225_v38 }
0x10ae   :  { %v2224_v42 = vpop.xlane.xlu0 %2223 }
0x10af   :  { %12014 = vrsqrt.f32 %v2227_v39  ;;  %v2226_v43 = vmul.f32 0.03125, %v2224_v42 }
0x10b1   :  { %v2228_v44 = vadd.f32 1e-05, %v2226_v43 }
0x10b3   :  { %12016 = vrsqrt.f32 %v2228_v44 }
0x10b9   :  { %v12015_v48 = vpop.eup %12014 }
0x10ba   :  { %v2231_v50 = vmul.f32 %v12015_v48, %v2215_v21 }
0x10bc   :  { %v2240_v52 = vmul.f32 %v9866_v49, %v2231_v50 }
0x10bd   :  { %v12017_v53 = vpop.eup %12016 }
0x10be   :  { %v2232_v54 = vmul.f32 %v12017_v53, %v2216_v26  ;;  %v13363_v55 = vadd.f32 %v9867_v51, %v2240_v52 }
0x10c0   :  { %v2241_v56 = vmul.f32 %v9866_v49, %v2232_v54  ;;  %10619 = vmatprep.mubr.msk.f32.mxu0 %vm745_vm3, %v13363_v55 }
0x10c2   :  { %v13367_v31 = vadd.f32 %v9867_v51, %v2241_v56 }
0x10c4   :  { %10620 = vmatmul.mubr.msk.f32.vlgmr.msra.gmra.mrb[16].mxu0 %vm745_vm3, %v13367_v31 }
0x1197   :  { %v10621_v33 = vpop.f32.mrb[16].mxu0 }
0x1198   :  { %v13372_v58 = vadd.f32 %v10621_v33, %v9868_v57  ;;  %v2334_v59 = vpop.f32.mrb[17].mxu0 }
0x1199   :  { %v13374_v60 = vadd.f32 %v9868_v57, %v2334_v59 }
0x119b   :  { %10626 = vmatprep.mubr.msk.f32.mxu0 %vm554_vm0, %v13374_v60  ;;  %v13380_v61 = vpack.i.bf16 %v13372_v58, %v13374_v60 }
0x119d   :  { %11774 = vrot.lane.b32.xlu1 %v13380_v61, %s12708_s12  ;;  %11769 = vrot.lane.b32.xlu0 %v13380_v61, %s12706_s9 }
0x11a1   :  { %11779 = vrot.lane.b32.xlu1 %v13380_v61, %s12711_s5  ;;  %2545 = vrot.lane.b32.xlu0 %v13374_v60, %s12709_s15 }
0x11a5   :  { %2909 = vrot.lane.b32.xlu1 %v13372_v58, %s12712_s29  ;;  %2547 = vrot.lane.b32.xlu0 %v13372_v58, %s12709_s15 }
0x11a9   :  { %2907 = vrot.lane.b32.xlu0 %v13374_v60, %s12712_s29 }
0x120f   :  { %v11775_v62 = vpop.permute.xlu1 %11774  ;;  %v11770_v63 = vpop.permute.xlu0 %11769 }
0x1210   :  { %v11777_v0 = vunpack.i.h.bf16 %v11775_v62  ;;  %v11776_v1 = vunpack.i.l.bf16 %v11775_v62  ;;  %v11772_v2 = vunpack.i.h.bf16 %v11770_v63  ;;  %v11771_v3 = vunpack.i.l.bf16 %v11770_v63 }
0x1212   :  { %v11255_v4 = vpack.c.bf16 %v11772_v2, %v11771_v3  ;;  %v11265_v5 = vpack.c.bf16 %v11777_v0, %v11776_v1 }
0x1213   :  { %v11780_v6 = vpop.permute.xlu1 %11779  ;;  %v2546_v9 = vpop.permute.xlu0 %2545 }
0x1214   :  { %11257 = vmatprep.subr.msk.bf16.mxu0 %vm13189_vm4, %v11255_v4  ;;  %v11782_v7 = vunpack.i.h.bf16 %v11780_v6  ;;  %v11781_v8 = vunpack.i.l.bf16 %v11780_v6 }
0x1215   :  { %11260 = vmatpush3.bf16.xpose.msk.msra.mxu0 %vm13189_vm4, %v11255_v4 }
0x1216   :  { %11267 = vmatprep.subr.msk.bf16.mxu0 %vm13189_vm4, %v11265_v5  ;;  %v11275_v10 = vpack.c.bf16 %v11782_v7, %v11781_v8 }
0x1217   :  { %v2548_v11 = vpop.permute.xlu0 %2547  ;;  %v2910_v13 = vpop.permute.xlu1 %2909 }
0x121b   :  { %v2908_v12 = vpop.permute.xlu0 %2907 }
0x121c   :  { %10627 = vmatmul.mubr.msk.f32.vlgmr.msra.gmra.mrb[18].mxu0 %vm554_vm0, %v13372_v58 }
0x121d   :  { %11270 = vmatpush3.bf16.xpose.msk.msra.mxu0 %vm13189_vm4, %v11265_v5  ;;  %10640 = vmatprep.mubr.msk.f32.mxu0 %vm554_vm0, %v2546_v9 }
0x121e   :  { %11277 = vmatprep.subr.msk.bf16.mxu0 %vm13189_vm4, %v11275_v10 }
0x1224   :  { %10641 = vmatmul.mubr.msk.f32.vlgmr.msra.gmra.mrb[20].mxu0 %vm554_vm0, %v2548_v11 }
0x1225   :  { %11280 = vmatpush3.bf16.xpose.msk.msra.mxu0 %vm13189_vm4, %v11275_v10  ;;  %10664 = vmatprep.mubr.msk.f32.mxu0 %vm554_vm0, %v2908_v12 }
0x122c   :  { %10665 = vmatmul.mubr.msk.f32.vlgmr.msra.gmra.mrb[22].mxu0 %vm554_vm0, %v2910_v13 }
0x12ef   :  { %v10628_v14 = vpop.f32.mrb[18].mxu0 }
0x12f0   :  { %v2433_v15 = vadd.f32 %v10628_v14, %v13237_v47  ;;  %v2427_v16 = vpop.f32.mrb[19].mxu0 }
0x12f1   :  { %v2428_v17 = vadd.f32 %v2427_v16, %v13234_v46 }
0x12f2   :  { %v2439_v18 = vsel %vm920_vm7, %v2433_v15, -inf }
0x12f3   :  { %2440 = vmax.xlane.f32.xlu1 %v2439_v18  ;;  %v2436_v20 = vsel %vm920_vm7, %v2428_v17, -inf }
0x12f4   :  { %2437 = vmax.xlane.f32.xlu0 %v2436_v20 }
0x12f7   :  { %v10642_v21 = vpop.f32.mrb[20].mxu0 }
0x12f8   :  { %v2627_v23 = vpop.f32.mrb[21].mxu0  ;;  %v2633_v19 = vadd.f32 %v10642_v21, %v13237_v47 }
0x12f9   :  { %v2628_v24 = vadd.f32 %v2627_v23, %v13234_v46 }
0x12fa   :  { %v2639_v27 = vsel %vm920_vm7, %v2633_v19, -inf }
0x12fb   :  { %v2636_v26 = vsel %vm920_vm7, %v2628_v24, -inf }
0x12fc   :  { %2637 = vmax.xlane.f32.xlu0 %v2636_v26 }
0x12ff   :  { %v10666_v25 = vpop.f32.mrb[22].mxu0 }
0x1300   :  { %v2989_v28 = vpop.f32.mrb[23].mxu0  ;;  %2640 = vmax.xlane.f32.xlu0 %v2639_v27  ;;  %v2995_v57 = vadd.f32 %v10666_v25, %v13237_v47 }
0x1301   :  { %v2990_v33 = vadd.f32 %v2989_v28, %v13234_v46 }
0x1302   :  { %v3001_v62 = vsel %vm920_vm7, %v2995_v57, -inf }
0x1303   :  { %v2998_v59 = vsel %vm920_vm7, %v2990_v33, -inf }
0x1380   :  { %v2441_v34 = vpop.xlane.xlu1 %2440 }
0x1381   :  { %v2443_v29 = vsub.f32 %v2433_v15, %v2441_v34  ;;  %v2438_v30 = vpop.xlane.xlu0 %2437 }
0x1382   :  { %v2442_v32 = vsub.f32 %v2428_v17, %v2438_v30 }
0x1383   :  { %v2446_v35 = vmul.f32 1.442695, %v2443_v29 }
0x1384   :  { %v2444_v36 = vmul.f32 1.442695, %v2442_v32 }
0x1385   :  { %12018 = vpow2.f32 %v2446_v35 }
0x1386   :  { %12020 = vpow2.f32 %v2444_v36  ;;  %v2344_v36 = vld [vmem:[%s14255_s30 + $0x8] sm:$0xff] }
0x1389   :  { %v2638_v37 = vpop.xlane.xlu0 %2637 }
0x138a   :  { %v2642_v38 = vsub.f32 %v2628_v24, %v2638_v37  ;;  %v2343_v37 = vld [vmem:[%s14255_s30] sm:$0xff] }
0x138c   :  { %v2644_v39 = vmul.f32 1.442695, %v2642_v38 }
0x138d   :  { %v2641_v42 = vpop.xlane.xlu0 %2640 }
0x138e   :  { %12022 = vpow2.f32 %v2644_v39  ;;  %v2643_v43 = vsub.f32 %v2633_v19, %v2641_v42 }
0x138f   :  { %v12019_v44 = vpop.eup %12018 }
0x1390   :  { %v12021_v48 = vpop.eup %12020  ;;  %v2646_v49 = vmul.f32 1.442695, %v2643_v43  ;;  %v2451_v50 = vsel %vm920_vm7, %v12019_v44, 0.0 }
0x1391   :  { %2452 = vadd.xlane.f32.xlu0 %v2451_v50  ;;  %v2448_v51 = vsel %vm920_vm7, %v12021_v48, 0.0 }
0x1392   :  { %12024 = vpow2.f32 %v2646_v49  ;;  %2449 = vadd.xlane.f32.xlu1 %v2448_v51 }
0x1398   :  { %v12023_v52 = vpop.eup %12022 }
0x1399   :  { %v2648_v53 = vsel %vm920_vm7, %v12023_v52, 0.0 }
0x139a   :  { %2649 = vadd.xlane.f32.xlu1 %v2648_v53 }
0x139c   :  { %v12025_v54 = vpop.eup %12024 }
0x139d   :  { %v2651_v56 = vsel %vm920_vm7, %v12025_v54, 0.0 }
0x139e   :  { %2652 = vadd.xlane.f32.xlu0 %v2651_v56 }
0x13ab   :  { %11784 = vrot.lane.b32.xlu1 %v13380_v61, %s12710_s16 }
0x13af   :  { %11794 = vrot.lane.b32.xlu1 %v13380_v61, %s12714_s25 }
0x13b3   :  { %3190 = vrot.lane.b32.xlu1 %v13374_v60, %s12715_s28 }
0x13b4   :  { %11789 = vrot.lane.b32.xlu0 %v13380_v61, %s12713_s10 }
0x13b8   :  { %3192 = vrot.lane.b32.xlu0 %v13372_v58, %s12715_s28 }
0x13d7   :  { %2999 = vmax.xlane.f32.xlu1 %v2998_v59  ;;  %3002 = vmax.xlane.f32.xlu0 %v3001_v62 }
0x141e   :  { %v2453_v0 = vpop.xlane.xlu0 %2452 }
0x141f   :  { %v2450_v63 = vpop.xlane.xlu1 %2449 }
0x1420   :  { %12026 = vrcp.f32 %v2450_v63 }
0x1421   :  { %12028 = vrcp.f32 %v2453_v0 }
0x1427   :  { %v2650_v60 = vpop.xlane.xlu1 %2649 }
0x1428   :  { %12030 = vrcp.f32 %v2650_v60 }
0x142a   :  { %v12027_v1 = vpop.eup %12026 }
0x142b   :  { %v11785_v2 = vpop.permute.xlu1 %11784  ;;  %v2653_v3 = vpop.xlane.xlu0 %2652  ;;  %v2456_v58 = vmul.f32 %v12027_v1, %v12021_v48  ;;  %v2345_v1 = vld [vmem:[%s14255_s30 + $0x10] sm:$0xff] }
0x142c   :  { %v11787_v4 = vunpack.i.h.bf16 %v11785_v2  ;;  %v11786_v5 = vunpack.i.l.bf16 %v11785_v2  ;;  %12032 = vrcp.f32 %v2653_v3  ;;  %v12029_v7 = vpop.eup %12028 }
0x142d   :  { %10633 = vmatprep.mubr.msk.f32.mxu1 %vm920_vm7, %v2456_v58  ;;  %v2457_v16 = vmul.f32 %v12029_v7, %v12019_v44 }
0x142e   :  { %v11261_v6 = vpack.c.bf16 %v11787_v4, %v11786_v5 }
0x142f   :  { %v11795_v8 = vpop.permute.xlu1 %11794  ;;  %v11790_v9 = vpop.permute.xlu0 %11789 }
0x1430   :  { %v11797_v10 = vunpack.i.h.bf16 %v11795_v8  ;;  %v11796_v11 = vunpack.i.l.bf16 %v11795_v8  ;;  %v11792_v12 = vunpack.i.h.bf16 %v11790_v9  ;;  %v11791_v13 = vunpack.i.l.bf16 %v11790_v9  ;;  %11262 = vmatprep.subr.bf16.mxu1 %v11261_v6 }
0x1431   :  { %11264 = vmatpush3.bf16.msra.mxu1 %v11261_v6 }
0x1432   :  { %v12031_v14 = vpop.eup %12030  ;;  %v11285_v15 = vpack.c.bf16 %v11797_v10, %v11796_v11  ;;  %v11271_v17 = vpack.c.bf16 %v11792_v12, %v11791_v13 }
0x1433   :  { %v3191_v18 = vpop.permute.xlu1 %3190  ;;  %v2656_v20 = vmul.f32 %v12031_v14, %v12023_v52  ;;  %v3193_v24 = vpop.permute.xlu0 %3192 }
0x1434   :  { %10634 = vmatmul.mubr.msk.f32.vlgmr.msra.gmra.mrb[12].mxu1 %vm920_vm7, %v2457_v16  ;;  %11272 = vmatprep.subr.bf16.mxu1 %v11271_v17 }
0x1435   :  { %11287 = vmatprep.subr.msk.bf16.mxu0 %vm13189_vm4, %v11285_v15  ;;  %10683 = vmatprep.mubr.msk.f32.mxu0 %vm554_vm0, %v3191_v18 }
0x1436   :  { %v12033_v21 = vpop.eup %12032  ;;  %11274 = vmatpush3.bf16.msra.mxu1 %v11271_v17  ;;  %10647 = vmatprep.mubr.msk.f32.mxu1 %vm920_vm7, %v2656_v20  ;;  %v2346_v17 = vld [vmem:[%s14255_s30 + $0x18] sm:$0xff]  ;;  %s14274_s30 = sld [smem:[#allocation39_spill]] }
0x1437   :  { %11290 = vmatpush3.bf16.xpose.msk.msra.mxu0 %vm13189_vm4, %v11285_v15  ;;  %v2657_v23 = vmul.f32 %v12033_v21, %v12025_v54  ;;  %10650 = vmatprep.subr.mxu1 %v2344_v36 }
0x1439   :  { %10648 = vmatmul.mubr.msk.f32.vlgmr.msra.gmra.mrb[14].mxu1 %vm920_vm7, %v2657_v23 }
0x143a   :  { %10651 = vmatpush3.msra.mxu1 %v2344_v36 }
0x143b   :  { %10655 = vmatprep.subr.mxu1 %v2343_v37 }
0x143e   :  { %10684 = vmatmul.mubr.msk.f32.vlgmr.msra.gmra.mrb[24].mxu0 %vm554_vm0, %v3193_v24 }
0x1464   :  { %v3000_v19 = vpop.xlane.xlu1 %2999  ;;  %v3003_v26 = vpop.xlane.xlu0 %3002 }
0x1465   :  { %v3004_v25 = vsub.f32 %v2990_v33, %v3000_v19  ;;  %v3005_v27 = vsub.f32 %v2995_v57, %v3003_v26  ;;  %v9903_v19 = vld [vmem:[#allocation25] ss:$0 sm:$0xff] }
0x1467   :  { %v3006_v28 = vmul.f32 1.442695, %v3004_v25  ;;  %v3008_v34 = vmul.f32 1.442695, %v3005_v27 }
0x1469   :  { %12034 = vpow2.f32 %v3006_v28 }
0x146a   :  { %12036 = vpow2.f32 %v3008_v34 }
0x1473   :  { %v12035_v29 = vpop.eup %12034 }
0x1474   :  { %v12037_v30 = vpop.eup %12036  ;;  %v3010_v32 = vsel %vm920_vm7, %v12035_v29, 0.0 }
0x1475   :  { %3011 = vadd.xlane.f32.xlu0 %v3010_v32  ;;  %v3013_v35 = vsel %vm920_vm7, %v12037_v30, 0.0 }
0x1476   :  { %3014 = vadd.xlane.f32.xlu1 %v3013_v35 }
0x148b   :  { %11799 = vrot.lane.b32.xlu0 %v13380_v61, %s12716_s13 }
0x1502   :  { %v3012_v38 = vpop.xlane.xlu0 %3011 }
0x1503   :  { %v3015_v44 = vpop.xlane.xlu1 %3014  ;;  %12038 = vrcp.f32 %v3012_v38 }
0x1504   :  { %12040 = vrcp.f32 %v3015_v44 }
0x1506   :  { %v11800_v42 = vpop.permute.xlu0 %11799 }
0x1507   :  { %v10635_v39 = vpop.f32.mrb[12].mxu1  ;;  %v11802_v48 = vunpack.i.h.bf16 %v11800_v42  ;;  %v11801_v49 = vunpack.i.l.bf16 %v11800_v42 }
0x1508   :  { %v2536_v43 = vpop.f32.mrb[13].mxu1 }
0x1509   :  { %v11281_v52 = vpack.c.bf16 %v11802_v48, %v11801_v49  ;;  %v3528_v48 = vld [vmem:[%s14256_s4] sm:$0xff]  ;;  %v3529_v49 = vld [vmem:[%s14256_s4 + $0x8] sm:$0xff] }
0x150c   :  { %v10649_v50 = vpop.f32.mrb[14].mxu1 }
0x150d   :  { %v2736_v51 = vpop.f32.mrb[15].mxu1  ;;  %v12039_v56 = vpop.eup %12038 }
0x150e   :  { %10652 = vmatprep.mubr.msk.f32.mxu1 %vm554_vm0, %v2736_v51  ;;  %v12041_v62 = vpop.eup %12040  ;;  %v3018_v63 = vmul.f32 %v12039_v56, %v12035_v29  ;;  %v11295_v51 = vpack.c.bf16 %v3529_v49, %v3528_v48  ;;  %v3815_v56 = vld [vmem:[%s14257_s17 + $0x8] sm:$0xff] }
0x150f   :  { %10653 = vmatmul.mubr.msk.f32.vlgmr.msra.gmra.mrb[16].mxu1 %vm554_vm0, %v10649_v50  ;;  %v3019_v60 = vmul.f32 %v12041_v62, %v12037_v30  ;;  %v3530_v50 = vld [vmem:[%s14256_s4 + $0x10] sm:$0xff]  ;;  %v510_v48 = vld [vmem:[%s13089_s3 + $0x8] sm:$0xff] }
0x1510   :  { %10656 = vmatpush3.msra.mxu1 %v2343_v37  ;;  %10657 = vmatprep.mubr.msk.f32.mxu1 %vm554_vm0, %v2536_v43  ;;  %v3624_v62 = vld [vmem:[%s14258_s2 + $0x10] sm:$0xff] }
0x1511   :  { %v10685_v53 = vpop.f32.mrb[24].mxu0  ;;  %11282 = vmatprep.subr.bf16.mxu1 %v11281_v52  ;;  %11296 = vmatprep.subr.bf16.mxu0 %v11295_v51 }
0x1512   :  { %v3272_v54 = vpop.f32.mrb[25].mxu0  ;;  %v3278_v33 = vadd.f32 %v10685_v53, %v13237_v47  ;;  %11298 = vmatpush3.bf16.msra.mxu0 %v11295_v51 }
0x1513   :  { %v3273_v57 = vadd.f32 %v3272_v54, %v13234_v46  ;;  %v3814_v54 = vld [vmem:[%s14257_s17] sm:$0xff] }
0x1514   :  { %v3284_v0 = vsel %vm920_vm7, %v3278_v33, -inf }
0x1515   :  { %v3281_v59 = vsel %vm920_vm7, %v3273_v57, -inf }
0x1516   :  { %3282 = vmax.xlane.f32.xlu1 %v3281_v59  ;;  %v3623_v59 = vld [vmem:[%s14258_s2 + $0x8] sm:$0xff] }
0x1517   :  { %10658 = vmatmul.mubr.msk.f32.vlgmr.msra.gmra.mrb[16].mxu1 %vm554_vm0, %v10635_v39 }
0x1518   :  { %11284 = vmatpush3.bf16.msra.mxu1 %v11281_v52  ;;  %10671 = vmatprep.mubr.msk.f32.mxu1 %vm920_vm7, %v3018_v63  ;;  %v3531_v52 = vld [vmem:[%s14256_s4 + $0x18] sm:$0xff]  ;;  %s14275_s4 = sld [smem:[#allocation40_spill]] }
0x1519   :  { %10674 = vmatprep.subr.mxu1 %v2345_v1  ;;  %v11299_v53 = vpack.c.bf16 %v3531_v52, %v3530_v50 }
0x151a   :  { %3285 = vmax.xlane.f32.xlu1 %v3284_v0  ;;  %v3625_v0 = vld [vmem:[%s14258_s2 + $0x18] sm:$0xff] }
0x151b   :  { %10672 = vmatmul.mubr.msk.f32.vlgmr.msra.gmra.mrb[18].mxu1 %vm920_vm7, %v3019_v60  ;;  %11300 = vmatprep.subr.bf16.mxu0 %v11299_v53  ;;  %v11307_v60 = vpack.c.bf16 %v3625_v0, %v3624_v62 }
0x151c   :  { %10675 = vmatpush3.msra.mxu1 %v2345_v1  ;;  %11302 = vmatpush3.bf16.msra.mxu0 %v11299_v53  ;;  %v3626_v1 = vld [vmem:[%s14258_s2 + $0x20] sm:$0xff] }
0x15a3   :  { %v3283_v46 = vpop.xlane.xlu1 %3282 }
0x15a4   :  { %v3287_v47 = vsub.f32 %v3273_v57, %v3283_v46  ;;  %v11319_v57 = vpack.c.bf16 %v3815_v56, %v3814_v54  ;;  %v3627_v46 = vld [vmem:[%s14258_s2 + $0x28] sm:$0xff] }
0x15a6   :  { %v3289_v58 = vmul.f32 1.442695, %v3287_v47  ;;  %11320 = vmatprep.subr.bf16.mxu0 %v11319_v57  ;;  %v11311_v47 = vpack.c.bf16 %v3627_v46, %v3626_v1 }
0x15a7   :  { %v3286_v2 = vpop.xlane.xlu1 %3285 }
0x15a8   :  { %v3288_v3 = vsub.f32 %v3278_v33, %v3286_v2  ;;  %v3622_v33 = vld [vmem:[%s14258_s2] sm:$0xff] }
0x15a9   :  { %v11303_v63 = vpack.c.bf16 %v3623_v59, %v3622_v33 }
0x15aa   :  { %v3291_v4 = vmul.f32 1.442695, %v3288_v3 }
0x15ac   :  { %12042 = vpow2.f32 %v3291_v4 }
0x15ad   :  { %12044 = vpow2.f32 %v3289_v58 }
0x15b6   :  { %v12043_v5 = vpop.eup %12042 }
0x15b7   :  { %v3296_v6 = vsel %vm920_vm7, %v12043_v5, 0.0  ;;  %v12045_v7 = vpop.eup %12044 }
0x15b8   :  { %3297 = vadd.xlane.f32.xlu1 %v3296_v6  ;;  %v3293_v8 = vsel %vm920_vm7, %v12045_v7, 0.0 }
0x15bc   :  { %3294 = vadd.xlane.f32.xlu1 %v3293_v8  ;;  %v9904_v8 = vld [vmem:[#allocation20] ss:$0 sm:$0xff] }
0x15cd   :  { %11804 = vrot.lane.b32.xlu1 %v13380_v61, %s12717_s1 }
0x15ee   :  { %v10673_v9 = vpop.f32.mrb[18].mxu1 }
0x15ef   :  { %v3098_v10 = vpop.f32.mrb[19].mxu1 }
0x15f0   :  { %10676 = vmatprep.mubr.msk.f32.mxu1 %vm554_vm0, %v3098_v10  ;;  %v9905_v10 = vld [vmem:[#allocation19] ss:$0 sm:$0xff] }
0x15f1   :  { %10677 = vmatmul.mubr.msk.f32.vlgmr.msra.gmra.mrb[16].mxu1 %vm554_vm0, %v10673_v9 }
0x1645   :  { %v3298_v11 = vpop.xlane.xlu1 %3297 }
0x1646   :  { %12046 = vrcp.f32 %v3298_v11 }
0x1649   :  { %v3295_v12 = vpop.xlane.xlu1 %3294 }
0x164a   :  { %12048 = vrcp.f32 %v3295_v12 }
0x164d   :  { %v11805_v13 = vpop.permute.xlu1 %11804 }
0x164e   :  { %v11807_v14 = vunpack.i.h.bf16 %v11805_v13  ;;  %v11806_v15 = vunpack.i.l.bf16 %v11805_v13 }
0x1650   :  { %v11291_v16 = vpack.c.bf16 %v11807_v14, %v11806_v15  ;;  %v12047_v18 = vpop.eup %12046  ;;  %v3808_v15 = vld [vmem:[%s14259_s11] sm:$0xff] }
0x1651   :  { %v3302_v21 = vmul.f32 %v12047_v18, %v12043_v5  ;;  %v3817_v18 = vld [vmem:[%s14257_s17 + $0x18] sm:$0xff] }
0x1652   :  { %11292 = vmatprep.subr.bf16.mxu1 %v11291_v16 }
0x1653   :  { %11294 = vmatpush3.bf16.msra.mxu1 %v11291_v16  ;;  %v3810_v16 = vld [vmem:[%s14260_s19] sm:$0xff] }
0x1654   :  { %v12049_v20 = vpop.eup %12048  ;;  %10693 = vmatprep.subr.mxu1 %v2346_v17 }
0x1655   :  { %v3301_v61 = vmul.f32 %v12049_v20, %v12045_v7 }
0x1657   :  { %10690 = vmatprep.mubr.msk.f32.mxu1 %vm920_vm7, %v3301_v61  ;;  %v13504_v61 = vadd.f32 %v3810_v16, %v3808_v15 }
0x1658   :  { %10691 = vmatmul.mubr.msk.f32.vlgmr.msra.gmra.mrb[20].mxu1 %vm920_vm7, %v3302_v21 }
0x1659   :  { %10694 = vmatpush3.msra.mxu1 %v2346_v17  ;;  %v3816_v17 = vld [vmem:[%s14257_s17 + $0x10] sm:$0xff]  ;;  %s14276_s17 = sld [smem:[#allocation71_spill]] }
0x165a   :  { %11304 = vmatprep.subr.bf16.mxu1 %v11303_v63 }
0x172b   :  { %v10692_v23 = vpop.f32.mrb[20].mxu1 }
0x172c   :  { %v3381_v24 = vpop.f32.mrb[21].mxu1 }
0x172d   :  { %10695 = vmatprep.mubr.msk.f32.mxu1 %vm554_vm0, %v3381_v24  ;;  %v3809_v24 = vld [vmem:[%s14259_s11 + $0x8] sm:$0xff]  ;;  %s14278_s11 = sld [smem:[#allocation49_spill]] }
0x172e   :  { %10696 = vmatmul.mubr.msk.f32.vlgmr.msra.gmra.mrb[16].mxu1 %vm554_vm0, %v10692_v23  ;;  %v11323_v23 = vpack.c.bf16 %v3817_v18, %v3816_v17 }
0x172f   :  { %11306 = vmatpush3.bf16.msra.mxu1 %v11303_v63 }
0x1730   :  { %11308 = vmatprep.subr.bf16.mxu1 %v11307_v60 }
0x1733   :  { %11310 = vmatpush3.bf16.msra.mxu1 %v11307_v60 }
0x1734   :  { %11312 = vmatprep.subr.bf16.mxu1 %v11311_v47 }
0x1737   :  { %11314 = vmatpush3.bf16.msra.mxu1 %v11311_v47 }
0x1801   :  { %v10697_v26 = vpop.f32.mrb[16].mxu1 }
0x1802   :  { %v3481_v25 = vadd.f32 %v10697_v26, %v9903_v19  ;;  %v3462_v27 = vpop.f32.mrb[17].mxu1 }
0x1803   :  { %v3480_v28 = vadd.f32 %v9903_v19, %v3462_v27  ;;  %v3811_v19 = vld [vmem:[%s14260_s19 + $0x8] sm:$0xff]  ;;  %v3629_v27 = vld [vmem:[%s14258_s2 + $0x38] sm:$0xff]  ;;  %s14279_s19 = sld [smem:[#allocation69_spill]] }
0x1804   :  { %v3483_v34 = vadd.f32 %v3481_v25, %v13367_v31  ;;  %v13514_v26 = vadd.f32 %v3811_v19, %v3809_v24  ;;  %v3628_v25 = vld [vmem:[%s14258_s2 + $0x30] sm:$0xff]  ;;  %s14277_s2 = sld [smem:[#allocation50_spill]] }
0x1805   :  { %v3482_v29 = vadd.f32 %v3480_v28, %v13363_v55  ;;  %v11315_v28 = vpack.c.bf16 %v3629_v27, %v3628_v25 }
0x1806   :  { %v3487_v30 = vsel %vm745_vm3, %v3483_v34, 0.0 }
0x1807   :  { %3488 = vadd.xlane.f32.xlu1 %v3487_v30  ;;  %v3484_v32 = vsel %vm745_vm3, %v3482_v29, 0.0  ;;  %11316 = vmatprep.subr.bf16.mxu1 %v11315_v28 }
0x1808   :  { %3485 = vadd.xlane.f32.xlu0 %v3484_v32  ;;  %11318 = vmatpush3.bf16.msra.mxu1 %v11315_v28 }
0x1894   :  { %v3489_v35 = vpop.xlane.xlu1 %3488 }
0x1895   :  { %v3491_v36 = vmul.f32 0.03125, %v3489_v35  ;;  %v3486_v37 = vpop.xlane.xlu0 %3485 }
0x1896   :  { %v3490_v38 = vmul.f32 0.03125, %v3486_v37 }
0x1897   :  { %v3493_v39 = vsub.f32 %v3483_v34, %v3491_v36  ;;  %v9906_v34 = vld [vmem:[#allocation16] ss:$0 sm:$0xff] }
0x1898   :  { %v3492_v42 = vsub.f32 %v3482_v29, %v3490_v38  ;;  %v9916_v38 = vld [vmem:[%s14261_s0] ss:$0 sm:$0xff]  ;;  %s14284_s0 = sld [smem:[#allocation64_spill]] }
0x1899   :  { %v3495_v31 = vmul.f32 %v3493_v39, %v3493_v39 }
0x189a   :  { %v3494_v43 = vmul.f32 %v3492_v42, %v3492_v42 }
0x189b   :  { %v3499_v44 = vsel %vm745_vm3, %v3495_v31, 0.0 }
0x189c   :  { %v3496_v55 = vsel %vm745_vm3, %v3494_v43, 0.0 }
0x189d   :  { %3497 = vadd.xlane.f32.xlu0 %v3496_v55 }
0x18a1   :  { %3500 = vadd.xlane.f32.xlu0 %v3499_v44  ;;  %v509_v44 = vld [vmem:[%s13089_s3] sm:$0xff]  ;;  %s14262_s3 = sld [smem:[#allocation54_spill]] }
0x192a   :  { %v3498_v2 = vpop.xlane.xlu0 %3497 }
0x192b   :  { %v3502_v3 = vmul.f32 0.03125, %v3498_v2 }
0x192d   :  { %v3504_v58 = vadd.f32 1e-05, %v3502_v3  ;;  %v13571_v3 = vld [vmem:[#allocation17] ss:$0 sm:$0xff] }
0x192e   :  { %v3501_v4 = vpop.xlane.xlu0 %3500 }
0x192f   :  { %12050 = vrsqrt.f32 %v3504_v58  ;;  %v3503_v5 = vmul.f32 0.03125, %v3501_v4 }
0x1931   :  { %v3505_v6 = vadd.f32 1e-05, %v3503_v5 }
0x1933   :  { %12052 = vrsqrt.f32 %v3505_v6  ;;  %v9821_v6 = vld [vmem:[%s13094_s14] ss:$0 sm:$0xff]  ;;  %s14263_s14 = sld [smem:[#allocation52_spill]] }
0x1939   :  { %v12051_v7 = vpop.eup %12050 }
0x193a   :  { %v3508_v9 = vmul.f32 %v12051_v7, %v3492_v42 }
0x193c   :  { %v3517_v11 = vmul.f32 %v9904_v8, %v3508_v9 }
0x193d   :  { %v12053_v12 = vpop.eup %12052 }
0x193e   :  { %v3509_v13 = vmul.f32 %v12053_v12, %v3493_v39  ;;  %v13496_v14 = vadd.f32 %v9905_v10, %v3517_v11 }
0x1940   :  { %v3518_v20 = vmul.f32 %v9904_v8, %v3509_v13  ;;  %10706 = vmatprep.mubr.msk.f32.mxu0 %vm745_vm3, %v13496_v14 }
0x1942   :  { %v13506_v21 = vadd.f32 %v9905_v10, %v3518_v20 }
0x1944   :  { %10707 = vmatmul.mubr.msk.f32.vlgmr.msra.gmra.mrb[26].mxu0 %vm745_vm3, %v13506_v21 }
0x1945   :  { %11322 = vmatpush3.bf16.msra.mxu0 %v11319_v57  ;;  %10736 = vmatprep.mubr.msk.f32.mxu0 %vm745_vm3, %v13504_v61 }
0x1946   :  { %11324 = vmatprep.subr.bf16.mxu0 %v11323_v23 }
0x1949   :  { %11326 = vmatpush3.bf16.msra.mxu0 %v11323_v23 }
0x194c   :  { %10737 = vmatmul.mubr.msk.f32.vlgmr.msra.gmra.mrb[28].mxu0 %vm745_vm3, %v13514_v26 }
0x1a17   :  { %v10708_v29 = vpop.f32.mrb[26].mxu0 }
0x1a18   :  { %v3617_v30 = vadd.f32 %v10708_v29, %v9906_v34  ;;  %v3611_v32 = vpop.f32.mrb[27].mxu0 }
0x1a19   :  { %v3612_v35 = vadd.f32 %v9906_v34, %v3611_v32 }
0x1a1a   :  { %v3621_v37 = vmax.f32 %v3617_v30, 0.0 }
0x1a1b   :  { %v3620_v36 = vmax.f32 %v3612_v35, 0.0 }
0x1a1d   :  { %10725 = vmatprep.mubr.msk.f32.mxu1 %vm2123_vm8, %v3620_v36 }
0x1a1e   :  { %10726 = vmatmul.mubr.msk.f32.vlgmr.msra.gmra.mrb[22].mxu1 %vm2123_vm8, %v3621_v37 }
0x1a1f   :  { %v10738_v39 = vpop.f32.mrb[28].mxu0 }
0x1a20   :  { %v13523_v42 = vadd.f32 %v10738_v39, %v9916_v38  ;;  %v3897_v43 = vpop.f32.mrb[29].mxu0 }
0x1a21   :  { %v13525_v55 = vadd.f32 %v9916_v38, %v3897_v43 }
0x1a23   :  { %10743 = vmatprep.mubr.msk.f32.mxu0 %vm554_vm0, %v13525_v55  ;;  %v13531_v31 = vpack.i.bf16 %v13523_v42, %v13525_v55 }
0x1a25   :  { %11814 = vrot.lane.b32.xlu1 %v13531_v31, %s12708_s12  ;;  %11809 = vrot.lane.b32.xlu0 %v13531_v31, %s12706_s9 }
0x1a29   :  { %528 = vperm.xlu1 %11732, %v509_v44   ;;  %4108 = vrot.lane.b32.xlu0 %v13525_v55, %s12709_s15 }
0x1a2d   :  { %11819 = vrot.lane.b32.xlu1 %v13531_v31, %s12711_s5  ;;  %4110 = vrot.lane.b32.xlu0 %v13523_v42, %s12709_s15 }
0x1a31   :  { %4472 = vrot.lane.b32.xlu1 %v13523_v42, %s12712_s29  ;;  %531 = vperm.xlu0 %11726, %v510_v48  }
0x1a35   :  { %4470 = vrot.lane.b32.xlu0 %v13525_v55, %s12712_s29 }
0x1a97   :  { %v11815_v49 = vpop.permute.xlu1 %11814  ;;  %v11810_v50 = vpop.permute.xlu0 %11809 }
0x1a98   :  { %v11817_v51 = vunpack.i.h.bf16 %v11815_v49  ;;  %v11816_v52 = vunpack.i.l.bf16 %v11815_v49  ;;  %v11812_v53 = vunpack.i.h.bf16 %v11810_v50  ;;  %v11811_v54 = vunpack.i.l.bf16 %v11810_v50 }
0x1a9a   :  { %v11327_v56 = vpack.c.bf16 %v11812_v53, %v11811_v54  ;;  %v11337_v57 = vpack.c.bf16 %v11817_v51, %v11816_v52 }
0x1a9b   :  { %v4109_v33 = vpop.permute.xlu0 %4108 }
0x1a9c   :  { %11329 = vmatprep.subr.msk.bf16.mxu0 %vm13189_vm4, %v11327_v56 }
0x1a9d   :  { %11332 = vmatpush3.bf16.xpose.msk.msra.mxu0 %vm13189_vm4, %v11327_v56 }
0x1a9e   :  { %11339 = vmatprep.subr.msk.bf16.mxu0 %vm13189_vm4, %v11337_v57 }
0x1a9f   :  { %v4111_v62 = vpop.permute.xlu0 %4110 }
0x1aa4   :  { %10744 = vmatmul.mubr.msk.f32.vlgmr.msra.gmra.mrb[30].mxu0 %vm554_vm0, %v13523_v42 }
0x1aa5   :  { %11342 = vmatpush3.bf16.xpose.msk.msra.mxu0 %vm13189_vm4, %v11337_v57  ;;  %10757 = vmatprep.mubr.msk.f32.mxu0 %vm554_vm0, %v4109_v33 }
0x1aa8   :  { %v13560_v59 = vpop.permute.xlu1 %528 }
0x1aa9   :  { %vm722_vm10 = vcmp.eq.s32.totalorder %v13560_v59, %v9821_v6 }
0x1aaa   :  { %v724_v8 = vsel %vm722_vm10, 0.0, %v12707_v45 }
0x1aab   :  { %v13587_v10 = vadd.f32 %v724_v8, %v13230_v41 }
0x1aac   :  { %v11820_v63 = vpop.permute.xlu1 %11819  ;;  %10758 = vmatmul.mubr.msk.f32.vlgmr.msra.gmra.mrb[32].mxu0 %vm554_vm0, %v4111_v62 }
0x1aad   :  { %v11822_v0 = vunpack.i.h.bf16 %v11820_v63  ;;  %v11821_v60 = vunpack.i.l.bf16 %v11820_v63 }
0x1aaf   :  { %v11347_v1 = vpack.c.bf16 %v11822_v0, %v11821_v60 }
0x1ab0   :  { %v13563_v46 = vpop.permute.xlu0 %531  ;;  %v4473_v2 = vpop.permute.xlu1 %4472 }
0x1ab1   :  { %11349 = vmatprep.subr.msk.bf16.mxu0 %vm13189_vm4, %v11347_v1  ;;  %vm723_vm9 = vcmp.eq.s32.totalorder %v13563_v46, %v9821_v6 }
0x1ab2   :  { %11352 = vmatpush3.bf16.xpose.msk.msra.mxu0 %vm13189_vm4, %v11347_v1  ;;  %v725_v7 = vsel %vm723_vm9, 0.0, %v12707_v45 }
0x1ab3   :  { %v13584_v9 = vadd.f32 %v13228_v40, %v725_v7 }
0x1ab4   :  { %v4471_v47 = vpop.permute.xlu0 %4470 }
0x1ab5   :  { %10781 = vmatprep.mubr.msk.f32.mxu0 %vm554_vm0, %v4471_v47 }
0x1ab9   :  { %10782 = vmatmul.mubr.msk.f32.vlgmr.msra.gmra.mrb[34].mxu0 %vm554_vm0, %v4473_v2 }
0x1af1   :  { %v10727_v58 = vpop.f32.mrb[22].mxu1 }
0x1af2   :  { %v13574_v4 = vadd.f32 %v10727_v58, %v13571_v3  ;;  %v13576_v5 = vpop.f32.mrb[23].mxu1 }
0x1b77   :  { %v10745_v11 = vpop.f32.mrb[30].mxu0 }
0x1b78   :  { %v3996_v12 = vadd.f32 %v10745_v11, %v13584_v9  ;;  %v3990_v13 = vpop.f32.mrb[31].mxu0 }
0x1b79   :  { %v3991_v15 = vadd.f32 %v3990_v13, %v13587_v10 }
0x1b7a   :  { %v4002_v16 = vsel %vm920_vm7, %v3996_v12, -inf }
0x1b7b   :  { %4003 = vmax.xlane.f32.xlu1 %v4002_v16  ;;  %v3999_v17 = vsel %vm920_vm7, %v3991_v15, -inf }
0x1b7c   :  { %4000 = vmax.xlane.f32.xlu0 %v3999_v17 }
0x1b7f   :  { %v10759_v18 = vpop.f32.mrb[32].mxu0 }
0x1b80   :  { %v4190_v20 = vpop.f32.mrb[33].mxu0  ;;  %v4196_v23 = vadd.f32 %v10759_v18, %v13584_v9 }
0x1b81   :  { %v4191_v40 = vadd.f32 %v4190_v20, %v13587_v10 }
0x1b82   :  { %v4202_v24 = vsel %vm920_vm7, %v4196_v23, -inf }
0x1b83   :  { %v4199_v41 = vsel %vm920_vm7, %v4191_v40, -inf }
0x1b84   :  { %4200 = vmax.xlane.f32.xlu0 %v4199_v41 }
0x1b88   :  { %4203 = vmax.xlane.f32.xlu0 %v4202_v24 }
0x1b8c   :  { %v10783_v19 = vpop.f32.mrb[34].mxu0 }
0x1b8d   :  { %v4552_v25 = vpop.f32.mrb[35].mxu0  ;;  %v4558_v56 = vadd.f32 %v10783_v19, %v13584_v9 }
0x1b8e   :  { %v4553_v57 = vadd.f32 %v4552_v25, %v13587_v10 }
0x1b8f   :  { %v4564_v62 = vsel %vm920_vm7, %v4558_v56, -inf }
0x1b90   :  { %v4561_v33 = vsel %vm920_vm7, %v4553_v57, -inf }
0x1c08   :  { %v4004_v27 = vpop.xlane.xlu1 %4003 }
0x1c09   :  { %v4006_v28 = vsub.f32 %v3996_v12, %v4004_v27  ;;  %v4001_v34 = vpop.xlane.xlu0 %4000 }
0x1c0a   :  { %v4005_v29 = vsub.f32 %v3991_v15, %v4001_v34 }
0x1c0b   :  { %v4009_v30 = vmul.f32 1.442695, %v4006_v28 }
0x1c0c   :  { %v4007_v32 = vmul.f32 1.442695, %v4005_v29 }
0x1c0d   :  { %12054 = vpow2.f32 %v4009_v30 }
0x1c0e   :  { %12056 = vpow2.f32 %v4007_v32 }
0x1c11   :  { %v4201_v35 = vpop.xlane.xlu0 %4200 }
0x1c12   :  { %v4205_v36 = vsub.f32 %v4191_v40, %v4201_v35 }
0x1c14   :  { %v4207_v37 = vmul.f32 1.442695, %v4205_v36 }
0x1c15   :  { %v4204_v38 = vpop.xlane.xlu0 %4203 }
0x1c16   :  { %12058 = vpow2.f32 %v4207_v37  ;;  %v4206_v39 = vsub.f32 %v4196_v23, %v4204_v38 }
0x1c17   :  { %v12055_v43 = vpop.eup %12054 }
0x1c18   :  { %v12057_v44 = vpop.eup %12056  ;;  %v4209_v48 = vmul.f32 1.442695, %v4206_v39  ;;  %v4014_v49 = vsel %vm920_vm7, %v12055_v43, 0.0  ;;  %v3907_v39 = vld [vmem:[%s14262_s3 + $0x8] sm:$0xff] }
0x1c19   :  { %4015 = vadd.xlane.f32.xlu0 %v4014_v49  ;;  %v4011_v50 = vsel %vm920_vm7, %v12057_v44, 0.0 }
0x1c1a   :  { %12060 = vpow2.f32 %v4209_v48  ;;  %4012 = vadd.xlane.f32.xlu1 %v4011_v50 }
0x1c20   :  { %v12059_v51 = vpop.eup %12058 }
0x1c21   :  { %v4211_v52 = vsel %vm920_vm7, %v12059_v51, 0.0 }
0x1c22   :  { %4212 = vadd.xlane.f32.xlu1 %v4211_v52 }
0x1c24   :  { %v12061_v53 = vpop.eup %12060 }
0x1c25   :  { %v4214_v54 = vsel %vm920_vm7, %v12061_v53, 0.0 }
0x1c26   :  { %4215 = vadd.xlane.f32.xlu0 %v4214_v54 }
0x1c33   :  { %11824 = vrot.lane.b32.xlu1 %v13531_v31, %s12710_s16 }
0x1c37   :  { %11834 = vrot.lane.b32.xlu1 %v13531_v31, %s12714_s25 }
0x1c3b   :  { %4753 = vrot.lane.b32.xlu1 %v13525_v55, %s12715_s28 }
0x1c3c   :  { %11829 = vrot.lane.b32.xlu0 %v13531_v31, %s12713_s10 }
0x1c40   :  { %4755 = vrot.lane.b32.xlu0 %v13523_v42, %s12715_s28 }
0x1c5f   :  { %4562 = vmax.xlane.f32.xlu1 %v4561_v33  ;;  %4565 = vmax.xlane.f32.xlu0 %v4564_v62 }
0x1ca6   :  { %v4016_v0 = vpop.xlane.xlu0 %4015 }
0x1ca7   :  { %v4013_v63 = vpop.xlane.xlu1 %4012 }
0x1ca8   :  { %12062 = vrcp.f32 %v4013_v63 }
0x1ca9   :  { %12064 = vrcp.f32 %v4016_v0 }
0x1caf   :  { %v4213_v55 = vpop.xlane.xlu1 %4212 }
0x1cb0   :  { %12066 = vrcp.f32 %v4213_v55 }
0x1cb2   :  { %v12063_v60 = vpop.eup %12062 }
0x1cb3   :  { %v11825_v1 = vpop.permute.xlu1 %11824  ;;  %v4216_v47 = vpop.xlane.xlu0 %4215  ;;  %v4019_v42 = vmul.f32 %v12063_v60, %v12057_v44  ;;  %v3710_v44 = vadd.f32 %v13571_v3, %v13576_v5 }
0x1cb4   :  { %v11827_v2 = vunpack.i.h.bf16 %v11825_v1  ;;  %v11826_v58 = vunpack.i.l.bf16 %v11825_v1  ;;  %12068 = vrcp.f32 %v4216_v47  ;;  %v12065_v7 = vpop.eup %12064 }
0x1cb5   :  { %10750 = vmatprep.mubr.msk.f32.mxu1 %vm920_vm7, %v4019_v42  ;;  %v4020_v20 = vmul.f32 %v12065_v7, %v12055_v43  ;;  %v3906_v43 = vld [vmem:[%s14262_s3] sm:$0xff]  ;;  %v3718_v48 = vadd.f32 %v3710_v44, %v13496_v14 }
0x1cb6   :  { %v11333_v6 = vpack.c.bf16 %v11827_v2, %v11826_v58 }
0x1cb7   :  { %v11835_v8 = vpop.permute.xlu1 %11834  ;;  %v11830_v11 = vpop.permute.xlu0 %11829  ;;  %v3720_v49 = vsel %vm745_vm3, %v3718_v48, 0.0 }
0x1cb8   :  { %v11837_v12 = vunpack.i.h.bf16 %v11835_v8  ;;  %v11836_v13 = vunpack.i.l.bf16 %v11835_v8  ;;  %v11832_v15 = vunpack.i.h.bf16 %v11830_v11  ;;  %v11831_v16 = vunpack.i.l.bf16 %v11830_v11  ;;  %11334 = vmatprep.subr.bf16.mxu1 %v11333_v6 }
0x1cb9   :  { %11336 = vmatpush3.bf16.msra.mxu1 %v11333_v6 }
0x1cba   :  { %v12067_v17 = vpop.eup %12066  ;;  %v11357_v18 = vpack.c.bf16 %v11837_v12, %v11836_v13  ;;  %v11343_v40 = vpack.c.bf16 %v11832_v15, %v11831_v16  ;;  %v3908_v12 = vld [vmem:[%s14262_s3 + $0x10] sm:$0xff] }
0x1cbb   :  { %v4754_v23 = vpop.permute.xlu1 %4753  ;;  %v4219_v41 = vmul.f32 %v12067_v17, %v12059_v51  ;;  %v4756_v25 = vpop.permute.xlu0 %4755 }
0x1cbc   :  { %10751 = vmatmul.mubr.msk.f32.vlgmr.msra.gmra.mrb[24].mxu1 %vm920_vm7, %v4020_v20  ;;  %11344 = vmatprep.subr.bf16.mxu1 %v11343_v40 }
0x1cbd   :  { %11359 = vmatprep.subr.msk.bf16.mxu0 %vm13189_vm4, %v11357_v18  ;;  %10800 = vmatprep.mubr.msk.f32.mxu0 %vm554_vm0, %v4754_v23 }
0x1cbe   :  { %v12069_v24 = vpop.eup %12068  ;;  %11346 = vmatpush3.bf16.msra.mxu1 %v11343_v40  ;;  %10764 = vmatprep.mubr.msk.f32.mxu1 %vm920_vm7, %v4219_v41 }
0x1cbf   :  { %11362 = vmatpush3.bf16.xpose.msk.msra.mxu0 %vm13189_vm4, %v11357_v18  ;;  %v4220_v19 = vmul.f32 %v12069_v24, %v12061_v53  ;;  %10767 = vmatprep.subr.mxu1 %v3907_v39 }
0x1cc1   :  { %10765 = vmatmul.mubr.msk.f32.vlgmr.msra.gmra.mrb[26].mxu1 %vm920_vm7, %v4220_v19  ;;  %v3719_v19 = vadd.f32 %v13574_v4, %v13506_v21 }
0x1cc2   :  { %10768 = vmatpush3.msra.mxu1 %v3907_v39 }
0x1cc3   :  { %10772 = vmatprep.subr.mxu1 %v3906_v43 }
0x1cc6   :  { %10801 = vmatmul.mubr.msk.f32.vlgmr.msra.gmra.mrb[36].mxu0 %vm554_vm0, %v4756_v25 }
0x1cec   :  { %v4563_v27 = vpop.xlane.xlu1 %4562  ;;  %v4566_v28 = vpop.xlane.xlu0 %4565 }
0x1ced   :  { %v4567_v34 = vsub.f32 %v4553_v57, %v4563_v27  ;;  %v4568_v29 = vsub.f32 %v4558_v56, %v4566_v28  ;;  %v3723_v28 = vsel %vm745_vm3, %v3719_v19, 0.0 }
0x1cef   :  { %v4569_v30 = vmul.f32 1.442695, %v4567_v34  ;;  %v4571_v32 = vmul.f32 1.442695, %v4568_v29 }
0x1cf1   :  { %12070 = vpow2.f32 %v4569_v30 }
0x1cf2   :  { %12072 = vpow2.f32 %v4571_v32 }
0x1cfb   :  { %v12071_v35 = vpop.eup %12070 }
0x1cfc   :  { %v12073_v36 = vpop.eup %12072  ;;  %v4573_v37 = vsel %vm920_vm7, %v12071_v35, 0.0 }
0x1cfd   :  { %4574 = vadd.xlane.f32.xlu0 %v4573_v37  ;;  %v4576_v38 = vsel %vm920_vm7, %v12073_v36, 0.0 }
0x1cfe   :  { %4577 = vadd.xlane.f32.xlu1 %v4576_v38 }
0x1d13   :  { %11839 = vrot.lane.b32.xlu0 %v13531_v31, %s12716_s13 }
0x1d32   :  { %3721 = vadd.xlane.f32.xlu0 %v3720_v49 }
0x1d8a   :  { %v4575_v50 = vpop.xlane.xlu0 %4574 }
0x1d8b   :  { %v4578_v54 = vpop.xlane.xlu1 %4577  ;;  %12074 = vrcp.f32 %v4575_v50  ;;  %v9912_v50 = vld [vmem:[#allocation23] ss:$0 sm:$0xff] }
0x1d8c   :  { %12076 = vrcp.f32 %v4578_v54  ;;  %v9913_v54 = vld [vmem:[#allocation22] ss:$0 sm:$0xff] }
0x1d8e   :  { %v11840_v52 = vpop.permute.xlu0 %11839 }
0x1d8f   :  { %v10752_v51 = vpop.f32.mrb[24].mxu1  ;;  %v11842_v56 = vunpack.i.h.bf16 %v11840_v52  ;;  %v11841_v57 = vunpack.i.l.bf16 %v11840_v52 }
0x1d90   :  { %v4099_v53 = vpop.f32.mrb[25].mxu1 }
0x1d91   :  { %v11353_v3 = vpack.c.bf16 %v11842_v56, %v11841_v57 }
0x1d94   :  { %v10766_v33 = vpop.f32.mrb[26].mxu1 }
0x1d95   :  { %v4299_v62 = vpop.f32.mrb[27].mxu1  ;;  %v12075_v63 = vpop.eup %12074 }
0x1d96   :  { %10769 = vmatprep.mubr.msk.f32.mxu1 %vm554_vm0, %v4299_v62  ;;  %v12077_v1 = vpop.eup %12076  ;;  %v4581_v47 = vmul.f32 %v12075_v63, %v12071_v35 }
0x1d97   :  { %10770 = vmatmul.mubr.msk.f32.vlgmr.msra.gmra.mrb[28].mxu1 %vm554_vm0, %v10766_v33  ;;  %v4582_v2 = vmul.f32 %v12077_v1, %v12073_v36 }
0x1d98   :  { %10773 = vmatpush3.msra.mxu1 %v3906_v43  ;;  %10774 = vmatprep.mubr.msk.f32.mxu1 %vm554_vm0, %v4099_v53 }
0x1d99   :  { %v10802_v14 = vpop.f32.mrb[36].mxu0  ;;  %11354 = vmatprep.subr.bf16.mxu1 %v11353_v3 }
0x1d9a   :  { %v4835_v5 = vpop.f32.mrb[37].mxu0  ;;  %v4841_v55 = vadd.f32 %v10802_v14, %v13584_v9 }
0x1d9b   :  { %v4836_v0 = vadd.f32 %v4835_v5, %v13587_v10 }
0x1d9c   :  { %v4847_v42 = vsel %vm920_vm7, %v4841_v55, -inf }
0x1d9d   :  { %v4844_v60 = vsel %vm920_vm7, %v4836_v0, -inf }
0x1d9e   :  { %4845 = vmax.xlane.f32.xlu1 %v4844_v60 }
0x1d9f   :  { %10775 = vmatmul.mubr.msk.f32.vlgmr.msra.gmra.mrb[28].mxu1 %vm554_vm0, %v10752_v51 }
0x1da0   :  { %11356 = vmatpush3.bf16.msra.mxu1 %v11353_v3  ;;  %10788 = vmatprep.mubr.msk.f32.mxu1 %vm920_vm7, %v4581_v47  ;;  %v3909_v3 = vld [vmem:[%s14262_s3 + $0x18] sm:$0xff]  ;;  %s14285_s3 = sld [smem:[#allocation63_spill]] }
0x1da1   :  { %10791 = vmatprep.subr.mxu1 %v3908_v12 }
0x1da2   :  { %4848 = vmax.xlane.f32.xlu1 %v4847_v42 }
0x1da3   :  { %10789 = vmatmul.mubr.msk.f32.vlgmr.msra.gmra.mrb[30].mxu1 %vm920_vm7, %v4582_v2 }
0x1da4   :  { %10792 = vmatpush3.msra.mxu1 %v3908_v12 }
0x1dbf   :  { %v3722_v58 = vpop.xlane.xlu0 %3721 }
0x1dc0   :  { %v3726_v6 = vmul.f32 0.03125, %v3722_v58 }
0x1dc2   :  { %v3728_v7 = vsub.f32 %v3718_v48, %v3726_v6 }
0x1dc4   :  { %v3730_v8 = vmul.f32 %v3728_v7, %v3728_v7 }
0x1dc6   :  { %v3732_v11 = vsel %vm745_vm3, %v3730_v8, 0.0 }
0x1dc7   :  { %3733 = vadd.xlane.f32.xlu0 %v3732_v11  ;;  %v9951_v11 = vld [vmem:[%s14263_s14] ss:$0 sm:$0xff]  ;;  %s14293_s14 = sld [smem:[#allocation58_spill]] }
0x1e2b   :  { %v4846_v13 = vpop.xlane.xlu1 %4845 }
0x1e2c   :  { %v4850_v15 = vsub.f32 %v4836_v0, %v4846_v13 }
0x1e2e   :  { %v4852_v18 = vmul.f32 1.442695, %v4850_v15 }
0x1e2f   :  { %v4849_v16 = vpop.xlane.xlu1 %4848 }
0x1e30   :  { %v4851_v17 = vsub.f32 %v4841_v55, %v4849_v16 }
0x1e32   :  { %v4854_v20 = vmul.f32 1.442695, %v4851_v17 }
0x1e34   :  { %12078 = vpow2.f32 %v4854_v20 }
0x1e35   :  { %12080 = vpow2.f32 %v4852_v18 }
0x1e3e   :  { %v12079_v40 = vpop.eup %12078 }
0x1e3f   :  { %v4859_v23 = vsel %vm920_vm7, %v12079_v40, 0.0  ;;  %v12081_v41 = vpop.eup %12080 }
0x1e40   :  { %4860 = vadd.xlane.f32.xlu1 %v4859_v23  ;;  %v4856_v24 = vsel %vm920_vm7, %v12081_v41, 0.0 }
0x1e44   :  { %4857 = vadd.xlane.f32.xlu1 %v4856_v24 }
0x1e54   :  { %v3734_v38 = vpop.xlane.xlu0 %3733 }
0x1e55   :  { %11844 = vrot.lane.b32.xlu1 %v13531_v31, %s12717_s1  ;;  %v3738_v39 = vmul.f32 0.03125, %v3734_v38 }
0x1e57   :  { %v3740_v43 = vadd.f32 1e-05, %v3738_v39 }
0x1e76   :  { %v10790_v25 = vpop.f32.mrb[30].mxu1 }
0x1e77   :  { %v4661_v27 = vpop.f32.mrb[31].mxu1 }
0x1e78   :  { %10793 = vmatprep.mubr.msk.f32.mxu1 %vm554_vm0, %v4661_v27 }
0x1e79   :  { %3724 = vadd.xlane.f32.xlu1 %v3723_v28  ;;  %10794 = vmatmul.mubr.msk.f32.vlgmr.msra.gmra.mrb[28].mxu1 %vm554_vm0, %v10790_v25 }
0x1ecd   :  { %v4861_v34 = vpop.xlane.xlu1 %4860 }
0x1ece   :  { %12082 = vrcp.f32 %v4861_v34 }
0x1ed1   :  { %v4858_v29 = vpop.xlane.xlu1 %4857 }
0x1ed2   :  { %12084 = vrcp.f32 %v4858_v29 }
0x1ed3   :  { %12086 = vrsqrt.f32 %v3740_v43 }
0x1ed5   :  { %v11845_v30 = vpop.permute.xlu1 %11844 }
0x1ed6   :  { %v11847_v32 = vunpack.i.h.bf16 %v11845_v30  ;;  %v11846_v35 = vunpack.i.l.bf16 %v11845_v30 }
0x1ed8   :  { %v11363_v31 = vpack.c.bf16 %v11847_v32, %v11846_v35  ;;  %v12083_v36 = vpop.eup %12082 }
0x1ed9   :  { %v4865_v37 = vmul.f32 %v12083_v36, %v12079_v40 }
0x1eda   :  { %11364 = vmatprep.subr.bf16.mxu1 %v11363_v31 }
0x1edb   :  { %11366 = vmatpush3.bf16.msra.mxu1 %v11363_v31 }
0x1edc   :  { %v12085_v21 = vpop.eup %12084  ;;  %10810 = vmatprep.subr.mxu1 %v3909_v3 }
0x1edd   :  { %v4864_v4 = vmul.f32 %v12085_v21, %v12081_v41  ;;  %v12087_v44 = vpop.eup %12086 }
0x1ede   :  { %v3744_v48 = vmul.f32 %v12087_v44, %v3728_v7  ;;  %v5093_v44 = vld [vmem:[%s14264_s6 + $0x10] sm:$0xff] }
0x1edf   :  { %10807 = vmatprep.mubr.msk.f32.mxu1 %vm920_vm7, %v4864_v4 }
0x1ee0   :  { %10808 = vmatmul.mubr.msk.f32.vlgmr.msra.gmra.mrb[32].mxu1 %vm920_vm7, %v4865_v37  ;;  %v3753_v53 = vmul.f32 %v9912_v50, %v3744_v48  ;;  %v5094_v48 = vld [vmem:[%s14264_s6 + $0x18] sm:$0xff] }
0x1ee1   :  { %10811 = vmatpush3.msra.mxu1 %v3909_v3  ;;  %v5091_v3 = vld [vmem:[%s14264_s6] sm:$0xff] }
0x1ee2   :  { %v3762_v33 = vadd.f32 %v9913_v54, %v3753_v53 }
0x1ee4   :  { %v3764_v62 = vsel %vm745_vm3, %v3762_v33, 0.0 }
0x1f06   :  { %v3725_v49 = vpop.xlane.xlu1 %3724 }
0x1f07   :  { %v3727_v51 = vmul.f32 0.03125, %v3725_v49 }
0x1f09   :  { %v3729_v52 = vsub.f32 %v3719_v19, %v3727_v51 }
0x1f0b   :  { %v3731_v56 = vmul.f32 %v3729_v52, %v3729_v52 }
0x1f0d   :  { %v3735_v57 = vsel %vm745_vm3, %v3731_v56, 0.0  ;;  %v11853_v56 = vpack.i.bf16 %v5094_v48, %v5093_v44 }
0x1f0e   :  { %3736 = vadd.xlane.f32.xlu0 %v3735_v57 }
0x1f12   :  { %3765 = vadd.xlane.f32.xlu0 %v3764_v62 }
0x1f9b   :  { %v3737_v14 = vpop.xlane.xlu0 %3736 }
0x1f9c   :  { %v3739_v5 = vmul.f32 0.03125, %v3737_v14  ;;  %v5092_v14 = vld [vmem:[%s14264_s6 + $0x8] sm:$0xff]  ;;  %s14294_s6 = sld [smem:[#allocation68_spill]] }
0x1f9e   :  { %v3741_v63 = vadd.f32 1e-05, %v3739_v5 }
0x1f9f   :  { %v3766_v58 = vpop.xlane.xlu0 %3765 }
0x1fa0   :  { %12088 = vrsqrt.f32 %v3741_v63  ;;  %v3770_v8 = vmul.f32 0.03125, %v3766_v58  ;;  %v11848_v63 = vpack.i.bf16 %v5092_v14, %v5091_v3 }
0x1fa2   :  { %v3772_v17 = vsub.f32 %v3762_v33, %v3770_v8 }
0x1fa4   :  { %v3774_v19 = vmul.f32 %v3772_v17, %v3772_v17 }
0x1fa6   :  { %v3776_v27 = vsel %vm745_vm3, %v3774_v19, 0.0  ;;  %v9953_v19 = vld [vmem:[%s14267_s8] ss:$0 sm:$0xff]  ;;  %s14297_s8 = sld [smem:[#allocation75_spill]] }
0x1faa   :  { %v12089_v0 = vpop.eup %12088 }
0x1fab   :  { %v3745_v55 = vmul.f32 %v12089_v0, %v3729_v52  ;;  %v11367_v0 = vpack.c.bf16 %v5092_v14, %v5091_v3 }
0x1fad   :  { %v3754_v60 = vmul.f32 %v9912_v50, %v3745_v55  ;;  %v9914_v50 = vld [vmem:[#allocation28] ss:$0 sm:$0xff]  ;;  %11368 = vmatprep.subr.bf16.mxu0 %v11367_v0  ;;  %v11371_v55 = vpack.c.bf16 %v5094_v48, %v5093_v44 }
0x1fae   :  { %11370 = vmatpush3.bf16.msra.mxu0 %v11367_v0 }
0x1faf   :  { %v3763_v1 = vadd.f32 %v9913_v54, %v3754_v60  ;;  %v9915_v54 = vld [vmem:[#allocation26] ss:$0 sm:$0xff]  ;;  %11372 = vmatprep.subr.bf16.mxu0 %v11371_v55  ;;  %v9954_v60 = vld [vmem:[%s14265_s23] ss:$0 sm:$0xff]  ;;  %s14295_s23 = sld [smem:[#allocation67_spill]] }
0x1fb1   :  { %v3767_v47 = vsel %vm745_vm3, %v3763_v1, 0.0 }
0x1fb2   :  { %3768 = vadd.xlane.f32.xlu0 %v3767_v47  ;;  %11374 = vmatpush3.bf16.msra.mxu0 %v11371_v55 }
0x1fb3   :  { %v10809_v42 = vpop.f32.mrb[32].mxu1 }
0x1fb4   :  { %v4944_v2 = vpop.f32.mrb[33].mxu1 }
0x1fb5   :  { %10812 = vmatprep.mubr.msk.f32.mxu1 %vm554_vm0, %v4944_v2 }
0x1fb6   :  { %10813 = vmatmul.mubr.msk.f32.vlgmr.msra.gmra.mrb[28].mxu1 %vm554_vm0, %v10809_v42 }
0x203f   :  { %v3769_v6 = vpop.xlane.xlu0 %3768 }
0x2040   :  { %v3771_v7 = vmul.f32 0.03125, %v3769_v6 }
0x2042   :  { %v3773_v13 = vsub.f32 %v3763_v1, %v3771_v7 }
0x2044   :  { %v3775_v41 = vmul.f32 %v3773_v13, %v3773_v13 }
0x2046   :  { %v3779_v25 = vsel %vm745_vm3, %v3775_v41, 0.0 }
0x2089   :  { %v10814_v12 = vpop.f32.mrb[28].mxu1 }
0x208a   :  { %v5044_v15 = vadd.f32 %v10814_v12, %v9951_v11  ;;  %v5025_v16 = vpop.f32.mrb[29].mxu1 }
0x208b   :  { %v5043_v18 = vadd.f32 %v9951_v11, %v5025_v16 }
0x208c   :  { %v5046_v20 = vadd.f32 %v5044_v15, %v13514_v26 }
0x208d   :  { %v5045_v40 = vadd.f32 %v5043_v18, %v13504_v61 }
0x208e   :  { %v5050_v23 = vsel %vm745_vm3, %v5046_v20, 0.0 }
0x208f   :  { %5051 = vadd.xlane.f32.xlu1 %v5050_v23  ;;  %v5047_v24 = vsel %vm745_vm3, %v5045_v40, 0.0 }
0x2090   :  { %5048 = vadd.xlane.f32.xlu0 %v5047_v24 }
0x2093   :  { %3780 = vadd.xlane.f32.xlu1 %v3779_v25 }
0x2094   :  { %3777 = vadd.xlane.f32.xlu0 %v3776_v27 }
0x211c   :  { %v5052_v28 = vpop.xlane.xlu1 %5051 }
0x211d   :  { %v5054_v34 = vmul.f32 0.03125, %v5052_v28  ;;  %v5049_v29 = vpop.xlane.xlu0 %5048 }
0x211e   :  { %v5053_v26 = vmul.f32 0.03125, %v5049_v29 }
0x211f   :  { %v13671_v30 = vsub.f32 %v5046_v20, %v5054_v34  ;;  %v9952_v20 = vld [vmem:[%s14266_s21] ss:$0 sm:$0xff]  ;;  %s14296_s21 = sld [smem:[#allocation38_spill]] }
0x2120   :  { %v13673_v61 = vsub.f32 %v5045_v40, %v5053_v26  ;;  %v3781_v32 = vpop.xlane.xlu1 %3780 }
0x2121   :  { %v3783_v35 = vmul.f32 0.03125, %v3781_v32  ;;  %v3778_v31 = vpop.xlane.xlu0 %3777  ;;  %v5058_v36 = vmul.f32 %v13671_v30, %v13671_v30 }
0x2122   :  { %v3782_v21 = vmul.f32 0.03125, %v3778_v31  ;;  %v5057_v4 = vmul.f32 %v13673_v61, %v13673_v61 }
0x2123   :  { %v3785_v37 = vadd.f32 1e-05, %v3783_v35  ;;  %v5062_v38 = vsel %vm745_vm3, %v5058_v36, 0.0 }
0x2124   :  { %v3784_v39 = vadd.f32 1e-05, %v3782_v21  ;;  %5063 = vadd.xlane.f32.xlu1 %v5062_v38  ;;  %v5059_v43 = vsel %vm745_vm3, %v5057_v4, 0.0 }
0x2125   :  { %12090 = vrsqrt.f32 %v3785_v37  ;;  %5060 = vadd.xlane.f32.xlu0 %v5059_v43 }
0x2126   :  { %12092 = vrsqrt.f32 %v3784_v39 }
0x212f   :  { %v12091_v49 = vpop.eup %12090 }
0x2130   :  { %v12093_v51 = vpop.eup %12092  ;;  %v3789_v52 = vmul.f32 %v12091_v49, %v3773_v13 }
0x2131   :  { %v3788_v53 = vmul.f32 %v12093_v51, %v3772_v17 }
0x2132   :  { %v3798_v57 = vmul.f32 %v9914_v50, %v3789_v52 }
0x2133   :  { %v3797_v33 = vmul.f32 %v9914_v50, %v3788_v53 }
0x2134   :  { %v13683_v62 = vadd.f32 %v9915_v54, %v3798_v57 }
0x2135   :  { %v13687_v5 = vadd.f32 %v9915_v54, %v3797_v33  ;;  %11854 = vrot.lane.b32.xlu1 %v11853_v56, %s12706_s9  ;;  %v12218_v56 = vld [vmem:[%s14249_s7] ss:$0 sm:$0xff]  ;;  %s14268_s7 = sld [smem:[#allocation44_spill]] }
0x2136   :  { %vm534_vm11 = vcmp.eq.s32.totalorder %v13563_v46, %v12218_v56  ;;  %vm533_vm12 = vcmp.eq.s32.totalorder %v13560_v59, %v12218_v56 }
0x2137   :  { %10834 = vmatprep.mubr.msk.f32.mxu1 %vm745_vm3, %v13687_v5  ;;  %v13751_v57 = vsel %vm534_vm11, 0.0, %v12707_v45  ;;  %v13754_v3 = vsel %vm533_vm12, 0.0, %v12707_v45 }
0x2139   :  { %5199 = vrot.lane.b32.xlu1 %v9954_v60, %s12706_s9 }
0x213b   :  { %11849 = vrot.lane.b32.xlu0 %v11848_v63, %s12706_s9 }
0x21b1   :  { %v5064_v1 = vpop.xlane.xlu1 %5063 }
0x21b2   :  { %v5066_v47 = vmul.f32 0.03125, %v5064_v1  ;;  %v5061_v42 = vpop.xlane.xlu0 %5060 }
0x21b3   :  { %v5065_v2 = vmul.f32 0.03125, %v5061_v42 }
0x21b4   :  { %v5068_v58 = vadd.f32 1e-05, %v5066_v47 }
0x21b5   :  { %v5067_v6 = vadd.f32 1e-05, %v5065_v2  ;;  %v11855_v7 = vpop.permute.xlu1 %11854 }
0x21b6   :  { %12094 = vrsqrt.f32 %v5068_v58  ;;  %v11850_v8 = vpop.permute.xlu0 %11849  ;;  %v11857_v11 = vunpack.i.h.bf16 %v11855_v7  ;;  %v11856_v12 = vunpack.i.l.bf16 %v11855_v7 }
0x21b7   :  { %12096 = vrsqrt.f32 %v5067_v6  ;;  %v11852_v13 = vunpack.i.h.bf16 %v11850_v8  ;;  %v11851_v15 = vunpack.i.l.bf16 %v11850_v8 }
0x21b8   :  { %v11379_v17 = vpack.c.bf16 %v11857_v11, %v11856_v12 }
0x21b9   :  { %v11375_v16 = vpack.c.bf16 %v11852_v13, %v11851_v15  ;;  %v5200_v34 = vpop.permute.xlu1 %5199 }
0x21bb   :  { %11376 = vmatprep.subr.bf16.mxu1 %v11375_v16 }
0x21bc   :  { %11378 = vmatpush3.bf16.msra.mxu1 %v11375_v16 }
0x21bd   :  { %11380 = vmatprep.subr.bf16.mxu1 %v11379_v17 }
0x21c0   :  { %v12095_v18 = vpop.eup %12094  ;;  %11382 = vmatpush3.bf16.msra.mxu1 %v11379_v17 }
0x21c1   :  { %v12097_v40 = vpop.eup %12096  ;;  %v5072_v23 = vmul.f32 %v12095_v18, %v13671_v30 }
0x21c2   :  { %v5071_v41 = vmul.f32 %v12097_v40, %v13673_v61 }
0x21c3   :  { %10835 = vmatmul.mubr.msk.f32.vlgmr.msra.gmra.mrb[34].mxu1 %vm745_vm3, %v13683_v62  ;;  %v5081_v24 = vmul.f32 %v9952_v20, %v5072_v23 }
0x21c4   :  { %v5080_v25 = vmul.f32 %v9952_v20, %v5071_v41 }
0x21c5   :  { %v13703_v28 = vadd.f32 %v9953_v19, %v5081_v24 }
0x21c6   :  { %v13701_v27 = vadd.f32 %v9953_v19, %v5080_v25 }
0x21c8   :  { %10823 = vmatprep.mubr.msk.f32.mxu0 %vm745_vm3, %v13701_v27 }
0x21c9   :  { %10824 = vmatmul.mubr.msk.f32.vlgmr.msra.gmra.mrb[38].mxu0 %vm745_vm3, %v13703_v28 }
0x2296   :  { %v10836_v29 = vpop.f32.mrb[34].mxu1 }
0x2297   :  { %v5280_v26 = vadd.f32 %v10836_v29, %v5200_v34  ;;  %v5274_v30 = vpop.f32.mrb[35].mxu1 }
0x2298   :  { %v5275_v61 = vadd.f32 %v5274_v30, %v5200_v34 }
0x229a   :  { %v13709_v32 = vpack.i.bf16 %v5280_v26, %v5275_v61  ;;  %v11383_v35 = vpack.c.bf16 %v5280_v26, %v5275_v61 }
0x229c   :  { %v10825_v31 = vpop.f32.mrb[38].mxu0  ;;  %11859 = vrot.lane.b32.xlu0 %v13709_v32, %s12709_s15  ;;  %11385 = vmatprep.subr.msk.bf16.mxu0 %vm13189_vm4, %v11383_v35 }
0x229d   :  { %v13715_v36 = vadd.f32 %v10825_v31, %v9954_v60  ;;  %v5174_v21 = vpop.f32.mrb[39].mxu0  ;;  %11388 = vmatpush3.bf16.xpose.msk.msra.mxu0 %vm13189_vm4, %v11383_v35 }
0x229e   :  { %v13719_v4 = vadd.f32 %v9954_v60, %v5174_v21 }
0x22a0   :  { %5483 = vrot.lane.b32.xlu1 %v13719_v4, %s12709_s15  ;;  %10841 = vmatprep.mubr.msk.f32.mxu0 %vm554_vm0, %v13719_v4 }
0x22a1   :  { %5485 = vrot.lane.b32.xlu0 %v13715_v36, %s12709_s15 }
0x22a4   :  { %11864 = vrot.lane.b32.xlu1 %v13709_v32, %s12712_s29  ;;  %10842 = vmatmul.mubr.msk.f32.vlgmr.msra.gmra.mrb[40].mxu0 %vm554_vm0, %v13715_v36 }
0x22a5   :  { %5845 = vrot.lane.b32.xlu0 %v13719_v4, %s12712_s29 }
0x22a8   :  { %5847 = vrot.lane.b32.xlu1 %v13715_v36, %s12712_s29 }
0x230e   :  { %v11860_v37 = vpop.permute.xlu0 %11859 }
0x230f   :  { %v11862_v38 = vunpack.i.h.bf16 %v11860_v37  ;;  %v11861_v39 = vunpack.i.l.bf16 %v11860_v37 }
0x2311   :  { %v11393_v43 = vpack.c.bf16 %v11862_v38, %v11861_v39 }
0x2312   :  { %v5484_v44 = vpop.permute.xlu1 %5483 }
0x2313   :  { %11395 = vmatprep.subr.msk.bf16.mxu0 %vm13189_vm4, %v11393_v43  ;;  %10855 = vmatprep.mubr.msk.f32.mxu0 %vm554_vm0, %v5484_v44  ;;  %v5486_v48 = vpop.permute.xlu0 %5485 }
0x2314   :  { %11398 = vmatpush3.bf16.xpose.msk.msra.mxu0 %vm13189_vm4, %v11393_v43 }
0x2316   :  { %v11865_v49 = vpop.permute.xlu1 %11864 }
0x2317   :  { %v11867_v50 = vunpack.i.h.bf16 %v11865_v49  ;;  %v11866_v51 = vunpack.i.l.bf16 %v11865_v49  ;;  %v5846_v53 = vpop.permute.xlu0 %5845 }
0x2319   :  { %v11403_v52 = vpack.c.bf16 %v11867_v50, %v11866_v51 }
0x231a   :  { %v5848_v54 = vpop.permute.xlu1 %5847 }
0x231b   :  { %10856 = vmatmul.mubr.msk.f32.vlgmr.msra.gmra.mrb[42].mxu0 %vm554_vm0, %v5486_v48  ;;  %11405 = vmatprep.subr.msk.bf16.mxu0 %vm13189_vm4, %v11403_v52 }
0x231c   :  { %11408 = vmatpush3.bf16.xpose.msk.msra.mxu0 %vm13189_vm4, %v11403_v52  ;;  %10879 = vmatprep.mubr.msk.f32.mxu0 %vm554_vm0, %v5846_v53 }
0x2323   :  { %10880 = vmatmul.mubr.msk.f32.vlgmr.msra.gmra.mrb[44].mxu0 %vm554_vm0, %v5848_v54 }
0x2377   :  { %v10843_v33 = vpop.f32.mrb[40].mxu0 }
0x2378   :  { %v5371_v14 = vadd.f32 %v10843_v33, %v13751_v57  ;;  %v5365_v63 = vpop.f32.mrb[41].mxu0 }
0x2379   :  { %v5366_v0 = vadd.f32 %v5365_v63, %v13754_v3 }
0x237a   :  { %v5377_v55 = vsel %vm920_vm7, %v5371_v14, -inf }
0x237b   :  { %5378 = vmax.xlane.f32.xlu1 %v5377_v55  ;;  %v5374_v60 = vsel %vm920_vm7, %v5366_v0, -inf }
0x237c   :  { %5375 = vmax.xlane.f32.xlu0 %v5374_v60 }
0x23ee   :  { %v10857_v46 = vpop.f32.mrb[42].mxu0 }
0x23ef   :  { %v5565_v59 = vpop.f32.mrb[43].mxu0  ;;  %v5571_v47 = vadd.f32 %v10857_v46, %v13751_v57 }
0x23f0   :  { %v5566_v1 = vadd.f32 %v5565_v59, %v13754_v3 }
0x23f1   :  { %v5577_v2 = vsel %vm920_vm7, %v5571_v47, -inf }
0x23f2   :  { %v5574_v45 = vsel %vm920_vm7, %v5566_v1, -inf }
0x23f3   :  { %5575 = vmax.xlane.f32.xlu0 %v5574_v45 }
0x23f6   :  { %v10881_v42 = vpop.f32.mrb[44].mxu0 }
0x23f7   :  { %v5927_v58 = vpop.f32.mrb[45].mxu0  ;;  %5578 = vmax.xlane.f32.xlu0 %v5577_v2  ;;  %v5933_v31 = vadd.f32 %v10881_v42, %v13751_v57 }
0x23f8   :  { %v5928_v21 = vadd.f32 %v5927_v58, %v13754_v3 }
0x23f9   :  { %v5939_v38 = vsel %vm920_vm7, %v5933_v31, -inf }
0x23fa   :  { %v5936_v37 = vsel %vm920_vm7, %v5928_v21, -inf }
0x2408   :  { %v5379_v6 = vpop.xlane.xlu1 %5378 }
0x2409   :  { %v5381_v7 = vsub.f32 %v5371_v14, %v5379_v6  ;;  %v5376_v8 = vpop.xlane.xlu0 %5375 }
0x240a   :  { %v5380_v11 = vsub.f32 %v5366_v0, %v5376_v8 }
0x240b   :  { %v5384_v12 = vmul.f32 1.442695, %v5381_v7 }
0x240c   :  { %v5382_v13 = vmul.f32 1.442695, %v5380_v11 }
0x240d   :  { %12098 = vpow2.f32 %v5384_v12 }
0x240e   :  { %12100 = vpow2.f32 %v5382_v13 }
0x2417   :  { %v12099_v15 = vpop.eup %12098 }
0x2418   :  { %v12101_v16 = vpop.eup %12100  ;;  %v5389_v17 = vsel %vm920_vm7, %v12099_v15, 0.0 }
0x2419   :  { %5390 = vadd.xlane.f32.xlu0 %v5389_v17  ;;  %v5386_v18 = vsel %vm920_vm7, %v12101_v16, 0.0 }
0x241a   :  { %5387 = vadd.xlane.f32.xlu1 %v5386_v18 }
0x2480   :  { %v5576_v20 = vpop.xlane.xlu0 %5575 }
0x2481   :  { %v5580_v40 = vsub.f32 %v5566_v1, %v5576_v20 }
0x2483   :  { %v5582_v23 = vmul.f32 1.442695, %v5580_v40 }
0x2484   :  { %v5579_v41 = vpop.xlane.xlu0 %5578 }
0x2485   :  { %12102 = vpow2.f32 %v5582_v23  ;;  %v5581_v24 = vsub.f32 %v5571_v47, %v5579_v41 }
0x2487   :  { %v5584_v19 = vmul.f32 1.442695, %v5581_v24 }
0x2489   :  { %12104 = vpow2.f32 %v5584_v19 }
0x248f   :  { %v12103_v25 = vpop.eup %12102 }
0x2490   :  { %v5586_v34 = vsel %vm920_vm7, %v12103_v25, 0.0 }
0x2491   :  { %5587 = vadd.xlane.f32.xlu1 %v5586_v34 }
0x2493   :  { %v12105_v29 = vpop.eup %12104 }
0x2494   :  { %v5589_v26 = vsel %vm920_vm7, %v12105_v29, 0.0 }
0x2495   :  { %5590 = vadd.xlane.f32.xlu0 %v5589_v26 }
0x24a2   :  { %11869 = vrot.lane.b32.xlu1 %v13709_v32, %s12706_s9 }
0x24a6   :  { %11879 = vrot.lane.b32.xlu1 %v13709_v32, %s12715_s28 }
0x24a7   :  { %v5388_v30 = vpop.xlane.xlu1 %5387 }
0x24a8   :  { %12106 = vrcp.f32 %v5388_v30 }
0x24aa   :  { %6128 = vrot.lane.b32.xlu1 %v13719_v4, %s12715_s28  ;;  %v5391_v4 = vpop.xlane.xlu0 %5390 }
0x24ab   :  { %11874 = vrot.lane.b32.xlu0 %v13709_v32, %s12708_s12  ;;  %12108 = vrcp.f32 %v5391_v4 }
0x24af   :  { %6130 = vrot.lane.b32.xlu0 %v13715_v36, %s12715_s28 }
0x24b2   :  { %v12107_v61 = vpop.eup %12106 }
0x24b3   :  { %v5394_v35 = vmul.f32 %v12107_v61, %v12101_v16  ;;  %v5283_v16 = vld [vmem:[%s14268_s7] sm:$0xff] }
0x24b5   :  { %10848 = vmatprep.mubr.msk.f32.mxu1 %vm920_vm7, %v5394_v35  ;;  %v12109_v50 = vpop.eup %12108 }
0x24b6   :  { %v5395_v0 = vmul.f32 %v12109_v50, %v12099_v15  ;;  %v5284_v15 = vld [vmem:[%s14268_s7 + $0x8] sm:$0xff] }
0x24ce   :  { %5937 = vmax.xlane.f32.xlu1 %v5936_v37  ;;  %5940 = vmax.xlane.f32.xlu0 %v5939_v38 }
0x251e   :  { %v5588_v39 = vpop.xlane.xlu1 %5587 }
0x251f   :  { %12110 = vrcp.f32 %v5588_v39  ;;  %v5285_v39 = vld [vmem:[%s14268_s7 + $0x10] sm:$0xff] }
0x2522   :  { %v11870_v43 = vpop.permute.xlu1 %11869  ;;  %v5591_v36 = vpop.xlane.xlu0 %5590 }
0x2523   :  { %v11872_v44 = vunpack.i.h.bf16 %v11870_v43  ;;  %v11871_v48 = vunpack.i.l.bf16 %v11870_v43  ;;  %12112 = vrcp.f32 %v5591_v36 }
0x2525   :  { %v11389_v49 = vpack.c.bf16 %v11872_v44, %v11871_v48 }
0x2526   :  { %v11880_v51 = vpop.permute.xlu1 %11879  ;;  %v11875_v52 = vpop.permute.xlu0 %11874 }
0x2527   :  { %v11882_v53 = vunpack.i.h.bf16 %v11880_v51  ;;  %v11881_v54 = vunpack.i.l.bf16 %v11880_v51  ;;  %v11877_v56 = vunpack.i.h.bf16 %v11875_v52  ;;  %v11876_v33 = vunpack.i.l.bf16 %v11875_v52  ;;  %11390 = vmatprep.subr.bf16.mxu1 %v11389_v49 }
0x2528   :  { %11392 = vmatpush3.bf16.msra.mxu1 %v11389_v49 }
0x2529   :  { %v12111_v14 = vpop.eup %12110  ;;  %v11413_v63 = vpack.c.bf16 %v11882_v53, %v11881_v54  ;;  %v11399_v55 = vpack.c.bf16 %v11877_v56, %v11876_v33 }
0x252a   :  { %v6129_v60 = vpop.permute.xlu1 %6128  ;;  %v5594_v46 = vmul.f32 %v12111_v14, %v12103_v25  ;;  %v6131_v47 = vpop.permute.xlu0 %6130 }
0x252b   :  { %10849 = vmatmul.mubr.msk.f32.vlgmr.msra.gmra.mrb[36].mxu1 %vm920_vm7, %v5395_v0  ;;  %11400 = vmatprep.subr.bf16.mxu1 %v11399_v55 }
0x252c   :  { %11415 = vmatprep.subr.msk.bf16.mxu0 %vm13189_vm4, %v11413_v63  ;;  %10898 = vmatprep.mubr.msk.f32.mxu0 %vm554_vm0, %v6129_v60 }
0x252d   :  { %v12113_v59 = vpop.eup %12112  ;;  %11402 = vmatpush3.bf16.msra.mxu1 %v11399_v55  ;;  %10862 = vmatprep.mubr.msk.f32.mxu1 %vm920_vm7, %v5594_v46 }
0x252e   :  { %11418 = vmatpush3.bf16.xpose.msk.msra.mxu0 %vm13189_vm4, %v11413_v63  ;;  %v5595_v1 = vmul.f32 %v12113_v59, %v12105_v29  ;;  %10865 = vmatprep.subr.mxu1 %v5284_v15  ;;  %v5286_v59 = vld [vmem:[%s14268_s7 + $0x18] sm:$0xff] }
0x2530   :  { %10863 = vmatmul.mubr.msk.f32.vlgmr.msra.gmra.mrb[38].mxu1 %vm920_vm7, %v5595_v1 }
0x2531   :  { %10866 = vmatpush3.msra.mxu1 %v5284_v15 }
0x2532   :  { %10870 = vmatprep.subr.mxu1 %v5283_v16 }
0x2535   :  { %10899 = vmatmul.mubr.msk.f32.vlgmr.msra.gmra.mrb[46].mxu0 %vm554_vm0, %v6131_v47 }
0x255b   :  { %v5938_v45 = vpop.xlane.xlu1 %5937  ;;  %v5941_v42 = vpop.xlane.xlu0 %5940 }
0x255c   :  { %v5942_v2 = vsub.f32 %v5928_v21, %v5938_v45  ;;  %v5943_v58 = vsub.f32 %v5933_v31, %v5941_v42 }
0x255e   :  { %v5944_v6 = vmul.f32 1.442695, %v5942_v2  ;;  %v5946_v7 = vmul.f32 1.442695, %v5943_v58  ;;  %v9991_v58 = vld [vmem:[%s14269_s20] ss:$0 sm:$0xff] }
0x2560   :  { %12114 = vpow2.f32 %v5944_v6 }
0x2561   :  { %12116 = vpow2.f32 %v5946_v7 }
0x256a   :  { %v12115_v8 = vpop.eup %12114 }
0x256b   :  { %v12117_v11 = vpop.eup %12116  ;;  %v5948_v12 = vsel %vm920_vm7, %v12115_v8, 0.0 }
0x256c   :  { %5949 = vadd.xlane.f32.xlu0 %v5948_v12  ;;  %v5951_v13 = vsel %vm920_vm7, %v12117_v11, 0.0 }
0x256d   :  { %5952 = vadd.xlane.f32.xlu1 %v5951_v13 }
0x2582   :  { %11884 = vrot.lane.b32.xlu0 %v13709_v32, %s12711_s5 }
0x25f9   :  { %v5950_v17 = vpop.xlane.xlu0 %5949 }
0x25fa   :  { %v5953_v23 = vpop.xlane.xlu1 %5952  ;;  %12118 = vrcp.f32 %v5950_v17 }
0x25fb   :  { %12120 = vrcp.f32 %v5953_v23 }
0x25fd   :  { %v11885_v20 = vpop.permute.xlu0 %11884 }
0x25fe   :  { %v10850_v18 = vpop.f32.mrb[36].mxu1  ;;  %v11887_v41 = vunpack.i.h.bf16 %v11885_v20  ;;  %v11886_v24 = vunpack.i.l.bf16 %v11885_v20 }
0x25ff   :  { %v5474_v40 = vpop.f32.mrb[37].mxu1 }
0x2600   :  { %v11409_v34 = vpack.c.bf16 %v11887_v41, %v11886_v24 }
0x2603   :  { %v10864_v19 = vpop.f32.mrb[38].mxu1 }
0x2604   :  { %v5674_v25 = vpop.f32.mrb[39].mxu1  ;;  %v12119_v30 = vpop.eup %12118 }
0x2605   :  { %10867 = vmatprep.mubr.msk.f32.mxu1 %vm554_vm0, %v5674_v25  ;;  %v12121_v21 = vpop.eup %12120  ;;  %v5956_v37 = vmul.f32 %v12119_v30, %v12115_v8  ;;  %v6466_v25 = vld [vmem:[%s14270_s22] sm:$0xff]  ;;  %v6469_v30 = vld [vmem:[%s14270_s22 + $0x18] sm:$0xff] }
0x2606   :  { %10868 = vmatmul.mubr.msk.f32.vlgmr.msra.gmra.mrb[40].mxu1 %vm554_vm0, %v10864_v19  ;;  %v5957_v38 = vmul.f32 %v12121_v21, %v12117_v11  ;;  %v6562_v21 = vld [vmem:[%s14271_s18 + $0x10] sm:$0xff] }
0x2607   :  { %10871 = vmatpush3.msra.mxu1 %v5283_v16  ;;  %10872 = vmatprep.mubr.msk.f32.mxu1 %vm554_vm0, %v5474_v40 }
0x2608   :  { %v10900_v29 = vpop.f32.mrb[46].mxu0  ;;  %11410 = vmatprep.subr.bf16.mxu1 %v11409_v34 }
0x2609   :  { %v6210_v26 = vpop.f32.mrb[47].mxu0  ;;  %v6216_v35 = vadd.f32 %v10900_v29, %v13751_v57 }
0x260a   :  { %v6211_v61 = vadd.f32 %v6210_v26, %v13754_v3  ;;  %v6468_v26 = vld [vmem:[%s14270_s22 + $0x10] sm:$0xff] }
0x260b   :  { %v6222_v4 = vsel %vm920_vm7, %v6216_v35, -inf }
0x260c   :  { %v6219_v31 = vsel %vm920_vm7, %v6211_v61, -inf }
0x260d   :  { %6220 = vmax.xlane.f32.xlu1 %v6219_v31  ;;  %v6561_v31 = vld [vmem:[%s14271_s18 + $0x8] sm:$0xff] }
0x260e   :  { %10873 = vmatmul.mubr.msk.f32.vlgmr.msra.gmra.mrb[40].mxu1 %vm554_vm0, %v10850_v18 }
0x260f   :  { %11412 = vmatpush3.bf16.msra.mxu1 %v11409_v34  ;;  %10886 = vmatprep.mubr.msk.f32.mxu1 %vm920_vm7, %v5956_v37  ;;  %v6467_v34 = vld [vmem:[%s14270_s22 + $0x8] sm:$0xff] }
0x2610   :  { %10889 = vmatprep.subr.mxu1 %v5285_v39  ;;  %v11423_v29 = vpack.c.bf16 %v6467_v34, %v6466_v25 }
0x2611   :  { %6223 = vmax.xlane.f32.xlu1 %v6222_v4 }
0x2612   :  { %10887 = vmatmul.mubr.msk.f32.vlgmr.msra.gmra.mrb[42].mxu1 %vm920_vm7, %v5957_v38  ;;  %11424 = vmatprep.subr.bf16.mxu0 %v11423_v29  ;;  %v6563_v38 = vld [vmem:[%s14271_s18 + $0x18] sm:$0xff] }
0x2613   :  { %10890 = vmatpush3.msra.mxu1 %v5285_v39  ;;  %11426 = vmatpush3.bf16.msra.mxu0 %v11423_v29  ;;  %v11435_v4 = vpack.c.bf16 %v6563_v38, %v6562_v21  ;;  %v6564_v39 = vld [vmem:[%s14271_s18 + $0x20] sm:$0xff] }
0x269a   :  { %v6221_v43 = vpop.xlane.xlu1 %6220 }
0x269b   :  { %v6225_v36 = vsub.f32 %v6211_v61, %v6221_v43  ;;  %v11427_v61 = vpack.c.bf16 %v6469_v30, %v6468_v26  ;;  %v6565_v43 = vld [vmem:[%s14271_s18 + $0x28] sm:$0xff]  ;;  %v6702_v26 = vld [vmem:[%s14276_s17] sm:$0xff] }
0x269c   :  { %v6703_v30 = vld [vmem:[%s14276_s17 + $0x8] sm:$0xff] }
0x269d   :  { %v6227_v49 = vmul.f32 1.442695, %v6225_v36  ;;  %11428 = vmatprep.subr.bf16.mxu0 %v11427_v61  ;;  %v11439_v36 = vpack.c.bf16 %v6565_v43, %v6564_v39 }
0x269e   :  { %v6224_v44 = vpop.xlane.xlu1 %6223  ;;  %11430 = vmatpush3.bf16.msra.mxu0 %v11427_v61  ;;  %v11447_v61 = vpack.c.bf16 %v6703_v30, %v6702_v26 }
0x269f   :  { %v6226_v48 = vsub.f32 %v6216_v35, %v6224_v44  ;;  %v6560_v35 = vld [vmem:[%s14271_s18] sm:$0xff] }
0x26a0   :  { %v11431_v37 = vpack.c.bf16 %v6561_v31, %v6560_v35  ;;  %11448 = vmatprep.subr.bf16.mxu0 %v11447_v61  ;;  %v6704_v35 = vld [vmem:[%s14276_s17 + $0x10] sm:$0xff]  ;;  %v6705_v31 = vld [vmem:[%s14276_s17 + $0x18] sm:$0xff] }
0x26a1   :  { %v6229_v50 = vmul.f32 1.442695, %v6226_v48  ;;  %v11451_v21 = vpack.c.bf16 %v6705_v31, %v6704_v35 }
0x26a3   :  { %12122 = vpow2.f32 %v6229_v50 }
0x26a4   :  { %12124 = vpow2.f32 %v6227_v49 }
0x26ad   :  { %v12123_v51 = vpop.eup %12122 }
0x26ae   :  { %v6234_v52 = vsel %vm920_vm7, %v12123_v51, 0.0  ;;  %v12125_v53 = vpop.eup %12124 }
0x26af   :  { %6235 = vadd.xlane.f32.xlu1 %v6234_v52  ;;  %v6231_v54 = vsel %vm920_vm7, %v12125_v53, 0.0 }
0x26b3   :  { %6232 = vadd.xlane.f32.xlu1 %v6231_v54  ;;  %v9992_v54 = vld [vmem:[%s14272_s26] ss:$0 sm:$0xff] }
0x26c4   :  { %11889 = vrot.lane.b32.xlu1 %v13709_v32, %s12714_s25 }
0x26e5   :  { %v10888_v56 = vpop.f32.mrb[42].mxu1 }
0x26e6   :  { %v6036_v33 = vpop.f32.mrb[43].mxu1 }
0x26e7   :  { %10891 = vmatprep.mubr.msk.f32.mxu1 %vm554_vm0, %v6036_v33  ;;  %v9993_v33 = vld [vmem:[%s14273_s27] ss:$0 sm:$0xff] }
0x26e8   :  { %10892 = vmatmul.mubr.msk.f32.vlgmr.msra.gmra.mrb[40].mxu1 %vm554_vm0, %v10888_v56 }
0x273c   :  { %v6236_v14 = vpop.xlane.xlu1 %6235 }
0x273d   :  { %12126 = vrcp.f32 %v6236_v14 }
0x2740   :  { %v6233_v63 = vpop.xlane.xlu1 %6232 }
0x2741   :  { %12128 = vrcp.f32 %v6233_v63 }
0x2744   :  { %v11890_v0 = vpop.permute.xlu1 %11889 }
0x2745   :  { %v11892_v55 = vunpack.i.h.bf16 %v11890_v0  ;;  %v11891_v60 = vunpack.i.l.bf16 %v11890_v0 }
0x2747   :  { %v11419_v46 = vpack.c.bf16 %v11892_v55, %v11891_v60  ;;  %v12127_v1 = vpop.eup %12126 }
0x2748   :  { %v6240_v45 = vmul.f32 %v12127_v1, %v12123_v51  ;;  %v6567_v1 = vld [vmem:[%s14271_s18 + $0x38] sm:$0xff] }
0x2749   :  { %11420 = vmatprep.subr.bf16.mxu1 %v11419_v46 }
0x274a   :  { %11422 = vmatpush3.bf16.msra.mxu1 %v11419_v46 }
0x274b   :  { %v12129_v32 = vpop.eup %12128  ;;  %10908 = vmatprep.subr.mxu1 %v5286_v59 }
0x274c   :  { %v6239_v47 = vmul.f32 %v12129_v32, %v12125_v53 }
0x274e   :  { %10905 = vmatprep.mubr.msk.f32.mxu1 %vm920_vm7, %v6239_v47  ;;  %v9994_v47 = vld [vmem:[%s14274_s30] ss:$0 sm:$0xff] }
0x274f   :  { %10906 = vmatmul.mubr.msk.f32.vlgmr.msra.gmra.mrb[44].mxu1 %vm920_vm7, %v6240_v45 }
0x2750   :  { %10909 = vmatpush3.msra.mxu1 %v5286_v59  ;;  %v6566_v59 = vld [vmem:[%s14271_s18 + $0x30] sm:$0xff] }
0x2751   :  { %11432 = vmatprep.subr.bf16.mxu1 %v11431_v37  ;;  %v11443_v32 = vpack.c.bf16 %v6567_v1, %v6566_v59 }
0x2822   :  { %v10907_v42 = vpop.f32.mrb[44].mxu1 }
0x2823   :  { %v6319_v2 = vpop.f32.mrb[45].mxu1 }
0x2824   :  { %10910 = vmatprep.mubr.msk.f32.mxu1 %vm554_vm0, %v6319_v2 }
0x2825   :  { %10911 = vmatmul.mubr.msk.f32.vlgmr.msra.gmra.mrb[40].mxu1 %vm554_vm0, %v10907_v42 }
0x2826   :  { %11434 = vmatpush3.bf16.msra.mxu1 %v11431_v37 }
0x2827   :  { %11436 = vmatprep.subr.bf16.mxu1 %v11435_v4 }
0x282a   :  { %11438 = vmatpush3.bf16.msra.mxu1 %v11435_v4 }
0x282b   :  { %11440 = vmatprep.subr.bf16.mxu1 %v11439_v36 }
0x282e   :  { %11442 = vmatpush3.bf16.msra.mxu1 %v11439_v36 }
0x282f   :  { %11444 = vmatprep.subr.bf16.mxu1 %v11443_v32 }
0x2832   :  { %11446 = vmatpush3.bf16.msra.mxu1 %v11443_v32 }
0x28f8   :  { %v10912_v6 = vpop.f32.mrb[40].mxu1 }
0x28f9   :  { %v6419_v7 = vadd.f32 %v10912_v6, %v9991_v58  ;;  %v6400_v8 = vpop.f32.mrb[41].mxu1 }
0x28fa   :  { %v6418_v11 = vadd.f32 %v9991_v58, %v6400_v8  ;;  %v9997_v8 = vld [vmem:[%s14275_s4] ss:$0 sm:$0xff] }
0x28fb   :  { %v6421_v12 = vadd.f32 %v6419_v7, %v13703_v28 }
0x28fc   :  { %v6420_v13 = vadd.f32 %v6418_v11, %v13701_v27 }
0x28fd   :  { %v6425_v15 = vsel %vm745_vm3, %v6421_v12, 0.0 }
0x28fe   :  { %6426 = vadd.xlane.f32.xlu1 %v6425_v15  ;;  %v6422_v16 = vsel %vm745_vm3, %v6420_v13, 0.0 }
0x28ff   :  { %6423 = vadd.xlane.f32.xlu0 %v6422_v16 }
0x298b   :  { %v6427_v17 = vpop.xlane.xlu1 %6426 }
0x298c   :  { %v6429_v18 = vmul.f32 0.03125, %v6427_v17  ;;  %v6424_v20 = vpop.xlane.xlu0 %6423 }
0x298d   :  { %v6428_v40 = vmul.f32 0.03125, %v6424_v20 }
0x298e   :  { %v6431_v23 = vsub.f32 %v6421_v12, %v6429_v18 }
0x298f   :  { %v6430_v41 = vsub.f32 %v6420_v13, %v6428_v40 }
0x2990   :  { %v6433_v28 = vmul.f32 %v6431_v23, %v6431_v23 }
0x2991   :  { %v6432_v24 = vmul.f32 %v6430_v41, %v6430_v41 }
0x2992   :  { %v6437_v19 = vsel %vm745_vm3, %v6433_v28, 0.0 }
0x2993   :  { %v6434_v27 = vsel %vm745_vm3, %v6432_v24, 0.0 }
0x2994   :  { %6435 = vadd.xlane.f32.xlu0 %v6434_v27 }
0x2998   :  { %6438 = vadd.xlane.f32.xlu0 %v6437_v19 }
0x2a21   :  { %v6436_v44 = vpop.xlane.xlu0 %6435 }
0x2a22   :  { %v6440_v48 = vmul.f32 0.03125, %v6436_v44 }
0x2a24   :  { %v6442_v49 = vadd.f32 1e-05, %v6440_v48  ;;  %v10000_v48 = vld [vmem:[%s14277_s2] ss:$0 sm:$0xff] }
0x2a25   :  { %v6439_v50 = vpop.xlane.xlu0 %6438 }
0x2a26   :  { %12130 = vrsqrt.f32 %v6442_v49  ;;  %v6441_v51 = vmul.f32 0.03125, %v6439_v50  ;;  %v10001_v50 = vld [vmem:[%s14278_s11] ss:$0 sm:$0xff] }
0x2a28   :  { %v6443_v52 = vadd.f32 1e-05, %v6441_v51 }
0x2a2a   :  { %12132 = vrsqrt.f32 %v6443_v52 }
0x2a30   :  { %v12131_v53 = vpop.eup %12130 }
0x2a31   :  { %v6446_v56 = vmul.f32 %v12131_v53, %v6430_v41 }
0x2a33   :  { %v6455_v14 = vmul.f32 %v9992_v54, %v6446_v56 }
0x2a34   :  { %v12133_v63 = vpop.eup %12132 }
0x2a35   :  { %v6447_v0 = vmul.f32 %v12133_v63, %v6431_v23  ;;  %v6464_v55 = vadd.f32 %v9993_v33, %v6455_v14  ;;  %v10002_v14 = vld [vmem:[%s14279_s19] ss:$0 sm:$0xff] }
0x2a37   :  { %v6456_v60 = vmul.f32 %v9992_v54, %v6447_v0  ;;  %10921 = vmatprep.mubr.msk.f32.mxu0 %vm745_vm3, %v6464_v55 }
0x2a39   :  { %v6465_v46 = vadd.f32 %v9993_v33, %v6456_v60 }
0x2a3b   :  { %10922 = vmatmul.mubr.msk.f32.vlgmr.msra.gmra.mrb[48].mxu0 %vm745_vm3, %v6465_v46 }
0x2a3c   :  { %11450 = vmatpush3.bf16.msra.mxu0 %v11447_v61 }
0x2a3d   :  { %11452 = vmatprep.subr.bf16.mxu0 %v11451_v21 }
0x2a40   :  { %11454 = vmatpush3.bf16.msra.mxu0 %v11451_v21 }
0x2b0e   :  { %v10923_v45 = vpop.f32.mrb[48].mxu0 }
0x2b0f   :  { %v6555_v42 = vadd.f32 %v10923_v45, %v9994_v47  ;;  %v6549_v2 = vpop.f32.mrb[49].mxu0 }
0x2b10   :  { %v6550_v58 = vadd.f32 %v9994_v47, %v6549_v2 }
0x2b11   :  { %v6559_v7 = vmax.f32 %v6555_v42, 0.0 }
0x2b12   :  { %v6558_v6 = vmax.f32 %v6550_v58, 0.0 }
0x2b14   :  { %10940 = vmatprep.mubr.msk.f32.mxu1 %vm2123_vm8, %v6558_v6 }
0x2b15   :  { %10941 = vmatmul.mubr.msk.f32.vlgmr.msra.gmra.mrb[46].mxu1 %vm2123_vm8, %v6559_v7 }
0x2be8   :  { %v10942_v11 = vpop.f32.mrb[46].mxu1 }
0x2be9   :  { %v6647_v12 = vpop.f32.mrb[47].mxu1  ;;  %v6653_v13 = vadd.f32 %v10942_v11, %v9997_v8 }
0x2bea   :  { %v6648_v15 = vadd.f32 %v9997_v8, %v6647_v12 }
0x2beb   :  { %v6657_v17 = vadd.f32 %v6653_v13, %v6465_v46 }
0x2bec   :  { %v6656_v16 = vadd.f32 %v6648_v15, %v6464_v55 }
0x2bed   :  { %v6661_v20 = vsel %vm745_vm3, %v6657_v17, 0.0 }
0x2bee   :  { %v6658_v18 = vsel %vm745_vm3, %v6656_v16, 0.0 }
0x2bef   :  { %6659 = vadd.xlane.f32.xlu0 %v6658_v18 }
0x2bf3   :  { %6662 = vadd.xlane.f32.xlu0 %v6661_v20 }
0x2c7c   :  { %v6660_v40 = vpop.xlane.xlu0 %6659 }
0x2c7d   :  { %v6664_v23 = vmul.f32 0.03125, %v6660_v40 }
0x2c7f   :  { %v6666_v41 = vsub.f32 %v6656_v16, %v6664_v23 }
0x2c80   :  { %v6663_v24 = vpop.xlane.xlu0 %6662 }
0x2c81   :  { %v6665_v27 = vmul.f32 0.03125, %v6663_v24  ;;  %v6668_v28 = vmul.f32 %v6666_v41, %v6666_v41 }
0x2c83   :  { %v6667_v19 = vsub.f32 %v6657_v17, %v6665_v27  ;;  %v6670_v25 = vsel %vm745_vm3, %v6668_v28, 0.0 }
0x2c84   :  { %6671 = vadd.xlane.f32.xlu0 %v6670_v25 }
0x2c85   :  { %v6669_v34 = vmul.f32 %v6667_v19, %v6667_v19 }
0x2c87   :  { %v6673_v29 = vsel %vm745_vm3, %v6669_v34, 0.0 }
0x2c88   :  { %6674 = vadd.xlane.f32.xlu1 %v6673_v29 }
0x2d11   :  { %v6672_v37 = vpop.xlane.xlu0 %6671 }
0x2d12   :  { %v6676_v38 = vmul.f32 0.03125, %v6672_v37 }
0x2d14   :  { %v6678_v4 = vadd.f32 1e-05, %v6676_v38 }
0x2d15   :  { %v6675_v39 = vpop.xlane.xlu1 %6674 }
0x2d16   :  { %12134 = vrsqrt.f32 %v6678_v4  ;;  %v6677_v43 = vmul.f32 0.03125, %v6675_v39 }
0x2d18   :  { %v6679_v36 = vadd.f32 1e-05, %v6677_v43 }
0x2d1a   :  { %12136 = vrsqrt.f32 %v6679_v36 }
0x2d20   :  { %v12135_v44 = vpop.eup %12134 }
0x2d21   :  { %v6682_v49 = vmul.f32 %v12135_v44, %v6666_v41 }
0x2d23   :  { %v6691_v51 = vmul.f32 %v10000_v48, %v6682_v49 }
0x2d24   :  { %v12137_v52 = vpop.eup %12136 }
0x2d25   :  { %v6683_v53 = vmul.f32 %v12137_v52, %v6667_v19  ;;  %v13857_v54 = vadd.f32 %v10001_v50, %v6691_v51 }
0x2d27   :  { %v6692_v56 = vmul.f32 %v10000_v48, %v6683_v53  ;;  %10951 = vmatprep.mubr.msk.f32.mxu0 %vm745_vm3, %v13857_v54 }
0x2d29   :  { %v13861_v33 = vadd.f32 %v10001_v50, %v6692_v56 }
0x2d2b   :  { %10952 = vmatmul.mubr.msk.f32.vlgmr.msra.gmra.mrb[50].mxu0 %vm745_vm3, %v13861_v33 }
0x2dfe   :  { %v10953_v63 = vpop.f32.mrb[50].mxu0 }
0x2dff   :  { %v13866_v0 = vadd.f32 %v10953_v63, %v10002_v14  ;;  %v6785_v55 = vpop.f32.mrb[51].mxu0 }
0x2e00   :  { %v13868_v60 = vadd.f32 %v10002_v14, %v6785_v55 }
0x2e02   :  { %10958 = vmatprep.mubr.msk.f32.mxu0 %vm554_vm0, %v13868_v60  ;;  %v13874_v46 = vpack.i.bf16 %v13866_v0, %v13868_v60 }
0x2e04   :  { %11899 = vrot.lane.b32.xlu1 %v13874_v46, %s12708_s12  ;;  %11894 = vrot.lane.b32.xlu0 %v13874_v46, %s12706_s9 }
0x2e08   :  { %6996 = vrot.lane.b32.xlu1 %v13868_v60, %s12709_s15  ;;  %6998 = vrot.lane.b32.xlu0 %v13866_v0, %s12709_s15 }
0x2e0c   :  { %11904 = vrot.lane.b32.xlu1 %v13874_v46, %s12711_s5  ;;  %7358 = vrot.lane.b32.xlu0 %v13868_v60, %s12712_s29 }
0x2e10   :  { %7360 = vrot.lane.b32.xlu1 %v13866_v0, %s12712_s29 }
0x2e76   :  { %v11900_v59 = vpop.permute.xlu1 %11899  ;;  %v11895_v1 = vpop.permute.xlu0 %11894 }
0x2e77   :  { %v11902_v32 = vunpack.i.h.bf16 %v11900_v59  ;;  %v11901_v47 = vunpack.i.l.bf16 %v11900_v59  ;;  %v11897_v45 = vunpack.i.h.bf16 %v11895_v1  ;;  %v11896_v42 = vunpack.i.l.bf16 %v11895_v1 }
0x2e79   :  { %v11455_v2 = vpack.c.bf16 %v11897_v45, %v11896_v42  ;;  %v11465_v6 = vpack.c.bf16 %v11902_v32, %v11901_v47 }
0x2e7a   :  { %v6997_v58 = vpop.permute.xlu1 %6996  ;;  %v6999_v13 = vpop.permute.xlu0 %6998 }
0x2e7b   :  { %11457 = vmatprep.subr.msk.bf16.mxu0 %vm13189_vm4, %v11455_v2 }
0x2e7c   :  { %11460 = vmatpush3.bf16.xpose.msk.msra.mxu0 %vm13189_vm4, %v11455_v2 }
0x2e7d   :  { %11467 = vmatprep.subr.msk.bf16.mxu0 %vm13189_vm4, %v11465_v6 }
0x2e7e   :  { %v11905_v7 = vpop.permute.xlu1 %11904  ;;  %v7359_v15 = vpop.permute.xlu0 %7358 }
0x2e7f   :  { %v11907_v8 = vunpack.i.h.bf16 %v11905_v7  ;;  %v11906_v11 = vunpack.i.l.bf16 %v11905_v7 }
0x2e81   :  { %v11475_v12 = vpack.c.bf16 %v11907_v8, %v11906_v11 }
0x2e82   :  { %v7361_v16 = vpop.permute.xlu1 %7360 }
0x2e83   :  { %10959 = vmatmul.mubr.msk.f32.vlgmr.msra.gmra.mrb[52].mxu0 %vm554_vm0, %v13866_v0 }
0x2e84   :  { %11470 = vmatpush3.bf16.xpose.msk.msra.mxu0 %vm13189_vm4, %v11465_v6  ;;  %10972 = vmatprep.mubr.msk.f32.mxu0 %vm554_vm0, %v6997_v58 }
0x2e85   :  { %11477 = vmatprep.subr.msk.bf16.mxu0 %vm13189_vm4, %v11475_v12 }
0x2e8b   :  { %10973 = vmatmul.mubr.msk.f32.vlgmr.msra.gmra.mrb[54].mxu0 %vm554_vm0, %v6999_v13 }
0x2e8c   :  { %11480 = vmatpush3.bf16.xpose.msk.msra.mxu0 %vm13189_vm4, %v11475_v12  ;;  %10996 = vmatprep.mubr.msk.f32.mxu0 %vm554_vm0, %v7359_v15 }
0x2e93   :  { %10997 = vmatmul.mubr.msk.f32.vlgmr.msra.gmra.mrb[56].mxu0 %vm554_vm0, %v7361_v16 }
0x2f56   :  { %v10960_v17 = vpop.f32.mrb[52].mxu0 }
0x2f57   :  { %v6884_v18 = vadd.f32 %v10960_v17, %v13584_v9  ;;  %v6878_v20 = vpop.f32.mrb[53].mxu0 }
0x2f58   :  { %v6879_v40 = vadd.f32 %v6878_v20, %v13587_v10 }
0x2f59   :  { %v6890_v23 = vsel %vm920_vm7, %v6884_v18, -inf }
0x2f5a   :  { %6891 = vmax.xlane.f32.xlu1 %v6890_v23  ;;  %v6887_v41 = vsel %vm920_vm7, %v6879_v40, -inf }
0x2f5b   :  { %6888 = vmax.xlane.f32.xlu0 %v6887_v41 }
0x2f5e   :  { %v10974_v24 = vpop.f32.mrb[54].mxu0 }
0x2f5f   :  { %v7078_v27 = vpop.f32.mrb[55].mxu0  ;;  %v7084_v19 = vadd.f32 %v10974_v24, %v13584_v9 }
0x2f60   :  { %v7079_v28 = vadd.f32 %v7078_v27, %v13587_v10 }
0x2f61   :  { %v7090_v29 = vsel %vm920_vm7, %v7084_v19, -inf }
0x2f62   :  { %v7087_v25 = vsel %vm920_vm7, %v7079_v28, -inf }
0x2f63   :  { %7088 = vmax.xlane.f32.xlu0 %v7087_v25 }
0x2f66   :  { %v10998_v34 = vpop.f32.mrb[56].mxu0 }
0x2f67   :  { %v7440_v26 = vpop.f32.mrb[57].mxu0  ;;  %7091 = vmax.xlane.f32.xlu0 %v7090_v29  ;;  %v7446_v63 = vadd.f32 %v10998_v34, %v13584_v9 }
0x2f68   :  { %v7441_v55 = vadd.f32 %v7440_v26, %v13587_v10 }
0x2f69   :  { %v7452_v1 = vsel %vm920_vm7, %v7446_v63, -inf }
0x2f6a   :  { %v7449_v59 = vsel %vm920_vm7, %v7441_v55, -inf }
0x2fe7   :  { %v6892_v30 = vpop.xlane.xlu1 %6891 }
0x2fe8   :  { %v6894_v61 = vsub.f32 %v6884_v18, %v6892_v30  ;;  %v6889_v35 = vpop.xlane.xlu0 %6888 }
0x2fe9   :  { %v6893_v31 = vsub.f32 %v6879_v40, %v6889_v35 }
0x2fea   :  { %v6897_v21 = vmul.f32 1.442695, %v6894_v61 }
0x2feb   :  { %v6895_v37 = vmul.f32 1.442695, %v6893_v31 }
0x2fec   :  { %12138 = vpow2.f32 %v6897_v21 }
0x2fed   :  { %12140 = vpow2.f32 %v6895_v37 }
0x2ff0   :  { %v7089_v38 = vpop.xlane.xlu0 %7088 }
0x2ff1   :  { %v7093_v4 = vsub.f32 %v7079_v28, %v7089_v38 }
0x2ff3   :  { %v7095_v39 = vmul.f32 1.442695, %v7093_v4 }
0x2ff4   :  { %v7092_v43 = vpop.xlane.xlu0 %7091 }
0x2ff5   :  { %12142 = vpow2.f32 %v7095_v39  ;;  %v7094_v36 = vsub.f32 %v7084_v19, %v7092_v43 }
0x2ff6   :  { %v12139_v44 = vpop.eup %12138 }
0x2ff7   :  { %v12141_v48 = vpop.eup %12140  ;;  %v7097_v49 = vmul.f32 1.442695, %v7094_v36  ;;  %v6902_v50 = vsel %vm920_vm7, %v12139_v44, 0.0 }
0x2ff8   :  { %6903 = vadd.xlane.f32.xlu0 %v6902_v50  ;;  %v6899_v51 = vsel %vm920_vm7, %v12141_v48, 0.0 }
0x2ff9   :  { %12144 = vpow2.f32 %v7097_v49  ;;  %6900 = vadd.xlane.f32.xlu1 %v6899_v51 }
0x2fff   :  { %v12143_v52 = vpop.eup %12142 }
0x3000   :  { %v7099_v53 = vsel %vm920_vm7, %v12143_v52, 0.0 }
0x3001   :  { %7100 = vadd.xlane.f32.xlu1 %v7099_v53 }
0x3003   :  { %v12145_v56 = vpop.eup %12144 }
0x3004   :  { %v7102_v14 = vsel %vm920_vm7, %v12145_v56, 0.0 }
0x3005   :  { %7103 = vadd.xlane.f32.xlu0 %v7102_v14 }
0x3012   :  { %11909 = vrot.lane.b32.xlu1 %v13874_v46, %s12710_s16  ;;  %s14280_s16 = sld [smem:[#allocation72_spill]] }
0x3016   :  { %11919 = vrot.lane.b32.xlu1 %v13874_v46, %s12714_s25 }
0x3018   :  { %v6795_v38 = vld [vmem:[%s14280_s16 + $0x8] sm:$0xff]  ;;  %v6794_v4 = vld [vmem:[%s14280_s16] sm:$0xff] }
0x301a   :  { %7641 = vrot.lane.b32.xlu1 %v13868_v60, %s12715_s28 }
0x301b   :  { %11914 = vrot.lane.b32.xlu0 %v13874_v46, %s12713_s10  ;;  %s14281_s10 = sld [smem:[#allocation70_spill]] }
0x301f   :  { %7643 = vrot.lane.b32.xlu0 %v13866_v0, %s12715_s28 }
0x303e   :  { %7450 = vmax.xlane.f32.xlu1 %v7449_v59  ;;  %7453 = vmax.xlane.f32.xlu0 %v7452_v1 }
0x3085   :  { %v6904_v47 = vpop.xlane.xlu0 %6903 }
0x3086   :  { %v6901_v32 = vpop.xlane.xlu1 %6900 }
0x3087   :  { %12146 = vrcp.f32 %v6901_v32 }
0x3088   :  { %12148 = vrcp.f32 %v6904_v47 }
0x308e   :  { %v7101_v60 = vpop.xlane.xlu1 %7100 }
0x308f   :  { %12150 = vrcp.f32 %v7101_v60 }
0x3091   :  { %v12147_v45 = vpop.eup %12146 }
0x3092   :  { %v11910_v42 = vpop.permute.xlu1 %11909  ;;  %v7104_v2 = vpop.xlane.xlu0 %7103  ;;  %v6907_v0 = vmul.f32 %v12147_v45, %v12141_v48 }
0x3093   :  { %v11912_v58 = vunpack.i.h.bf16 %v11910_v42  ;;  %v11911_v6 = vunpack.i.l.bf16 %v11910_v42  ;;  %12152 = vrcp.f32 %v7104_v2  ;;  %v12149_v8 = vpop.eup %12148  ;;  %v6796_v42 = vld [vmem:[%s14280_s16 + $0x10] sm:$0xff] }
0x3094   :  { %10965 = vmatprep.mubr.msk.f32.mxu1 %vm920_vm7, %v6907_v0  ;;  %v6908_v20 = vmul.f32 %v12149_v8, %v12139_v44 }
0x3095   :  { %v11461_v7 = vpack.c.bf16 %v11912_v58, %v11911_v6 }
0x3096   :  { %v11920_v11 = vpop.permute.xlu1 %11919  ;;  %v11915_v12 = vpop.permute.xlu0 %11914 }
0x3097   :  { %v11922_v13 = vunpack.i.h.bf16 %v11920_v11  ;;  %v11921_v15 = vunpack.i.l.bf16 %v11920_v11  ;;  %v11917_v16 = vunpack.i.h.bf16 %v11915_v12  ;;  %v11916_v17 = vunpack.i.l.bf16 %v11915_v12  ;;  %11462 = vmatprep.subr.bf16.mxu1 %v11461_v7 }
0x3098   :  { %11464 = vmatpush3.bf16.msra.mxu1 %v11461_v7 }
0x3099   :  { %v12151_v18 = vpop.eup %12150  ;;  %v11485_v40 = vpack.c.bf16 %v11922_v13, %v11921_v15  ;;  %v11471_v23 = vpack.c.bf16 %v11917_v16, %v11916_v17 }
0x309a   :  { %v7642_v41 = vpop.permute.xlu1 %7641  ;;  %v7107_v24 = vmul.f32 %v12151_v18, %v12143_v52  ;;  %v7644_v19 = vpop.permute.xlu0 %7643 }
0x309b   :  { %10966 = vmatmul.mubr.msk.f32.vlgmr.msra.gmra.mrb[48].mxu1 %vm920_vm7, %v6908_v20  ;;  %11472 = vmatprep.subr.bf16.mxu1 %v11471_v23 }
0x309c   :  { %11487 = vmatprep.subr.msk.bf16.mxu0 %vm13189_vm4, %v11485_v40  ;;  %11015 = vmatprep.mubr.msk.f32.mxu0 %vm554_vm0, %v7642_v41  ;;  %v6797_v41 = vld [vmem:[%s14280_s16 + $0x18] sm:$0xff] }
0x309d   :  { %v12153_v27 = vpop.eup %12152  ;;  %11474 = vmatpush3.bf16.msra.mxu1 %v11471_v23  ;;  %10979 = vmatprep.mubr.msk.f32.mxu1 %vm920_vm7, %v7107_v24 }
0x309e   :  { %v7108_v28 = vmul.f32 %v12153_v27, %v12145_v56  ;;  %11490 = vmatpush3.bf16.xpose.msk.msra.mxu0 %vm13189_vm4, %v11485_v40  ;;  %10982 = vmatprep.subr.mxu1 %v6795_v38 }
0x30a0   :  { %10980 = vmatmul.mubr.msk.f32.vlgmr.msra.gmra.mrb[50].mxu1 %vm920_vm7, %v7108_v28 }
0x30a1   :  { %10983 = vmatpush3.msra.mxu1 %v6795_v38 }
0x30a2   :  { %10987 = vmatprep.subr.mxu1 %v6794_v4 }
0x30a5   :  { %11016 = vmatmul.mubr.msk.f32.vlgmr.msra.gmra.mrb[58].mxu0 %vm554_vm0, %v7644_v19 }
0x30cb   :  { %v7451_v25 = vpop.xlane.xlu1 %7450  ;;  %v7454_v34 = vpop.xlane.xlu0 %7453 }
0x30cc   :  { %v7455_v29 = vsub.f32 %v7441_v55, %v7451_v25  ;;  %v7456_v26 = vsub.f32 %v7446_v63, %v7454_v34  ;;  %v10037_v34 = vld [vmem:[%s14281_s10] ss:$0 sm:$0xff] }
0x30ce   :  { %v7457_v30 = vmul.f32 1.442695, %v7455_v29  ;;  %v7459_v61 = vmul.f32 1.442695, %v7456_v26 }
0x30d0   :  { %12154 = vpow2.f32 %v7457_v30 }
0x30d1   :  { %12156 = vpow2.f32 %v7459_v61 }
0x30da   :  { %v12155_v35 = vpop.eup %12154 }
0x30db   :  { %v12157_v31 = vpop.eup %12156  ;;  %v7461_v21 = vsel %vm920_vm7, %v12155_v35, 0.0 }
0x30dc   :  { %7462 = vadd.xlane.f32.xlu0 %v7461_v21  ;;  %v7464_v37 = vsel %vm920_vm7, %v12157_v31, 0.0 }
0x30dd   :  { %7465 = vadd.xlane.f32.xlu1 %v7464_v37 }
0x30f2   :  { %11924 = vrot.lane.b32.xlu0 %v13874_v46, %s12716_s13  ;;  %s14282_s13 = sld [smem:[#allocation61_spill]] }
0x30f8   :  { %v7981_v38 = vld [vmem:[%s14282_s13 + $0x10] sm:$0xff] }
0x3169   :  { %v7463_v39 = vpop.xlane.xlu0 %7462 }
0x316a   :  { %v7466_v48 = vpop.xlane.xlu1 %7465  ;;  %12158 = vrcp.f32 %v7463_v39 }
0x316b   :  { %12160 = vrcp.f32 %v7466_v48 }
0x316d   :  { %v11925_v36 = vpop.permute.xlu0 %11924 }
0x316e   :  { %v10967_v43 = vpop.f32.mrb[48].mxu1  ;;  %v11927_v49 = vunpack.i.h.bf16 %v11925_v36  ;;  %v11926_v50 = vunpack.i.l.bf16 %v11925_v36 }
0x316f   :  { %v6987_v44 = vpop.f32.mrb[49].mxu1 }
0x3170   :  { %v11481_v53 = vpack.c.bf16 %v11927_v49, %v11926_v50 }
0x3173   :  { %v10981_v51 = vpop.f32.mrb[50].mxu1 }
0x3174   :  { %v7187_v52 = vpop.f32.mrb[51].mxu1  ;;  %v12159_v63 = vpop.eup %12158 }
0x3175   :  { %10984 = vmatprep.mubr.msk.f32.mxu1 %vm554_vm0, %v7187_v52  ;;  %v12161_v32 = vpop.eup %12160  ;;  %v7469_v47 = vmul.f32 %v12159_v63, %v12155_v35  ;;  %v7979_v52 = vld [vmem:[%s14282_s13] sm:$0xff] }
0x3176   :  { %10985 = vmatmul.mubr.msk.f32.vlgmr.msra.gmra.mrb[52].mxu1 %vm554_vm0, %v10981_v51  ;;  %v7470_v60 = vmul.f32 %v12161_v32, %v12157_v31 }
0x3177   :  { %10988 = vmatpush3.msra.mxu1 %v6794_v4  ;;  %10989 = vmatprep.mubr.msk.f32.mxu1 %vm554_vm0, %v6987_v44  ;;  %v7982_v4 = vld [vmem:[%s14282_s13 + $0x18] sm:$0xff] }
0x3178   :  { %v11017_v56 = vpop.f32.mrb[58].mxu0  ;;  %11482 = vmatprep.subr.bf16.mxu1 %v11481_v53  ;;  %v11499_v63 = vpack.c.bf16 %v7982_v4, %v7981_v38 }
0x3179   :  { %v7723_v14 = vpop.f32.mrb[59].mxu0  ;;  %v7729_v59 = vadd.f32 %v11017_v56, %v13584_v9 }
0x317a   :  { %v7724_v55 = vadd.f32 %v7723_v14, %v13587_v10 }
0x317b   :  { %v7735_v45 = vsel %vm920_vm7, %v7729_v59, -inf }
0x317c   :  { %v7732_v1 = vsel %vm920_vm7, %v7724_v55, -inf }
0x317d   :  { %7733 = vmax.xlane.f32.xlu1 %v7732_v1 }
0x317e   :  { %10990 = vmatmul.mubr.msk.f32.vlgmr.msra.gmra.mrb[52].mxu1 %vm554_vm0, %v10967_v43 }
0x317f   :  { %11484 = vmatpush3.bf16.msra.mxu1 %v11481_v53  ;;  %11003 = vmatprep.mubr.msk.f32.mxu1 %vm920_vm7, %v7469_v47  ;;  %v7980_v53 = vld [vmem:[%s14282_s13 + $0x8] sm:$0xff] }
0x3180   :  { %11006 = vmatprep.subr.mxu1 %v6796_v42  ;;  %v11933_v56 = vpack.i.bf16 %v7980_v53, %v7979_v52  ;;  %v11495_v14 = vpack.c.bf16 %v7980_v53, %v7979_v52 }
0x3181   :  { %7736 = vmax.xlane.f32.xlu1 %v7735_v45 }
0x3182   :  { %11004 = vmatmul.mubr.msk.f32.vlgmr.msra.gmra.mrb[54].mxu1 %vm920_vm7, %v7470_v60  ;;  %11496 = vmatprep.subr.bf16.mxu0 %v11495_v14 }
0x3183   :  { %11007 = vmatpush3.msra.mxu1 %v6796_v42  ;;  %11498 = vmatpush3.bf16.msra.mxu0 %v11495_v14 }
0x3184   :  { %11500 = vmatprep.subr.bf16.mxu0 %v11499_v63 }
0x3187   :  { %11502 = vmatpush3.bf16.msra.mxu0 %v11499_v63 }
0x320a   :  { %v7734_v9 = vpop.xlane.xlu1 %7733 }
0x320b   :  { %v7738_v10 = vsub.f32 %v7724_v55, %v7734_v9 }
0x320d   :  { %v7740_v58 = vmul.f32 1.442695, %v7738_v10 }
0x320e   :  { %v7737_v2 = vpop.xlane.xlu1 %7736 }
0x320f   :  { %v7739_v0 = vsub.f32 %v7729_v59, %v7737_v2 }
0x3211   :  { %v7742_v6 = vmul.f32 1.442695, %v7739_v0 }
0x3213   :  { %12162 = vpow2.f32 %v7742_v6 }
0x3214   :  { %12164 = vpow2.f32 %v7740_v58 }
0x321d   :  { %v12163_v7 = vpop.eup %12162 }
0x321e   :  { %v7747_v8 = vsel %vm920_vm7, %v12163_v7, 0.0  ;;  %v12165_v11 = vpop.eup %12164 }
0x321f   :  { %7748 = vadd.xlane.f32.xlu1 %v7747_v8  ;;  %v7744_v12 = vsel %vm920_vm7, %v12165_v11, 0.0 }
0x3223   :  { %7745 = vadd.xlane.f32.xlu1 %v7744_v12  ;;  %v10038_v12 = vld [vmem:[%s14284_s0] ss:$0 sm:$0xff] }
0x3234   :  { %11929 = vrot.lane.b32.xlu1 %v13874_v46, %s12717_s1  ;;  %s14283_s1 = sld [smem:[#allocation59_spill]] }
0x323a   :  { %v10040_v55 = vld [vmem:[%s14283_s1] ss:$0 sm:$0xff] }
0x3255   :  { %v11005_v13 = vpop.f32.mrb[54].mxu1 }
0x3256   :  { %v7549_v15 = vpop.f32.mrb[55].mxu1 }
0x3257   :  { %11008 = vmatprep.mubr.msk.f32.mxu1 %vm554_vm0, %v7549_v15 }
0x3258   :  { %11009 = vmatmul.mubr.msk.f32.vlgmr.msra.gmra.mrb[52].mxu1 %vm554_vm0, %v11005_v13 }
0x32ac   :  { %v7749_v16 = vpop.xlane.xlu1 %7748 }
0x32ad   :  { %12166 = vrcp.f32 %v7749_v16 }
0x32b0   :  { %v7746_v17 = vpop.xlane.xlu1 %7745 }
0x32b1   :  { %12168 = vrcp.f32 %v7746_v17 }
0x32b4   :  { %v11930_v18 = vpop.permute.xlu1 %11929 }
0x32b5   :  { %v11932_v20 = vunpack.i.h.bf16 %v11930_v18  ;;  %v11931_v40 = vunpack.i.l.bf16 %v11930_v18  ;;  %v10039_v18 = vld [vmem:[%s14285_s3] ss:$0 sm:$0xff] }
0x32b7   :  { %v11491_v23 = vpack.c.bf16 %v11932_v20, %v11931_v40  ;;  %v12167_v24 = vpop.eup %12166 }
0x32b8   :  { %v7753_v28 = vmul.f32 %v12167_v24, %v12163_v7 }
0x32b9   :  { %11492 = vmatprep.subr.bf16.mxu1 %v11491_v23 }
0x32ba   :  { %11494 = vmatpush3.bf16.msra.mxu1 %v11491_v23 }
0x32bb   :  { %v12169_v46 = vpop.eup %12168  ;;  %11025 = vmatprep.subr.mxu1 %v6797_v41 }
0x32bc   :  { %v7752_v27 = vmul.f32 %v12169_v46, %v12165_v11 }
0x32be   :  { %11022 = vmatprep.mubr.msk.f32.mxu1 %vm920_vm7, %v7752_v27 }
0x32bf   :  { %11023 = vmatmul.mubr.msk.f32.vlgmr.msra.gmra.mrb[56].mxu1 %vm920_vm7, %v7753_v28 }
0x32c0   :  { %11026 = vmatpush3.msra.mxu1 %v6797_v41 }
0x3392   :  { %v11024_v19 = vpop.f32.mrb[56].mxu1 }
0x3393   :  { %v7832_v25 = vpop.f32.mrb[57].mxu1 }
0x3394   :  { %11027 = vmatprep.mubr.msk.f32.mxu1 %vm554_vm0, %v7832_v25 }
0x3395   :  { %11028 = vmatmul.mubr.msk.f32.vlgmr.msra.gmra.mrb[52].mxu1 %vm554_vm0, %v11024_v19 }
0x3396   :  { %11049 = vmatprep.mubr.msk.f32.mxu1 %vm745_vm3, %v13687_v5  ;;  %v11938_v5 = vpack.i.bf16 %v7982_v4, %v7981_v38 }
0x3468   :  { %v11029_v29 = vpop.f32.mrb[52].mxu1 }
0x3469   :  { %v7932_v26 = vadd.f32 %v11029_v29, %v10037_v34  ;;  %v7913_v30 = vpop.f32.mrb[53].mxu1 }
0x346a   :  { %v7931_v61 = vadd.f32 %v10037_v34, %v7913_v30 }
0x346b   :  { %v7934_v35 = vadd.f32 %v7932_v26, %v13861_v33 }
0x346c   :  { %v7933_v31 = vadd.f32 %v7931_v61, %v13857_v54 }
0x346d   :  { %v7938_v21 = vsel %vm745_vm3, %v7934_v35, 0.0 }
0x346e   :  { %7939 = vadd.xlane.f32.xlu1 %v7938_v21  ;;  %v7935_v37 = vsel %vm745_vm3, %v7933_v31, 0.0 }
0x346f   :  { %7936 = vadd.xlane.f32.xlu0 %v7935_v37 }
0x347f   :  { %11939 = vrot.lane.b32.xlu1 %v11938_v5, %s12706_s9 }
0x34fb   :  { %v7940_v39 = vpop.xlane.xlu1 %7939 }
0x34fc   :  { %v7942_v43 = vmul.f32 0.03125, %v7940_v39  ;;  %v7937_v36 = vpop.xlane.xlu0 %7936 }
0x34fd   :  { %v7941_v44 = vmul.f32 0.03125, %v7937_v36 }
0x34fe   :  { %v7944_v33 = vsub.f32 %v7934_v35, %v7942_v43 }
0x34ff   :  { %v7943_v48 = vsub.f32 %v7933_v31, %v7941_v44  ;;  %v11940_v60 = vpop.permute.xlu1 %11939 }
0x3500   :  { %v7946_v54 = vmul.f32 %v7944_v33, %v7944_v33  ;;  %v11942_v9 = vunpack.i.h.bf16 %v11940_v60  ;;  %v11941_v10 = vunpack.i.l.bf16 %v11940_v60 }
0x3501   :  { %v7945_v50 = vmul.f32 %v7943_v48, %v7943_v48 }
0x3502   :  { %v7950_v49 = vsel %vm745_vm3, %v7946_v54, 0.0  ;;  %v11507_v7 = vpack.c.bf16 %v11942_v9, %v11941_v10 }
0x3503   :  { %7951 = vadd.xlane.f32.xlu0 %v7950_v49  ;;  %v7947_v51 = vsel %vm745_vm3, %v7945_v50, 0.0 }
0x3507   :  { %7948 = vadd.xlane.f32.xlu0 %v7947_v51 }
0x351d   :  { %11934 = vrot.lane.b32.xlu0 %v11933_v56, %s12706_s9 }
0x3521   :  { %8087 = vrot.lane.b32.xlu0 %v10040_v55, %s12706_s9 }
0x3590   :  { %v7952_v59 = vpop.xlane.xlu0 %7951 }
0x3591   :  { %v7954_v1 = vmul.f32 0.03125, %v7952_v59 }
0x3593   :  { %v7956_v32 = vadd.f32 1e-05, %v7954_v1 }
0x3594   :  { %v7949_v47 = vpop.xlane.xlu0 %7948 }
0x3595   :  { %12170 = vrsqrt.f32 %v7956_v32  ;;  %v7953_v45 = vmul.f32 0.03125, %v7949_v47 }
0x3597   :  { %v7955_v42 = vadd.f32 1e-05, %v7953_v45 }
0x3598   :  { %v11935_v2 = vpop.permute.xlu0 %11934 }
0x3599   :  { %12172 = vrsqrt.f32 %v7955_v42  ;;  %v11937_v0 = vunpack.i.h.bf16 %v11935_v2  ;;  %v11936_v58 = vunpack.i.l.bf16 %v11935_v2 }
0x359b   :  { %v11503_v6 = vpack.c.bf16 %v11937_v0, %v11936_v58 }
0x359c   :  { %v8088_v23 = vpop.permute.xlu0 %8087 }
0x359d   :  { %11504 = vmatprep.subr.bf16.mxu1 %v11503_v6 }
0x359e   :  { %11506 = vmatpush3.bf16.msra.mxu1 %v11503_v6 }
0x359f   :  { %v12171_v8 = vpop.eup %12170  ;;  %11508 = vmatprep.subr.bf16.mxu1 %v11507_v7 }
0x35a0   :  { %v7960_v11 = vmul.f32 %v12171_v8, %v7944_v33 }
0x35a2   :  { %11510 = vmatpush3.bf16.msra.mxu1 %v11507_v7  ;;  %v7969_v16 = vmul.f32 %v10038_v12, %v7960_v11 }
0x35a3   :  { %v12173_v13 = vpop.eup %12172 }
0x35a4   :  { %v7959_v15 = vmul.f32 %v12173_v13, %v7943_v48  ;;  %v13995_v40 = vadd.f32 %v10039_v18, %v7969_v16 }
0x35a5   :  { %11050 = vmatmul.mubr.msk.f32.vlgmr.msra.gmra.mrb[58].mxu1 %vm745_vm3, %v13683_v62 }
0x35a6   :  { %v7968_v17 = vmul.f32 %v10038_v12, %v7959_v15 }
0x35a8   :  { %v13993_v20 = vadd.f32 %v10039_v18, %v7968_v17 }
0x35aa   :  { %11038 = vmatprep.mubr.msk.f32.mxu0 %vm745_vm3, %v13993_v20 }
0x35ab   :  { %11039 = vmatmul.mubr.msk.f32.vlgmr.msra.gmra.mrb[60].mxu0 %vm745_vm3, %v13995_v40 }
0x3678   :  { %v11051_v41 = vpop.f32.mrb[58].mxu1 }
0x3679   :  { %v8162_v24 = vadd.f32 %v11051_v41, %v8088_v23  ;;  %v8156_v46 = vpop.f32.mrb[59].mxu1 }
0x367a   :  { %v8157_v27 = vadd.f32 %v8156_v46, %v8088_v23 }
0x367c   :  { %v14001_v28 = vpack.i.bf16 %v8162_v24, %v8157_v27  ;;  %v11511_v62 = vpack.c.bf16 %v8162_v24, %v8157_v27 }
0x367e   :  { %v11040_v19 = vpop.f32.mrb[60].mxu0  ;;  %11944 = vrot.lane.b32.xlu0 %v14001_v28, %s12709_s15  ;;  %11513 = vmatprep.subr.msk.bf16.mxu0 %vm13189_vm4, %v11511_v62 }
0x367f   :  { %v14007_v25 = vadd.f32 %v11040_v19, %v10040_v55  ;;  %v8062_v34 = vpop.f32.mrb[61].mxu0  ;;  %11516 = vmatpush3.bf16.xpose.msk.msra.mxu0 %vm13189_vm4, %v11511_v62 }
0x3680   :  { %v14011_v29 = vadd.f32 %v10040_v55, %v8062_v34 }
0x3682   :  { %8365 = vrot.lane.b32.xlu1 %v14011_v29, %s12709_s15  ;;  %11056 = vmatprep.mubr.msk.f32.mxu0 %vm554_vm0, %v14011_v29 }
0x3683   :  { %8367 = vrot.lane.b32.xlu0 %v14007_v25, %s12709_s15  ;;  %s14288_s15 = sld [smem:[#allocation73_spill]] }
0x3686   :  { %11949 = vrot.lane.b32.xlu1 %v14001_v28, %s12712_s29  ;;  %11057 = vmatmul.mubr.msk.f32.vlgmr.msra.gmra.mrb[62].mxu0 %vm554_vm0, %v14007_v25 }
0x3687   :  { %8727 = vrot.lane.b32.xlu0 %v14011_v29, %s12712_s29 }
0x368a   :  { %8729 = vrot.lane.b32.xlu1 %v14007_v25, %s12712_s29  ;;  %s14290_s29 = sld [smem:[#allocation66_spill]] }
0x36f0   :  { %v11945_v26 = vpop.permute.xlu0 %11944 }
0x36f1   :  { %v11947_v30 = vunpack.i.h.bf16 %v11945_v26  ;;  %v11946_v61 = vunpack.i.l.bf16 %v11945_v26 }
0x36f3   :  { %v11521_v35 = vpack.c.bf16 %v11947_v30, %v11946_v61 }
0x36f4   :  { %v8366_v31 = vpop.permute.xlu1 %8365 }
0x36f5   :  { %11523 = vmatprep.subr.msk.bf16.mxu0 %vm13189_vm4, %v11521_v35  ;;  %11070 = vmatprep.mubr.msk.f32.mxu0 %vm554_vm0, %v8366_v31  ;;  %v8368_v21 = vpop.permute.xlu0 %8367 }
0x36f6   :  { %11526 = vmatpush3.bf16.xpose.msk.msra.mxu0 %vm13189_vm4, %v11521_v35 }
0x36f8   :  { %v11950_v37 = vpop.permute.xlu1 %11949 }
0x36f9   :  { %v11952_v38 = vunpack.i.h.bf16 %v11950_v37  ;;  %v11951_v4 = vunpack.i.l.bf16 %v11950_v37  ;;  %v8728_v39 = vpop.permute.xlu0 %8727 }
0x36fb   :  { %v11531_v5 = vpack.c.bf16 %v11952_v38, %v11951_v4 }
0x36fc   :  { %v8730_v43 = vpop.permute.xlu1 %8729 }
0x36fd   :  { %11071 = vmatmul.mubr.msk.f32.vlgmr.msra.gmra.mrb[64].mxu0 %vm554_vm0, %v8368_v21  ;;  %11533 = vmatprep.subr.msk.bf16.mxu0 %vm13189_vm4, %v11531_v5 }
0x36fe   :  { %11536 = vmatpush3.bf16.xpose.msk.msra.mxu0 %vm13189_vm4, %v11531_v5  ;;  %11094 = vmatprep.mubr.msk.f32.mxu0 %vm554_vm0, %v8728_v39 }
0x3705   :  { %11095 = vmatmul.mubr.msk.f32.vlgmr.msra.gmra.mrb[66].mxu0 %vm554_vm0, %v8730_v43 }
0x3759   :  { %v11058_v36 = vpop.f32.mrb[62].mxu0 }
0x375a   :  { %v8253_v44 = vadd.f32 %v11058_v36, %v13751_v57  ;;  %v8247_v33 = vpop.f32.mrb[63].mxu0 }
0x375b   :  { %v8248_v48 = vadd.f32 %v8247_v33, %v13754_v3 }
0x375c   :  { %v8259_v54 = vsel %vm920_vm7, %v8253_v44, -inf }
0x375d   :  { %8260 = vmax.xlane.f32.xlu1 %v8259_v54  ;;  %v8256_v49 = vsel %vm920_vm7, %v8248_v48, -inf }
0x375e   :  { %8257 = vmax.xlane.f32.xlu0 %v8256_v49 }
0x37d0   :  { %v11072_v50 = vpop.f32.mrb[64].mxu0 }
0x37d1   :  { %v8447_v51 = vpop.f32.mrb[65].mxu0  ;;  %v8453_v53 = vadd.f32 %v11072_v50, %v13751_v57 }
0x37d2   :  { %v8448_v52 = vadd.f32 %v8447_v51, %v13754_v3 }
0x37d3   :  { %v8459_v63 = vsel %vm920_vm7, %v8453_v53, -inf }
0x37d4   :  { %v8456_v56 = vsel %vm920_vm7, %v8448_v52, -inf }
0x37d5   :  { %8457 = vmax.xlane.f32.xlu0 %v8456_v56 }
0x37d8   :  { %v11096_v14 = vpop.f32.mrb[66].mxu0 }
0x37d9   :  { %v8809_v55 = vpop.f32.mrb[67].mxu0  ;;  %8460 = vmax.xlane.f32.xlu0 %v8459_v63  ;;  %v8815_v41 = vadd.f32 %v11096_v14, %v13751_v57 }
0x37da   :  { %v8810_v24 = vadd.f32 %v8809_v55, %v13754_v3 }
0x37db   :  { %v8821_v27 = vsel %vm920_vm7, %v8815_v41, -inf }
0x37dc   :  { %v8818_v46 = vsel %vm920_vm7, %v8810_v24, -inf }
0x37ea   :  { %v8261_v59 = vpop.xlane.xlu1 %8260 }
0x37eb   :  { %v8263_v1 = vsub.f32 %v8253_v44, %v8261_v59  ;;  %v8258_v32 = vpop.xlane.xlu0 %8257 }
0x37ec   :  { %v8262_v47 = vsub.f32 %v8248_v48, %v8258_v32 }
0x37ed   :  { %v8266_v60 = vmul.f32 1.442695, %v8263_v1 }
0x37ee   :  { %v8264_v45 = vmul.f32 1.442695, %v8262_v47 }
0x37ef   :  { %12174 = vpow2.f32 %v8266_v60 }
0x37f0   :  { %12176 = vpow2.f32 %v8264_v45 }
0x37f9   :  { %v12175_v42 = vpop.eup %12174 }
0x37fa   :  { %v12177_v9 = vpop.eup %12176  ;;  %v8271_v10 = vsel %vm920_vm7, %v12175_v42, 0.0 }
0x37fb   :  { %8272 = vadd.xlane.f32.xlu0 %v8271_v10  ;;  %v8268_v2 = vsel %vm920_vm7, %v12177_v9, 0.0 }
0x37fc   :  { %8269 = vadd.xlane.f32.xlu1 %v8268_v2 }
0x3862   :  { %v8458_v0 = vpop.xlane.xlu0 %8457 }
0x3863   :  { %v8462_v58 = vsub.f32 %v8448_v52, %v8458_v0 }
0x3865   :  { %v8464_v6 = vmul.f32 1.442695, %v8462_v58 }
0x3866   :  { %v8461_v7 = vpop.xlane.xlu0 %8460 }
0x3867   :  { %12178 = vpow2.f32 %v8464_v6  ;;  %v8463_v8 = vsub.f32 %v8453_v53, %v8461_v7 }
0x3869   :  { %v8466_v11 = vmul.f32 1.442695, %v8463_v8 }
0x386b   :  { %12180 = vpow2.f32 %v8466_v11 }
0x3871   :  { %v12179_v12 = vpop.eup %12178 }
0x3872   :  { %v8468_v13 = vsel %vm920_vm7, %v12179_v12, 0.0 }
0x3873   :  { %8469 = vadd.xlane.f32.xlu1 %v8468_v13 }
0x3875   :  { %v12181_v15 = vpop.eup %12180 }
0x3876   :  { %v8471_v16 = vsel %vm920_vm7, %v12181_v15, 0.0 }
0x3877   :  { %8472 = vadd.xlane.f32.xlu0 %v8471_v16 }
0x3884   :  { %11954 = vrot.lane.b32.xlu1 %v14001_v28, %s12706_s9  ;;  %s14286_s9 = sld [smem:[#allocation62_spill]] }
0x3888   :  { %11964 = vrot.lane.b32.xlu1 %v14001_v28, %s12715_s28  ;;  %v8273_v62 = vpop.xlane.xlu0 %8272 }
0x3889   :  { %v8270_v17 = vpop.xlane.xlu1 %8269 }
0x388a   :  { %12182 = vrcp.f32 %v8270_v17  ;;  %v8166_v1 = vld [vmem:[%s14286_s9 + $0x8] sm:$0xff]  ;;  %v8165_v32 = vld [vmem:[%s14286_s9] sm:$0xff] }
0x388b   :  { %12184 = vrcp.f32 %v8273_v62 }
0x388c   :  { %9010 = vrot.lane.b32.xlu1 %v14011_v29, %s12715_s28 }
0x388d   :  { %11959 = vrot.lane.b32.xlu0 %v14001_v28, %s12708_s12  ;;  %s14287_s12 = sld [smem:[#allocation60_spill]] }
0x3891   :  { %9012 = vrot.lane.b32.xlu0 %v14007_v25, %s12715_s28  ;;  %s14292_s28 = sld [smem:[#allocation57_spill]] }
0x3894   :  { %v12183_v18 = vpop.eup %12182 }
0x3895   :  { %v8276_v23 = vmul.f32 %v12183_v18, %v12177_v9  ;;  %v12185_v61 = vpop.eup %12184 }
0x3896   :  { %v8277_v39 = vmul.f32 %v12185_v61, %v12175_v42 }
0x3897   :  { %11063 = vmatprep.mubr.msk.f32.mxu1 %vm920_vm7, %v8276_v23 }
0x38b0   :  { %8819 = vmax.xlane.f32.xlu1 %v8818_v46  ;;  %8822 = vmax.xlane.f32.xlu0 %v8821_v27 }
0x3900   :  { %v8470_v19 = vpop.xlane.xlu1 %8469 }
0x3901   :  { %12186 = vrcp.f32 %v8470_v19 }
0x3904   :  { %v11955_v34 = vpop.permute.xlu1 %11954  ;;  %v8473_v25 = vpop.xlane.xlu0 %8472 }
0x3905   :  { %v11957_v29 = vunpack.i.h.bf16 %v11955_v34  ;;  %v11956_v26 = vunpack.i.l.bf16 %v11955_v34  ;;  %12188 = vrcp.f32 %v8473_v25 }
0x3907   :  { %v11517_v30 = vpack.c.bf16 %v11957_v29, %v11956_v26 }
0x3908   :  { %v11965_v35 = vpop.permute.xlu1 %11964  ;;  %v11960_v31 = vpop.permute.xlu0 %11959 }
0x3909   :  { %v11967_v21 = vunpack.i.h.bf16 %v11965_v35  ;;  %v11966_v37 = vunpack.i.l.bf16 %v11965_v35  ;;  %v11962_v38 = vunpack.i.h.bf16 %v11960_v31  ;;  %v11961_v4 = vunpack.i.l.bf16 %v11960_v31  ;;  %11518 = vmatprep.subr.bf16.mxu1 %v11517_v30 }
0x390a   :  { %11520 = vmatpush3.bf16.msra.mxu1 %v11517_v30 }
0x390b   :  { %v12187_v5 = vpop.eup %12186  ;;  %v11541_v43 = vpack.c.bf16 %v11967_v21, %v11966_v37  ;;  %v11527_v36 = vpack.c.bf16 %v11962_v38, %v11961_v4  ;;  %v8168_v4 = vld [vmem:[%s14286_s9 + $0x18] sm:$0xff] }
0x390c   :  { %v9011_v44 = vpop.permute.xlu1 %9010  ;;  %v8476_v33 = vmul.f32 %v12187_v5, %v12179_v12  ;;  %v9013_v49 = vpop.permute.xlu0 %9012 }
0x390d   :  { %11064 = vmatmul.mubr.msk.f32.vlgmr.msra.gmra.mrb[60].mxu1 %vm920_vm7, %v8277_v39  ;;  %11528 = vmatprep.subr.bf16.mxu1 %v11527_v36 }
0x390e   :  { %11543 = vmatprep.subr.msk.bf16.mxu0 %vm13189_vm4, %v11541_v43  ;;  %11113 = vmatprep.mubr.msk.f32.mxu0 %vm554_vm0, %v9011_v44 }
0x390f   :  { %v12189_v48 = vpop.eup %12188  ;;  %11530 = vmatpush3.bf16.msra.mxu1 %v11527_v36  ;;  %11077 = vmatprep.mubr.msk.f32.mxu1 %vm920_vm7, %v8476_v33  ;;  %v10077_v33 = vld [vmem:[%s14287_s12] ss:$0 sm:$0xff] }
0x3910   :  { %v8477_v54 = vmul.f32 %v12189_v48, %v12181_v15  ;;  %11546 = vmatpush3.bf16.xpose.msk.msra.mxu0 %vm13189_vm4, %v11541_v43  ;;  %11080 = vmatprep.subr.mxu1 %v8166_v1 }
0x3912   :  { %11078 = vmatmul.mubr.msk.f32.vlgmr.msra.gmra.mrb[62].mxu1 %vm920_vm7, %v8477_v54 }
0x3913   :  { %11081 = vmatpush3.msra.mxu1 %v8166_v1 }
0x3914   :  { %11085 = vmatprep.subr.mxu1 %v8165_v32 }
0x3917   :  { %11114 = vmatmul.mubr.msk.f32.vlgmr.msra.gmra.mrb[68].mxu0 %vm554_vm0, %v9013_v49 }
0x393d   :  { %v8820_v50 = vpop.xlane.xlu1 %8819  ;;  %v8823_v51 = vpop.xlane.xlu0 %8822 }
0x393e   :  { %v8824_v52 = vsub.f32 %v8810_v24, %v8820_v50  ;;  %v8825_v53 = vsub.f32 %v8815_v41, %v8823_v51  ;;  %v8167_v41 = vld [vmem:[%s14286_s9 + $0x10] sm:$0xff] }
0x3940   :  { %v8826_v56 = vmul.f32 1.442695, %v8824_v52  ;;  %v8828_v14 = vmul.f32 1.442695, %v8825_v53 }
0x3942   :  { %12190 = vpow2.f32 %v8826_v56 }
0x3943   :  { %12192 = vpow2.f32 %v8828_v14 }
0x394c   :  { %v12191_v63 = vpop.eup %12190 }
0x394d   :  { %v12193_v55 = vpop.eup %12192  ;;  %v8830_v22 = vsel %vm920_vm7, %v12191_v63, 0.0 }
0x394e   :  { %8831 = vadd.xlane.f32.xlu0 %v8830_v22  ;;  %v8833_v59 = vsel %vm920_vm7, %v12193_v55, 0.0 }
0x394f   :  { %8834 = vadd.xlane.f32.xlu1 %v8833_v59 }
0x3964   :  { %11969 = vrot.lane.b32.xlu0 %v14001_v28, %s12711_s5  ;;  %s14289_s5 = sld [smem:[#allocation74_spill]] }
0x39db   :  { %v8832_v47 = vpop.xlane.xlu0 %8831 }
0x39dc   :  { %v8835_v9 = vpop.xlane.xlu1 %8834  ;;  %12194 = vrcp.f32 %v8832_v47 }
0x39dd   :  { %12196 = vrcp.f32 %v8835_v9  ;;  %v9350_v9 = vld [vmem:[%s14288_s15 + $0x10] sm:$0xff] }
0x39df   :  { %v11970_v45 = vpop.permute.xlu0 %11969 }
0x39e0   :  { %v11065_v60 = vpop.f32.mrb[60].mxu1  ;;  %v11972_v10 = vunpack.i.h.bf16 %v11970_v45  ;;  %v11971_v2 = vunpack.i.l.bf16 %v11970_v45  ;;  %v9349_v45 = vld [vmem:[%s14288_s15 + $0x8] sm:$0xff] }
0x39e1   :  { %v8356_v42 = vpop.f32.mrb[61].mxu1 }
0x39e2   :  { %v11537_v6 = vpack.c.bf16 %v11972_v10, %v11971_v2  ;;  %v9351_v10 = vld [vmem:[%s14288_s15 + $0x18] sm:$0xff] }
0x39e3   :  { %v11555_v2 = vpack.c.bf16 %v9351_v10, %v9350_v9  ;;  %v10086_v9 = vld [vmem:[%s14294_s6] ss:$0 sm:$0xff] }
0x39e5   :  { %v11079_v0 = vpop.f32.mrb[62].mxu1 }
0x39e6   :  { %v8556_v58 = vpop.f32.mrb[63].mxu1  ;;  %v12195_v11 = vpop.eup %12194 }
0x39e7   :  { %11082 = vmatprep.mubr.msk.f32.mxu1 %vm554_vm0, %v8556_v58  ;;  %v12197_v16 = vpop.eup %12196  ;;  %v8838_v17 = vmul.f32 %v12195_v11, %v12191_v63  ;;  %v9443_v58 = vld [vmem:[%s14289_s5 + $0x8] sm:$0xff] }
0x39e8   :  { %11083 = vmatmul.mubr.msk.f32.vlgmr.msra.gmra.mrb[64].mxu1 %vm554_vm0, %v11079_v0  ;;  %v8839_v18 = vmul.f32 %v12197_v16, %v12193_v55  ;;  %v9442_v0 = vld [vmem:[%s14289_s5] sm:$0xff] }
0x39e9   :  { %11086 = vmatpush3.msra.mxu1 %v8165_v32  ;;  %11087 = vmatprep.mubr.msk.f32.mxu1 %vm554_vm0, %v8356_v42 }
0x39ea   :  { %v11115_v7 = vpop.f32.mrb[68].mxu0  ;;  %11538 = vmatprep.subr.bf16.mxu1 %v11537_v6 }
0x39eb   :  { %v9092_v8 = vpop.f32.mrb[69].mxu0  ;;  %v9098_v13 = vadd.f32 %v11115_v7, %v13751_v57  ;;  %v11559_v7 = vpack.c.bf16 %v9443_v58, %v9442_v0 }
0x39ec   :  { %v9093_v12 = vadd.f32 %v9092_v8, %v13754_v3  ;;  %v9445_v8 = vld [vmem:[%s14289_s5 + $0x18] sm:$0xff] }
0x39ed   :  { %v9104_v23 = vsel %vm920_vm7, %v9098_v13, -inf }
0x39ee   :  { %v9101_v15 = vsel %vm920_vm7, %v9093_v12, -inf }
0x39ef   :  { %9102 = vmax.xlane.f32.xlu1 %v9101_v15 }
0x39f0   :  { %11088 = vmatmul.mubr.msk.f32.vlgmr.msra.gmra.mrb[64].mxu1 %vm554_vm0, %v11065_v60  ;;  %v9348_v60 = vld [vmem:[%s14288_s15] sm:$0xff] }
0x39f1   :  { %11540 = vmatpush3.bf16.msra.mxu1 %v11537_v6  ;;  %11101 = vmatprep.mubr.msk.f32.mxu1 %vm920_vm7, %v8838_v17  ;;  %v11551_v42 = vpack.c.bf16 %v9349_v45, %v9348_v60  ;;  %v9444_v6 = vld [vmem:[%s14289_s5 + $0x10] sm:$0xff] }
0x39f2   :  { %11104 = vmatprep.subr.mxu1 %v8167_v41  ;;  %v11563_v11 = vpack.c.bf16 %v9445_v8, %v9444_v6 }
0x39f3   :  { %9105 = vmax.xlane.f32.xlu1 %v9104_v23  ;;  %11552 = vmatprep.subr.bf16.mxu0 %v11551_v42 }
0x39f4   :  { %11102 = vmatmul.mubr.msk.f32.vlgmr.msra.gmra.mrb[66].mxu1 %vm920_vm7, %v8839_v18  ;;  %11554 = vmatpush3.bf16.msra.mxu0 %v11551_v42 }
0x39f5   :  { %11105 = vmatpush3.msra.mxu1 %v8167_v41  ;;  %11556 = vmatprep.subr.bf16.mxu0 %v11555_v2 }
0x39f8   :  { %11558 = vmatpush3.bf16.msra.mxu0 %v11555_v2  ;;  %v10087_v2 = vld [vmem:[%s14295_s23] ss:$0 sm:$0xff] }
0x3a7c   :  { %v9103_v57 = vpop.xlane.xlu1 %9102 }
0x3a7d   :  { %v9107_v3 = vsub.f32 %v9093_v12, %v9103_v57  ;;  %v9446_v12 = vld [vmem:[%s14289_s5 + $0x20] sm:$0xff] }
0x3a7f   :  { %v9109_v27 = vmul.f32 1.442695, %v9107_v3 }
0x3a80   :  { %v9106_v24 = vpop.xlane.xlu1 %9105 }
0x3a81   :  { %v9108_v46 = vsub.f32 %v9098_v13, %v9106_v24  ;;  %v9447_v13 = vld [vmem:[%s14289_s5 + $0x28] sm:$0xff]  ;;  %v10078_v24 = vld [vmem:[%s14290_s29] ss:$0 sm:$0xff] }
0x3a82   :  { %v11567_v15 = vpack.c.bf16 %v9447_v13, %v9446_v12 }
0x3a83   :  { %v9111_v62 = vmul.f32 1.442695, %v9108_v46 }
0x3a85   :  { %12198 = vpow2.f32 %v9111_v62 }
0x3a86   :  { %12200 = vpow2.f32 %v9109_v27 }
0x3a8f   :  { %v12199_v19 = vpop.eup %12198 }
0x3a90   :  { %v9116_v34 = vsel %vm920_vm7, %v12199_v19, 0.0  ;;  %v12201_v25 = vpop.eup %12200 }
0x3a91   :  { %9117 = vadd.xlane.f32.xlu1 %v9116_v34  ;;  %v9113_v29 = vsel %vm920_vm7, %v12201_v25, 0.0 }
0x3a95   :  { %9114 = vadd.xlane.f32.xlu1 %v9113_v29 }
0x3aa6   :  { %11974 = vrot.lane.b32.xlu1 %v14001_v28, %s12714_s25  ;;  %s14291_s25 = sld [smem:[#allocation65_spill]] }
0x3aac   :  { %v10079_v27 = vld [vmem:[%s14291_s25] ss:$0 sm:$0xff] }
0x3ac7   :  { %v11103_v26 = vpop.f32.mrb[66].mxu1 }
0x3ac8   :  { %v8918_v30 = vpop.f32.mrb[67].mxu1 }
0x3ac9   :  { %11106 = vmatprep.mubr.msk.f32.mxu1 %vm554_vm0, %v8918_v30  ;;  %v9448_v30 = vld [vmem:[%s14289_s5 + $0x30] sm:$0xff] }
0x3aca   :  { %11107 = vmatmul.mubr.msk.f32.vlgmr.msra.gmra.mrb[64].mxu1 %vm554_vm0, %v11103_v26 }
0x3b1e   :  { %v9118_v61 = vpop.xlane.xlu1 %9117 }
0x3b1f   :  { %12202 = vrcp.f32 %v9118_v61  ;;  %v9449_v61 = vld [vmem:[%s14289_s5 + $0x38] sm:$0xff] }
0x3b22   :  { %v9115_v35 = vpop.xlane.xlu1 %9114 }
0x3b23   :  { %12204 = vrcp.f32 %v9115_v35  ;;  %v11571_v35 = vpack.c.bf16 %v9449_v61, %v9448_v30 }
0x3b26   :  { %v11975_v31 = vpop.permute.xlu1 %11974 }
0x3b27   :  { %v11977_v21 = vunpack.i.h.bf16 %v11975_v31  ;;  %v11976_v37 = vunpack.i.l.bf16 %v11975_v31  ;;  %v10080_v31 = vld [vmem:[%s14292_s28] ss:$0 sm:$0xff] }
0x3b29   :  { %v11547_v38 = vpack.c.bf16 %v11977_v21, %v11976_v37  ;;  %v12203_v5 = vpop.eup %12202 }
0x3b2a   :  { %v9122_v43 = vmul.f32 %v12203_v5, %v12199_v19 }
0x3b2b   :  { %11548 = vmatprep.subr.bf16.mxu1 %v11547_v38 }
0x3b2c   :  { %11550 = vmatpush3.bf16.msra.mxu1 %v11547_v38 }
0x3b2d   :  { %v12205_v28 = vpop.eup %12204  ;;  %11123 = vmatprep.subr.mxu1 %v8168_v4 }
0x3b2e   :  { %v9121_v39 = vmul.f32 %v12205_v28, %v12201_v25 }
0x3b30   :  { %11120 = vmatprep.mubr.msk.f32.mxu1 %vm920_vm7, %v9121_v39  ;;  %v10083_v39 = vld [vmem:[%s14293_s14] ss:$0 sm:$0xff] }
0x3b31   :  { %11121 = vmatmul.mubr.msk.f32.vlgmr.msra.gmra.mrb[68].mxu1 %vm920_vm7, %v9122_v43 }
0x3b32   :  { %11124 = vmatpush3.msra.mxu1 %v8168_v4 }
0x3b33   :  { %11560 = vmatprep.subr.bf16.mxu1 %v11559_v7 }
0x3c04   :  { %v11122_v36 = vpop.f32.mrb[68].mxu1 }
0x3c05   :  { %v9201_v44 = vpop.f32.mrb[69].mxu1 }
0x3c06   :  { %11125 = vmatprep.mubr.msk.f32.mxu1 %vm554_vm0, %v9201_v44 }
0x3c07   :  { %11126 = vmatmul.mubr.msk.f32.vlgmr.msra.gmra.mrb[64].mxu1 %vm554_vm0, %v11122_v36 }
0x3c08   :  { %11562 = vmatpush3.bf16.msra.mxu1 %v11559_v7 }
0x3c09   :  { %11564 = vmatprep.subr.bf16.mxu1 %v11563_v11 }
0x3c0c   :  { %11566 = vmatpush3.bf16.msra.mxu1 %v11563_v11 }
0x3c0d   :  { %11568 = vmatprep.subr.bf16.mxu1 %v11567_v15 }
0x3c10   :  { %11570 = vmatpush3.bf16.msra.mxu1 %v11567_v15 }
0x3c11   :  { %11572 = vmatprep.subr.bf16.mxu1 %v11571_v35 }
0x3c14   :  { %11574 = vmatpush3.bf16.msra.mxu1 %v11571_v35 }
0x3cda   :  { %v11127_v48 = vpop.f32.mrb[64].mxu1 }
0x3cdb   :  { %v9301_v54 = vadd.f32 %v11127_v48, %v10077_v33  ;;  %v9282_v49 = vpop.f32.mrb[65].mxu1 }
0x3cdc   :  { %v9300_v50 = vadd.f32 %v10077_v33, %v9282_v49 }
0x3cdd   :  { %v9303_v51 = vadd.f32 %v9301_v54, %v13995_v40 }
0x3cde   :  { %v9302_v52 = vadd.f32 %v9300_v50, %v13993_v20 }
0x3cdf   :  { %v9307_v53 = vsel %vm745_vm3, %v9303_v51, 0.0 }
0x3ce0   :  { %9308 = vadd.xlane.f32.xlu1 %v9307_v53  ;;  %v9304_v56 = vsel %vm745_vm3, %v9302_v52, 0.0 }
0x3ce1   :  { %9305 = vadd.xlane.f32.xlu0 %v9304_v56 }
0x3d6d   :  { %v9309_v14 = vpop.xlane.xlu1 %9308 }
0x3d6e   :  { %v9311_v63 = vmul.f32 0.03125, %v9309_v14  ;;  %v9306_v55 = vpop.xlane.xlu0 %9305 }
0x3d6f   :  { %v9310_v22 = vmul.f32 0.03125, %v9306_v55 }
0x3d70   :  { %v9313_v59 = vsub.f32 %v9303_v51, %v9311_v63 }
0x3d71   :  { %v9312_v1 = vsub.f32 %v9302_v52, %v9310_v22 }
0x3d72   :  { %v9315_v40 = vmul.f32 %v9313_v59, %v9313_v59 }
0x3d73   :  { %v9314_v32 = vmul.f32 %v9312_v1, %v9312_v1 }
0x3d74   :  { %v9319_v47 = vsel %vm745_vm3, %v9315_v40, 0.0 }
0x3d75   :  { %v9316_v20 = vsel %vm745_vm3, %v9314_v32, 0.0 }
0x3d76   :  { %9317 = vadd.xlane.f32.xlu0 %v9316_v20 }
0x3d7a   :  { %9320 = vadd.xlane.f32.xlu0 %v9319_v47 }
0x3e03   :  { %v9318_v16 = vpop.xlane.xlu0 %9317 }
0x3e04   :  { %v9322_v17 = vmul.f32 0.03125, %v9318_v16 }
0x3e06   :  { %v9324_v18 = vadd.f32 1e-05, %v9322_v17 }
0x3e07   :  { %v9321_v23 = vpop.xlane.xlu0 %9320 }
0x3e08   :  { %12206 = vrsqrt.f32 %v9324_v18  ;;  %v9323_v41 = vmul.f32 0.03125, %v9321_v23 }
0x3e0a   :  { %v9325_v57 = vadd.f32 1e-05, %v9323_v41 }
0x3e0c   :  { %12208 = vrsqrt.f32 %v9325_v57 }
0x3e12   :  { %v12207_v3 = vpop.eup %12206 }
0x3e13   :  { %v9328_v46 = vmul.f32 %v12207_v3, %v9312_v1 }
0x3e15   :  { %v9337_v62 = vmul.f32 %v10078_v24, %v9328_v46 }
0x3e16   :  { %v12209_v19 = vpop.eup %12208 }
0x3e17   :  { %v9329_v34 = vmul.f32 %v12209_v19, %v9313_v59  ;;  %v9346_v25 = vadd.f32 %v10079_v27, %v9337_v62  ;;  %v9629_v62 = vld [vmem:[%s14296_s21 + $0x8] sm:$0xff] }
0x3e19   :  { %v9338_v29 = vmul.f32 %v10078_v24, %v9329_v34  ;;  %11136 = vmatprep.mubr.msk.f32.mxu0 %vm745_vm3, %v9346_v25  ;;  %v9630_v34 = vld [vmem:[%s14296_s21 + $0x10] sm:$0xff] }
0x3e1b   :  { %v9347_v26 = vadd.f32 %v10079_v27, %v9338_v29  ;;  %v9628_v27 = vld [vmem:[%s14296_s21] sm:$0xff] }
0x3e1c   :  { %v11575_v19 = vpack.c.bf16 %v9629_v62, %v9628_v27 }
0x3e1d   :  { %11137 = vmatmul.mubr.msk.f32.vlgmr.msra.gmra.mrb[70].mxu0 %vm745_vm3, %v9347_v26 }
0x3e1e   :  { %11576 = vmatprep.subr.bf16.mxu0 %v11575_v19 }
0x3e1f   :  { %11578 = vmatpush3.bf16.msra.mxu0 %v11575_v19 }
0x3ef0   :  { %v11138_v21 = vpop.f32.mrb[70].mxu0 }
0x3ef1   :  { %v9437_v37 = vadd.f32 %v11138_v21, %v10080_v31  ;;  %v9431_v38 = vpop.f32.mrb[71].mxu0 }
0x3ef2   :  { %v9432_v4 = vadd.f32 %v10080_v31, %v9431_v38  ;;  %v10088_v38 = vld [vmem:[#allocation3] ss:$0 sm:$0xff] }
0x3ef3   :  { %v9441_v28 = vmax.f32 %v9437_v37, 0.0 }
0x3ef4   :  { %v9440_v5 = vmax.f32 %v9432_v4, 0.0 }
0x3ef6   :  { %11155 = vmatprep.mubr.msk.f32.mxu1 %vm2123_vm8, %v9440_v5  ;;  %v10089_v5 = vld [vmem:[%s14297_s8] ss:$0 sm:$0xff] }
0x3ef7   :  { %11156 = vmatmul.mubr.msk.f32.vlgmr.msra.gmra.mrb[70].mxu1 %vm2123_vm8, %v9441_v28 }
0x3fca   :  { %v11157_v43 = vpop.f32.mrb[70].mxu1 }
0x3fcb   :  { %v9529_v36 = vpop.f32.mrb[71].mxu1  ;;  %v9535_v44 = vadd.f32 %v11157_v43, %v10083_v39 }
0x3fcc   :  { %v9530_v33 = vadd.f32 %v10083_v39, %v9529_v36 }
0x3fcd   :  { %v9539_v54 = vadd.f32 %v9535_v44, %v9347_v26 }
0x3fce   :  { %v9538_v48 = vadd.f32 %v9530_v33, %v9346_v25  ;;  %v9631_v25 = vld [vmem:[%s14296_s21 + $0x18] sm:$0xff] }
0x3fcf   :  { %v9543_v50 = vsel %vm745_vm3, %v9539_v54, 0.0  ;;  %v11579_v29 = vpack.c.bf16 %v9631_v25, %v9630_v34 }
0x3fd0   :  { %v9540_v49 = vsel %vm745_vm3, %v9538_v48, 0.0 }
0x3fd1   :  { %9541 = vadd.xlane.f32.xlu0 %v9540_v49  ;;  %11580 = vmatprep.subr.bf16.mxu0 %v11579_v29 }
0x3fd2   :  { %11582 = vmatpush3.bf16.msra.mxu0 %v11579_v29 }
0x3fd5   :  { %9544 = vadd.xlane.f32.xlu0 %v9543_v50 }
0x405e   :  { %v9542_v51 = vpop.xlane.xlu0 %9541 }
0x405f   :  { %v9546_v52 = vmul.f32 0.03125, %v9542_v51 }
0x4061   :  { %v9548_v53 = vsub.f32 %v9538_v48, %v9546_v52  ;;  %v10090_v48 = vld [vmem:[#allocation2] ss:$0 sm:$0xff] }
0x4062   :  { %v9545_v56 = vpop.xlane.xlu0 %9544 }
0x4063   :  { %v9547_v14 = vmul.f32 0.03125, %v9545_v56  ;;  %v9550_v63 = vmul.f32 %v9548_v53, %v9548_v53 }
0x4065   :  { %v9549_v55 = vsub.f32 %v9539_v54, %v9547_v14  ;;  %v9552_v22 = vsel %vm745_vm3, %v9550_v63, 0.0 }
0x4066   :  { %9553 = vadd.xlane.f32.xlu0 %v9552_v22 }
0x4067   :  { %v9551_v59 = vmul.f32 %v9549_v55, %v9549_v55 }
0x4069   :  { %v9555_v1 = vsel %vm745_vm3, %v9551_v59, 0.0 }
0x406a   :  { %9556 = vadd.xlane.f32.xlu1 %v9555_v1 }
0x40f3   :  { %v9554_v32 = vpop.xlane.xlu0 %9553 }
0x40f4   :  { %v9558_v20 = vmul.f32 0.03125, %v9554_v32 }
0x40f6   :  { %v9560_v40 = vadd.f32 1e-05, %v9558_v20 }
0x40f7   :  { %v9557_v47 = vpop.xlane.xlu1 %9556 }
0x40f8   :  { %12210 = vrsqrt.f32 %v9560_v40  ;;  %v9559_v60 = vmul.f32 0.03125, %v9557_v47 }
0x40fa   :  { %v9561_v45 = vadd.f32 1e-05, %v9559_v60 }
0x40fc   :  { %12212 = vrsqrt.f32 %v9561_v45 }
0x4102   :  { %v12211_v42 = vpop.eup %12210 }
0x4103   :  { %v9564_v10 = vmul.f32 %v12211_v42, %v9548_v53 }
0x4105   :  { %v9573_v0 = vmul.f32 %v10086_v9, %v9564_v10 }
0x4106   :  { %v12213_v58 = vpop.eup %12212 }
0x4107   :  { %v9582_v6 = vadd.f32 %v10087_v2, %v9573_v0  ;;  %v9565_v7 = vmul.f32 %v12213_v58, %v9549_v55 }
0x4109   :  { %v9584_v8 = vsel %vm745_vm3, %v9582_v6, 0.0  ;;  %v9574_v11 = vmul.f32 %v10086_v9, %v9565_v7 }
0x410a   :  { %9585 = vadd.xlane.f32.xlu0 %v9584_v8 }
0x410b   :  { %v9583_v12 = vadd.f32 %v10087_v2, %v9574_v11 }
0x410d   :  { %v9587_v13 = vsel %vm745_vm3, %v9583_v12, 0.0 }
0x410e   :  { %9588 = vadd.xlane.f32.xlu1 %v9587_v13 }
0x4197   :  { %v9586_v15 = vpop.xlane.xlu0 %9585 }
0x4198   :  { %v9590_v16 = vmul.f32 0.03125, %v9586_v15 }
0x419a   :  { %v9592_v17 = vsub.f32 %v9582_v6, %v9590_v16 }
0x419b   :  { %v9589_v18 = vpop.xlane.xlu1 %9588 }
0x419c   :  { %v9591_v23 = vmul.f32 0.03125, %v9589_v18  ;;  %v9594_v41 = vmul.f32 %v9592_v17, %v9592_v17 }
0x419e   :  { %v9593_v57 = vsub.f32 %v9583_v12, %v9591_v23  ;;  %v9596_v3 = vsel %vm745_vm3, %v9594_v41, 0.0 }
0x419f   :  { %9597 = vadd.xlane.f32.xlu0 %v9596_v3 }
0x41a0   :  { %v9595_v24 = vmul.f32 %v9593_v57, %v9593_v57 }
0x41a2   :  { %v9599_v46 = vsel %vm745_vm3, %v9595_v24, 0.0 }
0x41a3   :  { %9600 = vadd.xlane.f32.xlu1 %v9599_v46 }
0x422c   :  { %v9598_v26 = vpop.xlane.xlu0 %9597 }
0x422d   :  { %v9602_v30 = vmul.f32 0.03125, %v9598_v26 }
0x422f   :  { %v9604_v61 = vadd.f32 1e-05, %v9602_v30 }
0x4230   :  { %v9601_v35 = vpop.xlane.xlu1 %9600 }
0x4231   :  { %12214 = vrsqrt.f32 %v9604_v61  ;;  %v9603_v31 = vmul.f32 0.03125, %v9601_v35 }
0x4233   :  { %v9605_v21 = vadd.f32 1e-05, %v9603_v31 }
0x4235   :  { %12216 = vrsqrt.f32 %v9605_v21 }
0x423b   :  { %v12215_v37 = vpop.eup %12214 }
0x423c   :  { %v9608_v4 = vmul.f32 %v12215_v37, %v9592_v17 }
0x423e   :  { %v9617_v28 = vmul.f32 %v10088_v38, %v9608_v4 }
0x423f   :  { %v12217_v39 = vpop.eup %12216 }
0x4240   :  { %v9609_v43 = vmul.f32 %v12217_v39, %v9593_v57  ;;  %v9626_v36 = vadd.f32 %v10089_v5, %v9617_v28 }
0x4242   :  { %v9618_v44 = vmul.f32 %v10088_v38, %v9609_v43  ;;  %11166 = vmatprep.mubr.msk.f32.mxu0 %vm745_vm3, %v9626_v36 }
0x4244   :  { %v9627_v33 = vadd.f32 %v10089_v5, %v9618_v44 }
0x4246   :  { %11167 = vmatmul.mubr.msk.f32.vlgmr.msra.gmra.mrb[72].mxu0 %vm745_vm3, %v9627_v33 }
0x4319   :  { %v11168_v54 = vpop.f32.mrb[72].mxu0 }
0x431a   :  { %v9717_v49 = vadd.f32 %v11168_v54, %v10090_v48  ;;  %v9711_v50 = vpop.f32.mrb[73].mxu0 }
0x431b   :  { %v9712_v51 = vadd.f32 %v10090_v48, %v9711_v50 }
0x431c   :  { %9722 = vst.msk [vmem:[%s13104_s24 + $0x8] sm:$0xff] %vm9720_vm13, %v9717_v49 }
0x431d   :  { %9721 = vst.msk [vmem:[%s13104_s24] sm:$0xff] %vm9720_vm13, %v9712_v51 }
0x431e   :  { %9727 = vsyncpa [#allocation4], 1 }
0x431f   :  { %9728 = vsyncpa [#allocation6], 1 }
0x4320   :  { %9729 = vsyncpa [#allocation9], 1 }
0x4321   :  { %9730 = vsyncpa [#allocation12], 1 }
0x4322   :  { %9731 = vsyncpa [#allocation15], 1 }
0x4323   :  { %9732 = vsyncpa [#allocation18], 1 }
0x4324   :  { %9733 = vsyncpa [#allocation21], 1 }
0x4325   :  { %9734 = vsyncpa [#allocation24], 1 }
0x4326   :  { %9735 = vsyncpa [#allocation27], 1 }

</bundles_post_ra>
